<compile_context>
chip_gen: v6e
topology: v6e:2x2x1
jax: 0.10.0
libtpu: 0.0.40
codegen_flags: <defaults>
</compile_context>

<pallas_src>
import functools

import jax
import jax.numpy as jnp
from jax import lax
from jax.experimental import pallas as pl
from jax.experimental.pallas import tpu as pltpu

VMEM_LIMIT = 40 * 1024 * 1024  # worst layer needs ~16 MiB double-buffered


def _cp(c):
    """Channel count rounded up to a multiple of 16 (bf16 sublane tile)."""
    return max(16, ((c + 15) // 16) * 16)


# ----------------------------------------------------------------------------
# Fused Conv2d (valid padding, optional stride) + folded-BN bias + activation
# Activations: (1, H*Cp_in, W) bf16 block -> (1, (OH+2p)*Cp_out, OW+2p) bf16.
# ----------------------------------------------------------------------------
def _conv_kernel(*refs, KH, KW, cp_in, cp_out, stride, act, pad_out, has_res):
    if has_res:
        x_ref, w_ref, b_ref, res_ref, out_ref = refs
    else:
        x_ref, w_ref, b_ref, out_ref = refs
        res_ref = None

    W_in = x_ref.shape[2]
    H_in = x_ref.shape[1] // cp_in
    OW = (W_in - KW) // stride + 1
    OH = (H_in - KH) // stride + 1
    K = KH * cp_in
    out_dtype = out_ref.dtype

    # Hoisted out of the row loop (JAX does not CSE broadcast_in_dim).
    bias_b = jnp.broadcast_to(b_ref[...], (cp_out, OW)).astype(jnp.float32)

    if stride > 1:
        # small column-selection matrices (only used by the tiny strided conv6)
        w_iota = lax.broadcasted_iota(jnp.int32, (W_in, OW), 0)
        ow_iota = lax.broadcasted_iota(jnp.int32, (W_in, OW), 1)
        sels = [(w_iota == stride * ow_iota + i).astype(jnp.float32)
                for i in range(KW)]

    if pad_out:
        zslab = jnp.zeros((cp_out, OW + 2), out_dtype)
        # top / bottom zero border row-slabs (static offsets)
        out_ref[0, pl.ds(0, cp_out), :] = zslab
        out_ref[0, pl.ds((OH + 1) * cp_out, cp_out), :] = zslab

    def body(oh, carry):
        base = pl.multiple_of(stride * oh * cp_in, 16)
        acc = jnp.zeros((cp_out, OW), jnp.float32)
        if stride == 1:
            for i in range(KW):
                # (K, OW) slab: KH input rows x Cp_in channels, lane offset i.
                rhs = x_ref[0, pl.ds(base, K), pl.ds(i, OW)]
                acc = acc + jnp.dot(w_ref[i], rhs,
                                    preferred_element_type=jnp.float32)
        else:
            patch = x_ref[0, pl.ds(base, K), :]              # (K, W_in)
            for i in range(KW):
                full = jnp.dot(w_ref[i], patch,
                               preferred_element_type=jnp.float32)
                acc = acc + jnp.dot(full, sels[i],
                                    preferred_element_type=jnp.float32)

        y = acc + bias_b
        if act == "relu":
            y = jnp.maximum(y, 0.0)
        elif act == "ptlu":                      # PTLU(T=3) == hardtanh(-3, 3)
            y = jnp.clip(y, -3.0, 3.0)
        elif act == "residual_relu":             # relu(residual - conv_bn(x))
            roff = pl.multiple_of((oh + 1) * cp_out, 16)
            res = res_ref[0, pl.ds(roff, cp_out),
                          pl.ds(1, OW)].astype(jnp.float32)
            y = jnp.maximum(res - y, 0.0)
        y = y.astype(out_dtype)

        if pad_out:
            row = pl.multiple_of((oh + 1) * cp_out, 16)
            out_ref[0, pl.ds(row, cp_out), :] = zslab          # zero borders
            out_ref[0, pl.ds(row, cp_out), pl.ds(1, OW)] = y   # interior
        else:
            row = pl.multiple_of(oh * cp_out, 16)
            out_ref[0, pl.ds(row, cp_out), :] = y
        return carry

    lax.fori_loop(0, OH, body, 0)


def conv_bn_act(x, layer, *, act="relu", stride=1, residual=None, pad_out=0):
    w4 = layer["w"]                       # (KW, cp_out, KH, cp_in) bf16
    KW, cpo, KH, cpi = w4.shape
    wk = w4.reshape(KW, cpo, KH * cpi)
    bias = layer["bias"]                  # (cp_out, 1) f32

    N = x.shape[0]
    H_in = x.shape[1] // cpi
    W_in = x.shape[2]
    OH = (H_in - KH) // stride + 1
    OW = (W_in - KW) // stride + 1
    oh_t = OH + 2 * pad_out
    ow_t = OW + 2 * pad_out

    kernel = functools.partial(
        _conv_kernel, KH=KH, KW=KW, cp_in=cpi, cp_out=cpo, stride=stride,
        act=act, pad_out=pad_out, has_res=residual is not None)

    in_specs = [
        pl.BlockSpec((1, H_in * cpi, W_in), lambda n: (n, 0, 0)),
        pl.BlockSpec((KW, cpo, KH * cpi), lambda n: (0, 0, 0)),
        pl.BlockSpec((cpo, 1), lambda n: (0, 0)),
    ]
    args = [x, wk, bias]
    if residual is not None:
        rh, rw = residual.shape[1], residual.shape[2]
        in_specs.append(pl.BlockSpec((1, rh, rw), lambda n: (n, 0, 0)))
        args.append(residual)

    return pl.pallas_call(
        kernel,
        out_shape=jax.ShapeDtypeStruct((N, oh_t * cpo, ow_t), jnp.bfloat16),
        grid=(N,),
        in_specs=in_specs,
        out_specs=pl.BlockSpec((1, oh_t * cpo, ow_t), lambda n: (n, 0, 0)),
        compiler_params=pltpu.CompilerParams(
            dimension_semantics=("parallel",),
            vmem_limit_bytes=VMEM_LIMIT),
    )(*args)


# ----------------------------------------------------------------------------
# AvgPool2d (window k, stride s, no input padding) — matches torch.nn.AvgPool2d
# Optionally writes a zero-padded output (pad=1) for the following conv.
# ----------------------------------------------------------------------------
def _pool_kernel(x_ref, out_ref, *, cp, k, stride, pad_out):
    W_in = x_ref.shape[2]
    H_in = x_ref.shape[1] // cp
    OW = (W_in - k) // stride + 1
    OH = (H_in - k) // stride + 1
    out_dtype = out_ref.dtype

    w_iota = lax.broadcasted_iota(jnp.int32, (W_in, OW), 0)
    ow_iota = lax.broadcasted_iota(jnp.int32, (W_in, OW), 1)
    P = ((w_iota >= stride * ow_iota) &
         (w_iota < stride * ow_iota + k)).astype(jnp.float32)
    inv = 1.0 / float(k * k)

    if pad_out:
        zslab = jnp.zeros((cp, OW + 2), out_dtype)
        out_ref[0, pl.ds(0, cp), :] = zslab
        out_ref[0, pl.ds((OH + 1) * cp, cp), :] = zslab

    def body(oh, carry):
        rows = jnp.zeros((cp, W_in), jnp.float32)
        for dh in range(k):
            off = pl.multiple_of((stride * oh + dh) * cp, 16)
            rows = rows + x_ref[0, pl.ds(off, cp), :].astype(jnp.float32)
        pooled = (jnp.dot(rows, P, preferred_element_type=jnp.float32)
                  * inv).astype(out_dtype)
        if pad_out:
            row = pl.multiple_of((oh + 1) * cp, 16)
            out_ref[0, pl.ds(row, cp), :] = zslab
            out_ref[0, pl.ds(row, cp), pl.ds(1, OW)] = pooled
        else:
            row = pl.multiple_of(oh * cp, 16)
            out_ref[0, pl.ds(row, cp), :] = pooled
        return carry

    lax.fori_loop(0, OH, body, 0)


def avg_pool(x, *, cp, k, stride, pad_out=0):
    N = x.shape[0]
    H_in = x.shape[1] // cp
    W_in = x.shape[2]
    OH = (H_in - k) // stride + 1
    OW = (W_in - k) // stride + 1
    oh_t = OH + 2 * pad_out
    ow_t = OW + 2 * pad_out
    kernel = functools.partial(_pool_kernel, cp=cp, k=k, stride=stride,
                               pad_out=pad_out)
    return pl.pallas_call(
        kernel,
        out_shape=jax.ShapeDtypeStruct((N, oh_t * cp, ow_t), jnp.bfloat16),
        grid=(N,),
        in_specs=[pl.BlockSpec((1, H_in * cp, W_in), lambda n: (n, 0, 0))],
        out_specs=pl.BlockSpec((1, oh_t * cp, ow_t), lambda n: (n, 0, 0)),
        compiler_params=pltpu.CompilerParams(
            dimension_semantics=("parallel",),
            vmem_limit_bytes=VMEM_LIMIT),
    )(x)


# ----------------------------------------------------------------------------
# Linear + softmax (dim=1)
# ----------------------------------------------------------------------------
def _fc_softmax_kernel(x_ref, w_ref, b_ref, out_ref):
    logits = jnp.dot(x_ref[...], w_ref[...],
                     preferred_element_type=jnp.float32) + b_ref[...]
    m = jnp.max(logits, axis=1, keepdims=True)
    e = jnp.exp(logits - m)
    out_ref[...] = e / jnp.sum(e, axis=1, keepdims=True)


def fc_softmax(x, w, b):
    N, _ = x.shape
    Dout = w.shape[1]
    return pl.pallas_call(
        _fc_softmax_kernel,
        out_shape=jax.ShapeDtypeStruct((N, Dout), jnp.float32),
    )(x, w, b)


# ----------------------------------------------------------------------------
# Parameter construction (deterministic, synthetic) + packing
# ----------------------------------------------------------------------------
def pack_conv(w, b, gamma, beta, mean, var, eps=1e-5):
    """Fold conv bias + eval-mode BN into (scale-folded weights, bias)."""
    cout, cin, KH, KW = w.shape
    cpo, cpi = _cp(cout), _cp(cin)
    scale = gamma / jnp.sqrt(var + eps)
    bias_eff = (b - mean) * scale + beta
    w_folded = w * scale[:, None, None, None]
    # (cout, cin, KH, KW) -> (KW, cout, KH, cin), zero-padded channel dims.
    wt = jnp.transpose(w_folded, (3, 0, 2, 1))
    w4 = jnp.zeros((KW, cpo, KH, cpi), jnp.float32).at[:, :cout, :, :cin].set(wt)
    bias_p = jnp.zeros((cpo, 1), jnp.float32).at[:cout, 0].set(bias_eff)
    return {"w": w4.astype(jnp.bfloat16), "bias": bias_p}


def _make_conv_bn(key, cin, cout, ksize):
    k1, k2, k3, k4 = jax.random.split(key, 4)
    w = 0.05 * jax.random.normal(k1, (cout, cin, ksize, ksize), jnp.float32)
    b = 0.01 * jax.random.normal(k2, (cout,), jnp.float32)
    gamma = 1.0 + 0.01 * jax.random.normal(k3, (cout,), jnp.float32)
    beta = 0.01 * jax.random.normal(k4, (cout,), jnp.float32)
    mean = jnp.zeros((cout,), jnp.float32)
    var = jnp.ones((cout,), jnp.float32)
    return pack_conv(w, b, gamma, beta, mean, var)


def make_params(key):
    keys = jax.random.split(key, 16)
    P = {}
    P["resconv"] = _make_conv_bn(keys[0], 1, 34, 5)
    P["conv1"] = _make_conv_bn(keys[1], 34, 34, 3)
    P["conv2"] = _make_conv_bn(keys[2], 34, 34, 3)
    P["conv3"] = _make_conv_bn(keys[3], 34, 34, 3)
    P["rb1c1"] = _make_conv_bn(keys[4], 34, 34, 3)
    P["rb1c2"] = _make_conv_bn(keys[5], 34, 34, 3)
    P["rb2c1"] = _make_conv_bn(keys[6], 34, 34, 3)
    P["rb2c2"] = _make_conv_bn(keys[7], 34, 34, 3)
    P["conv4"] = _make_conv_bn(keys[8], 34, 32, 3)
    P["conv5"] = _make_conv_bn(keys[9], 32, 16, 3)
    P["conv6"] = _make_conv_bn(keys[10], 16, 16, 3)
    P["fc_w"] = 0.05 * jax.random.normal(keys[11], (16 * 3 * 3, 3), jnp.float32)
    P["fc_b"] = (0.01 * jax.random.normal(keys[12], (3,), jnp.float32)
                 ).reshape(1, 3)
    return P


# ----------------------------------------------------------------------------
# Full forward pass (glue: layout prep / final flatten only)
# ----------------------------------------------------------------------------
def to_kernel_layout(x, cpi):
    """(N, C, H, W) f32 -> (N, H*cpi, W) bf16 with channels zero-padded."""
    N, C, H, W = x.shape
    xt = jnp.transpose(x, (0, 2, 1, 3)).astype(jnp.bfloat16)   # (N, H, C, W)
    xp = jnp.zeros((N, H, cpi, W), jnp.bfloat16).at[:, :, :C, :].set(xt)
    return xp.reshape(N, H * cpi, W)


def forward(x, P):
    cpi0 = P["resconv"]["w"].shape[3]
    x = to_kernel_layout(x, cpi0)                               # 208x208, Cp=16

    x = conv_bn_act(x, P["resconv"], act="ptlu")                # -> 204
    x = conv_bn_act(x, P["conv1"], act="relu")                  # -> 202
    x = conv_bn_act(x, P["conv2"], act="relu")                  # -> 200
    x = conv_bn_act(x, P["conv3"], act="relu")                  # -> 198

    cp34 = P["conv3"]["bias"].shape[0]                          # 48
    x = avg_pool(x, cp=cp34, k=2, stride=2, pad_out=1)          # -> 99 (padded)

    # ResidualBlock 1: out = relu(x - convbn2(relu(convbn1(x))))
    r = x
    h = conv_bn_act(x, P["rb1c1"], act="relu", pad_out=1)       # 99 (padded)
    x = conv_bn_act(h, P["rb1c2"], act="residual_relu", residual=r)  # 99
    x = avg_pool(x, cp=cp34, k=3, stride=2, pad_out=1)          # -> 49 (padded)

    # ResidualBlock 2
    r = x
    h = conv_bn_act(x, P["rb2c1"], act="relu", pad_out=1)
    x = conv_bn_act(h, P["rb2c2"], act="residual_relu", residual=r)  # 49
    x = avg_pool(x, cp=cp34, k=3, stride=2)                     # -> 24

    x = conv_bn_act(x, P["conv4"], act="relu")                  # -> 22, Cp=32
    cp32 = P["conv4"]["bias"].shape[0]
    x = avg_pool(x, cp=cp32, k=2, stride=2)                     # -> 11
    x = conv_bn_act(x, P["conv5"], act="relu")                  # -> 9, Cp=16
    x = conv_bn_act(x, P["conv6"], act="relu", stride=3)        # -> 3, Cp=16

    # (N, 3*16, 3) row=h*16+c  ->  torch .view(-1, 16*3*3) order (c, h, w)
    n = x.shape[0]
    t = x.reshape(n, 3, 16, 3)
    t = jnp.transpose(t, (0, 2, 1, 3)).reshape(n, 16 * 3 * 3)
    return fc_softmax(t.astype(jnp.float32), P["fc_w"], P["fc_b"])


if __name__ == "__main__":
    key = jax.random.PRNGKey(0)
    kx, kp = jax.random.split(key)
    # Smallest input consistent with the module's final view(-1, 16*3*3):
    # 208x208 single-channel images.
    x = jax.random.normal(kx, (2, 1, 208, 208), jnp.float32)
    params = make_params(kp)

    out = jax.jit(forward)(x, params)
    out = jax.block_until_ready(out)

    assert out.shape == (2, 3), out.shape
    assert bool(jnp.all(jnp.isfinite(out)))
    assert bool(jnp.allclose(jnp.sum(out, axis=1), 1.0, atol=1e-5))
    print("KERNEL_OK")
</pallas_src>

<mosaic_0001>
module attributes {stable_mosaic.version = 11 : i64} {
  func.func @_conv_kernel(%arg0: i32, %arg1: memref<1x3328x208xbf16, #tpu.memory_space<vmem>>, %arg2: memref<5x48x80xbf16, #tpu.memory_space<vmem>>, %arg3: memref<48x1xf32, #tpu.memory_space<vmem>>, %arg4: memref<1x9792x204xbf16, #tpu.memory_space<vmem>>) attributes {dimension_semantics = [#tpu.dimension_semantics<parallel>], iteration_bounds = array<i64: 2>, scalar_prefetch = 0 : i64, scratch_operands = 0 : i64, tpu.core_type = #tpu.core_type<tc>, window_params = [{transform_indices = @transform_0, window_bounds = array<i64: 1, 3328, 208>}, {pipeline_mode = #tpu.pipeline_mode<synchronous>, transform_indices = @transform_1, window_bounds = array<i64: 5, 48, 80>}, {pipeline_mode = #tpu.pipeline_mode<synchronous>, transform_indices = @transform_2, window_bounds = array<i64: 48, 1>}, {transform_indices = @transform_3, window_bounds = array<i64: 1, 9792, 204>}]} {
    %c0 = arith.constant 0 : index
    %c0_0 = arith.constant 0 : index
    %0 = vector.load %arg3[%c0, %c0_0] : memref<48x1xf32, #tpu.memory_space<vmem>>, vector<48x1xf32>
    %1 = vector.shape_cast %0 : vector<48x1xf32> to vector<48x1xf32>
    %2 = vector.broadcast %1 : vector<48x1xf32> to vector<48x204xf32>
    %c0_i32 = arith.constant 0 : i32
    %c204_i32 = arith.constant 204 : i32
    %3 = arith.addi %c0_i32, %c204_i32 : i32
    %c1_i32 = arith.constant 1 : i32
    scf.for %arg5 = %c0_i32 to %3 step %c1_i32  : i32 {
      %c1_i32_2 = arith.constant 1 : i32
      %4 = arith.muli %c1_i32_2, %arg5 : i32
      %c16_i32 = arith.constant 16 : i32
      %5 = arith.muli %4, %c16_i32 : i32
      %6 = tpu.assume_multiple %5, 16 : i32
      %cst = arith.constant 0.000000e+00 : f32
      %7 = vector.broadcast %cst : f32 to vector<48x204xf32>
      %c0_3 = arith.constant 0 : index
      %8 = arith.index_cast %6 : i32 to index
      %c0_4 = arith.constant 0 : index
      %9 = vector.load %arg1[%c0_3, %8, %c0_4] : memref<1x3328x208xbf16, #tpu.memory_space<vmem>>, vector<1x80x204xbf16>
      %10 = vector.shape_cast %9 : vector<1x80x204xbf16> to vector<80x204xbf16>
      %c0_5 = arith.constant 0 : index
      %c0_6 = arith.constant 0 : index
      %c0_7 = arith.constant 0 : index
      %11 = vector.load %arg2[%c0_5, %c0_6, %c0_7] : memref<5x48x80xbf16, #tpu.memory_space<vmem>>, vector<1x48x80xbf16>
      %12 = vector.shape_cast %11 : vector<1x48x80xbf16> to vector<48x80xbf16>
      %cst_8 = arith.constant dense<0.000000e+00> : vector<48x204xf32>
      %13 = tpu.matmul %12, %10, %cst_8 {dimension_numbers = #tpu.dot_dimension_numbers<[1], [0], [0], [1], [0, 0, 1, 1], [], []>} : vector<48x80xbf16>, vector<80x204xbf16>, vector<48x204xf32> -> vector<48x204xf32>
      %14 = arith.addf %7, %13 : vector<48x204xf32>
      %c0_9 = arith.constant 0 : index
      %15 = arith.index_cast %6 : i32 to index
      %c1 = arith.constant 1 : index
      %16 = vector.load %arg1[%c0_9, %15, %c1] : memref<1x3328x208xbf16, #tpu.memory_space<vmem>>, vector<1x80x204xbf16>
      %17 = vector.shape_cast %16 : vector<1x80x204xbf16> to vector<80x204xbf16>
      %c1_10 = arith.constant 1 : index
      %c0_11 = arith.constant 0 : index
      %c0_12 = arith.constant 0 : index
      %18 = vector.load %arg2[%c1_10, %c0_11, %c0_12] : memref<5x48x80xbf16, #tpu.memory_space<vmem>>, vector<1x48x80xbf16>
      %19 = vector.shape_cast %18 : vector<1x48x80xbf16> to vector<48x80xbf16>
      %cst_13 = arith.constant dense<0.000000e+00> : vector<48x204xf32>
      %20 = tpu.matmul %19, %17, %cst_13 {dimension_numbers = #tpu.dot_dimension_numbers<[1], [0], [0], [1], [0, 0, 1, 1], [], []>} : vector<48x80xbf16>, vector<80x204xbf16>, vector<48x204xf32> -> vector<48x204xf32>
      %21 = arith.addf %14, %20 : vector<48x204xf32>
      %c0_14 = arith.constant 0 : index
      %22 = arith.index_cast %6 : i32 to index
      %c2 = arith.constant 2 : index
      %23 = vector.load %arg1[%c0_14, %22, %c2] : memref<1x3328x208xbf16, #tpu.memory_space<vmem>>, vector<1x80x204xbf16>
      %24 = vector.shape_cast %23 : vector<1x80x204xbf16> to vector<80x204xbf16>
      %c2_15 = arith.constant 2 : index
      %c0_16 = arith.constant 0 : index
      %c0_17 = arith.constant 0 : index
      %25 = vector.load %arg2[%c2_15, %c0_16, %c0_17] : memref<5x48x80xbf16, #tpu.memory_space<vmem>>, vector<1x48x80xbf16>
      %26 = vector.shape_cast %25 : vector<1x48x80xbf16> to vector<48x80xbf16>
      %cst_18 = arith.constant dense<0.000000e+00> : vector<48x204xf32>
      %27 = tpu.matmul %26, %24, %cst_18 {dimension_numbers = #tpu.dot_dimension_numbers<[1], [0], [0], [1], [0, 0, 1, 1], [], []>} : vector<48x80xbf16>, vector<80x204xbf16>, vector<48x204xf32> -> vector<48x204xf32>
      %28 = arith.addf %21, %27 : vector<48x204xf32>
      %c0_19 = arith.constant 0 : index
      %29 = arith.index_cast %6 : i32 to index
      %c3 = arith.constant 3 : index
      %30 = vector.load %arg1[%c0_19, %29, %c3] : memref<1x3328x208xbf16, #tpu.memory_space<vmem>>, vector<1x80x204xbf16>
      %31 = vector.shape_cast %30 : vector<1x80x204xbf16> to vector<80x204xbf16>
      %c3_20 = arith.constant 3 : index
      %c0_21 = arith.constant 0 : index
      %c0_22 = arith.constant 0 : index
      %32 = vector.load %arg2[%c3_20, %c0_21, %c0_22] : memref<5x48x80xbf16, #tpu.memory_space<vmem>>, vector<1x48x80xbf16>
      %33 = vector.shape_cast %32 : vector<1x48x80xbf16> to vector<48x80xbf16>
      %cst_23 = arith.constant dense<0.000000e+00> : vector<48x204xf32>
      %34 = tpu.matmul %33, %31, %cst_23 {dimension_numbers = #tpu.dot_dimension_numbers<[1], [0], [0], [1], [0, 0, 1, 1], [], []>} : vector<48x80xbf16>, vector<80x204xbf16>, vector<48x204xf32> -> vector<48x204xf32>
      %35 = arith.addf %28, %34 : vector<48x204xf32>
      %c0_24 = arith.constant 0 : index
      %36 = arith.index_cast %6 : i32 to index
      %c4 = arith.constant 4 : index
      %37 = vector.load %arg1[%c0_24, %36, %c4] : memref<1x3328x208xbf16, #tpu.memory_space<vmem>>, vector<1x80x204xbf16>
      %38 = vector.shape_cast %37 : vector<1x80x204xbf16> to vector<80x204xbf16>
      %c4_25 = arith.constant 4 : index
      %c0_26 = arith.constant 0 : index
      %c0_27 = arith.constant 0 : index
      %39 = vector.load %arg2[%c4_25, %c0_26, %c0_27] : memref<5x48x80xbf16, #tpu.memory_space<vmem>>, vector<1x48x80xbf16>
      %40 = vector.shape_cast %39 : vector<1x48x80xbf16> to vector<48x80xbf16>
      %cst_28 = arith.constant dense<0.000000e+00> : vector<48x204xf32>
      %41 = tpu.matmul %40, %38, %cst_28 {dimension_numbers = #tpu.dot_dimension_numbers<[1], [0], [0], [1], [0, 0, 1, 1], [], []>} : vector<48x80xbf16>, vector<80x204xbf16>, vector<48x204xf32> -> vector<48x204xf32>
      %42 = arith.addf %35, %41 : vector<48x204xf32>
      %43 = arith.addf %42, %2 : vector<48x204xf32>
      %cst_29 = arith.constant -3.000000e+00 : f32
      %cst_30 = arith.constant 3.000000e+00 : f32
      %44 = vector.broadcast %cst_29 : f32 to vector<48x204xf32>
      %45 = arith.maximumf %44, %43 : vector<48x204xf32>
      %46 = vector.broadcast %cst_30 : f32 to vector<48x204xf32>
      %47 = arith.minimumf %46, %45 : vector<48x204xf32>
      %48 = arith.truncf %47 : vector<48x204xf32> to vector<48x204xbf16>
      %c48_i32 = arith.constant 48 : i32
      %49 = arith.muli %arg5, %c48_i32 : i32
      %50 = tpu.assume_multiple %49, 16 : i32
      %c0_31 = arith.constant 0 : index
      %51 = arith.index_cast %50 : i32 to index
      %c0_32 = arith.constant 0 : index
      %52 = vector.load %arg4[%c0_31, %51, %c0_32] : memref<1x9792x204xbf16, #tpu.memory_space<vmem>>, vector<1x48x204xbf16>
      %53 = vector.shape_cast %52 : vector<1x48x204xbf16> to vector<48x204xbf16>
      %54 = vector.shape_cast %48 : vector<48x204xbf16> to vector<1x48x204xbf16>
      tpu.vector_store %arg4[%c0_31, %51, %c0_32], %54 {strides = array<i32>} : memref<1x9792x204xbf16, #tpu.memory_space<vmem>>, vector<1x48x204xbf16>,
    }
    %c204_i32_1 = arith.constant 204 : i32
    return
  }
  func.func @transform_0(%arg0: i32) -> (i32, i32, i32) {
    %c0_i32 = arith.constant 0 : i32
    %c0_i32_0 = arith.constant 0 : i32
    %c0_i32_1 = arith.constant 0 : i32
    return %arg0, %c0_i32, %c0_i32_0 : i32, i32, i32
  }
  func.func @transform_1(%arg0: i32) -> (i32, i32, i32) {
    %c0_i32 = arith.constant 0 : i32
    %c0_i32_0 = arith.constant 0 : i32
    %c0_i32_1 = arith.constant 0 : i32
    %c0_i32_2 = arith.constant 0 : i32
    return %c0_i32, %c0_i32_0, %c0_i32_1 : i32, i32, i32
  }
  func.func @transform_2(%arg0: i32) -> (i32, i32) {
    %c0_i32 = arith.constant 0 : i32
    %c0_i32_0 = arith.constant 0 : i32
    %c0_i32_1 = arith.constant 0 : i32
    return %c0_i32, %c0_i32_0 : i32, i32
  }
  func.func @transform_3(%arg0: i32) -> (i32, i32, i32) {
    %c0_i32 = arith.constant 0 : i32
    %c0_i32_0 = arith.constant 0 : i32
    %c0_i32_1 = arith.constant 0 : i32
    return %arg0, %c0_i32, %c0_i32_0 : i32, i32, i32
  }
}

module attributes {stable_mosaic.version = 11 : i64} {
  func.func @_conv_kernel(%arg0: i32, %arg1: memref<1x9792x204xbf16, #tpu.memory_space<vmem>>, %arg2: memref<3x48x144xbf16, #tpu.memory_space<vmem>>, %arg3: memref<48x1xf32, #tpu.memory_space<vmem>>, %arg4: memref<1x9696x202xbf16, #tpu.memory_space<vmem>>) attributes {dimension_semantics = [#tpu.dimension_semantics<parallel>], iteration_bounds = array<i64: 2>, scalar_prefetch = 0 : i64, scratch_operands = 0 : i64, tpu.core_type = #tpu.core_type<tc>, window_params = [{transform_indices = @transform_0, window_bounds = array<i64: 1, 9792, 204>}, {pipeline_mode = #tpu.pipeline_mode<synchronous>, transform_indices = @transform_1, window_bounds = array<i64: 3, 48, 144>}, {pipeline_mode = #tpu.pipeline_mode<synchronous>, transform_indices = @transform_2, window_bounds = array<i64: 48, 1>}, {transform_indices = @transform_3, window_bounds = array<i64: 1, 9696, 202>}]} {
    %c0 = arith.constant 0 : index
    %c0_0 = arith.constant 0 : index
    %0 = vector.load %arg3[%c0, %c0_0] : memref<48x1xf32, #tpu.memory_space<vmem>>, vector<48x1xf32>
    %1 = vector.shape_cast %0 : vector<48x1xf32> to vector<48x1xf32>
    %2 = vector.broadcast %1 : vector<48x1xf32> to vector<48x202xf32>
    %c0_i32 = arith.constant 0 : i32
    %c202_i32 = arith.constant 202 : i32
    %3 = arith.addi %c0_i32, %c202_i32 : i32
    %c1_i32 = arith.constant 1 : i32
    scf.for %arg5 = %c0_i32 to %3 step %c1_i32  : i32 {
      %c1_i32_2 = arith.constant 1 : i32
      %4 = arith.muli %c1_i32_2, %arg5 : i32
      %c48_i32 = arith.constant 48 : i32
      %5 = arith.muli %4, %c48_i32 : i32
      %6 = tpu.assume_multiple %5, 16 : i32
      %cst = arith.constant 0.000000e+00 : f32
      %7 = vector.broadcast %cst : f32 to vector<48x202xf32>
      %c0_3 = arith.constant 0 : index
      %8 = arith.index_cast %6 : i32 to index
      %c0_4 = arith.constant 0 : index
      %9 = vector.load %arg1[%c0_3, %8, %c0_4] : memref<1x9792x204xbf16, #tpu.memory_space<vmem>>, vector<1x144x202xbf16>
      %10 = vector.shape_cast %9 : vector<1x144x202xbf16> to vector<144x202xbf16>
      %c0_5 = arith.constant 0 : index
      %c0_6 = arith.constant 0 : index
      %c0_7 = arith.constant 0 : index
      %11 = vector.load %arg2[%c0_5, %c0_6, %c0_7] : memref<3x48x144xbf16, #tpu.memory_space<vmem>>, vector<1x48x144xbf16>
      %12 = vector.shape_cast %11 : vector<1x48x144xbf16> to vector<48x144xbf16>
      %cst_8 = arith.constant dense<0.000000e+00> : vector<48x202xf32>
      %13 = tpu.matmul %12, %10, %cst_8 {dimension_numbers = #tpu.dot_dimension_numbers<[1], [0], [0], [1], [0, 0, 1, 1], [], []>} : vector<48x144xbf16>, vector<144x202xbf16>, vector<48x202xf32> -> vector<48x202xf32>
      %14 = arith.addf %7, %13 : vector<48x202xf32>
      %c0_9 = arith.constant 0 : index
      %15 = arith.index_cast %6 : i32 to index
      %c1 = arith.constant 1 : index
      %16 = vector.load %arg1[%c0_9, %15, %c1] : memref<1x9792x204xbf16, #tpu.memory_space<vmem>>, vector<1x144x202xbf16>
      %17 = vector.shape_cast %16 : vector<1x144x202xbf16> to vector<144x202xbf16>
      %c1_10 = arith.constant 1 : index
      %c0_11 = arith.constant 0 : index
      %c0_12 = arith.constant 0 : index
      %18 = vector.load %arg2[%c1_10, %c0_11, %c0_12] : memref<3x48x144xbf16, #tpu.memory_space<vmem>>, vector<1x48x144xbf16>
      %19 = vector.shape_cast %18 : vector<1x48x144xbf16> to vector<48x144xbf16>
      %cst_13 = arith.constant dense<0.000000e+00> : vector<48x202xf32>
      %20 = tpu.matmul %19, %17, %cst_13 {dimension_numbers = #tpu.dot_dimension_numbers<[1], [0], [0], [1], [0, 0, 1, 1], [], []>} : vector<48x144xbf16>, vector<144x202xbf16>, vector<48x202xf32> -> vector<48x202xf32>
      %21 = arith.addf %14, %20 : vector<48x202xf32>
      %c0_14 = arith.constant 0 : index
      %22 = arith.index_cast %6 : i32 to index
      %c2 = arith.constant 2 : index
      %23 = vector.load %arg1[%c0_14, %22, %c2] : memref<1x9792x204xbf16, #tpu.memory_space<vmem>>, vector<1x144x202xbf16>
      %24 = vector.shape_cast %23 : vector<1x144x202xbf16> to vector<144x202xbf16>
      %c2_15 = arith.constant 2 : index
      %c0_16 = arith.constant 0 : index
      %c0_17 = arith.constant 0 : index
      %25 = vector.load %arg2[%c2_15, %c0_16, %c0_17] : memref<3x48x144xbf16, #tpu.memory_space<vmem>>, vector<1x48x144xbf16>
      %26 = vector.shape_cast %25 : vector<1x48x144xbf16> to vector<48x144xbf16>
      %cst_18 = arith.constant dense<0.000000e+00> : vector<48x202xf32>
      %27 = tpu.matmul %26, %24, %cst_18 {dimension_numbers = #tpu.dot_dimension_numbers<[1], [0], [0], [1], [0, 0, 1, 1], [], []>} : vector<48x144xbf16>, vector<144x202xbf16>, vector<48x202xf32> -> vector<48x202xf32>
      %28 = arith.addf %21, %27 : vector<48x202xf32>
      %29 = arith.addf %28, %2 : vector<48x202xf32>
      %cst_19 = arith.constant 0.000000e+00 : f32
      %30 = vector.broadcast %cst_19 : f32 to vector<48x202xf32>
      %31 = arith.maximumf %29, %30 : vector<48x202xf32>
      %32 = arith.truncf %31 : vector<48x202xf32> to vector<48x202xbf16>
      %c48_i32_20 = arith.constant 48 : i32
      %33 = arith.muli %arg5, %c48_i32_20 : i32
      %34 = tpu.assume_multiple %33, 16 : i32
      %c0_21 = arith.constant 0 : index
      %35 = arith.index_cast %34 : i32 to index
      %c0_22 = arith.constant 0 : index
      %36 = vector.load %arg4[%c0_21, %35, %c0_22] : memref<1x9696x202xbf16, #tpu.memory_space<vmem>>, vector<1x48x202xbf16>
      %37 = vector.shape_cast %36 : vector<1x48x202xbf16> to vector<48x202xbf16>
      %38 = vector.shape_cast %32 : vector<48x202xbf16> to vector<1x48x202xbf16>
      tpu.vector_store %arg4[%c0_21, %35, %c0_22], %38 {strides = array<i32>} : memref<1x9696x202xbf16, #tpu.memory_space<vmem>>, vector<1x48x202xbf16>,
    }
    %c202_i32_1 = arith.constant 202 : i32
    return
  }
  func.func @transform_0(%arg0: i32) -> (i32, i32, i32) {
    %c0_i32 = arith.constant 0 : i32
    %c0_i32_0 = arith.constant 0 : i32
    %c0_i32_1 = arith.constant 0 : i32
    return %arg0, %c0_i32, %c0_i32_0 : i32, i32, i32
  }
  func.func @transform_1(%arg0: i32) -> (i32, i32, i32) {
    %c0_i32 = arith.constant 0 : i32
    %c0_i32_0 = arith.constant 0 : i32
    %c0_i32_1 = arith.constant 0 : i32
    %c0_i32_2 = arith.constant 0 : i32
    return %c0_i32, %c0_i32_0, %c0_i32_1 : i32, i32, i32
  }
  func.func @transform_2(%arg0: i32) -> (i32, i32) {
    %c0_i32 = arith.constant 0 : i32
    %c0_i32_0 = arith.constant 0 : i32
    %c0_i32_1 = arith.constant 0 : i32
    return %c0_i32, %c0_i32_0 : i32, i32
  }
  func.func @transform_3(%arg0: i32) -> (i32, i32, i32) {
    %c0_i32 = arith.constant 0 : i32
    %c0_i32_0 = arith.constant 0 : i32
    %c0_i32_1 = arith.constant 0 : i32
    return %arg0, %c0_i32, %c0_i32_0 : i32, i32, i32
  }
}

module attributes {stable_mosaic.version = 11 : i64} {
  func.func @_conv_kernel(%arg0: i32, %arg1: memref<1x9600x200xbf16, #tpu.memory_space<vmem>>, %arg2: memref<3x48x144xbf16, #tpu.memory_space<vmem>>, %arg3: memref<48x1xf32, #tpu.memory_space<vmem>>, %arg4: memref<1x9504x198xbf16, #tpu.memory_space<vmem>>) attributes {dimension_semantics = [#tpu.dimension_semantics<parallel>], iteration_bounds = array<i64: 2>, scalar_prefetch = 0 : i64, scratch_operands = 0 : i64, tpu.core_type = #tpu.core_type<tc>, window_params = [{transform_indices = @transform_0, window_bounds = array<i64: 1, 9600, 200>}, {pipeline_mode = #tpu.pipeline_mode<synchronous>, transform_indices = @transform_1, window_bounds = array<i64: 3, 48, 144>}, {pipeline_mode = #tpu.pipeline_mode<synchronous>, transform_indices = @transform_2, window_bounds = array<i64: 48, 1>}, {transform_indices = @transform_3, window_bounds = array<i64: 1, 9504, 198>}]} {
    %c0 = arith.constant 0 : index
    %c0_0 = arith.constant 0 : index
    %0 = vector.load %arg3[%c0, %c0_0] : memref<48x1xf32, #tpu.memory_space<vmem>>, vector<48x1xf32>
    %1 = vector.shape_cast %0 : vector<48x1xf32> to vector<48x1xf32>
    %2 = vector.broadcast %1 : vector<48x1xf32> to vector<48x198xf32>
    %c0_i32 = arith.constant 0 : i32
    %c198_i32 = arith.constant 198 : i32
    %3 = arith.addi %c0_i32, %c198_i32 : i32
    %c1_i32 = arith.constant 1 : i32
    scf.for %arg5 = %c0_i32 to %3 step %c1_i32  : i32 {
      %c1_i32_2 = arith.constant 1 : i32
      %4 = arith.muli %c1_i32_2, %arg5 : i32
      %c48_i32 = arith.constant 48 : i32
      %5 = arith.muli %4, %c48_i32 : i32
      %6 = tpu.assume_multiple %5, 16 : i32
      %cst = arith.constant 0.000000e+00 : f32
      %7 = vector.broadcast %cst : f32 to vector<48x198xf32>
      %c0_3 = arith.constant 0 : index
      %8 = arith.index_cast %6 : i32 to index
      %c0_4 = arith.constant 0 : index
      %9 = vector.load %arg1[%c0_3, %8, %c0_4] : memref<1x9600x200xbf16, #tpu.memory_space<vmem>>, vector<1x144x198xbf16>
      %10 = vector.shape_cast %9 : vector<1x144x198xbf16> to vector<144x198xbf16>
      %c0_5 = arith.constant 0 : index
      %c0_6 = arith.constant 0 : index
      %c0_7 = arith.constant 0 : index
      %11 = vector.load %arg2[%c0_5, %c0_6, %c0_7] : memref<3x48x144xbf16, #tpu.memory_space<vmem>>, vector<1x48x144xbf16>
      %12 = vector.shape_cast %11 : vector<1x48x144xbf16> to vector<48x144xbf16>
      %cst_8 = arith.constant dense<0.000000e+00> : vector<48x198xf32>
      %13 = tpu.matmul %12, %10, %cst_8 {dimension_numbers = #tpu.dot_dimension_numbers<[1], [0], [0], [1], [0, 0, 1, 1], [], []>} : vector<48x144xbf16>, vector<144x198xbf16>, vector<48x198xf32> -> vector<48x198xf32>
      %14 = arith.addf %7, %13 : vector<48x198xf32>
      %c0_9 = arith.constant 0 : index
      %15 = arith.index_cast %6 : i32 to index
      %c1 = arith.constant 1 : index
      %16 = vector.load %arg1[%c0_9, %15, %c1] : memref<1x9600x200xbf16, #tpu.memory_space<vmem>>, vector<1x144x198xbf16>
      %17 = vector.shape_cast %16 : vector<1x144x198xbf16> to vector<144x198xbf16>
      %c1_10 = arith.constant 1 : index
      %c0_11 = arith.constant 0 : index
      %c0_12 = arith.constant 0 : index
      %18 = vector.load %arg2[%c1_10, %c0_11, %c0_12] : memref<3x48x144xbf16, #tpu.memory_space<vmem>>, vector<1x48x144xbf16>
      %19 = vector.shape_cast %18 : vector<1x48x144xbf16> to vector<48x144xbf16>
      %cst_13 = arith.constant dense<0.000000e+00> : vector<48x198xf32>
      %20 = tpu.matmul %19, %17, %cst_13 {dimension_numbers = #tpu.dot_dimension_numbers<[1], [0], [0], [1], [0, 0, 1, 1], [], []>} : vector<48x144xbf16>, vector<144x198xbf16>, vector<48x198xf32> -> vector<48x198xf32>
      %21 = arith.addf %14, %20 : vector<48x198xf32>
      %c0_14 = arith.constant 0 : index
      %22 = arith.index_cast %6 : i32 to index
      %c2 = arith.constant 2 : index
      %23 = vector.load %arg1[%c0_14, %22, %c2] : memref<1x9600x200xbf16, #tpu.memory_space<vmem>>, vector<1x144x198xbf16>
      %24 = vector.shape_cast %23 : vector<1x144x198xbf16> to vector<144x198xbf16>
      %c2_15 = arith.constant 2 : index
      %c0_16 = arith.constant 0 : index
      %c0_17 = arith.constant 0 : index
      %25 = vector.load %arg2[%c2_15, %c0_16, %c0_17] : memref<3x48x144xbf16, #tpu.memory_space<vmem>>, vector<1x48x144xbf16>
      %26 = vector.shape_cast %25 : vector<1x48x144xbf16> to vector<48x144xbf16>
      %cst_18 = arith.constant dense<0.000000e+00> : vector<48x198xf32>
      %27 = tpu.matmul %26, %24, %cst_18 {dimension_numbers = #tpu.dot_dimension_numbers<[1], [0], [0], [1], [0, 0, 1, 1], [], []>} : vector<48x144xbf16>, vector<144x198xbf16>, vector<48x198xf32> -> vector<48x198xf32>
      %28 = arith.addf %21, %27 : vector<48x198xf32>
      %29 = arith.addf %28, %2 : vector<48x198xf32>
      %cst_19 = arith.constant 0.000000e+00 : f32
      %30 = vector.broadcast %cst_19 : f32 to vector<48x198xf32>
      %31 = arith.maximumf %29, %30 : vector<48x198xf32>
      %32 = arith.truncf %31 : vector<48x198xf32> to vector<48x198xbf16>
      %c48_i32_20 = arith.constant 48 : i32
      %33 = arith.muli %arg5, %c48_i32_20 : i32
      %34 = tpu.assume_multiple %33, 16 : i32
      %c0_21 = arith.constant 0 : index
      %35 = arith.index_cast %34 : i32 to index
      %c0_22 = arith.constant 0 : index
      %36 = vector.load %arg4[%c0_21, %35, %c0_22] : memref<1x9504x198xbf16, #tpu.memory_space<vmem>>, vector<1x48x198xbf16>
      %37 = vector.shape_cast %36 : vector<1x48x198xbf16> to vector<48x198xbf16>
      %38 = vector.shape_cast %32 : vector<48x198xbf16> to vector<1x48x198xbf16>
      tpu.vector_store %arg4[%c0_21, %35, %c0_22], %38 {strides = array<i32>} : memref<1x9504x198xbf16, #tpu.memory_space<vmem>>, vector<1x48x198xbf16>,
    }
    %c198_i32_1 = arith.constant 198 : i32
    return
  }
  func.func @transform_0(%arg0: i32) -> (i32, i32, i32) {
    %c0_i32 = arith.constant 0 : i32
    %c0_i32_0 = arith.constant 0 : i32
    %c0_i32_1 = arith.constant 0 : i32
    return %arg0, %c0_i32, %c0_i32_0 : i32, i32, i32
  }
  func.func @transform_1(%arg0: i32) -> (i32, i32, i32) {
    %c0_i32 = arith.constant 0 : i32
    %c0_i32_0 = arith.constant 0 : i32
    %c0_i32_1 = arith.constant 0 : i32
    %c0_i32_2 = arith.constant 0 : i32
    return %c0_i32, %c0_i32_0, %c0_i32_1 : i32, i32, i32
  }
  func.func @transform_2(%arg0: i32) -> (i32, i32) {
    %c0_i32 = arith.constant 0 : i32
    %c0_i32_0 = arith.constant 0 : i32
    %c0_i32_1 = arith.constant 0 : i32
    return %c0_i32, %c0_i32_0 : i32, i32
  }
  func.func @transform_3(%arg0: i32) -> (i32, i32, i32) {
    %c0_i32 = arith.constant 0 : i32
    %c0_i32_0 = arith.constant 0 : i32
    %c0_i32_1 = arith.constant 0 : i32
    return %arg0, %c0_i32, %c0_i32_0 : i32, i32, i32
  }
}

module attributes {stable_mosaic.version = 11 : i64} {
  func.func @_conv_kernel(%arg0: i32, %arg1: memref<1x9696x202xbf16, #tpu.memory_space<vmem>>, %arg2: memref<3x48x144xbf16, #tpu.memory_space<vmem>>, %arg3: memref<48x1xf32, #tpu.memory_space<vmem>>, %arg4: memref<1x9600x200xbf16, #tpu.memory_space<vmem>>) attributes {dimension_semantics = [#tpu.dimension_semantics<parallel>], iteration_bounds = array<i64: 2>, scalar_prefetch = 0 : i64, scratch_operands = 0 : i64, tpu.core_type = #tpu.core_type<tc>, window_params = [{transform_indices = @transform_0, window_bounds = array<i64: 1, 9696, 202>}, {pipeline_mode = #tpu.pipeline_mode<synchronous>, transform_indices = @transform_1, window_bounds = array<i64: 3, 48, 144>}, {pipeline_mode = #tpu.pipeline_mode<synchronous>, transform_indices = @transform_2, window_bounds = array<i64: 48, 1>}, {transform_indices = @transform_3, window_bounds = array<i64: 1, 9600, 200>}]} {
    %c0 = arith.constant 0 : index
    %c0_0 = arith.constant 0 : index
    %0 = vector.load %arg3[%c0, %c0_0] : memref<48x1xf32, #tpu.memory_space<vmem>>, vector<48x1xf32>
    %1 = vector.shape_cast %0 : vector<48x1xf32> to vector<48x1xf32>
    %2 = vector.broadcast %1 : vector<48x1xf32> to vector<48x200xf32>
    %c0_i32 = arith.constant 0 : i32
    %c200_i32 = arith.constant 200 : i32
    %3 = arith.addi %c0_i32, %c200_i32 : i32
    %c1_i32 = arith.constant 1 : i32
    scf.for %arg5 = %c0_i32 to %3 step %c1_i32  : i32 {
      %c1_i32_2 = arith.constant 1 : i32
      %4 = arith.muli %c1_i32_2, %arg5 : i32
      %c48_i32 = arith.constant 48 : i32
      %5 = arith.muli %4, %c48_i32 : i32
      %6 = tpu.assume_multiple %5, 16 : i32
      %cst = arith.constant 0.000000e+00 : f32
      %7 = vector.broadcast %cst : f32 to vector<48x200xf32>
      %c0_3 = arith.constant 0 : index
      %8 = arith.index_cast %6 : i32 to index
      %c0_4 = arith.constant 0 : index
      %9 = vector.load %arg1[%c0_3, %8, %c0_4] : memref<1x9696x202xbf16, #tpu.memory_space<vmem>>, vector<1x144x200xbf16>
      %10 = vector.shape_cast %9 : vector<1x144x200xbf16> to vector<144x200xbf16>
      %c0_5 = arith.constant 0 : index
      %c0_6 = arith.constant 0 : index
      %c0_7 = arith.constant 0 : index
      %11 = vector.load %arg2[%c0_5, %c0_6, %c0_7] : memref<3x48x144xbf16, #tpu.memory_space<vmem>>, vector<1x48x144xbf16>
      %12 = vector.shape_cast %11 : vector<1x48x144xbf16> to vector<48x144xbf16>
      %cst_8 = arith.constant dense<0.000000e+00> : vector<48x200xf32>
      %13 = tpu.matmul %12, %10, %cst_8 {dimension_numbers = #tpu.dot_dimension_numbers<[1], [0], [0], [1], [0, 0, 1, 1], [], []>} : vector<48x144xbf16>, vector<144x200xbf16>, vector<48x200xf32> -> vector<48x200xf32>
      %14 = arith.addf %7, %13 : vector<48x200xf32>
      %c0_9 = arith.constant 0 : index
      %15 = arith.index_cast %6 : i32 to index
      %c1 = arith.constant 1 : index
      %16 = vector.load %arg1[%c0_9, %15, %c1] : memref<1x9696x202xbf16, #tpu.memory_space<vmem>>, vector<1x144x200xbf16>
      %17 = vector.shape_cast %16 : vector<1x144x200xbf16> to vector<144x200xbf16>
      %c1_10 = arith.constant 1 : index
      %c0_11 = arith.constant 0 : index
      %c0_12 = arith.constant 0 : index
      %18 = vector.load %arg2[%c1_10, %c0_11, %c0_12] : memref<3x48x144xbf16, #tpu.memory_space<vmem>>, vector<1x48x144xbf16>
      %19 = vector.shape_cast %18 : vector<1x48x144xbf16> to vector<48x144xbf16>
      %cst_13 = arith.constant dense<0.000000e+00> : vector<48x200xf32>
      %20 = tpu.matmul %19, %17, %cst_13 {dimension_numbers = #tpu.dot_dimension_numbers<[1], [0], [0], [1], [0, 0, 1, 1], [], []>} : vector<48x144xbf16>, vector<144x200xbf16>, vector<48x200xf32> -> vector<48x200xf32>
      %21 = arith.addf %14, %20 : vector<48x200xf32>
      %c0_14 = arith.constant 0 : index
      %22 = arith.index_cast %6 : i32 to index
      %c2 = arith.constant 2 : index
      %23 = vector.load %arg1[%c0_14, %22, %c2] : memref<1x9696x202xbf16, #tpu.memory_space<vmem>>, vector<1x144x200xbf16>
      %24 = vector.shape_cast %23 : vector<1x144x200xbf16> to vector<144x200xbf16>
      %c2_15 = arith.constant 2 : index
      %c0_16 = arith.constant 0 : index
      %c0_17 = arith.constant 0 : index
      %25 = vector.load %arg2[%c2_15, %c0_16, %c0_17] : memref<3x48x144xbf16, #tpu.memory_space<vmem>>, vector<1x48x144xbf16>
      %26 = vector.shape_cast %25 : vector<1x48x144xbf16> to vector<48x144xbf16>
      %cst_18 = arith.constant dense<0.000000e+00> : vector<48x200xf32>
      %27 = tpu.matmul %26, %24, %cst_18 {dimension_numbers = #tpu.dot_dimension_numbers<[1], [0], [0], [1], [0, 0, 1, 1], [], []>} : vector<48x144xbf16>, vector<144x200xbf16>, vector<48x200xf32> -> vector<48x200xf32>
      %28 = arith.addf %21, %27 : vector<48x200xf32>
      %29 = arith.addf %28, %2 : vector<48x200xf32>
      %cst_19 = arith.constant 0.000000e+00 : f32
      %30 = vector.broadcast %cst_19 : f32 to vector<48x200xf32>
      %31 = arith.maximumf %29, %30 : vector<48x200xf32>
      %32 = arith.truncf %31 : vector<48x200xf32> to vector<48x200xbf16>
      %c48_i32_20 = arith.constant 48 : i32
      %33 = arith.muli %arg5, %c48_i32_20 : i32
      %34 = tpu.assume_multiple %33, 16 : i32
      %c0_21 = arith.constant 0 : index
      %35 = arith.index_cast %34 : i32 to index
      %c0_22 = arith.constant 0 : index
      %36 = vector.load %arg4[%c0_21, %35, %c0_22] : memref<1x9600x200xbf16, #tpu.memory_space<vmem>>, vector<1x48x200xbf16>
      %37 = vector.shape_cast %36 : vector<1x48x200xbf16> to vector<48x200xbf16>
      %38 = vector.shape_cast %32 : vector<48x200xbf16> to vector<1x48x200xbf16>
      tpu.vector_store %arg4[%c0_21, %35, %c0_22], %38 {strides = array<i32>} : memref<1x9600x200xbf16, #tpu.memory_space<vmem>>, vector<1x48x200xbf16>,
    }
    %c200_i32_1 = arith.constant 200 : i32
    return
  }
  func.func @transform_0(%arg0: i32) -> (i32, i32, i32) {
    %c0_i32 = arith.constant 0 : i32
    %c0_i32_0 = arith.constant 0 : i32
    %c0_i32_1 = arith.constant 0 : i32
    return %arg0, %c0_i32, %c0_i32_0 : i32, i32, i32
  }
  func.func @transform_1(%arg0: i32) -> (i32, i32, i32) {
    %c0_i32 = arith.constant 0 : i32
    %c0_i32_0 = arith.constant 0 : i32
    %c0_i32_1 = arith.constant 0 : i32
    %c0_i32_2 = arith.constant 0 : i32
    return %c0_i32, %c0_i32_0, %c0_i32_1 : i32, i32, i32
  }
  func.func @transform_2(%arg0: i32) -> (i32, i32) {
    %c0_i32 = arith.constant 0 : i32
    %c0_i32_0 = arith.constant 0 : i32
    %c0_i32_1 = arith.constant 0 : i32
    return %c0_i32, %c0_i32_0 : i32, i32
  }
  func.func @transform_3(%arg0: i32) -> (i32, i32, i32) {
    %c0_i32 = arith.constant 0 : i32
    %c0_i32_0 = arith.constant 0 : i32
    %c0_i32_1 = arith.constant 0 : i32
    return %arg0, %c0_i32, %c0_i32_0 : i32, i32, i32
  }
}

module attributes {stable_mosaic.version = 11 : i64} {
  func.func @_pool_kernel(%arg0: i32, %arg1: memref<1x9504x198xbf16, #tpu.memory_space<vmem>>, %arg2: memref<1x4848x101xbf16, #tpu.memory_space<vmem>>) attributes {dimension_semantics = [#tpu.dimension_semantics<parallel>], iteration_bounds = array<i64: 2>, scalar_prefetch = 0 : i64, scratch_operands = 0 : i64, tpu.core_type = #tpu.core_type<tc>, window_params = [{transform_indices = @transform_0, window_bounds = array<i64: 1, 9504, 198>}, {transform_indices = @transform_1, window_bounds = array<i64: 1, 4848, 101>}]} {
    %0 = tpu.iota {dimensions = array<i32: 0>} : vector<198x99xi32>
    %1 = tpu.iota {dimensions = array<i32: 1>} : vector<198x99xi32>
    %c2_i32 = arith.constant 2 : i32
    %2 = vector.broadcast %c2_i32 : i32 to vector<198x99xi32>
    %3 = arith.muli %2, %1 : vector<198x99xi32>
    %4 = arith.cmpi sge, %0, %3 : vector<198x99xi32>
    %c2_i32_0 = arith.constant 2 : i32
    %5 = vector.broadcast %c2_i32_0 : i32 to vector<198x99xi32>
    %6 = arith.muli %5, %1 : vector<198x99xi32>
    %c2_i32_1 = arith.constant 2 : i32
    %7 = vector.broadcast %c2_i32_1 : i32 to vector<198x99xi32>
    %8 = arith.addi %6, %7 : vector<198x99xi32>
    %9 = arith.cmpi slt, %0, %8 : vector<198x99xi32>
    %10 = arith.andi %4, %9 : vector<198x99xi1>
    %11 = arith.extui %10 : vector<198x99xi1> to vector<198x99xi32>
    %12 = arith.sitofp %11 : vector<198x99xi32> to vector<198x99xf32>
    %cst = arith.constant 0.000000e+00 : bf16
    %13 = vector.broadcast %cst : bf16 to vector<48x101xbf16>
    %c0 = arith.constant 0 : index
    %c0_2 = arith.constant 0 : index
    %c0_3 = arith.constant 0 : index
    %14 = vector.load %arg2[%c0, %c0_2, %c0_3] : memref<1x4848x101xbf16, #tpu.memory_space<vmem>>, vector<1x48x101xbf16>
    %15 = vector.shape_cast %14 : vector<1x48x101xbf16> to vector<48x101xbf16>
    %16 = vector.shape_cast %13 : vector<48x101xbf16> to vector<1x48x101xbf16>
    tpu.vector_store %arg2[%c0, %c0_2, %c0_3], %16 {strides = array<i32>} : memref<1x4848x101xbf16, #tpu.memory_space<vmem>>, vector<1x48x101xbf16>,
    %c0_4 = arith.constant 0 : index
    %c4800 = arith.constant 4800 : index
    %c0_5 = arith.constant 0 : index
    %17 = vector.load %arg2[%c0_4, %c4800, %c0_5] : memref<1x4848x101xbf16, #tpu.memory_space<vmem>>, vector<1x48x101xbf16>
    %18 = vector.shape_cast %17 : vector<1x48x101xbf16> to vector<48x101xbf16>
    %19 = vector.shape_cast %13 : vector<48x101xbf16> to vector<1x48x101xbf16>
    tpu.vector_store %arg2[%c0_4, %c4800, %c0_5], %19 {strides = array<i32>} : memref<1x4848x101xbf16, #tpu.memory_space<vmem>>, vector<1x48x101xbf16>,
    %c0_i32 = arith.constant 0 : i32
    %c99_i32 = arith.constant 99 : i32
    %20 = arith.addi %c0_i32, %c99_i32 : i32
    %c1_i32 = arith.constant 1 : i32
    scf.for %arg3 = %c0_i32 to %20 step %c1_i32  : i32 {
      %cst_7 = arith.constant 0.000000e+00 : f32
      %21 = vector.broadcast %cst_7 : f32 to vector<48x198xf32>
      %c2_i32_8 = arith.constant 2 : i32
      %22 = arith.muli %c2_i32_8, %arg3 : i32
      %c0_i32_9 = arith.constant 0 : i32
      %23 = arith.addi %22, %c0_i32_9 : i32
      %c48_i32 = arith.constant 48 : i32
      %24 = arith.muli %23, %c48_i32 : i32
      %25 = tpu.assume_multiple %24, 16 : i32
      %c0_10 = arith.constant 0 : index
      %26 = arith.index_cast %25 : i32 to index
      %c0_11 = arith.constant 0 : index
      %27 = vector.load %arg1[%c0_10, %26, %c0_11] : memref<1x9504x198xbf16, #tpu.memory_space<vmem>>, vector<1x48x198xbf16>
      %28 = vector.shape_cast %27 : vector<1x48x198xbf16> to vector<48x198xbf16>
      %29 = arith.extf %28 : vector<48x198xbf16> to vector<48x198xf32>
      %30 = arith.addf %21, %29 : vector<48x198xf32>
      %c2_i32_12 = arith.constant 2 : i32
      %31 = arith.muli %c2_i32_12, %arg3 : i32
      %c1_i32_13 = arith.constant 1 : i32
      %32 = arith.addi %31, %c1_i32_13 : i32
      %c48_i32_14 = arith.constant 48 : i32
      %33 = arith.muli %32, %c48_i32_14 : i32
      %34 = tpu.assume_multiple %33, 16 : i32
      %c0_15 = arith.constant 0 : index
      %35 = arith.index_cast %34 : i32 to index
      %c0_16 = arith.constant 0 : index
      %36 = vector.load %arg1[%c0_15, %35, %c0_16] : memref<1x9504x198xbf16, #tpu.memory_space<vmem>>, vector<1x48x198xbf16>
      %37 = vector.shape_cast %36 : vector<1x48x198xbf16> to vector<48x198xbf16>
      %38 = arith.extf %37 : vector<48x198xbf16> to vector<48x198xf32>
      %39 = arith.addf %30, %38 : vector<48x198xf32>
      %cst_17 = arith.constant dense<0.000000e+00> : vector<48x99xf32>
      %40 = tpu.matmul %39, %12, %cst_17 {dimension_numbers = #tpu.dot_dimension_numbers<[1], [0], [0], [1], [0, 0, 1, 1], [], []>} : vector<48x198xf32>, vector<198x99xf32>, vector<48x99xf32> -> vector<48x99xf32>
      %cst_18 = arith.constant 2.500000e-01 : f32
      %41 = vector.broadcast %cst_18 : f32 to vector<48x99xf32>
      %42 = arith.mulf %40, %41 : vector<48x99xf32>
      %43 = arith.truncf %42 : vector<48x99xf32> to vector<48x99xbf16>
      %c1_i32_19 = arith.constant 1 : i32
      %44 = arith.addi %arg3, %c1_i32_19 : i32
      %c48_i32_20 = arith.constant 48 : i32
      %45 = arith.muli %44, %c48_i32_20 : i32
      %46 = tpu.assume_multiple %45, 16 : i32
      %c0_21 = arith.constant 0 : index
      %47 = arith.index_cast %46 : i32 to index
      %c0_22 = arith.constant 0 : index
      %48 = vector.load %arg2[%c0_21, %47, %c0_22] : memref<1x4848x101xbf16, #tpu.memory_space<vmem>>, vector<1x48x101xbf16>
      %49 = vector.shape_cast %48 : vector<1x48x101xbf16> to vector<48x101xbf16>
      %50 = vector.shape_cast %13 : vector<48x101xbf16> to vector<1x48x101xbf16>
      tpu.vector_store %arg2[%c0_21, %47, %c0_22], %50 {strides = array<i32>} : memref<1x4848x101xbf16, #tpu.memory_space<vmem>>, vector<1x48x101xbf16>,
      %c0_23 = arith.constant 0 : index
      %51 = arith.index_cast %46 : i32 to index
      %c1 = arith.constant 1 : index
      %52 = vector.load %arg2[%c0_23, %51, %c1] : memref<1x4848x101xbf16, #tpu.memory_space<vmem>>, vector<1x48x99xbf16>
      %53 = vector.shape_cast %52 : vector<1x48x99xbf16> to vector<48x99xbf16>
      %54 = vector.shape_cast %43 : vector<48x99xbf16> to vector<1x48x99xbf16>
      tpu.vector_store %arg2[%c0_23, %51, %c1], %54 {strides = array<i32>} : memref<1x4848x101xbf16, #tpu.memory_space<vmem>>, vector<1x48x99xbf16>,
    }
    %c99_i32_6 = arith.constant 99 : i32
    return
  }
  func.func @transform_0(%arg0: i32) -> (i32, i32, i32) {
    %c0_i32 = arith.constant 0 : i32
    %c0_i32_0 = arith.constant 0 : i32
    %c0_i32_1 = arith.constant 0 : i32
    return %arg0, %c0_i32, %c0_i32_0 : i32, i32, i32
  }
  func.func @transform_1(%arg0: i32) -> (i32, i32, i32) {
    %c0_i32 = arith.constant 0 : i32
    %c0_i32_0 = arith.constant 0 : i32
    %c0_i32_1 = arith.constant 0 : i32
    return %arg0, %c0_i32, %c0_i32_0 : i32, i32, i32
  }
}

module attributes {stable_mosaic.version = 11 : i64} {
  func.func @_conv_kernel(%arg0: i32, %arg1: memref<1x4848x101xbf16, #tpu.memory_space<vmem>>, %arg2: memref<3x48x144xbf16, #tpu.memory_space<vmem>>, %arg3: memref<48x1xf32, #tpu.memory_space<vmem>>, %arg4: memref<1x4848x101xbf16, #tpu.memory_space<vmem>>) attributes {dimension_semantics = [#tpu.dimension_semantics<parallel>], iteration_bounds = array<i64: 2>, scalar_prefetch = 0 : i64, scratch_operands = 0 : i64, tpu.core_type = #tpu.core_type<tc>, window_params = [{transform_indices = @transform_0, window_bounds = array<i64: 1, 4848, 101>}, {pipeline_mode = #tpu.pipeline_mode<synchronous>, transform_indices = @transform_1, window_bounds = array<i64: 3, 48, 144>}, {pipeline_mode = #tpu.pipeline_mode<synchronous>, transform_indices = @transform_2, window_bounds = array<i64: 48, 1>}, {transform_indices = @transform_3, window_bounds = array<i64: 1, 4848, 101>}]} {
    %c0 = arith.constant 0 : index
    %c0_0 = arith.constant 0 : index
    %0 = vector.load %arg3[%c0, %c0_0] : memref<48x1xf32, #tpu.memory_space<vmem>>, vector<48x1xf32>
    %1 = vector.shape_cast %0 : vector<48x1xf32> to vector<48x1xf32>
    %2 = vector.broadcast %1 : vector<48x1xf32> to vector<48x99xf32>
    %cst = arith.constant 0.000000e+00 : bf16
    %3 = vector.broadcast %cst : bf16 to vector<48x101xbf16>
    %c0_1 = arith.constant 0 : index
    %c0_2 = arith.constant 0 : index
    %c0_3 = arith.constant 0 : index
    %4 = vector.load %arg4[%c0_1, %c0_2, %c0_3] : memref<1x4848x101xbf16, #tpu.memory_space<vmem>>, vector<1x48x101xbf16>
    %5 = vector.shape_cast %4 : vector<1x48x101xbf16> to vector<48x101xbf16>
    %6 = vector.shape_cast %3 : vector<48x101xbf16> to vector<1x48x101xbf16>
    tpu.vector_store %arg4[%c0_1, %c0_2, %c0_3], %6 {strides = array<i32>} : memref<1x4848x101xbf16, #tpu.memory_space<vmem>>, vector<1x48x101xbf16>,
    %c0_4 = arith.constant 0 : index
    %c4800 = arith.constant 4800 : index
    %c0_5 = arith.constant 0 : index
    %7 = vector.load %arg4[%c0_4, %c4800, %c0_5] : memref<1x4848x101xbf16, #tpu.memory_space<vmem>>, vector<1x48x101xbf16>
    %8 = vector.shape_cast %7 : vector<1x48x101xbf16> to vector<48x101xbf16>
    %9 = vector.shape_cast %3 : vector<48x101xbf16> to vector<1x48x101xbf16>
    tpu.vector_store %arg4[%c0_4, %c4800, %c0_5], %9 {strides = array<i32>} : memref<1x4848x101xbf16, #tpu.memory_space<vmem>>, vector<1x48x101xbf16>,
    %c0_i32 = arith.constant 0 : i32
    %c99_i32 = arith.constant 99 : i32
    %10 = arith.addi %c0_i32, %c99_i32 : i32
    %c1_i32 = arith.constant 1 : i32
    scf.for %arg5 = %c0_i32 to %10 step %c1_i32  : i32 {
      %c1_i32_7 = arith.constant 1 : i32
      %11 = arith.muli %c1_i32_7, %arg5 : i32
      %c48_i32 = arith.constant 48 : i32
      %12 = arith.muli %11, %c48_i32 : i32
      %13 = tpu.assume_multiple %12, 16 : i32
      %cst_8 = arith.constant 0.000000e+00 : f32
      %14 = vector.broadcast %cst_8 : f32 to vector<48x99xf32>
      %c0_9 = arith.constant 0 : index
      %15 = arith.index_cast %13 : i32 to index
      %c0_10 = arith.constant 0 : index
      %16 = vector.load %arg1[%c0_9, %15, %c0_10] : memref<1x4848x101xbf16, #tpu.memory_space<vmem>>, vector<1x144x99xbf16>
      %17 = vector.shape_cast %16 : vector<1x144x99xbf16> to vector<144x99xbf16>
      %c0_11 = arith.constant 0 : index
      %c0_12 = arith.constant 0 : index
      %c0_13 = arith.constant 0 : index
      %18 = vector.load %arg2[%c0_11, %c0_12, %c0_13] : memref<3x48x144xbf16, #tpu.memory_space<vmem>>, vector<1x48x144xbf16>
      %19 = vector.shape_cast %18 : vector<1x48x144xbf16> to vector<48x144xbf16>
      %cst_14 = arith.constant dense<0.000000e+00> : vector<48x99xf32>
      %20 = tpu.matmul %19, %17, %cst_14 {dimension_numbers = #tpu.dot_dimension_numbers<[1], [0], [0], [1], [0, 0, 1, 1], [], []>} : vector<48x144xbf16>, vector<144x99xbf16>, vector<48x99xf32> -> vector<48x99xf32>
      %21 = arith.addf %14, %20 : vector<48x99xf32>
      %c0_15 = arith.constant 0 : index
      %22 = arith.index_cast %13 : i32 to index
      %c1 = arith.constant 1 : index
      %23 = vector.load %arg1[%c0_15, %22, %c1] : memref<1x4848x101xbf16, #tpu.memory_space<vmem>>, vector<1x144x99xbf16>
      %24 = vector.shape_cast %23 : vector<1x144x99xbf16> to vector<144x99xbf16>
      %c1_16 = arith.constant 1 : index
      %c0_17 = arith.constant 0 : index
      %c0_18 = arith.constant 0 : index
      %25 = vector.load %arg2[%c1_16, %c0_17, %c0_18] : memref<3x48x144xbf16, #tpu.memory_space<vmem>>, vector<1x48x144xbf16>
      %26 = vector.shape_cast %25 : vector<1x48x144xbf16> to vector<48x144xbf16>
      %cst_19 = arith.constant dense<0.000000e+00> : vector<48x99xf32>
      %27 = tpu.matmul %26, %24, %cst_19 {dimension_numbers = #tpu.dot_dimension_numbers<[1], [0], [0], [1], [0, 0, 1, 1], [], []>} : vector<48x144xbf16>, vector<144x99xbf16>, vector<48x99xf32> -> vector<48x99xf32>
      %28 = arith.addf %21, %27 : vector<48x99xf32>
      %c0_20 = arith.constant 0 : index
      %29 = arith.index_cast %13 : i32 to index
      %c2 = arith.constant 2 : index
      %30 = vector.load %arg1[%c0_20, %29, %c2] : memref<1x4848x101xbf16, #tpu.memory_space<vmem>>, vector<1x144x99xbf16>
      %31 = vector.shape_cast %30 : vector<1x144x99xbf16> to vector<144x99xbf16>
      %c2_21 = arith.constant 2 : index
      %c0_22 = arith.constant 0 : index
      %c0_23 = arith.constant 0 : index
      %32 = vector.load %arg2[%c2_21, %c0_22, %c0_23] : memref<3x48x144xbf16, #tpu.memory_space<vmem>>, vector<1x48x144xbf16>
      %33 = vector.shape_cast %32 : vector<1x48x144xbf16> to vector<48x144xbf16>
      %cst_24 = arith.constant dense<0.000000e+00> : vector<48x99xf32>
      %34 = tpu.matmul %33, %31, %cst_24 {dimension_numbers = #tpu.dot_dimension_numbers<[1], [0], [0], [1], [0, 0, 1, 1], [], []>} : vector<48x144xbf16>, vector<144x99xbf16>, vector<48x99xf32> -> vector<48x99xf32>
      %35 = arith.addf %28, %34 : vector<48x99xf32>
      %36 = arith.addf %35, %2 : vector<48x99xf32>
      %cst_25 = arith.constant 0.000000e+00 : f32
      %37 = vector.broadcast %cst_25 : f32 to vector<48x99xf32>
      %38 = arith.maximumf %36, %37 : vector<48x99xf32>
      %39 = arith.truncf %38 : vector<48x99xf32> to vector<48x99xbf16>
      %c1_i32_26 = arith.constant 1 : i32
      %40 = arith.addi %arg5, %c1_i32_26 : i32
      %c48_i32_27 = arith.constant 48 : i32
      %41 = arith.muli %40, %c48_i32_27 : i32
      %42 = tpu.assume_multiple %41, 16 : i32
      %c0_28 = arith.constant 0 : index
      %43 = arith.index_cast %42 : i32 to index
      %c0_29 = arith.constant 0 : index
      %44 = vector.load %arg4[%c0_28, %43, %c0_29] : memref<1x4848x101xbf16, #tpu.memory_space<vmem>>, vector<1x48x101xbf16>
      %45 = vector.shape_cast %44 : vector<1x48x101xbf16> to vector<48x101xbf16>
      %46 = vector.shape_cast %3 : vector<48x101xbf16> to vector<1x48x101xbf16>
      tpu.vector_store %arg4[%c0_28, %43, %c0_29], %46 {strides = array<i32>} : memref<1x4848x101xbf16, #tpu.memory_space<vmem>>, vector<1x48x101xbf16>,
      %c0_30 = arith.constant 0 : index
      %47 = arith.index_cast %42 : i32 to index
      %c1_31 = arith.constant 1 : index
      %48 = vector.load %arg4[%c0_30, %47, %c1_31] : memref<1x4848x101xbf16, #tpu.memory_space<vmem>>, vector<1x48x99xbf16>
      %49 = vector.shape_cast %48 : vector<1x48x99xbf16> to vector<48x99xbf16>
      %50 = vector.shape_cast %39 : vector<48x99xbf16> to vector<1x48x99xbf16>
      tpu.vector_store %arg4[%c0_30, %47, %c1_31], %50 {strides = array<i32>} : memref<1x4848x101xbf16, #tpu.memory_space<vmem>>, vector<1x48x99xbf16>,
    }
    %c99_i32_6 = arith.constant 99 : i32
    return
  }
  func.func @transform_0(%arg0: i32) -> (i32, i32, i32) {
    %c0_i32 = arith.constant 0 : i32
    %c0_i32_0 = arith.constant 0 : i32
    %c0_i32_1 = arith.constant 0 : i32
    return %arg0, %c0_i32, %c0_i32_0 : i32, i32, i32
  }
  func.func @transform_1(%arg0: i32) -> (i32, i32, i32) {
    %c0_i32 = arith.constant 0 : i32
    %c0_i32_0 = arith.constant 0 : i32
    %c0_i32_1 = arith.constant 0 : i32
    %c0_i32_2 = arith.constant 0 : i32
    return %c0_i32, %c0_i32_0, %c0_i32_1 : i32, i32, i32
  }
  func.func @transform_2(%arg0: i32) -> (i32, i32) {
    %c0_i32 = arith.constant 0 : i32
    %c0_i32_0 = arith.constant 0 : i32
    %c0_i32_1 = arith.constant 0 : i32
    return %c0_i32, %c0_i32_0 : i32, i32
  }
  func.func @transform_3(%arg0: i32) -> (i32, i32, i32) {
    %c0_i32 = arith.constant 0 : i32
    %c0_i32_0 = arith.constant 0 : i32
    %c0_i32_1 = arith.constant 0 : i32
    return %arg0, %c0_i32, %c0_i32_0 : i32, i32, i32
  }
}

module attributes {stable_mosaic.version = 11 : i64} {
  func.func @_conv_kernel(%arg0: i32, %arg1: memref<1x4848x101xbf16, #tpu.memory_space<vmem>>, %arg2: memref<3x48x144xbf16, #tpu.memory_space<vmem>>, %arg3: memref<48x1xf32, #tpu.memory_space<vmem>>, %arg4: memref<1x4848x101xbf16, #tpu.memory_space<vmem>>, %arg5: memref<1x4752x99xbf16, #tpu.memory_space<vmem>>) attributes {dimension_semantics = [#tpu.dimension_semantics<parallel>], iteration_bounds = array<i64: 2>, scalar_prefetch = 0 : i64, scratch_operands = 0 : i64, tpu.core_type = #tpu.core_type<tc>, window_params = [{transform_indices = @transform_0, window_bounds = array<i64: 1, 4848, 101>}, {pipeline_mode = #tpu.pipeline_mode<synchronous>, transform_indices = @transform_1, window_bounds = array<i64: 3, 48, 144>}, {pipeline_mode = #tpu.pipeline_mode<synchronous>, transform_indices = @transform_2, window_bounds = array<i64: 48, 1>}, {transform_indices = @transform_3, window_bounds = array<i64: 1, 4848, 101>}, {transform_indices = @transform_4, window_bounds = array<i64: 1, 4752, 99>}]} {
    %c0 = arith.constant 0 : index
    %c0_0 = arith.constant 0 : index
    %0 = vector.load %arg3[%c0, %c0_0] : memref<48x1xf32, #tpu.memory_space<vmem>>, vector<48x1xf32>
    %1 = vector.shape_cast %0 : vector<48x1xf32> to vector<48x1xf32>
    %2 = vector.broadcast %1 : vector<48x1xf32> to vector<48x99xf32>
    %c0_i32 = arith.constant 0 : i32
    %c99_i32 = arith.constant 99 : i32
    %3 = arith.addi %c0_i32, %c99_i32 : i32
    %c1_i32 = arith.constant 1 : i32
    scf.for %arg6 = %c0_i32 to %3 step %c1_i32  : i32 {
      %c1_i32_2 = arith.constant 1 : i32
      %4 = arith.muli %c1_i32_2, %arg6 : i32
      %c48_i32 = arith.constant 48 : i32
      %5 = arith.muli %4, %c48_i32 : i32
      %6 = tpu.assume_multiple %5, 16 : i32
      %cst = arith.constant 0.000000e+00 : f32
      %7 = vector.broadcast %cst : f32 to vector<48x99xf32>
      %c0_3 = arith.constant 0 : index
      %8 = arith.index_cast %6 : i32 to index
      %c0_4 = arith.constant 0 : index
      %9 = vector.load %arg1[%c0_3, %8, %c0_4] : memref<1x4848x101xbf16, #tpu.memory_space<vmem>>, vector<1x144x99xbf16>
      %10 = vector.shape_cast %9 : vector<1x144x99xbf16> to vector<144x99xbf16>
      %c0_5 = arith.constant 0 : index
      %c0_6 = arith.constant 0 : index
      %c0_7 = arith.constant 0 : index
      %11 = vector.load %arg2[%c0_5, %c0_6, %c0_7] : memref<3x48x144xbf16, #tpu.memory_space<vmem>>, vector<1x48x144xbf16>
      %12 = vector.shape_cast %11 : vector<1x48x144xbf16> to vector<48x144xbf16>
      %cst_8 = arith.constant dense<0.000000e+00> : vector<48x99xf32>
      %13 = tpu.matmul %12, %10, %cst_8 {dimension_numbers = #tpu.dot_dimension_numbers<[1], [0], [0], [1], [0, 0, 1, 1], [], []>} : vector<48x144xbf16>, vector<144x99xbf16>, vector<48x99xf32> -> vector<48x99xf32>
      %14 = arith.addf %7, %13 : vector<48x99xf32>
      %c0_9 = arith.constant 0 : index
      %15 = arith.index_cast %6 : i32 to index
      %c1 = arith.constant 1 : index
      %16 = vector.load %arg1[%c0_9, %15, %c1] : memref<1x4848x101xbf16, #tpu.memory_space<vmem>>, vector<1x144x99xbf16>
      %17 = vector.shape_cast %16 : vector<1x144x99xbf16> to vector<144x99xbf16>
      %c1_10 = arith.constant 1 : index
      %c0_11 = arith.constant 0 : index
      %c0_12 = arith.constant 0 : index
      %18 = vector.load %arg2[%c1_10, %c0_11, %c0_12] : memref<3x48x144xbf16, #tpu.memory_space<vmem>>, vector<1x48x144xbf16>
      %19 = vector.shape_cast %18 : vector<1x48x144xbf16> to vector<48x144xbf16>
      %cst_13 = arith.constant dense<0.000000e+00> : vector<48x99xf32>
      %20 = tpu.matmul %19, %17, %cst_13 {dimension_numbers = #tpu.dot_dimension_numbers<[1], [0], [0], [1], [0, 0, 1, 1], [], []>} : vector<48x144xbf16>, vector<144x99xbf16>, vector<48x99xf32> -> vector<48x99xf32>
      %21 = arith.addf %14, %20 : vector<48x99xf32>
      %c0_14 = arith.constant 0 : index
      %22 = arith.index_cast %6 : i32 to index
      %c2 = arith.constant 2 : index
      %23 = vector.load %arg1[%c0_14, %22, %c2] : memref<1x4848x101xbf16, #tpu.memory_space<vmem>>, vector<1x144x99xbf16>
      %24 = vector.shape_cast %23 : vector<1x144x99xbf16> to vector<144x99xbf16>
      %c2_15 = arith.constant 2 : index
      %c0_16 = arith.constant 0 : index
      %c0_17 = arith.constant 0 : index
      %25 = vector.load %arg2[%c2_15, %c0_16, %c0_17] : memref<3x48x144xbf16, #tpu.memory_space<vmem>>, vector<1x48x144xbf16>
      %26 = vector.shape_cast %25 : vector<1x48x144xbf16> to vector<48x144xbf16>
      %cst_18 = arith.constant dense<0.000000e+00> : vector<48x99xf32>
      %27 = tpu.matmul %26, %24, %cst_18 {dimension_numbers = #tpu.dot_dimension_numbers<[1], [0], [0], [1], [0, 0, 1, 1], [], []>} : vector<48x144xbf16>, vector<144x99xbf16>, vector<48x99xf32> -> vector<48x99xf32>
      %28 = arith.addf %21, %27 : vector<48x99xf32>
      %29 = arith.addf %28, %2 : vector<48x99xf32>
      %c1_i32_19 = arith.constant 1 : i32
      %30 = arith.addi %arg6, %c1_i32_19 : i32
      %c48_i32_20 = arith.constant 48 : i32
      %31 = arith.muli %30, %c48_i32_20 : i32
      %32 = tpu.assume_multiple %31, 16 : i32
      %c0_21 = arith.constant 0 : index
      %33 = arith.index_cast %32 : i32 to index
      %c1_22 = arith.constant 1 : index
      %34 = vector.load %arg4[%c0_21, %33, %c1_22] : memref<1x4848x101xbf16, #tpu.memory_space<vmem>>, vector<1x48x99xbf16>
      %35 = vector.shape_cast %34 : vector<1x48x99xbf16> to vector<48x99xbf16>
      %36 = arith.extf %35 : vector<48x99xbf16> to vector<48x99xf32>
      %37 = arith.subf %36, %29 : vector<48x99xf32>
      %cst_23 = arith.constant 0.000000e+00 : f32
      %38 = vector.broadcast %cst_23 : f32 to vector<48x99xf32>
      %39 = arith.maximumf %37, %38 : vector<48x99xf32>
      %40 = arith.truncf %39 : vector<48x99xf32> to vector<48x99xbf16>
      %c48_i32_24 = arith.constant 48 : i32
      %41 = arith.muli %arg6, %c48_i32_24 : i32
      %42 = tpu.assume_multiple %41, 16 : i32
      %c0_25 = arith.constant 0 : index
      %43 = arith.index_cast %42 : i32 to index
      %c0_26 = arith.constant 0 : index
      %44 = vector.load %arg5[%c0_25, %43, %c0_26] : memref<1x4752x99xbf16, #tpu.memory_space<vmem>>, vector<1x48x99xbf16>
      %45 = vector.shape_cast %44 : vector<1x48x99xbf16> to vector<48x99xbf16>
      %46 = vector.shape_cast %40 : vector<48x99xbf16> to vector<1x48x99xbf16>
      tpu.vector_store %arg5[%c0_25, %43, %c0_26], %46 {strides = array<i32>} : memref<1x4752x99xbf16, #tpu.memory_space<vmem>>, vector<1x48x99xbf16>,
    }
    %c99_i32_1 = arith.constant 99 : i32
    return
  }
  func.func @transform_0(%arg0: i32) -> (i32, i32, i32) {
    %c0_i32 = arith.constant 0 : i32
    %c0_i32_0 = arith.constant 0 : i32
    %c0_i32_1 = arith.constant 0 : i32
    return %arg0, %c0_i32, %c0_i32_0 : i32, i32, i32
  }
  func.func @transform_1(%arg0: i32) -> (i32, i32, i32) {
    %c0_i32 = arith.constant 0 : i32
    %c0_i32_0 = arith.constant 0 : i32
    %c0_i32_1 = arith.constant 0 : i32
    %c0_i32_2 = arith.constant 0 : i32
    return %c0_i32, %c0_i32_0, %c0_i32_1 : i32, i32, i32
  }
  func.func @transform_2(%arg0: i32) -> (i32, i32) {
    %c0_i32 = arith.constant 0 : i32
    %c0_i32_0 = arith.constant 0 : i32
    %c0_i32_1 = arith.constant 0 : i32
    return %c0_i32, %c0_i32_0 : i32, i32
  }
  func.func @transform_3(%arg0: i32) -> (i32, i32, i32) {
    %c0_i32 = arith.constant 0 : i32
    %c0_i32_0 = arith.constant 0 : i32
    %c0_i32_1 = arith.constant 0 : i32
    return %arg0, %c0_i32, %c0_i32_0 : i32, i32, i32
  }
  func.func @transform_4(%arg0: i32) -> (i32, i32, i32) {
    %c0_i32 = arith.constant 0 : i32
    %c0_i32_0 = arith.constant 0 : i32
    %c0_i32_1 = arith.constant 0 : i32
    return %arg0, %c0_i32, %c0_i32_0 : i32, i32, i32
  }
}

module attributes {stable_mosaic.version = 11 : i64} {
  func.func @_pool_kernel(%arg0: i32, %arg1: memref<1x4752x99xbf16, #tpu.memory_space<vmem>>, %arg2: memref<1x2448x51xbf16, #tpu.memory_space<vmem>>) attributes {dimension_semantics = [#tpu.dimension_semantics<parallel>], iteration_bounds = array<i64: 2>, scalar_prefetch = 0 : i64, scratch_operands = 0 : i64, tpu.core_type = #tpu.core_type<tc>, window_params = [{transform_indices = @transform_0, window_bounds = array<i64: 1, 4752, 99>}, {transform_indices = @transform_1, window_bounds = array<i64: 1, 2448, 51>}]} {
    %0 = tpu.iota {dimensions = array<i32: 0>} : vector<99x49xi32>
    %1 = tpu.iota {dimensions = array<i32: 1>} : vector<99x49xi32>
    %c2_i32 = arith.constant 2 : i32
    %2 = vector.broadcast %c2_i32 : i32 to vector<99x49xi32>
    %3 = arith.muli %2, %1 : vector<99x49xi32>
    %4 = arith.cmpi sge, %0, %3 : vector<99x49xi32>
    %c2_i32_0 = arith.constant 2 : i32
    %5 = vector.broadcast %c2_i32_0 : i32 to vector<99x49xi32>
    %6 = arith.muli %5, %1 : vector<99x49xi32>
    %c3_i32 = arith.constant 3 : i32
    %7 = vector.broadcast %c3_i32 : i32 to vector<99x49xi32>
    %8 = arith.addi %6, %7 : vector<99x49xi32>
    %9 = arith.cmpi slt, %0, %8 : vector<99x49xi32>
    %10 = arith.andi %4, %9 : vector<99x49xi1>
    %11 = arith.extui %10 : vector<99x49xi1> to vector<99x49xi32>
    %12 = arith.sitofp %11 : vector<99x49xi32> to vector<99x49xf32>
    %cst = arith.constant 0.000000e+00 : bf16
    %13 = vector.broadcast %cst : bf16 to vector<48x51xbf16>
    %c0 = arith.constant 0 : index
    %c0_1 = arith.constant 0 : index
    %c0_2 = arith.constant 0 : index
    %14 = vector.load %arg2[%c0, %c0_1, %c0_2] : memref<1x2448x51xbf16, #tpu.memory_space<vmem>>, vector<1x48x51xbf16>
    %15 = vector.shape_cast %14 : vector<1x48x51xbf16> to vector<48x51xbf16>
    %16 = vector.shape_cast %13 : vector<48x51xbf16> to vector<1x48x51xbf16>
    tpu.vector_store %arg2[%c0, %c0_1, %c0_2], %16 {strides = array<i32>} : memref<1x2448x51xbf16, #tpu.memory_space<vmem>>, vector<1x48x51xbf16>,
    %c0_3 = arith.constant 0 : index
    %c2400 = arith.constant 2400 : index
    %c0_4 = arith.constant 0 : index
    %17 = vector.load %arg2[%c0_3, %c2400, %c0_4] : memref<1x2448x51xbf16, #tpu.memory_space<vmem>>, vector<1x48x51xbf16>
    %18 = vector.shape_cast %17 : vector<1x48x51xbf16> to vector<48x51xbf16>
    %19 = vector.shape_cast %13 : vector<48x51xbf16> to vector<1x48x51xbf16>
    tpu.vector_store %arg2[%c0_3, %c2400, %c0_4], %19 {strides = array<i32>} : memref<1x2448x51xbf16, #tpu.memory_space<vmem>>, vector<1x48x51xbf16>,
    %c0_i32 = arith.constant 0 : i32
    %c49_i32 = arith.constant 49 : i32
    %20 = arith.addi %c0_i32, %c49_i32 : i32
    %c1_i32 = arith.constant 1 : i32
    scf.for %arg3 = %c0_i32 to %20 step %c1_i32  : i32 {
      %cst_6 = arith.constant 0.000000e+00 : f32
      %21 = vector.broadcast %cst_6 : f32 to vector<48x99xf32>
      %c2_i32_7 = arith.constant 2 : i32
      %22 = arith.muli %c2_i32_7, %arg3 : i32
      %c0_i32_8 = arith.constant 0 : i32
      %23 = arith.addi %22, %c0_i32_8 : i32
      %c48_i32 = arith.constant 48 : i32
      %24 = arith.muli %23, %c48_i32 : i32
      %25 = tpu.assume_multiple %24, 16 : i32
      %c0_9 = arith.constant 0 : index
      %26 = arith.index_cast %25 : i32 to index
      %c0_10 = arith.constant 0 : index
      %27 = vector.load %arg1[%c0_9, %26, %c0_10] : memref<1x4752x99xbf16, #tpu.memory_space<vmem>>, vector<1x48x99xbf16>
      %28 = vector.shape_cast %27 : vector<1x48x99xbf16> to vector<48x99xbf16>
      %29 = arith.extf %28 : vector<48x99xbf16> to vector<48x99xf32>
      %30 = arith.addf %21, %29 : vector<48x99xf32>
      %c2_i32_11 = arith.constant 2 : i32
      %31 = arith.muli %c2_i32_11, %arg3 : i32
      %c1_i32_12 = arith.constant 1 : i32
      %32 = arith.addi %31, %c1_i32_12 : i32
      %c48_i32_13 = arith.constant 48 : i32
      %33 = arith.muli %32, %c48_i32_13 : i32
      %34 = tpu.assume_multiple %33, 16 : i32
      %c0_14 = arith.constant 0 : index
      %35 = arith.index_cast %34 : i32 to index
      %c0_15 = arith.constant 0 : index
      %36 = vector.load %arg1[%c0_14, %35, %c0_15] : memref<1x4752x99xbf16, #tpu.memory_space<vmem>>, vector<1x48x99xbf16>
      %37 = vector.shape_cast %36 : vector<1x48x99xbf16> to vector<48x99xbf16>
      %38 = arith.extf %37 : vector<48x99xbf16> to vector<48x99xf32>
      %39 = arith.addf %30, %38 : vector<48x99xf32>
      %c2_i32_16 = arith.constant 2 : i32
      %40 = arith.muli %c2_i32_16, %arg3 : i32
      %c2_i32_17 = arith.constant 2 : i32
      %41 = arith.addi %40, %c2_i32_17 : i32
      %c48_i32_18 = arith.constant 48 : i32
      %42 = arith.muli %41, %c48_i32_18 : i32
      %43 = tpu.assume_multiple %42, 16 : i32
      %c0_19 = arith.constant 0 : index
      %44 = arith.index_cast %43 : i32 to index
      %c0_20 = arith.constant 0 : index
      %45 = vector.load %arg1[%c0_19, %44, %c0_20] : memref<1x4752x99xbf16, #tpu.memory_space<vmem>>, vector<1x48x99xbf16>
      %46 = vector.shape_cast %45 : vector<1x48x99xbf16> to vector<48x99xbf16>
      %47 = arith.extf %46 : vector<48x99xbf16> to vector<48x99xf32>
      %48 = arith.addf %39, %47 : vector<48x99xf32>
      %cst_21 = arith.constant dense<0.000000e+00> : vector<48x49xf32>
      %49 = tpu.matmul %48, %12, %cst_21 {dimension_numbers = #tpu.dot_dimension_numbers<[1], [0], [0], [1], [0, 0, 1, 1], [], []>} : vector<48x99xf32>, vector<99x49xf32>, vector<48x49xf32> -> vector<48x49xf32>
      %cst_22 = arith.constant 0.111111112 : f32
      %50 = vector.broadcast %cst_22 : f32 to vector<48x49xf32>
      %51 = arith.mulf %49, %50 : vector<48x49xf32>
      %52 = arith.truncf %51 : vector<48x49xf32> to vector<48x49xbf16>
      %c1_i32_23 = arith.constant 1 : i32
      %53 = arith.addi %arg3, %c1_i32_23 : i32
      %c48_i32_24 = arith.constant 48 : i32
      %54 = arith.muli %53, %c48_i32_24 : i32
      %55 = tpu.assume_multiple %54, 16 : i32
      %c0_25 = arith.constant 0 : index
      %56 = arith.index_cast %55 : i32 to index
      %c0_26 = arith.constant 0 : index
      %57 = vector.load %arg2[%c0_25, %56, %c0_26] : memref<1x2448x51xbf16, #tpu.memory_space<vmem>>, vector<1x48x51xbf16>
      %58 = vector.shape_cast %57 : vector<1x48x51xbf16> to vector<48x51xbf16>
      %59 = vector.shape_cast %13 : vector<48x51xbf16> to vector<1x48x51xbf16>
      tpu.vector_store %arg2[%c0_25, %56, %c0_26], %59 {strides = array<i32>} : memref<1x2448x51xbf16, #tpu.memory_space<vmem>>, vector<1x48x51xbf16>,
      %c0_27 = arith.constant 0 : index
      %60 = arith.index_cast %55 : i32 to index
      %c1 = arith.constant 1 : index
      %61 = vector.load %arg2[%c0_27, %60, %c1] : memref<1x2448x51xbf16, #tpu.memory_space<vmem>>, vector<1x48x49xbf16>
      %62 = vector.shape_cast %61 : vector<1x48x49xbf16> to vector<48x49xbf16>
      %63 = vector.shape_cast %52 : vector<48x49xbf16> to vector<1x48x49xbf16>
      tpu.vector_store %arg2[%c0_27, %60, %c1], %63 {strides = array<i32>} : memref<1x2448x51xbf16, #tpu.memory_space<vmem>>, vector<1x48x49xbf16>,
    }
    %c49_i32_5 = arith.constant 49 : i32
    return
  }
  func.func @transform_0(%arg0: i32) -> (i32, i32, i32) {
    %c0_i32 = arith.constant 0 : i32
    %c0_i32_0 = arith.constant 0 : i32
    %c0_i32_1 = arith.constant 0 : i32
    return %arg0, %c0_i32, %c0_i32_0 : i32, i32, i32
  }
  func.func @transform_1(%arg0: i32) -> (i32, i32, i32) {
    %c0_i32 = arith.constant 0 : i32
    %c0_i32_0 = arith.constant 0 : i32
    %c0_i32_1 = arith.constant 0 : i32
    return %arg0, %c0_i32, %c0_i32_0 : i32, i32, i32
  }
}

module attributes {stable_mosaic.version = 11 : i64} {
  func.func @_conv_kernel(%arg0: i32, %arg1: memref<1x2448x51xbf16, #tpu.memory_space<vmem>>, %arg2: memref<3x48x144xbf16, #tpu.memory_space<vmem>>, %arg3: memref<48x1xf32, #tpu.memory_space<vmem>>, %arg4: memref<1x2448x51xbf16, #tpu.memory_space<vmem>>) attributes {dimension_semantics = [#tpu.dimension_semantics<parallel>], iteration_bounds = array<i64: 2>, scalar_prefetch = 0 : i64, scratch_operands = 0 : i64, tpu.core_type = #tpu.core_type<tc>, window_params = [{transform_indices = @transform_0, window_bounds = array<i64: 1, 2448, 51>}, {pipeline_mode = #tpu.pipeline_mode<synchronous>, transform_indices = @transform_1, window_bounds = array<i64: 3, 48, 144>}, {pipeline_mode = #tpu.pipeline_mode<synchronous>, transform_indices = @transform_2, window_bounds = array<i64: 48, 1>}, {transform_indices = @transform_3, window_bounds = array<i64: 1, 2448, 51>}]} {
    %c0 = arith.constant 0 : index
    %c0_0 = arith.constant 0 : index
    %0 = vector.load %arg3[%c0, %c0_0] : memref<48x1xf32, #tpu.memory_space<vmem>>, vector<48x1xf32>
    %1 = vector.shape_cast %0 : vector<48x1xf32> to vector<48x1xf32>
    %2 = vector.broadcast %1 : vector<48x1xf32> to vector<48x49xf32>
    %cst = arith.constant 0.000000e+00 : bf16
    %3 = vector.broadcast %cst : bf16 to vector<48x51xbf16>
    %c0_1 = arith.constant 0 : index
    %c0_2 = arith.constant 0 : index
    %c0_3 = arith.constant 0 : index
    %4 = vector.load %arg4[%c0_1, %c0_2, %c0_3] : memref<1x2448x51xbf16, #tpu.memory_space<vmem>>, vector<1x48x51xbf16>
    %5 = vector.shape_cast %4 : vector<1x48x51xbf16> to vector<48x51xbf16>
    %6 = vector.shape_cast %3 : vector<48x51xbf16> to vector<1x48x51xbf16>
    tpu.vector_store %arg4[%c0_1, %c0_2, %c0_3], %6 {strides = array<i32>} : memref<1x2448x51xbf16, #tpu.memory_space<vmem>>, vector<1x48x51xbf16>,
    %c0_4 = arith.constant 0 : index
    %c2400 = arith.constant 2400 : index
    %c0_5 = arith.constant 0 : index
    %7 = vector.load %arg4[%c0_4, %c2400, %c0_5] : memref<1x2448x51xbf16, #tpu.memory_space<vmem>>, vector<1x48x51xbf16>
    %8 = vector.shape_cast %7 : vector<1x48x51xbf16> to vector<48x51xbf16>
    %9 = vector.shape_cast %3 : vector<48x51xbf16> to vector<1x48x51xbf16>
    tpu.vector_store %arg4[%c0_4, %c2400, %c0_5], %9 {strides = array<i32>} : memref<1x2448x51xbf16, #tpu.memory_space<vmem>>, vector<1x48x51xbf16>,
    %c0_i32 = arith.constant 0 : i32
    %c49_i32 = arith.constant 49 : i32
    %10 = arith.addi %c0_i32, %c49_i32 : i32
    %c1_i32 = arith.constant 1 : i32
    scf.for %arg5 = %c0_i32 to %10 step %c1_i32  : i32 {
      %c1_i32_7 = arith.constant 1 : i32
      %11 = arith.muli %c1_i32_7, %arg5 : i32
      %c48_i32 = arith.constant 48 : i32
      %12 = arith.muli %11, %c48_i32 : i32
      %13 = tpu.assume_multiple %12, 16 : i32
      %cst_8 = arith.constant 0.000000e+00 : f32
      %14 = vector.broadcast %cst_8 : f32 to vector<48x49xf32>
      %c0_9 = arith.constant 0 : index
      %15 = arith.index_cast %13 : i32 to index
      %c0_10 = arith.constant 0 : index
      %16 = vector.load %arg1[%c0_9, %15, %c0_10] : memref<1x2448x51xbf16, #tpu.memory_space<vmem>>, vector<1x144x49xbf16>
      %17 = vector.shape_cast %16 : vector<1x144x49xbf16> to vector<144x49xbf16>
      %c0_11 = arith.constant 0 : index
      %c0_12 = arith.constant 0 : index
      %c0_13 = arith.constant 0 : index
      %18 = vector.load %arg2[%c0_11, %c0_12, %c0_13] : memref<3x48x144xbf16, #tpu.memory_space<vmem>>, vector<1x48x144xbf16>
      %19 = vector.shape_cast %18 : vector<1x48x144xbf16> to vector<48x144xbf16>
      %cst_14 = arith.constant dense<0.000000e+00> : vector<48x49xf32>
      %20 = tpu.matmul %19, %17, %cst_14 {dimension_numbers = #tpu.dot_dimension_numbers<[1], [0], [0], [1], [0, 0, 1, 1], [], []>} : vector<48x144xbf16>, vector<144x49xbf16>, vector<48x49xf32> -> vector<48x49xf32>
      %21 = arith.addf %14, %20 : vector<48x49xf32>
      %c0_15 = arith.constant 0 : index
      %22 = arith.index_cast %13 : i32 to index
      %c1 = arith.constant 1 : index
      %23 = vector.load %arg1[%c0_15, %22, %c1] : memref<1x2448x51xbf16, #tpu.memory_space<vmem>>, vector<1x144x49xbf16>
      %24 = vector.shape_cast %23 : vector<1x144x49xbf16> to vector<144x49xbf16>
      %c1_16 = arith.constant 1 : index
      %c0_17 = arith.constant 0 : index
      %c0_18 = arith.constant 0 : index
      %25 = vector.load %arg2[%c1_16, %c0_17, %c0_18] : memref<3x48x144xbf16, #tpu.memory_space<vmem>>, vector<1x48x144xbf16>
      %26 = vector.shape_cast %25 : vector<1x48x144xbf16> to vector<48x144xbf16>
      %cst_19 = arith.constant dense<0.000000e+00> : vector<48x49xf32>
      %27 = tpu.matmul %26, %24, %cst_19 {dimension_numbers = #tpu.dot_dimension_numbers<[1], [0], [0], [1], [0, 0, 1, 1], [], []>} : vector<48x144xbf16>, vector<144x49xbf16>, vector<48x49xf32> -> vector<48x49xf32>
      %28 = arith.addf %21, %27 : vector<48x49xf32>
      %c0_20 = arith.constant 0 : index
      %29 = arith.index_cast %13 : i32 to index
      %c2 = arith.constant 2 : index
      %30 = vector.load %arg1[%c0_20, %29, %c2] : memref<1x2448x51xbf16, #tpu.memory_space<vmem>>, vector<1x144x49xbf16>
      %31 = vector.shape_cast %30 : vector<1x144x49xbf16> to vector<144x49xbf16>
      %c2_21 = arith.constant 2 : index
      %c0_22 = arith.constant 0 : index
      %c0_23 = arith.constant 0 : index
      %32 = vector.load %arg2[%c2_21, %c0_22, %c0_23] : memref<3x48x144xbf16, #tpu.memory_space<vmem>>, vector<1x48x144xbf16>
      %33 = vector.shape_cast %32 : vector<1x48x144xbf16> to vector<48x144xbf16>
      %cst_24 = arith.constant dense<0.000000e+00> : vector<48x49xf32>
      %34 = tpu.matmul %33, %31, %cst_24 {dimension_numbers = #tpu.dot_dimension_numbers<[1], [0], [0], [1], [0, 0, 1, 1], [], []>} : vector<48x144xbf16>, vector<144x49xbf16>, vector<48x49xf32> -> vector<48x49xf32>
      %35 = arith.addf %28, %34 : vector<48x49xf32>
      %36 = arith.addf %35, %2 : vector<48x49xf32>
      %cst_25 = arith.constant 0.000000e+00 : f32
      %37 = vector.broadcast %cst_25 : f32 to vector<48x49xf32>
      %38 = arith.maximumf %36, %37 : vector<48x49xf32>
      %39 = arith.truncf %38 : vector<48x49xf32> to vector<48x49xbf16>
      %c1_i32_26 = arith.constant 1 : i32
      %40 = arith.addi %arg5, %c1_i32_26 : i32
      %c48_i32_27 = arith.constant 48 : i32
      %41 = arith.muli %40, %c48_i32_27 : i32
      %42 = tpu.assume_multiple %41, 16 : i32
      %c0_28 = arith.constant 0 : index
      %43 = arith.index_cast %42 : i32 to index
      %c0_29 = arith.constant 0 : index
      %44 = vector.load %arg4[%c0_28, %43, %c0_29] : memref<1x2448x51xbf16, #tpu.memory_space<vmem>>, vector<1x48x51xbf16>
      %45 = vector.shape_cast %44 : vector<1x48x51xbf16> to vector<48x51xbf16>
      %46 = vector.shape_cast %3 : vector<48x51xbf16> to vector<1x48x51xbf16>
      tpu.vector_store %arg4[%c0_28, %43, %c0_29], %46 {strides = array<i32>} : memref<1x2448x51xbf16, #tpu.memory_space<vmem>>, vector<1x48x51xbf16>,
      %c0_30 = arith.constant 0 : index
      %47 = arith.index_cast %42 : i32 to index
      %c1_31 = arith.constant 1 : index
      %48 = vector.load %arg4[%c0_30, %47, %c1_31] : memref<1x2448x51xbf16, #tpu.memory_space<vmem>>, vector<1x48x49xbf16>
      %49 = vector.shape_cast %48 : vector<1x48x49xbf16> to vector<48x49xbf16>
      %50 = vector.shape_cast %39 : vector<48x49xbf16> to vector<1x48x49xbf16>
      tpu.vector_store %arg4[%c0_30, %47, %c1_31], %50 {strides = array<i32>} : memref<1x2448x51xbf16, #tpu.memory_space<vmem>>, vector<1x48x49xbf16>,
    }
    %c49_i32_6 = arith.constant 49 : i32
    return
  }
  func.func @transform_0(%arg0: i32) -> (i32, i32, i32) {
    %c0_i32 = arith.constant 0 : i32
    %c0_i32_0 = arith.constant 0 : i32
    %c0_i32_1 = arith.constant 0 : i32
    return %arg0, %c0_i32, %c0_i32_0 : i32, i32, i32
  }
  func.func @transform_1(%arg0: i32) -> (i32, i32, i32) {
    %c0_i32 = arith.constant 0 : i32
    %c0_i32_0 = arith.constant 0 : i32
    %c0_i32_1 = arith.constant 0 : i32
    %c0_i32_2 = arith.constant 0 : i32
    return %c0_i32, %c0_i32_0, %c0_i32_1 : i32, i32, i32
  }
  func.func @transform_2(%arg0: i32) -> (i32, i32) {
    %c0_i32 = arith.constant 0 : i32
    %c0_i32_0 = arith.constant 0 : i32
    %c0_i32_1 = arith.constant 0 : i32
    return %c0_i32, %c0_i32_0 : i32, i32
  }
  func.func @transform_3(%arg0: i32) -> (i32, i32, i32) {
    %c0_i32 = arith.constant 0 : i32
    %c0_i32_0 = arith.constant 0 : i32
    %c0_i32_1 = arith.constant 0 : i32
    return %arg0, %c0_i32, %c0_i32_0 : i32, i32, i32
  }
}

module attributes {stable_mosaic.version = 11 : i64} {
  func.func @_conv_kernel(%arg0: i32, %arg1: memref<1x2448x51xbf16, #tpu.memory_space<vmem>>, %arg2: memref<3x48x144xbf16, #tpu.memory_space<vmem>>, %arg3: memref<48x1xf32, #tpu.memory_space<vmem>>, %arg4: memref<1x2448x51xbf16, #tpu.memory_space<vmem>>, %arg5: memref<1x2352x49xbf16, #tpu.memory_space<vmem>>) attributes {dimension_semantics = [#tpu.dimension_semantics<parallel>], iteration_bounds = array<i64: 2>, scalar_prefetch = 0 : i64, scratch_operands = 0 : i64, tpu.core_type = #tpu.core_type<tc>, window_params = [{transform_indices = @transform_0, window_bounds = array<i64: 1, 2448, 51>}, {pipeline_mode = #tpu.pipeline_mode<synchronous>, transform_indices = @transform_1, window_bounds = array<i64: 3, 48, 144>}, {pipeline_mode = #tpu.pipeline_mode<synchronous>, transform_indices = @transform_2, window_bounds = array<i64: 48, 1>}, {transform_indices = @transform_3, window_bounds = array<i64: 1, 2448, 51>}, {transform_indices = @transform_4, window_bounds = array<i64: 1, 2352, 49>}]} {
    %c0 = arith.constant 0 : index
    %c0_0 = arith.constant 0 : index
    %0 = vector.load %arg3[%c0, %c0_0] : memref<48x1xf32, #tpu.memory_space<vmem>>, vector<48x1xf32>
    %1 = vector.shape_cast %0 : vector<48x1xf32> to vector<48x1xf32>
    %2 = vector.broadcast %1 : vector<48x1xf32> to vector<48x49xf32>
    %c0_i32 = arith.constant 0 : i32
    %c49_i32 = arith.constant 49 : i32
    %3 = arith.addi %c0_i32, %c49_i32 : i32
    %c1_i32 = arith.constant 1 : i32
    scf.for %arg6 = %c0_i32 to %3 step %c1_i32  : i32 {
      %c1_i32_2 = arith.constant 1 : i32
      %4 = arith.muli %c1_i32_2, %arg6 : i32
      %c48_i32 = arith.constant 48 : i32
      %5 = arith.muli %4, %c48_i32 : i32
      %6 = tpu.assume_multiple %5, 16 : i32
      %cst = arith.constant 0.000000e+00 : f32
      %7 = vector.broadcast %cst : f32 to vector<48x49xf32>
      %c0_3 = arith.constant 0 : index
      %8 = arith.index_cast %6 : i32 to index
      %c0_4 = arith.constant 0 : index
      %9 = vector.load %arg1[%c0_3, %8, %c0_4] : memref<1x2448x51xbf16, #tpu.memory_space<vmem>>, vector<1x144x49xbf16>
      %10 = vector.shape_cast %9 : vector<1x144x49xbf16> to vector<144x49xbf16>
      %c0_5 = arith.constant 0 : index
      %c0_6 = arith.constant 0 : index
      %c0_7 = arith.constant 0 : index
      %11 = vector.load %arg2[%c0_5, %c0_6, %c0_7] : memref<3x48x144xbf16, #tpu.memory_space<vmem>>, vector<1x48x144xbf16>
      %12 = vector.shape_cast %11 : vector<1x48x144xbf16> to vector<48x144xbf16>
      %cst_8 = arith.constant dense<0.000000e+00> : vector<48x49xf32>
      %13 = tpu.matmul %12, %10, %cst_8 {dimension_numbers = #tpu.dot_dimension_numbers<[1], [0], [0], [1], [0, 0, 1, 1], [], []>} : vector<48x144xbf16>, vector<144x49xbf16>, vector<48x49xf32> -> vector<48x49xf32>
      %14 = arith.addf %7, %13 : vector<48x49xf32>
      %c0_9 = arith.constant 0 : index
      %15 = arith.index_cast %6 : i32 to index
      %c1 = arith.constant 1 : index
      %16 = vector.load %arg1[%c0_9, %15, %c1] : memref<1x2448x51xbf16, #tpu.memory_space<vmem>>, vector<1x144x49xbf16>
      %17 = vector.shape_cast %16 : vector<1x144x49xbf16> to vector<144x49xbf16>
      %c1_10 = arith.constant 1 : index
      %c0_11 = arith.constant 0 : index
      %c0_12 = arith.constant 0 : index
      %18 = vector.load %arg2[%c1_10, %c0_11, %c0_12] : memref<3x48x144xbf16, #tpu.memory_space<vmem>>, vector<1x48x144xbf16>
      %19 = vector.shape_cast %18 : vector<1x48x144xbf16> to vector<48x144xbf16>
      %cst_13 = arith.constant dense<0.000000e+00> : vector<48x49xf32>
      %20 = tpu.matmul %19, %17, %cst_13 {dimension_numbers = #tpu.dot_dimension_numbers<[1], [0], [0], [1], [0, 0, 1, 1], [], []>} : vector<48x144xbf16>, vector<144x49xbf16>, vector<48x49xf32> -> vector<48x49xf32>
      %21 = arith.addf %14, %20 : vector<48x49xf32>
      %c0_14 = arith.constant 0 : index
      %22 = arith.index_cast %6 : i32 to index
      %c2 = arith.constant 2 : index
      %23 = vector.load %arg1[%c0_14, %22, %c2] : memref<1x2448x51xbf16, #tpu.memory_space<vmem>>, vector<1x144x49xbf16>
      %24 = vector.shape_cast %23 : vector<1x144x49xbf16> to vector<144x49xbf16>
      %c2_15 = arith.constant 2 : index
      %c0_16 = arith.constant 0 : index
      %c0_17 = arith.constant 0 : index
      %25 = vector.load %arg2[%c2_15, %c0_16, %c0_17] : memref<3x48x144xbf16, #tpu.memory_space<vmem>>, vector<1x48x144xbf16>
      %26 = vector.shape_cast %25 : vector<1x48x144xbf16> to vector<48x144xbf16>
      %cst_18 = arith.constant dense<0.000000e+00> : vector<48x49xf32>
      %27 = tpu.matmul %26, %24, %cst_18 {dimension_numbers = #tpu.dot_dimension_numbers<[1], [0], [0], [1], [0, 0, 1, 1], [], []>} : vector<48x144xbf16>, vector<144x49xbf16>, vector<48x49xf32> -> vector<48x49xf32>
      %28 = arith.addf %21, %27 : vector<48x49xf32>
      %29 = arith.addf %28, %2 : vector<48x49xf32>
      %c1_i32_19 = arith.constant 1 : i32
      %30 = arith.addi %arg6, %c1_i32_19 : i32
      %c48_i32_20 = arith.constant 48 : i32
      %31 = arith.muli %30, %c48_i32_20 : i32
      %32 = tpu.assume_multiple %31, 16 : i32
      %c0_21 = arith.constant 0 : index
      %33 = arith.index_cast %32 : i32 to index
      %c1_22 = arith.constant 1 : index
      %34 = vector.load %arg4[%c0_21, %33, %c1_22] : memref<1x2448x51xbf16, #tpu.memory_space<vmem>>, vector<1x48x49xbf16>
      %35 = vector.shape_cast %34 : vector<1x48x49xbf16> to vector<48x49xbf16>
      %36 = arith.extf %35 : vector<48x49xbf16> to vector<48x49xf32>
      %37 = arith.subf %36, %29 : vector<48x49xf32>
      %cst_23 = arith.constant 0.000000e+00 : f32
      %38 = vector.broadcast %cst_23 : f32 to vector<48x49xf32>
      %39 = arith.maximumf %37, %38 : vector<48x49xf32>
      %40 = arith.truncf %39 : vector<48x49xf32> to vector<48x49xbf16>
      %c48_i32_24 = arith.constant 48 : i32
      %41 = arith.muli %arg6, %c48_i32_24 : i32
      %42 = tpu.assume_multiple %41, 16 : i32
      %c0_25 = arith.constant 0 : index
      %43 = arith.index_cast %42 : i32 to index
      %c0_26 = arith.constant 0 : index
      %44 = vector.load %arg5[%c0_25, %43, %c0_26] : memref<1x2352x49xbf16, #tpu.memory_space<vmem>>, vector<1x48x49xbf16>
      %45 = vector.shape_cast %44 : vector<1x48x49xbf16> to vector<48x49xbf16>
      %46 = vector.shape_cast %40 : vector<48x49xbf16> to vector<1x48x49xbf16>
      tpu.vector_store %arg5[%c0_25, %43, %c0_26], %46 {strides = array<i32>} : memref<1x2352x49xbf16, #tpu.memory_space<vmem>>, vector<1x48x49xbf16>,
    }
    %c49_i32_1 = arith.constant 49 : i32
    return
  }
  func.func @transform_0(%arg0: i32) -> (i32, i32, i32) {
    %c0_i32 = arith.constant 0 : i32
    %c0_i32_0 = arith.constant 0 : i32
    %c0_i32_1 = arith.constant 0 : i32
    return %arg0, %c0_i32, %c0_i32_0 : i32, i32, i32
  }
  func.func @transform_1(%arg0: i32) -> (i32, i32, i32) {
    %c0_i32 = arith.constant 0 : i32
    %c0_i32_0 = arith.constant 0 : i32
    %c0_i32_1 = arith.constant 0 : i32
    %c0_i32_2 = arith.constant 0 : i32
    return %c0_i32, %c0_i32_0, %c0_i32_1 : i32, i32, i32
  }
  func.func @transform_2(%arg0: i32) -> (i32, i32) {
    %c0_i32 = arith.constant 0 : i32
    %c0_i32_0 = arith.constant 0 : i32
    %c0_i32_1 = arith.constant 0 : i32
    return %c0_i32, %c0_i32_0 : i32, i32
  }
  func.func @transform_3(%arg0: i32) -> (i32, i32, i32) {
    %c0_i32 = arith.constant 0 : i32
    %c0_i32_0 = arith.constant 0 : i32
    %c0_i32_1 = arith.constant 0 : i32
    return %arg0, %c0_i32, %c0_i32_0 : i32, i32, i32
  }
  func.func @transform_4(%arg0: i32) -> (i32, i32, i32) {
    %c0_i32 = arith.constant 0 : i32
    %c0_i32_0 = arith.constant 0 : i32
    %c0_i32_1 = arith.constant 0 : i32
    return %arg0, %c0_i32, %c0_i32_0 : i32, i32, i32
  }
}

module attributes {stable_mosaic.version = 11 : i64} {
  func.func @_pool_kernel(%arg0: i32, %arg1: memref<1x2352x49xbf16, #tpu.memory_space<vmem>>, %arg2: memref<1x1152x24xbf16, #tpu.memory_space<vmem>>) attributes {dimension_semantics = [#tpu.dimension_semantics<parallel>], iteration_bounds = array<i64: 2>, scalar_prefetch = 0 : i64, scratch_operands = 0 : i64, tpu.core_type = #tpu.core_type<tc>, window_params = [{transform_indices = @transform_0, window_bounds = array<i64: 1, 2352, 49>}, {transform_indices = @transform_1, window_bounds = array<i64: 1, 1152, 24>}]} {
    %0 = tpu.iota {dimensions = array<i32: 0>} : vector<49x24xi32>
    %1 = tpu.iota {dimensions = array<i32: 1>} : vector<49x24xi32>
    %c2_i32 = arith.constant 2 : i32
    %2 = vector.broadcast %c2_i32 : i32 to vector<49x24xi32>
    %3 = arith.muli %2, %1 : vector<49x24xi32>
    %4 = arith.cmpi sge, %0, %3 : vector<49x24xi32>
    %c2_i32_0 = arith.constant 2 : i32
    %5 = vector.broadcast %c2_i32_0 : i32 to vector<49x24xi32>
    %6 = arith.muli %5, %1 : vector<49x24xi32>
    %c3_i32 = arith.constant 3 : i32
    %7 = vector.broadcast %c3_i32 : i32 to vector<49x24xi32>
    %8 = arith.addi %6, %7 : vector<49x24xi32>
    %9 = arith.cmpi slt, %0, %8 : vector<49x24xi32>
    %10 = arith.andi %4, %9 : vector<49x24xi1>
    %11 = arith.extui %10 : vector<49x24xi1> to vector<49x24xi32>
    %12 = arith.sitofp %11 : vector<49x24xi32> to vector<49x24xf32>
    %c0_i32 = arith.constant 0 : i32
    %c24_i32 = arith.constant 24 : i32
    %13 = arith.addi %c0_i32, %c24_i32 : i32
    %c1_i32 = arith.constant 1 : i32
    scf.for %arg3 = %c0_i32 to %13 step %c1_i32  : i32 {
      %cst = arith.constant 0.000000e+00 : f32
      %14 = vector.broadcast %cst : f32 to vector<48x49xf32>
      %c2_i32_2 = arith.constant 2 : i32
      %15 = arith.muli %c2_i32_2, %arg3 : i32
      %c0_i32_3 = arith.constant 0 : i32
      %16 = arith.addi %15, %c0_i32_3 : i32
      %c48_i32 = arith.constant 48 : i32
      %17 = arith.muli %16, %c48_i32 : i32
      %18 = tpu.assume_multiple %17, 16 : i32
      %c0 = arith.constant 0 : index
      %19 = arith.index_cast %18 : i32 to index
      %c0_4 = arith.constant 0 : index
      %20 = vector.load %arg1[%c0, %19, %c0_4] : memref<1x2352x49xbf16, #tpu.memory_space<vmem>>, vector<1x48x49xbf16>
      %21 = vector.shape_cast %20 : vector<1x48x49xbf16> to vector<48x49xbf16>
      %22 = arith.extf %21 : vector<48x49xbf16> to vector<48x49xf32>
      %23 = arith.addf %14, %22 : vector<48x49xf32>
      %c2_i32_5 = arith.constant 2 : i32
      %24 = arith.muli %c2_i32_5, %arg3 : i32
      %c1_i32_6 = arith.constant 1 : i32
      %25 = arith.addi %24, %c1_i32_6 : i32
      %c48_i32_7 = arith.constant 48 : i32
      %26 = arith.muli %25, %c48_i32_7 : i32
      %27 = tpu.assume_multiple %26, 16 : i32
      %c0_8 = arith.constant 0 : index
      %28 = arith.index_cast %27 : i32 to index
      %c0_9 = arith.constant 0 : index
      %29 = vector.load %arg1[%c0_8, %28, %c0_9] : memref<1x2352x49xbf16, #tpu.memory_space<vmem>>, vector<1x48x49xbf16>
      %30 = vector.shape_cast %29 : vector<1x48x49xbf16> to vector<48x49xbf16>
      %31 = arith.extf %30 : vector<48x49xbf16> to vector<48x49xf32>
      %32 = arith.addf %23, %31 : vector<48x49xf32>
      %c2_i32_10 = arith.constant 2 : i32
      %33 = arith.muli %c2_i32_10, %arg3 : i32
      %c2_i32_11 = arith.constant 2 : i32
      %34 = arith.addi %33, %c2_i32_11 : i32
      %c48_i32_12 = arith.constant 48 : i32
      %35 = arith.muli %34, %c48_i32_12 : i32
      %36 = tpu.assume_multiple %35, 16 : i32
      %c0_13 = arith.constant 0 : index
      %37 = arith.index_cast %36 : i32 to index
      %c0_14 = arith.constant 0 : index
      %38 = vector.load %arg1[%c0_13, %37, %c0_14] : memref<1x2352x49xbf16, #tpu.memory_space<vmem>>, vector<1x48x49xbf16>
      %39 = vector.shape_cast %38 : vector<1x48x49xbf16> to vector<48x49xbf16>
      %40 = arith.extf %39 : vector<48x49xbf16> to vector<48x49xf32>
      %41 = arith.addf %32, %40 : vector<48x49xf32>
      %cst_15 = arith.constant dense<0.000000e+00> : vector<48x24xf32>
      %42 = tpu.matmul %41, %12, %cst_15 {dimension_numbers = #tpu.dot_dimension_numbers<[1], [0], [0], [1], [0, 0, 1, 1], [], []>} : vector<48x49xf32>, vector<49x24xf32>, vector<48x24xf32> -> vector<48x24xf32>
      %cst_16 = arith.constant 0.111111112 : f32
      %43 = vector.broadcast %cst_16 : f32 to vector<48x24xf32>
      %44 = arith.mulf %42, %43 : vector<48x24xf32>
      %45 = arith.truncf %44 : vector<48x24xf32> to vector<48x24xbf16>
      %c48_i32_17 = arith.constant 48 : i32
      %46 = arith.muli %arg3, %c48_i32_17 : i32
      %47 = tpu.assume_multiple %46, 16 : i32
      %c0_18 = arith.constant 0 : index
      %48 = arith.index_cast %47 : i32 to index
      %c0_19 = arith.constant 0 : index
      %49 = vector.load %arg2[%c0_18, %48, %c0_19] : memref<1x1152x24xbf16, #tpu.memory_space<vmem>>, vector<1x48x24xbf16>
      %50 = vector.shape_cast %49 : vector<1x48x24xbf16> to vector<48x24xbf16>
      %51 = vector.shape_cast %45 : vector<48x24xbf16> to vector<1x48x24xbf16>
      tpu.vector_store %arg2[%c0_18, %48, %c0_19], %51 {strides = array<i32>} : memref<1x1152x24xbf16, #tpu.memory_space<vmem>>, vector<1x48x24xbf16>,
    }
    %c24_i32_1 = arith.constant 24 : i32
    return
  }
  func.func @transform_0(%arg0: i32) -> (i32, i32, i32) {
    %c0_i32 = arith.constant 0 : i32
    %c0_i32_0 = arith.constant 0 : i32
    %c0_i32_1 = arith.constant 0 : i32
    return %arg0, %c0_i32, %c0_i32_0 : i32, i32, i32
  }
  func.func @transform_1(%arg0: i32) -> (i32, i32, i32) {
    %c0_i32 = arith.constant 0 : i32
    %c0_i32_0 = arith.constant 0 : i32
    %c0_i32_1 = arith.constant 0 : i32
    return %arg0, %c0_i32, %c0_i32_0 : i32, i32, i32
  }
}

module attributes {stable_mosaic.version = 11 : i64} {
  func.func @_pool_kernel(%arg0: i32, %arg1: memref<1x704x22xbf16, #tpu.memory_space<vmem>>, %arg2: memref<1x352x11xbf16, #tpu.memory_space<vmem>>) attributes {dimension_semantics = [#tpu.dimension_semantics<parallel>], iteration_bounds = array<i64: 2>, scalar_prefetch = 0 : i64, scratch_operands = 0 : i64, tpu.core_type = #tpu.core_type<tc>, window_params = [{transform_indices = @transform_0, window_bounds = array<i64: 1, 704, 22>}, {transform_indices = @transform_1, window_bounds = array<i64: 1, 352, 11>}]} {
    %0 = tpu.iota {dimensions = array<i32: 0>} : vector<22x11xi32>
    %1 = tpu.iota {dimensions = array<i32: 1>} : vector<22x11xi32>
    %c2_i32 = arith.constant 2 : i32
    %2 = vector.broadcast %c2_i32 : i32 to vector<22x11xi32>
    %3 = arith.muli %2, %1 : vector<22x11xi32>
    %4 = arith.cmpi sge, %0, %3 : vector<22x11xi32>
    %c2_i32_0 = arith.constant 2 : i32
    %5 = vector.broadcast %c2_i32_0 : i32 to vector<22x11xi32>
    %6 = arith.muli %5, %1 : vector<22x11xi32>
    %c2_i32_1 = arith.constant 2 : i32
    %7 = vector.broadcast %c2_i32_1 : i32 to vector<22x11xi32>
    %8 = arith.addi %6, %7 : vector<22x11xi32>
    %9 = arith.cmpi slt, %0, %8 : vector<22x11xi32>
    %10 = arith.andi %4, %9 : vector<22x11xi1>
    %11 = arith.extui %10 : vector<22x11xi1> to vector<22x11xi32>
    %12 = arith.sitofp %11 : vector<22x11xi32> to vector<22x11xf32>
    %c0_i32 = arith.constant 0 : i32
    %c11_i32 = arith.constant 11 : i32
    %13 = arith.addi %c0_i32, %c11_i32 : i32
    %c1_i32 = arith.constant 1 : i32
    scf.for %arg3 = %c0_i32 to %13 step %c1_i32  : i32 {
      %cst = arith.constant 0.000000e+00 : f32
      %14 = vector.broadcast %cst : f32 to vector<32x22xf32>
      %c2_i32_3 = arith.constant 2 : i32
      %15 = arith.muli %c2_i32_3, %arg3 : i32
      %c0_i32_4 = arith.constant 0 : i32
      %16 = arith.addi %15, %c0_i32_4 : i32
      %c32_i32 = arith.constant 32 : i32
      %17 = arith.muli %16, %c32_i32 : i32
      %18 = tpu.assume_multiple %17, 16 : i32
      %c0 = arith.constant 0 : index
      %19 = arith.index_cast %18 : i32 to index
      %c0_5 = arith.constant 0 : index
      %20 = vector.load %arg1[%c0, %19, %c0_5] : memref<1x704x22xbf16, #tpu.memory_space<vmem>>, vector<1x32x22xbf16>
      %21 = vector.shape_cast %20 : vector<1x32x22xbf16> to vector<32x22xbf16>
      %22 = arith.extf %21 : vector<32x22xbf16> to vector<32x22xf32>
      %23 = arith.addf %14, %22 : vector<32x22xf32>
      %c2_i32_6 = arith.constant 2 : i32
      %24 = arith.muli %c2_i32_6, %arg3 : i32
      %c1_i32_7 = arith.constant 1 : i32
      %25 = arith.addi %24, %c1_i32_7 : i32
      %c32_i32_8 = arith.constant 32 : i32
      %26 = arith.muli %25, %c32_i32_8 : i32
      %27 = tpu.assume_multiple %26, 16 : i32
      %c0_9 = arith.constant 0 : index
      %28 = arith.index_cast %27 : i32 to index
      %c0_10 = arith.constant 0 : index
      %29 = vector.load %arg1[%c0_9, %28, %c0_10] : memref<1x704x22xbf16, #tpu.memory_space<vmem>>, vector<1x32x22xbf16>
      %30 = vector.shape_cast %29 : vector<1x32x22xbf16> to vector<32x22xbf16>
      %31 = arith.extf %30 : vector<32x22xbf16> to vector<32x22xf32>
      %32 = arith.addf %23, %31 : vector<32x22xf32>
      %cst_11 = arith.constant dense<0.000000e+00> : vector<32x11xf32>
      %33 = tpu.matmul %32, %12, %cst_11 {dimension_numbers = #tpu.dot_dimension_numbers<[1], [0], [0], [1], [0, 0, 1, 1], [], []>} : vector<32x22xf32>, vector<22x11xf32>, vector<32x11xf32> -> vector<32x11xf32>
      %cst_12 = arith.constant 2.500000e-01 : f32
      %34 = vector.broadcast %cst_12 : f32 to vector<32x11xf32>
      %35 = arith.mulf %33, %34 : vector<32x11xf32>
      %36 = arith.truncf %35 : vector<32x11xf32> to vector<32x11xbf16>
      %c32_i32_13 = arith.constant 32 : i32
      %37 = arith.muli %arg3, %c32_i32_13 : i32
      %38 = tpu.assume_multiple %37, 16 : i32
      %c0_14 = arith.constant 0 : index
      %39 = arith.index_cast %38 : i32 to index
      %c0_15 = arith.constant 0 : index
      %40 = vector.load %arg2[%c0_14, %39, %c0_15] : memref<1x352x11xbf16, #tpu.memory_space<vmem>>, vector<1x32x11xbf16>
      %41 = vector.shape_cast %40 : vector<1x32x11xbf16> to vector<32x11xbf16>
      %42 = vector.shape_cast %36 : vector<32x11xbf16> to vector<1x32x11xbf16>
      tpu.vector_store %arg2[%c0_14, %39, %c0_15], %42 {strides = array<i32>} : memref<1x352x11xbf16, #tpu.memory_space<vmem>>, vector<1x32x11xbf16>,
    }
    %c11_i32_2 = arith.constant 11 : i32
    return
  }
  func.func @transform_0(%arg0: i32) -> (i32, i32, i32) {
    %c0_i32 = arith.constant 0 : i32
    %c0_i32_0 = arith.constant 0 : i32
    %c0_i32_1 = arith.constant 0 : i32
    return %arg0, %c0_i32, %c0_i32_0 : i32, i32, i32
  }
  func.func @transform_1(%arg0: i32) -> (i32, i32, i32) {
    %c0_i32 = arith.constant 0 : i32
    %c0_i32_0 = arith.constant 0 : i32
    %c0_i32_1 = arith.constant 0 : i32
    return %arg0, %c0_i32, %c0_i32_0 : i32, i32, i32
  }
}

module attributes {stable_mosaic.version = 11 : i64} {
  func.func @_conv_kernel(%arg0: i32, %arg1: memref<1x352x11xbf16, #tpu.memory_space<vmem>>, %arg2: memref<3x16x96xbf16, #tpu.memory_space<vmem>>, %arg3: memref<16x1xf32, #tpu.memory_space<vmem>>, %arg4: memref<1x144x9xbf16, #tpu.memory_space<vmem>>) attributes {dimension_semantics = [#tpu.dimension_semantics<parallel>], iteration_bounds = array<i64: 2>, scalar_prefetch = 0 : i64, scratch_operands = 0 : i64, tpu.core_type = #tpu.core_type<tc>, window_params = [{transform_indices = @transform_0, window_bounds = array<i64: 1, 352, 11>}, {pipeline_mode = #tpu.pipeline_mode<synchronous>, transform_indices = @transform_1, window_bounds = array<i64: 3, 16, 96>}, {pipeline_mode = #tpu.pipeline_mode<synchronous>, transform_indices = @transform_2, window_bounds = array<i64: 16, 1>}, {transform_indices = @transform_3, window_bounds = array<i64: 1, 144, 9>}]} {
    %c0 = arith.constant 0 : index
    %c0_0 = arith.constant 0 : index
    %0 = vector.load %arg3[%c0, %c0_0] : memref<16x1xf32, #tpu.memory_space<vmem>>, vector<16x1xf32>
    %1 = vector.shape_cast %0 : vector<16x1xf32> to vector<16x1xf32>
    %2 = vector.broadcast %1 : vector<16x1xf32> to vector<16x9xf32>
    %c0_i32 = arith.constant 0 : i32
    %c9_i32 = arith.constant 9 : i32
    %3 = arith.addi %c0_i32, %c9_i32 : i32
    %c1_i32 = arith.constant 1 : i32
    scf.for %arg5 = %c0_i32 to %3 step %c1_i32  : i32 {
      %c1_i32_2 = arith.constant 1 : i32
      %4 = arith.muli %c1_i32_2, %arg5 : i32
      %c32_i32 = arith.constant 32 : i32
      %5 = arith.muli %4, %c32_i32 : i32
      %6 = tpu.assume_multiple %5, 16 : i32
      %cst = arith.constant 0.000000e+00 : f32
      %7 = vector.broadcast %cst : f32 to vector<16x9xf32>
      %c0_3 = arith.constant 0 : index
      %8 = arith.index_cast %6 : i32 to index
      %c0_4 = arith.constant 0 : index
      %9 = vector.load %arg1[%c0_3, %8, %c0_4] : memref<1x352x11xbf16, #tpu.memory_space<vmem>>, vector<1x96x9xbf16>
      %10 = vector.shape_cast %9 : vector<1x96x9xbf16> to vector<96x9xbf16>
      %c0_5 = arith.constant 0 : index
      %c0_6 = arith.constant 0 : index
      %c0_7 = arith.constant 0 : index
      %11 = vector.load %arg2[%c0_5, %c0_6, %c0_7] : memref<3x16x96xbf16, #tpu.memory_space<vmem>>, vector<1x16x96xbf16>
      %12 = vector.shape_cast %11 : vector<1x16x96xbf16> to vector<16x96xbf16>
      %cst_8 = arith.constant dense<0.000000e+00> : vector<16x9xf32>
      %13 = tpu.matmul %12, %10, %cst_8 {dimension_numbers = #tpu.dot_dimension_numbers<[1], [0], [0], [1], [0, 0, 1, 1], [], []>} : vector<16x96xbf16>, vector<96x9xbf16>, vector<16x9xf32> -> vector<16x9xf32>
      %14 = arith.addf %7, %13 : vector<16x9xf32>
      %c0_9 = arith.constant 0 : index
      %15 = arith.index_cast %6 : i32 to index
      %c1 = arith.constant 1 : index
      %16 = vector.load %arg1[%c0_9, %15, %c1] : memref<1x352x11xbf16, #tpu.memory_space<vmem>>, vector<1x96x9xbf16>
      %17 = vector.shape_cast %16 : vector<1x96x9xbf16> to vector<96x9xbf16>
      %c1_10 = arith.constant 1 : index
      %c0_11 = arith.constant 0 : index
      %c0_12 = arith.constant 0 : index
      %18 = vector.load %arg2[%c1_10, %c0_11, %c0_12] : memref<3x16x96xbf16, #tpu.memory_space<vmem>>, vector<1x16x96xbf16>
      %19 = vector.shape_cast %18 : vector<1x16x96xbf16> to vector<16x96xbf16>
      %cst_13 = arith.constant dense<0.000000e+00> : vector<16x9xf32>
      %20 = tpu.matmul %19, %17, %cst_13 {dimension_numbers = #tpu.dot_dimension_numbers<[1], [0], [0], [1], [0, 0, 1, 1], [], []>} : vector<16x96xbf16>, vector<96x9xbf16>, vector<16x9xf32> -> vector<16x9xf32>
      %21 = arith.addf %14, %20 : vector<16x9xf32>
      %c0_14 = arith.constant 0 : index
      %22 = arith.index_cast %6 : i32 to index
      %c2 = arith.constant 2 : index
      %23 = vector.load %arg1[%c0_14, %22, %c2] : memref<1x352x11xbf16, #tpu.memory_space<vmem>>, vector<1x96x9xbf16>
      %24 = vector.shape_cast %23 : vector<1x96x9xbf16> to vector<96x9xbf16>
      %c2_15 = arith.constant 2 : index
      %c0_16 = arith.constant 0 : index
      %c0_17 = arith.constant 0 : index
      %25 = vector.load %arg2[%c2_15, %c0_16, %c0_17] : memref<3x16x96xbf16, #tpu.memory_space<vmem>>, vector<1x16x96xbf16>
      %26 = vector.shape_cast %25 : vector<1x16x96xbf16> to vector<16x96xbf16>
      %cst_18 = arith.constant dense<0.000000e+00> : vector<16x9xf32>
      %27 = tpu.matmul %26, %24, %cst_18 {dimension_numbers = #tpu.dot_dimension_numbers<[1], [0], [0], [1], [0, 0, 1, 1], [], []>} : vector<16x96xbf16>, vector<96x9xbf16>, vector<16x9xf32> -> vector<16x9xf32>
      %28 = arith.addf %21, %27 : vector<16x9xf32>
      %29 = arith.addf %28, %2 : vector<16x9xf32>
      %cst_19 = arith.constant 0.000000e+00 : f32
      %30 = vector.broadcast %cst_19 : f32 to vector<16x9xf32>
      %31 = arith.maximumf %29, %30 : vector<16x9xf32>
      %32 = arith.truncf %31 : vector<16x9xf32> to vector<16x9xbf16>
      %c16_i32 = arith.constant 16 : i32
      %33 = arith.muli %arg5, %c16_i32 : i32
      %34 = tpu.assume_multiple %33, 16 : i32
      %c0_20 = arith.constant 0 : index
      %35 = arith.index_cast %34 : i32 to index
      %c0_21 = arith.constant 0 : index
      %36 = vector.load %arg4[%c0_20, %35, %c0_21] : memref<1x144x9xbf16, #tpu.memory_space<vmem>>, vector<1x16x9xbf16>
      %37 = vector.shape_cast %36 : vector<1x16x9xbf16> to vector<16x9xbf16>
      %38 = vector.shape_cast %32 : vector<16x9xbf16> to vector<1x16x9xbf16>
      tpu.vector_store %arg4[%c0_20, %35, %c0_21], %38 {strides = array<i32>} : memref<1x144x9xbf16, #tpu.memory_space<vmem>>, vector<1x16x9xbf16>,
    }
    %c9_i32_1 = arith.constant 9 : i32
    return
  }
  func.func @transform_0(%arg0: i32) -> (i32, i32, i32) {
    %c0_i32 = arith.constant 0 : i32
    %c0_i32_0 = arith.constant 0 : i32
    %c0_i32_1 = arith.constant 0 : i32
    return %arg0, %c0_i32, %c0_i32_0 : i32, i32, i32
  }
  func.func @transform_1(%arg0: i32) -> (i32, i32, i32) {
    %c0_i32 = arith.constant 0 : i32
    %c0_i32_0 = arith.constant 0 : i32
    %c0_i32_1 = arith.constant 0 : i32
    %c0_i32_2 = arith.constant 0 : i32
    return %c0_i32, %c0_i32_0, %c0_i32_1 : i32, i32, i32
  }
  func.func @transform_2(%arg0: i32) -> (i32, i32) {
    %c0_i32 = arith.constant 0 : i32
    %c0_i32_0 = arith.constant 0 : i32
    %c0_i32_1 = arith.constant 0 : i32
    return %c0_i32, %c0_i32_0 : i32, i32
  }
  func.func @transform_3(%arg0: i32) -> (i32, i32, i32) {
    %c0_i32 = arith.constant 0 : i32
    %c0_i32_0 = arith.constant 0 : i32
    %c0_i32_1 = arith.constant 0 : i32
    return %arg0, %c0_i32, %c0_i32_0 : i32, i32, i32
  }
}

module attributes {stable_mosaic.version = 11 : i64} {
  func.func @_conv_kernel(%arg0: i32, %arg1: memref<1x1152x24xbf16, #tpu.memory_space<vmem>>, %arg2: memref<3x32x144xbf16, #tpu.memory_space<vmem>>, %arg3: memref<32x1xf32, #tpu.memory_space<vmem>>, %arg4: memref<1x704x22xbf16, #tpu.memory_space<vmem>>) attributes {dimension_semantics = [#tpu.dimension_semantics<parallel>], iteration_bounds = array<i64: 2>, scalar_prefetch = 0 : i64, scratch_operands = 0 : i64, tpu.core_type = #tpu.core_type<tc>, window_params = [{transform_indices = @transform_0, window_bounds = array<i64: 1, 1152, 24>}, {pipeline_mode = #tpu.pipeline_mode<synchronous>, transform_indices = @transform_1, window_bounds = array<i64: 3, 32, 144>}, {pipeline_mode = #tpu.pipeline_mode<synchronous>, transform_indices = @transform_2, window_bounds = array<i64: 32, 1>}, {transform_indices = @transform_3, window_bounds = array<i64: 1, 704, 22>}]} {
    %c0 = arith.constant 0 : index
    %c0_0 = arith.constant 0 : index
    %0 = vector.load %arg3[%c0, %c0_0] : memref<32x1xf32, #tpu.memory_space<vmem>>, vector<32x1xf32>
    %1 = vector.shape_cast %0 : vector<32x1xf32> to vector<32x1xf32>
    %2 = vector.broadcast %1 : vector<32x1xf32> to vector<32x22xf32>
    %c0_i32 = arith.constant 0 : i32
    %c22_i32 = arith.constant 22 : i32
    %3 = arith.addi %c0_i32, %c22_i32 : i32
    %c1_i32 = arith.constant 1 : i32
    scf.for %arg5 = %c0_i32 to %3 step %c1_i32  : i32 {
      %c1_i32_2 = arith.constant 1 : i32
      %4 = arith.muli %c1_i32_2, %arg5 : i32
      %c48_i32 = arith.constant 48 : i32
      %5 = arith.muli %4, %c48_i32 : i32
      %6 = tpu.assume_multiple %5, 16 : i32
      %cst = arith.constant 0.000000e+00 : f32
      %7 = vector.broadcast %cst : f32 to vector<32x22xf32>
      %c0_3 = arith.constant 0 : index
      %8 = arith.index_cast %6 : i32 to index
      %c0_4 = arith.constant 0 : index
      %9 = vector.load %arg1[%c0_3, %8, %c0_4] : memref<1x1152x24xbf16, #tpu.memory_space<vmem>>, vector<1x144x22xbf16>
      %10 = vector.shape_cast %9 : vector<1x144x22xbf16> to vector<144x22xbf16>
      %c0_5 = arith.constant 0 : index
      %c0_6 = arith.constant 0 : index
      %c0_7 = arith.constant 0 : index
      %11 = vector.load %arg2[%c0_5, %c0_6, %c0_7] : memref<3x32x144xbf16, #tpu.memory_space<vmem>>, vector<1x32x144xbf16>
      %12 = vector.shape_cast %11 : vector<1x32x144xbf16> to vector<32x144xbf16>
      %cst_8 = arith.constant dense<0.000000e+00> : vector<32x22xf32>
      %13 = tpu.matmul %12, %10, %cst_8 {dimension_numbers = #tpu.dot_dimension_numbers<[1], [0], [0], [1], [0, 0, 1, 1], [], []>} : vector<32x144xbf16>, vector<144x22xbf16>, vector<32x22xf32> -> vector<32x22xf32>
      %14 = arith.addf %7, %13 : vector<32x22xf32>
      %c0_9 = arith.constant 0 : index
      %15 = arith.index_cast %6 : i32 to index
      %c1 = arith.constant 1 : index
      %16 = vector.load %arg1[%c0_9, %15, %c1] : memref<1x1152x24xbf16, #tpu.memory_space<vmem>>, vector<1x144x22xbf16>
      %17 = vector.shape_cast %16 : vector<1x144x22xbf16> to vector<144x22xbf16>
      %c1_10 = arith.constant 1 : index
      %c0_11 = arith.constant 0 : index
      %c0_12 = arith.constant 0 : index
      %18 = vector.load %arg2[%c1_10, %c0_11, %c0_12] : memref<3x32x144xbf16, #tpu.memory_space<vmem>>, vector<1x32x144xbf16>
      %19 = vector.shape_cast %18 : vector<1x32x144xbf16> to vector<32x144xbf16>
      %cst_13 = arith.constant dense<0.000000e+00> : vector<32x22xf32>
      %20 = tpu.matmul %19, %17, %cst_13 {dimension_numbers = #tpu.dot_dimension_numbers<[1], [0], [0], [1], [0, 0, 1, 1], [], []>} : vector<32x144xbf16>, vector<144x22xbf16>, vector<32x22xf32> -> vector<32x22xf32>
      %21 = arith.addf %14, %20 : vector<32x22xf32>
      %c0_14 = arith.constant 0 : index
      %22 = arith.index_cast %6 : i32 to index
      %c2 = arith.constant 2 : index
      %23 = vector.load %arg1[%c0_14, %22, %c2] : memref<1x1152x24xbf16, #tpu.memory_space<vmem>>, vector<1x144x22xbf16>
      %24 = vector.shape_cast %23 : vector<1x144x22xbf16> to vector<144x22xbf16>
      %c2_15 = arith.constant 2 : index
      %c0_16 = arith.constant 0 : index
      %c0_17 = arith.constant 0 : index
      %25 = vector.load %arg2[%c2_15, %c0_16, %c0_17] : memref<3x32x144xbf16, #tpu.memory_space<vmem>>, vector<1x32x144xbf16>
      %26 = vector.shape_cast %25 : vector<1x32x144xbf16> to vector<32x144xbf16>
      %cst_18 = arith.constant dense<0.000000e+00> : vector<32x22xf32>
      %27 = tpu.matmul %26, %24, %cst_18 {dimension_numbers = #tpu.dot_dimension_numbers<[1], [0], [0], [1], [0, 0, 1, 1], [], []>} : vector<32x144xbf16>, vector<144x22xbf16>, vector<32x22xf32> -> vector<32x22xf32>
      %28 = arith.addf %21, %27 : vector<32x22xf32>
      %29 = arith.addf %28, %2 : vector<32x22xf32>
      %cst_19 = arith.constant 0.000000e+00 : f32
      %30 = vector.broadcast %cst_19 : f32 to vector<32x22xf32>
      %31 = arith.maximumf %29, %30 : vector<32x22xf32>
      %32 = arith.truncf %31 : vector<32x22xf32> to vector<32x22xbf16>
      %c32_i32 = arith.constant 32 : i32
      %33 = arith.muli %arg5, %c32_i32 : i32
      %34 = tpu.assume_multiple %33, 16 : i32
      %c0_20 = arith.constant 0 : index
      %35 = arith.index_cast %34 : i32 to index
      %c0_21 = arith.constant 0 : index
      %36 = vector.load %arg4[%c0_20, %35, %c0_21] : memref<1x704x22xbf16, #tpu.memory_space<vmem>>, vector<1x32x22xbf16>
      %37 = vector.shape_cast %36 : vector<1x32x22xbf16> to vector<32x22xbf16>
      %38 = vector.shape_cast %32 : vector<32x22xbf16> to vector<1x32x22xbf16>
      tpu.vector_store %arg4[%c0_20, %35, %c0_21], %38 {strides = array<i32>} : memref<1x704x22xbf16, #tpu.memory_space<vmem>>, vector<1x32x22xbf16>,
    }
    %c22_i32_1 = arith.constant 22 : i32
    return
  }
  func.func @transform_0(%arg0: i32) -> (i32, i32, i32) {
    %c0_i32 = arith.constant 0 : i32
    %c0_i32_0 = arith.constant 0 : i32
    %c0_i32_1 = arith.constant 0 : i32
    return %arg0, %c0_i32, %c0_i32_0 : i32, i32, i32
  }
  func.func @transform_1(%arg0: i32) -> (i32, i32, i32) {
    %c0_i32 = arith.constant 0 : i32
    %c0_i32_0 = arith.constant 0 : i32
    %c0_i32_1 = arith.constant 0 : i32
    %c0_i32_2 = arith.constant 0 : i32
    return %c0_i32, %c0_i32_0, %c0_i32_1 : i32, i32, i32
  }
  func.func @transform_2(%arg0: i32) -> (i32, i32) {
    %c0_i32 = arith.constant 0 : i32
    %c0_i32_0 = arith.constant 0 : i32
    %c0_i32_1 = arith.constant 0 : i32
    return %c0_i32, %c0_i32_0 : i32, i32
  }
  func.func @transform_3(%arg0: i32) -> (i32, i32, i32) {
    %c0_i32 = arith.constant 0 : i32
    %c0_i32_0 = arith.constant 0 : i32
    %c0_i32_1 = arith.constant 0 : i32
    return %arg0, %c0_i32, %c0_i32_0 : i32, i32, i32
  }
}

module attributes {stable_mosaic.version = 11 : i64} {
  func.func @_conv_kernel(%arg0: i32, %arg1: memref<1x144x9xbf16, #tpu.memory_space<vmem>>, %arg2: memref<3x16x48xbf16, #tpu.memory_space<vmem>>, %arg3: memref<16x1xf32, #tpu.memory_space<vmem>>, %arg4: memref<1x48x3xbf16, #tpu.memory_space<vmem>>) attributes {dimension_semantics = [#tpu.dimension_semantics<parallel>], iteration_bounds = array<i64: 2>, scalar_prefetch = 0 : i64, scratch_operands = 0 : i64, tpu.core_type = #tpu.core_type<tc>, window_params = [{transform_indices = @transform_0, window_bounds = array<i64: 1, 144, 9>}, {pipeline_mode = #tpu.pipeline_mode<synchronous>, transform_indices = @transform_1, window_bounds = array<i64: 3, 16, 48>}, {pipeline_mode = #tpu.pipeline_mode<synchronous>, transform_indices = @transform_2, window_bounds = array<i64: 16, 1>}, {transform_indices = @transform_3, window_bounds = array<i64: 1, 48, 3>}]} {
    %c0 = arith.constant 0 : index
    %c0_0 = arith.constant 0 : index
    %0 = vector.load %arg3[%c0, %c0_0] : memref<16x1xf32, #tpu.memory_space<vmem>>, vector<16x1xf32>
    %1 = vector.shape_cast %0 : vector<16x1xf32> to vector<16x1xf32>
    %2 = vector.broadcast %1 : vector<16x1xf32> to vector<16x3xf32>
    %3 = tpu.iota {dimensions = array<i32: 0>} : vector<9x3xi32>
    %4 = tpu.iota {dimensions = array<i32: 1>} : vector<9x3xi32>
    %c3_i32 = arith.constant 3 : i32
    %5 = vector.broadcast %c3_i32 : i32 to vector<9x3xi32>
    %6 = arith.muli %5, %4 : vector<9x3xi32>
    %c0_i32 = arith.constant 0 : i32
    %7 = vector.broadcast %c0_i32 : i32 to vector<9x3xi32>
    %8 = arith.addi %6, %7 : vector<9x3xi32>
    %9 = arith.cmpi eq, %3, %8 : vector<9x3xi32>
    %10 = arith.extui %9 : vector<9x3xi1> to vector<9x3xi32>
    %11 = arith.sitofp %10 : vector<9x3xi32> to vector<9x3xf32>
    %c3_i32_1 = arith.constant 3 : i32
    %12 = vector.broadcast %c3_i32_1 : i32 to vector<9x3xi32>
    %13 = arith.muli %12, %4 : vector<9x3xi32>
    %c1_i32 = arith.constant 1 : i32
    %14 = vector.broadcast %c1_i32 : i32 to vector<9x3xi32>
    %15 = arith.addi %13, %14 : vector<9x3xi32>
    %16 = arith.cmpi eq, %3, %15 : vector<9x3xi32>
    %17 = arith.extui %16 : vector<9x3xi1> to vector<9x3xi32>
    %18 = arith.sitofp %17 : vector<9x3xi32> to vector<9x3xf32>
    %c3_i32_2 = arith.constant 3 : i32
    %19 = vector.broadcast %c3_i32_2 : i32 to vector<9x3xi32>
    %20 = arith.muli %19, %4 : vector<9x3xi32>
    %c2_i32 = arith.constant 2 : i32
    %21 = vector.broadcast %c2_i32 : i32 to vector<9x3xi32>
    %22 = arith.addi %20, %21 : vector<9x3xi32>
    %23 = arith.cmpi eq, %3, %22 : vector<9x3xi32>
    %24 = arith.extui %23 : vector<9x3xi1> to vector<9x3xi32>
    %25 = arith.sitofp %24 : vector<9x3xi32> to vector<9x3xf32>
    %c0_i32_3 = arith.constant 0 : i32
    %c3_i32_4 = arith.constant 3 : i32
    %26 = arith.addi %c0_i32_3, %c3_i32_4 : i32
    %c1_i32_5 = arith.constant 1 : i32
    scf.for %arg5 = %c0_i32_3 to %26 step %c1_i32_5  : i32 {
      %c3_i32_7 = arith.constant 3 : i32
      %27 = arith.muli %c3_i32_7, %arg5 : i32
      %c16_i32 = arith.constant 16 : i32
      %28 = arith.muli %27, %c16_i32 : i32
      %29 = tpu.assume_multiple %28, 16 : i32
      %cst = arith.constant 0.000000e+00 : f32
      %30 = vector.broadcast %cst : f32 to vector<16x3xf32>
      %c0_8 = arith.constant 0 : index
      %31 = arith.index_cast %29 : i32 to index
      %c0_9 = arith.constant 0 : index
      %32 = vector.load %arg1[%c0_8, %31, %c0_9] : memref<1x144x9xbf16, #tpu.memory_space<vmem>>, vector<1x48x9xbf16>
      %33 = vector.shape_cast %32 : vector<1x48x9xbf16> to vector<48x9xbf16>
      %c0_10 = arith.constant 0 : index
      %c0_11 = arith.constant 0 : index
      %c0_12 = arith.constant 0 : index
      %34 = vector.load %arg2[%c0_10, %c0_11, %c0_12] : memref<3x16x48xbf16, #tpu.memory_space<vmem>>, vector<1x16x48xbf16>
      %35 = vector.shape_cast %34 : vector<1x16x48xbf16> to vector<16x48xbf16>
      %cst_13 = arith.constant dense<0.000000e+00> : vector<16x9xf32>
      %36 = tpu.matmul %35, %33, %cst_13 {dimension_numbers = #tpu.dot_dimension_numbers<[1], [0], [0], [1], [0, 0, 1, 1], [], []>} : vector<16x48xbf16>, vector<48x9xbf16>, vector<16x9xf32> -> vector<16x9xf32>
      %cst_14 = arith.constant dense<0.000000e+00> : vector<16x3xf32>
      %37 = tpu.matmul %36, %11, %cst_14 {dimension_numbers = #tpu.dot_dimension_numbers<[1], [0], [0], [1], [0, 0, 1, 1], [], []>} : vector<16x9xf32>, vector<9x3xf32>, vector<16x3xf32> -> vector<16x3xf32>
      %38 = arith.addf %30, %37 : vector<16x3xf32>
      %c1 = arith.constant 1 : index
      %c0_15 = arith.constant 0 : index
      %c0_16 = arith.constant 0 : index
      %39 = vector.load %arg2[%c1, %c0_15, %c0_16] : memref<3x16x48xbf16, #tpu.memory_space<vmem>>, vector<1x16x48xbf16>
      %40 = vector.shape_cast %39 : vector<1x16x48xbf16> to vector<16x48xbf16>
      %cst_17 = arith.constant dense<0.000000e+00> : vector<16x9xf32>
      %41 = tpu.matmul %40, %33, %cst_17 {dimension_numbers = #tpu.dot_dimension_numbers<[1], [0], [0], [1], [0, 0, 1, 1], [], []>} : vector<16x48xbf16>, vector<48x9xbf16>, vector<16x9xf32> -> vector<16x9xf32>
      %cst_18 = arith.constant dense<0.000000e+00> : vector<16x3xf32>
      %42 = tpu.matmul %41, %18, %cst_18 {dimension_numbers = #tpu.dot_dimension_numbers<[1], [0], [0], [1], [0, 0, 1, 1], [], []>} : vector<16x9xf32>, vector<9x3xf32>, vector<16x3xf32> -> vector<16x3xf32>
      %43 = arith.addf %38, %42 : vector<16x3xf32>
      %c2 = arith.constant 2 : index
      %c0_19 = arith.constant 0 : index
      %c0_20 = arith.constant 0 : index
      %44 = vector.load %arg2[%c2, %c0_19, %c0_20] : memref<3x16x48xbf16, #tpu.memory_space<vmem>>, vector<1x16x48xbf16>
      %45 = vector.shape_cast %44 : vector<1x16x48xbf16> to vector<16x48xbf16>
      %cst_21 = arith.constant dense<0.000000e+00> : vector<16x9xf32>
      %46 = tpu.matmul %45, %33, %cst_21 {dimension_numbers = #tpu.dot_dimension_numbers<[1], [0], [0], [1], [0, 0, 1, 1], [], []>} : vector<16x48xbf16>, vector<48x9xbf16>, vector<16x9xf32> -> vector<16x9xf32>
      %cst_22 = arith.constant dense<0.000000e+00> : vector<16x3xf32>
      %47 = tpu.matmul %46, %25, %cst_22 {dimension_numbers = #tpu.dot_dimension_numbers<[1], [0], [0], [1], [0, 0, 1, 1], [], []>} : vector<16x9xf32>, vector<9x3xf32>, vector<16x3xf32> -> vector<16x3xf32>
      %48 = arith.addf %43, %47 : vector<16x3xf32>
      %49 = arith.addf %48, %2 : vector<16x3xf32>
      %cst_23 = arith.constant 0.000000e+00 : f32
      %50 = vector.broadcast %cst_23 : f32 to vector<16x3xf32>
      %51 = arith.maximumf %49, %50 : vector<16x3xf32>
      %52 = arith.truncf %51 : vector<16x3xf32> to vector<16x3xbf16>
      %c16_i32_24 = arith.constant 16 : i32
      %53 = arith.muli %arg5, %c16_i32_24 : i32
      %54 = tpu.assume_multiple %53, 16 : i32
      %c0_25 = arith.constant 0 : index
      %55 = arith.index_cast %54 : i32 to index
      %c0_26 = arith.constant 0 : index
      %56 = vector.load %arg4[%c0_25, %55, %c0_26] : memref<1x48x3xbf16, #tpu.memory_space<vmem>>, vector<1x16x3xbf16>
      %57 = vector.shape_cast %56 : vector<1x16x3xbf16> to vector<16x3xbf16>
      %58 = vector.shape_cast %52 : vector<16x3xbf16> to vector<1x16x3xbf16>
      tpu.vector_store %arg4[%c0_25, %55, %c0_26], %58 {strides = array<i32>} : memref<1x48x3xbf16, #tpu.memory_space<vmem>>, vector<1x16x3xbf16>,
    }
    %c3_i32_6 = arith.constant 3 : i32
    return
  }
  func.func @transform_0(%arg0: i32) -> (i32, i32, i32) {
    %c0_i32 = arith.constant 0 : i32
    %c0_i32_0 = arith.constant 0 : i32
    %c0_i32_1 = arith.constant 0 : i32
    return %arg0, %c0_i32, %c0_i32_0 : i32, i32, i32
  }
  func.func @transform_1(%arg0: i32) -> (i32, i32, i32) {
    %c0_i32 = arith.constant 0 : i32
    %c0_i32_0 = arith.constant 0 : i32
    %c0_i32_1 = arith.constant 0 : i32
    %c0_i32_2 = arith.constant 0 : i32
    return %c0_i32, %c0_i32_0, %c0_i32_1 : i32, i32, i32
  }
  func.func @transform_2(%arg0: i32) -> (i32, i32) {
    %c0_i32 = arith.constant 0 : i32
    %c0_i32_0 = arith.constant 0 : i32
    %c0_i32_1 = arith.constant 0 : i32
    return %c0_i32, %c0_i32_0 : i32, i32
  }
  func.func @transform_3(%arg0: i32) -> (i32, i32, i32) {
    %c0_i32 = arith.constant 0 : i32
    %c0_i32_0 = arith.constant 0 : i32
    %c0_i32_1 = arith.constant 0 : i32
    return %arg0, %c0_i32, %c0_i32_0 : i32, i32, i32
  }
}

module attributes {stable_mosaic.version = 11 : i64} {
  func.func @_fc_softmax_kernel(%arg0: memref<2x144xf32, #tpu.memory_space<vmem>>, %arg1: memref<144x3xf32, #tpu.memory_space<vmem>>, %arg2: memref<1x3xf32, #tpu.memory_space<vmem>>, %arg3: memref<2x3xf32, #tpu.memory_space<vmem>>) attributes {dimension_semantics = [], scalar_prefetch = 0 : i64, scratch_operands = 0 : i64, tpu.core_type = #tpu.core_type<tc>} {
    %c0 = arith.constant 0 : index
    %c0_0 = arith.constant 0 : index
    %0 = vector.load %arg0[%c0, %c0_0] : memref<2x144xf32, #tpu.memory_space<vmem>>, vector<2x144xf32>
    %c0_1 = arith.constant 0 : index
    %c0_2 = arith.constant 0 : index
    %1 = vector.load %arg1[%c0_1, %c0_2] : memref<144x3xf32, #tpu.memory_space<vmem>>, vector<144x3xf32>
    %cst = arith.constant dense<0.000000e+00> : vector<2x3xf32>
    %2 = tpu.matmul %0, %1, %cst {dimension_numbers = #tpu.dot_dimension_numbers<[1], [0], [0], [1], [0, 0, 1, 1], [], []>} : vector<2x144xf32>, vector<144x3xf32>, vector<2x3xf32> -> vector<2x3xf32>
    %c0_3 = arith.constant 0 : index
    %c0_4 = arith.constant 0 : index
    %3 = vector.load %arg2[%c0_3, %c0_4] : memref<1x3xf32, #tpu.memory_space<vmem>>, vector<1x3xf32>
    %4 = vector.broadcast %3 : vector<1x3xf32> to vector<2x3xf32>
    %5 = arith.addf %2, %4 : vector<2x3xf32>
    %cst_5 = arith.constant dense<0xFF800000> : vector<2xf32>
    %6 = vector.multi_reduction <maximumf>, %5, %cst_5 [1] : vector<2x3xf32> to vector<2xf32>
    %7 = vector.shape_cast %6 : vector<2xf32> to vector<2x1xf32>
    %8 = vector.broadcast %7 : vector<2x1xf32> to vector<2x3xf32>
    %9 = arith.subf %5, %8 : vector<2x3xf32>
    %10 = math.exp %9 : vector<2x3xf32>
    %cst_6 = arith.constant dense<0.000000e+00> : vector<2xf32>
    %11 = vector.multi_reduction <add>, %10, %cst_6 [1] : vector<2x3xf32> to vector<2xf32>
    %12 = vector.shape_cast %11 : vector<2xf32> to vector<2x1xf32>
    %13 = vector.broadcast %12 : vector<2x1xf32> to vector<2x3xf32>
    %14 = arith.divf %10, %13 : vector<2x3xf32>
    %c0_7 = arith.constant 0 : index
    %c0_8 = arith.constant 0 : index
    %15 = vector.load %arg3[%c0_7, %c0_8] : memref<2x3xf32, #tpu.memory_space<vmem>>, vector<2x3xf32>
    tpu.vector_store %arg3[%c0_7, %c0_8], %14 {strides = array<i32>} : memref<2x3xf32, #tpu.memory_space<vmem>>, vector<2x3xf32>,
    return
  }
}

</mosaic_0001>

<bundles_post_ra>
// kernel: forward.16
= control target key start
LH: loop header
LB: loop body
LE: loop exit
PB: predicated region body
PF: predicated region fallthrough
CT: control target
= control target key end

     0   :  { %s1293_s12 = smov 0   ;;  %s1532_s0 = inlined_call_operand.vmem [shape: bf16[2,3328,208], index: 0, kind: input, shape index: {}]   ;;  %s1533_s1 = inlined_call_operand.vmem [shape: bf16[5,48,80], index: 1, kind: input, shape index: {}]   ;;  %s1534_s2 = inlined_call_operand.vmem [shape: f32[48,1], index: 2, kind: input, shape index: {}]   ;;  %s1535_s3 = inlined_call_operand.vmem [shape: bf16[2,9792,204], index: 3, kind: output, shape index: {}]  }
   0x1 LB: > { %s1081_s13 = sadd.s32 4294967295, %s1261_s12   ;;  %p1085_p0 = scmp.ge.s32.totalorder %s1261_s12, 1  ;;  %s1261_s12 = sphi %s1293_s12, %s13_s12  }
   0x2   : > { %p137_p1 = scmp.lt.s32.totalorder %s1261_s12, 3 }
   0x4   : > { %p138_p2 = pnand %p1085_p0, %p137_p1 }
   0x5   : > { %p161_p3 = scmp.lt.s32.totalorder (!%p138_p2), %s1081_s13, 1  ;;  %s1341_s7 = smov (!%p138_p2), 0  }
   0x6   : > { %141 = sbr.rel (%p138_p2) target bundleno = 560 (0x230), region = 32 }
   0xb   : > { %v174_v0 = vld [vmem:[%s1534_s2 + $0x10] sm:$0xff]  ;;  %v172_v1 = vld [vmem:[%s1534_s2] sm:$0xff]  ;;  %v1267_v2 = vmov 0   ;;  %s1539_s13 = smov (!%p161_p3, %s1081_s13), 1  ;;  %v175_v3 = vld [vmem:[%s1534_s2 + $0x18] sm:$0xff] }
   0xc   : > { %1220 = vset.pattern.permute.xlu1 %v1267_v2  ;;  %1219 = vset.pattern.permute.xlu0 %v1267_v2  ;;  %v173_v4 = vld [vmem:[%s1534_s2 + $0x8] sm:$0xff]  ;;  %s1195_s22 = smul.u32 3328, %s1539_s13  ;;  %v176_v6 = vld [vmem:[%s1534_s2 + $0x20] sm:$0xff] }
   0xd   : > { %190 = vperm.xlu1 %1220, %v174_v0   ;;  %180 = vperm.xlu0 %1219, %v172_v1   ;;  %s1196_s23 = smul.u32 9792, %s1539_s13  ;;  %v177_v5 = vld [vmem:[%s1534_s2 + $0x28] sm:$0xff] }
   0xe   : > { %s1316_s26 = scalar_lea.vmem %s1532_s0, %s1195_s22 }
   0xf   : > { %s1327_s6 = scalar_lea.vmem %s1535_s3, %s1196_s23 }
  0x11   : > { %195 = vperm.xlu1 %1220, %v175_v3   ;;  %185 = vperm.xlu0 %1219, %v173_v4  }
  0x15   : > { %205 = vperm.xlu1 %1220, %v177_v5   ;;  %200 = vperm.xlu0 %1219, %v176_v6  }
  0x88   : > { %v1329_v7 = vpop.permute.xlu1 %190  ;;  %v1331_v8 = vpop.permute.xlu0 %180 }
  0x8c   : > { %v1333_v9 = vpop.permute.xlu1 %195  ;;  %v1335_v10 = vpop.permute.xlu0 %185 }
  0x90   : > { %v1337_v11 = vpop.permute.xlu1 %205  ;;  %v1339_v12 = vpop.permute.xlu0 %200 }
  0x91 LB: >> { %s1088_s8 = sshll.u32 %s1265_s7, 4  ;;  %s1268_s10 = smov 127   ;;  %v1269_v21 = vmov 0   ;;  %v1236_v24 = vld [vmem:[%s1533_s1] sm:$0xff]   ;;  %vm334_vm0 = vcmask 654336   ;;  %v1239_v25 = vld [vmem:[%s1533_s1 + $0x8] sm:$0xff]   ;;  %s1265_s7 = sphi %s1341_s7, %s213_s7  }
  0x92   : >> { %s219_s9 = scalar_lea.vmem %s1316_s26, %s1088_s8  ;;  %473 = vmatprep.mubr.bf16.mxu1 %v1269_v21  ;;  %376 = vmatprep.mubr.bf16.mxu0 %v1269_v21  ;;  %s1270_s14 = smov 125   ;;  %v1241_v26 = vld [vmem:[%s1533_s1 + $0x10] sm:$0xff]   ;;  %vm318_vm1 = vcmask 1039360   ;;  %vm688_vm2 = vcmask 1022976   ;;  %v1237_v44 = vld [vmem:[%s1533_s1 + $0x18] sm:$0xff]   ;;  %vm546_vm3 = vcmask 1031168  }
  0x93   : >> { %v1348_v13 = vld [vmem:[%s219_s9 + $0x40] ss:$8 sps:$4 sm:$0xff]   ;;  %v1350_v14 = vld [vmem:[%s219_s9 + $0x30] ss:$8 sps:$4 sm:$0xff]   ;;  %v1353_v15 = vld [vmem:[%s219_s9 + $0x44] ss:$8 sps:$4 sm:$0xff]  }
  0x94   : >> { %314 = vrot.lane.b32.xlu0 %v1348_v13, %s1268_s10  ;;  %310 = vrot.lane.b32.xlu1 %v1350_v14, %s1268_s10  ;;  %v1356_v16 = vld [vmem:[%s219_s9 + $0x34] ss:$8 sps:$4 sm:$0xff]   ;;  %v1227_v17 = vld [vmem:[%s219_s9 + $0x24] ss:$8 sps:$4 sm:$0xff]   ;;  %s1271_s17 = smov 126   ;;  %s1272_s20 = smov 124  }
  0x95   : >> { %447 = vmatprep.subr.bf16.mxu1 %v1353_v15  ;;  %v1229_v18 = vld [vmem:[%s219_s9 + $0x20] ss:$8 sps:$4 sm:$0xff]   ;;  %v1230_v19 = vld [vmem:[%s219_s9 + $0x14] ss:$8 sps:$4 sm:$0xff]   ;;  %v1232_v20 = vld [vmem:[%s219_s9 + $0x10] ss:$8 sps:$4 sm:$0xff]  }
  0x96   : >> { %448 = vmatpush1.bf16.msra.mxu1 %v1348_v13  ;;  %v1235_v22 = vld [vmem:[%s219_s9] ss:$8 sps:$4 sm:$0xff]   ;;  %v1233_v23 = vld [vmem:[%s219_s9 + $0x4] ss:$8 sps:$4 sm:$0xff]   ;;  %vm830_vm4 = vcmask 1014784   ;;  %s972_s22 = smul.u32 48, %s1265_s7 }
  0x97   : >> { %449 = vmatprep.subr.bf16.mxu1 %v1356_v16  ;;  %v1238_v51 = vld [vmem:[%s1533_s1 + $0x20] sm:$0xff]   ;;  %v1240_v58 = vld [vmem:[%s1533_s1 + $0x28] sm:$0xff]   ;;  %vm1008_vm5 = vcmask 1043456   ;;  %vm1009_vm6 = vcmask 621572   ;;  %s213_s7 = sadd.s32 1, %s1265_s7  }
  0x98   : >> { %316 = vrot.lane.b32.xlu0 %v1353_v15, %s1268_s10  ;;  %312 = vrot.lane.b32.xlu1 %v1356_v16, %s1268_s10  ;;  %v1242_v5 = vld [vmem:[%s1533_s1 + $0x48] sm:$0xff]   ;;  %s1480_s23 = sshra.s32 %s972_s22, 3  ;;  %vm1493_vm7 = vmor %vm1009_vm6, %vm1008_vm5  ;;  %p210_p4 = scmp.ge.s32.totalorder %s213_s7, 204  }
  0x99   : >> { %s1184_s24 = sshll.u32 %s1480_s23, 3 }
  0x9a   : >> { %450 = vmatpush1.bf16.msra.mxu1 %v1350_v14  ;;  %s1489_s25 = scalar_lea.vmem %s1327_s6, %s1184_s24 }
  0x9b   : >> { %451 = vmatprep.subr.bf16.mxu1 %v1227_v17 }
  0x9c   : >> { %306 = vrot.lane.b32.xlu0 %v1229_v18, %s1268_s10  ;;  %308 = vrot.lane.b32.xlu1 %v1227_v17, %s1268_s10 }
  0x9e   : >> { %452 = vmatpush1.bf16.msra.mxu1 %v1229_v18 }
  0x9f   : >> { %453 = vmatprep.subr.bf16.mxu1 %v1230_v19 }
  0xa0   : >> { %302 = vrot.lane.b32.xlu0 %v1232_v20, %s1268_s10  ;;  %304 = vrot.lane.b32.xlu1 %v1230_v19, %s1268_s10 }
  0xa2   : >> { %454 = vmatpush1.bf16.msra.mxu1 %v1232_v20 }
  0xa3   : >> { %455 = vmatprep.subr.bf16.mxu1 %v1233_v23 }
  0xa4   : >> { %298 = vrot.lane.b32.xlu0 %v1235_v22, %s1268_s10  ;;  %300 = vrot.lane.b32.xlu1 %v1233_v23, %s1268_s10 }
  0xa6   : >> { %456 = vmatpush1.bf16.msra.mxu1 %v1235_v22 }
  0xa8   : >> { %684 = vrot.lane.b32.xlu0 %v1348_v13, %s1270_s14  ;;  %686 = vrot.lane.b32.xlu1 %v1353_v15, %s1270_s14 }
  0xa9   : >> { %1116 = vmatmul.mubr.msk.bf16.vlgmr.msra.gmra.mxu1 %vm334_vm0, %v1236_v24 }
  0xaa   : >> { %483 = vmatprep.mubr.bf16.mxu1 %v1269_v21 }
  0xac   : >> { %680 = vrot.lane.b32.xlu0 %v1350_v14, %s1270_s14  ;;  %682 = vrot.lane.b32.xlu1 %v1356_v16, %s1270_s14 }
  0xb0   : >> { %542 = vrot.lane.b32.xlu0 %v1348_v13, %s1271_s17  ;;  %544 = vrot.lane.b32.xlu1 %v1353_v15, %s1271_s17 }
  0xb1   : >> { %1117 = vmatmul.mubr.msk.bf16.gmra.mxu1 %vm334_vm0, %v1239_v25 }
  0xb2   : >> { %493 = vmatprep.mubr.bf16.mxu1 %v1269_v21 }
  0xb4   : >> { %676 = vrot.lane.b32.xlu0 %v1229_v18, %s1270_s14  ;;  %678 = vrot.lane.b32.xlu1 %v1227_v17, %s1270_s14 }
  0xb8   : >> { %538 = vrot.lane.b32.xlu0 %v1350_v14, %s1271_s17  ;;  %540 = vrot.lane.b32.xlu1 %v1356_v16, %s1271_s17 }
  0xb9   : >> { %1118 = vmatmul.mubr.msk.bf16.gmra.mxu1 %vm334_vm0, %v1241_v26 }
  0xba   : >> { %745 = vmatprep.mubr.bf16.mxu1 %v1269_v21 }
  0xbc   : >> { %672 = vrot.lane.b32.xlu0 %v1232_v20, %s1270_s14  ;;  %674 = vrot.lane.b32.xlu1 %v1230_v19, %s1270_s14 }
  0xc0   : >> { %534 = vrot.lane.b32.xlu0 %v1229_v18, %s1271_s17  ;;  %536 = vrot.lane.b32.xlu1 %v1227_v17, %s1271_s17 }
  0xc4   : >> { %668 = vrot.lane.b32.xlu0 %v1235_v22, %s1270_s14  ;;  %670 = vrot.lane.b32.xlu1 %v1233_v23, %s1270_s14 }
  0xc8   : >> { %530 = vrot.lane.b32.xlu0 %v1232_v20, %s1271_s17  ;;  %532 = vrot.lane.b32.xlu1 %v1230_v19, %s1271_s17 }
  0xcc   : >> { %526 = vrot.lane.b32.xlu0 %v1235_v22, %s1271_s17  ;;  %528 = vrot.lane.b32.xlu1 %v1233_v23, %s1271_s17 }
  0xd0   : >> { %826 = vrot.lane.b32.xlu0 %v1348_v13, %s1272_s20  ;;  %828 = vrot.lane.b32.xlu1 %v1353_v15, %s1272_s20 }
  0xd4   : >> { %822 = vrot.lane.b32.xlu0 %v1350_v14, %s1272_s20  ;;  %824 = vrot.lane.b32.xlu1 %v1356_v16, %s1272_s20 }
  0xd8   : >> { %818 = vrot.lane.b32.xlu0 %v1229_v18, %s1272_s20  ;;  %820 = vrot.lane.b32.xlu1 %v1227_v17, %s1272_s20  ;;  %v1243_v18 = vld [vmem:[%s1533_s1 + $0x30] sm:$0xff]  }
  0xdc   : >> { %814 = vrot.lane.b32.xlu0 %v1232_v20, %s1272_s20  ;;  %816 = vrot.lane.b32.xlu1 %v1230_v19, %s1272_s20 }
  0xe0   : >> { %810 = vrot.lane.b32.xlu0 %v1235_v22, %s1272_s20  ;;  %812 = vrot.lane.b32.xlu1 %v1233_v23, %s1272_s20  ;;  %v1244_v22 = vld [vmem:[%s1533_s1 + $0x50] sm:$0xff]  }
 0x106   : >> { %v315_v27 = vpop.permute.xlu0 %314  ;;  %v311_v28 = vpop.permute.xlu1 %310 }
 0x10a   : >> { %v317_v29 = vpop.permute.xlu0 %316  ;;  %v313_v30 = vpop.permute.xlu1 %312 }
 0x10b   : >> { %350 = vmatprep.subr.bf16.mxu0 %v317_v29  ;;  %v323_v31 = vsel %vm318_vm1, %v315_v27, %v317_v29  ;;  %v322_v34 = vsel %vm318_vm1, %v311_v28, %v313_v30  ;;  %v1245_v27 = vld [vmem:[%s1533_s1 + $0x38] sm:$0xff]  }
 0x10c   : >> { %351 = vmatpush1.bf16.msra.mxu0 %v323_v31 }
 0x10d   : >> { %352 = vmatprep.subr.bf16.mxu0 %v313_v30  ;;  %v1246_v30 = vld [vmem:[%s1533_s1 + $0x58] sm:$0xff]  }
 0x10e   : >> { %v307_v32 = vpop.permute.xlu0 %306  ;;  %v309_v33 = vpop.permute.xlu1 %308 }
 0x10f   : >> { %v321_v37 = vsel %vm318_vm1, %v307_v32, %v309_v33 }
 0x110   : >> { %353 = vmatpush1.bf16.msra.mxu0 %v322_v34 }
 0x111   : >> { %354 = vmatprep.subr.bf16.mxu0 %v309_v33 }
 0x112   : >> { %v303_v35 = vpop.permute.xlu0 %302  ;;  %v305_v36 = vpop.permute.xlu1 %304 }
 0x113   : >> { %v320_v40 = vsel %vm318_vm1, %v303_v35, %v305_v36  ;;  %v1247_v35 = vld [vmem:[%s1533_s1 + $0x40] sm:$0xff]  }
 0x114   : >> { %355 = vmatpush1.bf16.msra.mxu0 %v321_v37 }
 0x115   : >> { %356 = vmatprep.subr.bf16.mxu0 %v305_v36 }
 0x116   : >> { %v299_v38 = vpop.permute.xlu0 %298  ;;  %v301_v39 = vpop.permute.xlu1 %300 }
 0x117   : >> { %v319_v43 = vsel %vm318_vm1, %v299_v38, %v301_v39 }
 0x118   : >> { %357 = vmatpush1.bf16.msra.mxu0 %v320_v40  ;;  %v1249_v40 = vld [vmem:[%s1533_s1 + $0x60] sm:$0xff]  }
 0x119   : >> { %358 = vmatprep.subr.bf16.mxu0 %v301_v39  ;;  %v1248_v39 = vld [vmem:[%s1533_s1 + $0x68] sm:$0xff]  }
 0x11a   : >> { %v685_v41 = vpop.permute.xlu0 %684  ;;  %v687_v42 = vpop.permute.xlu1 %686 }
 0x11b   : >> { %v693_v45 = vsel %vm688_vm2, %v685_v41, %v687_v42  ;;  %719 = vmatprep.subr.bf16.mxu1 %v687_v42  ;;  %v1250_v41 = vld [vmem:[%s1533_s1 + $0x70] sm:$0xff]  }
 0x11c   : >> { %359 = vmatpush1.bf16.msra.mxu0 %v319_v43  ;;  %720 = vmatpush1.bf16.msra.mxu1 %v693_v45 }
 0x11e   : >> { %v681_v46 = vpop.permute.xlu0 %680  ;;  %v683_v47 = vpop.permute.xlu1 %682 }
 0x11f   : >> { %1110 = vmatmul.mubr.msk.bf16.vlgmr.msra.gmra.mxu0 %vm334_vm0, %v1237_v44  ;;  %v692_v48 = vsel %vm688_vm2, %v681_v46, %v683_v47  ;;  %721 = vmatprep.subr.bf16.mxu1 %v683_v47 }
 0x120   : >> { %386 = vmatprep.mubr.bf16.mxu0 %v1269_v21  ;;  %722 = vmatpush1.bf16.msra.mxu1 %v692_v48 }
 0x122   : >> { %v543_v49 = vpop.permute.xlu0 %542  ;;  %v545_v50 = vpop.permute.xlu1 %544 }
 0x123   : >> { %v551_v52 = vsel %vm546_vm3, %v543_v49, %v545_v50  ;;  %577 = vmatprep.subr.bf16.mxu0 %v545_v50 }
 0x124   : >> { %578 = vmatpush1.bf16.msra.mxu0 %v551_v52 }
 0x126   : >> { %v677_v53 = vpop.permute.xlu0 %676  ;;  %v679_v54 = vpop.permute.xlu1 %678 }
 0x127   : >> { %1111 = vmatmul.mubr.msk.bf16.gmra.mxu0 %vm334_vm0, %v1238_v51  ;;  %v691_v55 = vsel %vm688_vm2, %v677_v53, %v679_v54  ;;  %723 = vmatprep.subr.bf16.mxu1 %v679_v54 }
 0x128   : >> { %396 = vmatprep.mubr.bf16.mxu0 %v1269_v21  ;;  %724 = vmatpush1.bf16.msra.mxu1 %v691_v55 }
 0x12a   : >> { %v539_v56 = vpop.permute.xlu0 %538  ;;  %v541_v57 = vpop.permute.xlu1 %540 }
 0x12b   : >> { %v550_v59 = vsel %vm546_vm3, %v539_v56, %v541_v57  ;;  %579 = vmatprep.subr.bf16.mxu0 %v541_v57 }
 0x12c   : >> { %580 = vmatpush1.bf16.msra.mxu0 %v550_v59 }
 0x12e   : >> { %v673_v60 = vpop.permute.xlu0 %672  ;;  %v675_v61 = vpop.permute.xlu1 %674 }
 0x12f   : >> { %1112 = vmatmul.mubr.msk.bf16.gmra.mxu0 %vm334_vm0, %v1240_v58  ;;  %v690_v62 = vsel %vm688_vm2, %v673_v60, %v675_v61  ;;  %725 = vmatprep.subr.bf16.mxu1 %v675_v61 }
 0x130   : >> { %603 = vmatprep.mubr.bf16.mxu0 %v1269_v21  ;;  %726 = vmatpush1.bf16.msra.mxu1 %v690_v62 }
 0x132   : >> { %v535_v63 = vpop.permute.xlu0 %534  ;;  %v537_v0 = vpop.permute.xlu1 %536 }
 0x133   : >> { %v549_v1 = vsel %vm546_vm3, %v535_v63, %v537_v0  ;;  %581 = vmatprep.subr.bf16.mxu0 %v537_v0 }
 0x134   : >> { %582 = vmatpush1.bf16.msra.mxu0 %v549_v1 }
 0x136   : >> { %v669_v2 = vpop.permute.xlu0 %668  ;;  %v671_v3 = vpop.permute.xlu1 %670 }
 0x137   : >> { %v689_v4 = vsel %vm688_vm2, %v669_v2, %v671_v3  ;;  %727 = vmatprep.subr.bf16.mxu1 %v671_v3 }
 0x138   : >> { %728 = vmatpush1.bf16.msra.mxu1 %v689_v4 }
 0x13a   : >> { %v531_v6 = vpop.permute.xlu0 %530  ;;  %v533_v13 = vpop.permute.xlu1 %532 }
 0x13b   : >> { %v548_v14 = vsel %vm546_vm3, %v531_v6, %v533_v13  ;;  %583 = vmatprep.subr.bf16.mxu0 %v533_v13  ;;  %1140 = vmatmul.mubr.msk.bf16.vlgmr.msra.gmra.mxu1 %vm334_vm0, %v1242_v5 }
 0x13c   : >> { %584 = vmatpush1.bf16.msra.mxu0 %v548_v14  ;;  %755 = vmatprep.mubr.bf16.mxu1 %v1269_v21 }
 0x13e   : >> { %v527_v15 = vpop.permute.xlu0 %526  ;;  %v529_v16 = vpop.permute.xlu1 %528 }
 0x13f   : >> { %v547_v17 = vsel %vm546_vm3, %v527_v15, %v529_v16  ;;  %585 = vmatprep.subr.bf16.mxu0 %v529_v16 }
 0x140   : >> { %586 = vmatpush1.bf16.msra.mxu0 %v547_v17 }
 0x142   : >> { %v827_v19 = vpop.permute.xlu0 %826  ;;  %v829_v20 = vpop.permute.xlu1 %828 }
 0x143   : >> { %v835_v23 = vsel %vm830_vm4, %v827_v19, %v829_v20  ;;  %1128 = vmatmul.mubr.msk.bf16.vlgmr.msra.gmra.mxu0 %vm334_vm0, %v1243_v18  ;;  %861 = vmatprep.subr.bf16.mxu0 %v829_v20 }
 0x144   : >> { %1185 = vmatprep.subr.bf16.mxu1 %v829_v20  ;;  %862 = vmatpush1.bf16.msra.mxu0 %v835_v23 }
 0x145   : >> { %1190 = vmatpush1.bf16.msra.mxu1 %v835_v23  ;;  %613 = vmatprep.mubr.bf16.mxu0 %v1269_v21 }
 0x146   : >> { %v823_v24 = vpop.permute.xlu0 %822  ;;  %v825_v25 = vpop.permute.xlu1 %824  ;;  %1141 = vmatmul.mubr.msk.bf16.gmra.mxu1 %vm334_vm0, %v1244_v22 }
 0x147   : >> { %v834_v26 = vsel %vm830_vm4, %v823_v24, %v825_v25  ;;  %1186 = vmatprep.subr.bf16.mxu1 %v825_v25  ;;  %863 = vmatprep.subr.bf16.mxu0 %v825_v25 }
 0x148   : >> { %864 = vmatpush1.bf16.msra.mxu0 %v834_v26  ;;  %765 = vmatprep.mubr.bf16.mxu1 %v1269_v21 }
 0x149   : >> { %1191 = vmatpush1.bf16.msra.mxu1 %v834_v26 }
 0x14a   : >> { %v819_v28 = vpop.permute.xlu0 %818  ;;  %v821_v29 = vpop.permute.xlu1 %820 }
 0x14b   : >> { %v833_v31 = vsel %vm830_vm4, %v819_v28, %v821_v29  ;;  %1129 = vmatmul.mubr.msk.bf16.gmra.mxu0 %vm334_vm0, %v1245_v27  ;;  %1187 = vmatprep.subr.bf16.mxu1 %v821_v29 }
 0x14c   : >> { %865 = vmatprep.subr.bf16.mxu0 %v821_v29  ;;  %623 = vmatprep.mubr.bf16.mxu0 %v1269_v21 }
 0x14d   : >> { %1192 = vmatpush1.bf16.msra.mxu1 %v833_v31  ;;  %866 = vmatpush1.bf16.msra.mxu0 %v833_v31 }
 0x14e   : >> { %v815_v32 = vpop.permute.xlu0 %814  ;;  %v817_v33 = vpop.permute.xlu1 %816  ;;  %1142 = vmatmul.mubr.msk.bf16.gmra.mxu1 %vm334_vm0, %v1246_v30 }
 0x14f   : >> { %v832_v34 = vsel %vm830_vm4, %v815_v32, %v817_v33  ;;  %1188 = vmatprep.subr.bf16.mxu1 %v817_v33  ;;  %867 = vmatprep.subr.bf16.mxu0 %v817_v33 }
 0x150   : >> { %897 = vmatprep.mubr.bf16.mxu1 %v1269_v21 }
 0x151   : >> { %1193 = vmatpush1.bf16.msra.mxu1 %v832_v34  ;;  %868 = vmatpush1.bf16.msra.mxu0 %v832_v34 }
 0x152   : >> { %v811_v36 = vpop.permute.xlu0 %810  ;;  %v813_v37 = vpop.permute.xlu1 %812 }
 0x153   : >> { %v831_v38 = vsel %vm830_vm4, %v811_v36, %v813_v37  ;;  %1130 = vmatmul.mubr.msk.bf16.gmra.mxu0 %vm334_vm0, %v1247_v35  ;;  %1189 = vmatprep.subr.bf16.mxu1 %v813_v37 }
 0x154   : >> { %869 = vmatprep.subr.bf16.mxu0 %v813_v37  ;;  %887 = vmatprep.mubr.bf16.mxu0 %v1269_v21 }
 0x155   : >> { %1194 = vmatpush1.bf16.msra.mxu1 %v831_v38  ;;  %870 = vmatpush1.bf16.msra.mxu0 %v831_v38 }
 0x158   : >> { %1153 = vmatmul.mubr.msk.bf16.vlgmr.msra.gmra.mxu1 %vm334_vm0, %v1248_v39 }
 0x159   : >> { %907 = vmatprep.mubr.bf16.mxu1 %v1269_v21 }
 0x15b   : >> { %1152 = vmatmul.mubr.msk.bf16.vlgmr.msra.gmra.mxu0 %vm334_vm0, %v1249_v40 }
 0x160   : >> { %1154 = vmatmul.mubr.msk.bf16.gmra.mxu1 %vm334_vm0, %v1250_v41 }
 0x169   : >> { %v475_v42 = vpop.f32.mrf.mxu1 }
 0x16b   : >> { %v477_v43 = vpop.f32.mrf.mxu1 }
 0x16d   : >> { %v479_v44 = vpop.f32.mrf.mxu1 }
 0x16f   : >> { %v481_v45 = vpop.f32.mrf.mxu1 }
 0x171   : >> { %v485_v46 = vpop.f32.mrf.mxu1 }
 0x173   : >> { %v487_v49 = vpop.f32.mrf.mxu1 }
 0x175   : >> { %v489_v52 = vpop.f32.mrf.mxu1 }
 0x177   : >> { %v491_v54 = vpop.f32.mrf.mxu1 }
 0x179   : >> { %v495_v56 = vpop.f32.mrf.mxu1 }
 0x17b   : >> { %v497_v58 = vpop.f32.mrf.mxu1 }
 0x17d   : >> { %v499_v60 = vpop.f32.mrf.mxu1 }
 0x17f   : >> { %v501_v62 = vpop.f32.mrf.mxu1 }
 0x1df   : >> { %v378_v47 = vpop.f32.mrf.mxu0 }
 0x1e0   : >> { %v476_v31 = vadd.f32 %v475_v42, %v378_v47 }
 0x1e1   : >> { %v380_v48 = vpop.f32.mrf.mxu0 }
 0x1e2   : >> { %v478_v35 = vadd.f32 %v477_v43, %v380_v48 }
 0x1e3   : >> { %v382_v50 = vpop.f32.mrf.mxu0 }
 0x1e4   : >> { %v480_v36 = vadd.f32 %v479_v44, %v382_v50 }
 0x1e5   : >> { %v384_v51 = vpop.f32.mrf.mxu0 }
 0x1e7   : >> { %v388_v21 = vpop.f32.mrf.mxu0 }
 0x1e8   : >> { %v486_v25 = vadd.f32 %v485_v46, %v388_v21  ;;  %v482_v21 = vadd.f32 %v481_v45, %v384_v51 }
 0x1e9   : >> { %v390_v53 = vpop.f32.mrf.mxu0 }
 0x1ea   : >> { %v488_v28 = vadd.f32 %v487_v49, %v390_v53 }
 0x1eb   : >> { %v392_v55 = vpop.f32.mrf.mxu0 }
 0x1ec   : >> { %v490_v32 = vadd.f32 %v489_v52, %v392_v55 }
 0x1ed   : >> { %v394_v57 = vpop.f32.mrf.mxu0 }
 0x1ee   : >> { %v492_v39 = vadd.f32 %v491_v54, %v394_v57 }
 0x1ef   : >> { %v398_v59 = vpop.f32.mrf.mxu0 }
 0x1f0   : >> { %v496_v49 = vadd.f32 %v495_v56, %v398_v59 }
 0x1f1   : >> { %v400_v61 = vpop.f32.mrf.mxu0 }
 0x1f2   : >> { %v498_v47 = vadd.f32 %v497_v58, %v400_v61 }
 0x1f3   : >> { %v402_v0 = vpop.f32.mrf.mxu0 }
 0x1f4   : >> { %v500_v48 = vadd.f32 %v499_v60, %v402_v0 }
 0x1f5   : >> { %v404_v3 = vpop.f32.mrf.mxu0 }
 0x1f6   : >> { %v502_v57 = vadd.f32 %v501_v62, %v404_v3 }
 0x1fb   : >> { %v747_v63 = vpop.f32.mrf.mxu1 }
 0x1fd   : >> { %v749_v1 = vpop.f32.mrf.mxu1 }
 0x1ff   : >> { %v751_v2 = vpop.f32.mrf.mxu1 }
 0x201   : >> { %v1471_v4 = vpop.f32.mrf.mxu1 }
 0x203   : >> { %v605_v5 = vpop.f32.mrf.mxu0 }
 0x204   : >> { %v634_v37 = vadd.f32 %v605_v5, %v476_v31 }
 0x205   : >> { %v607_v6 = vpop.f32.mrf.mxu0 }
 0x206   : >> { %v757_v13 = vpop.f32.mrf.mxu1  ;;  %v635_v53 = vadd.f32 %v607_v6, %v478_v35  ;;  %v776_v54 = vadd.f32 %v747_v63, %v634_v37 }
 0x207   : >> { %v609_v14 = vpop.f32.mrf.mxu0 }
 0x208   : >> { %v759_v15 = vpop.f32.mrf.mxu1 }
 0x209   : >> { %v611_v16 = vpop.f32.mrf.mxu0 }
 0x20a   : >> { %v761_v17 = vpop.f32.mrf.mxu1  ;;  %v637_v50 = vadd.f32 %v611_v16, %v482_v21 }
 0x20b   : >> { %v615_v18 = vpop.f32.mrf.mxu0 }
 0x20c   : >> { %v763_v19 = vpop.f32.mrf.mxu1  ;;  %v638_v29 = vadd.f32 %v615_v18, %v486_v25  ;;  %v636_v18 = vadd.f32 %v609_v14, %v480_v36 }
 0x20d   : >> { %v617_v20 = vpop.f32.mrf.mxu0 }
 0x20e   : >> { %v767_v22 = vpop.f32.mrf.mxu1  ;;  %v639_v33 = vadd.f32 %v617_v20, %v488_v28  ;;  %v780_v46 = vadd.f32 %v757_v13, %v638_v29  ;;  %v777_v13 = vadd.f32 %v749_v1, %v635_v53  ;;  %v778_v14 = vadd.f32 %v751_v2, %v636_v18 }
 0x20f   : >> { %v619_v23 = vpop.f32.mrf.mxu0 }
 0x210   : >> { %v1473_v24 = vpop.f32.mrf.mxu1  ;;  %v640_v40 = vadd.f32 %v619_v23, %v490_v32  ;;  %v781_v44 = vadd.f32 %v759_v15, %v639_v33 }
 0x211   : >> { %v621_v26 = vpop.f32.mrf.mxu0 }
 0x212   : >> { %v1475_v27 = vpop.f32.mrf.mxu1  ;;  %v641_v52 = vadd.f32 %v621_v26, %v492_v39  ;;  %v782_v59 = vadd.f32 %v761_v17, %v640_v40  ;;  %v779_v17 = vadd.f32 %v1471_v4, %v637_v50 }
 0x213   : >> { %v625_v30 = vpop.f32.mrf.mxu0 }
 0x214   : >> { %v1477_v38 = vpop.f32.mrf.mxu1  ;;  %v642_v5 = vadd.f32 %v625_v30, %v496_v49  ;;  %v783_v23 = vadd.f32 %v763_v19, %v641_v52 }
 0x215   : >> { %v627_v34 = vpop.f32.mrf.mxu0 }
 0x216   : >> { %v643_v6 = vadd.f32 %v627_v34, %v498_v47  ;;  %v784_v25 = vadd.f32 %v767_v22, %v642_v5 }
 0x217   : >> { %v629_v41 = vpop.f32.mrf.mxu0 }
 0x218   : >> { %v899_v42 = vpop.f32.mrf.mxu1  ;;  %v644_v15 = vadd.f32 %v629_v41, %v500_v48  ;;  %v785_v32 = vadd.f32 %v1473_v24, %v643_v6 }
 0x219   : >> { %v922_v55 = vadd.f32 %v899_v42, %v780_v46  ;;  %v631_v43 = vpop.f32.mrf.mxu0 }
 0x21a   : >> { %v901_v20 = vpop.f32.mrf.mxu1  ;;  %v645_v30 = vadd.f32 %v631_v43, %v502_v57  ;;  %v786_v37 = vadd.f32 %v1475_v27, %v644_v15 }
 0x21b   : >> { %v934_v45 = vadd.f32 %v922_v55, %v1329_v7  ;;  %v923_v51 = vadd.f32 %v901_v20, %v781_v44  ;;  %v889_v56 = vpop.f32.mrf.mxu0 }
 0x21c   : >> { %v918_v58 = vadd.f32 %v889_v56, %v776_v54  ;;  %v903_v61 = vpop.f32.mrf.mxu1  ;;  %v787_v44 = vadd.f32 %v1477_v38, %v645_v30 }
 0x21d   : >> { %v935_v60 = vadd.f32 %v923_v51, %v1329_v7  ;;  %v924_v0 = vadd.f32 %v903_v61, %v782_v59  ;;  %v891_v16 = vpop.f32.mrf.mxu0  ;;  %v1159_v26 = vclamps-f32 %v934_v45, 3.0 }
 0x21e   : >> { %v930_v62 = vadd.f32 %v918_v58, %v1331_v8  ;;  %v919_v63 = vadd.f32 %v891_v16, %v777_v13  ;;  %v905_v3 = vpop.f32.mrf.mxu1 }
 0x21f   : >> { %v1160_v28 = vclamps-f32 %v935_v60, 3.0  ;;  %v936_v1 = vadd.f32 %v924_v0, %v1333_v9  ;;  %v925_v2 = vadd.f32 %v905_v3, %v783_v23  ;;  %v893_v29 = vpop.f32.mrf.mxu0 }
 0x220   : >> { %v931_v22 = vadd.f32 %v919_v63, %v1331_v8  ;;  %v920_v31 = vadd.f32 %v893_v29, %v778_v14  ;;  %v909_v4 = vpop.f32.mrf.mxu1  ;;  %v1155_v39 = vclamps-f32 %v930_v62, 3.0 }
 0x221   : >> { %v1180_v33 = vpack.c.bf16 %v1160_v28, %v1159_v26  ;;  %v937_v34 = vadd.f32 %v925_v2, %v1333_v9  ;;  %v926_v35 = vadd.f32 %v909_v4, %v784_v25  ;;  %v895_v36 = vpop.f32.mrf.mxu0  ;;  %v1161_v49 = vclamps-f32 %v936_v1, 3.0 }
 0x222   : >> { %v1156_v40 = vclamps-f32 %v931_v22, 3.0  ;;  %v932_v41 = vadd.f32 %v920_v31, %v1335_v10  ;;  %v921_v46 = vadd.f32 %v895_v36, %v779_v17  ;;  %v911_v21 = vpop.f32.mrf.mxu1 }
 0x223   : >> { %1013 = vst.msk [vmem:[%s1489_s25 + $0x10] sm:$0xff] %vm1493_vm7, %v1180_v33  ;;  %v1162_v24 = vclamps-f32 %v937_v34, 3.0  ;;  %v938_v53 = vadd.f32 %v926_v35, %v1339_v12  ;;  %v927_v18 = vadd.f32 %v911_v21, %v785_v32 }
 0x224   : >> { %v1178_v42 = vpack.c.bf16 %v1156_v40, %v1155_v39  ;;  %v933_v47 = vadd.f32 %v921_v46, %v1335_v10  ;;  %v913_v27 = vpop.f32.mrf.mxu1  ;;  %v1157_v48 = vclamps-f32 %v932_v41, 3.0 }
 0x225   : >> { %v1181_v52 = vpack.c.bf16 %v1162_v24, %v1161_v49  ;;  %v939_v55 = vadd.f32 %v927_v18, %v1339_v12  ;;  %v928_v43 = vadd.f32 %v913_v27, %v786_v37  ;;  %v1163_v20 = vclamps-f32 %v938_v53, 3.0 }
 0x226   : >> { %1011 = vst.msk [vmem:[%s1489_s25] sm:$0xff] %vm1493_vm7, %v1178_v42  ;;  %v1158_v50 = vclamps-f32 %v933_v47, 3.0  ;;  %v915_v5 = vpop.f32.mrf.mxu1 }
 0x227   : >> { %1014 = vst.msk [vmem:[%s1489_s25 + $0x18] sm:$0xff] %vm1493_vm7, %v1181_v52  ;;  %v1164_v54 = vclamps-f32 %v939_v55, 3.0  ;;  %v940_v57 = vadd.f32 %v928_v43, %v1337_v11  ;;  %v929_v45 = vadd.f32 %v915_v5, %v787_v44 }
 0x228   : >> { %v1179_v51 = vpack.c.bf16 %v1158_v50, %v1157_v48 }
 0x229   : >> { %v1182_v56 = vpack.c.bf16 %v1164_v54, %v1163_v20  ;;  %v941_v59 = vadd.f32 %v929_v45, %v1337_v11  ;;  %v1165_v38 = vclamps-f32 %v940_v57, 3.0 }
 0x22a   : >> { %1012 = vst.msk [vmem:[%s1489_s25 + $0x8] sm:$0xff] %vm1493_vm7, %v1179_v51 }
 0x22b   : >> { %1015 = vst.msk [vmem:[%s1489_s25 + $0x20] sm:$0xff] %vm1493_vm7, %v1182_v56  ;;  %v1166_v6 = vclamps-f32 %v941_v59, 3.0  ;;  %212 = sbr.rel (!%p210_p4) target bundleno = 145 (0x91), region = 75 }
 0x22d   : >> { %v1183_v58 = vpack.c.bf16 %v1166_v6, %v1165_v38 }
 0x22f   : >> { %1016 = vst.msk [vmem:[%s1489_s25 + $0x28] sm:$0xff] %vm1493_vm7, %v1183_v58 }
 0x230 PF: > { %s13_s12 = sadd.s32 1, %s1261_s12  }
 0x231   : > { %p10_p5 = scmp.ge.s32.totalorder %s13_s12, 4  }
 0x233   :  { %12 = sbr.rel (!%p10_p5) target bundleno = 1 (0x1), region = 86 }

// kernel: forward.17
= control target key start
LH: loop header
LB: loop body
LE: loop exit
PB: predicated region body
PF: predicated region fallthrough
CT: control target
= control target key end

     0   :  { %s1138_s12 = smov 0   ;;  %s1387_s0 = inlined_call_operand.vmem [shape: bf16[2,9792,204], index: 0, kind: input, shape index: {}]   ;;  %s1388_s1 = inlined_call_operand.vmem [shape: bf16[3,48,144], index: 1, kind: input, shape index: {}]   ;;  %s1389_s2 = inlined_call_operand.vmem [shape: f32[48,1], index: 2, kind: input, shape index: {}]   ;;  %s1390_s3 = inlined_call_operand.vmem [shape: bf16[2,9696,202], index: 3, kind: output, shape index: {}]  }
   0x1 LB: > { %s921_s13 = sadd.s32 4294967295, %s1109_s12   ;;  %p925_p0 = scmp.ge.s32.totalorder %s1109_s12, 1  ;;  %s1109_s12 = sphi %s1138_s12, %s13_s12  }
   0x2   : > { %p137_p1 = scmp.lt.s32.totalorder %s1109_s12, 3 }
   0x4   : > { %p138_p2 = pnand %p925_p0, %p137_p1 }
   0x5   : > { %p161_p3 = scmp.lt.s32.totalorder (!%p138_p2), %s921_s13, 1  ;;  %s1186_s7 = smov (!%p138_p2), 0  }
   0x6   : > { %141 = sbr.rel (%p138_p2) target bundleno = 554 (0x22a), region = 32 }
   0xb   : > { %v174_v0 = vld [vmem:[%s1389_s2 + $0x10] sm:$0xff]  ;;  %v172_v1 = vld [vmem:[%s1389_s2] sm:$0xff]  ;;  %v1115_v2 = vmov 0   ;;  %s1394_s13 = smov (!%p161_p3, %s921_s13), 1  ;;  %v175_v3 = vld [vmem:[%s1389_s2 + $0x18] sm:$0xff] }
   0xc   : > { %1044 = vset.pattern.permute.xlu1 %v1115_v2  ;;  %1043 = vset.pattern.permute.xlu0 %v1115_v2  ;;  %v173_v4 = vld [vmem:[%s1389_s2 + $0x8] sm:$0xff]  ;;  %s1022_s22 = smul.u32 9792, %s1394_s13  ;;  %v176_v6 = vld [vmem:[%s1389_s2 + $0x20] sm:$0xff] }
   0xd   : > { %190 = vperm.xlu1 %1044, %v174_v0   ;;  %180 = vperm.xlu0 %1043, %v172_v1   ;;  %s1023_s23 = smul.u32 9696, %s1394_s13  ;;  %v177_v5 = vld [vmem:[%s1389_s2 + $0x28] sm:$0xff] }
   0xe   : > { %s1161_s26 = scalar_lea.vmem %s1387_s0, %s1022_s22 }
   0xf   : > { %s1172_s6 = scalar_lea.vmem %s1390_s3, %s1023_s23 }
  0x11   : > { %195 = vperm.xlu1 %1044, %v175_v3   ;;  %185 = vperm.xlu0 %1043, %v173_v4  }
  0x15   : > { %205 = vperm.xlu1 %1044, %v177_v5   ;;  %200 = vperm.xlu0 %1043, %v176_v6  }
  0x88   : > { %v1174_v7 = vpop.permute.xlu1 %190  ;;  %v1176_v8 = vpop.permute.xlu0 %180 }
  0x8c   : > { %v1178_v9 = vpop.permute.xlu1 %195  ;;  %v1180_v10 = vpop.permute.xlu0 %185 }
  0x90   : > { %v1182_v11 = vpop.permute.xlu1 %205  ;;  %v1184_v12 = vpop.permute.xlu0 %200 }
  0x91 LB: >> { %s214_s8 = smul.u32 48, %s1113_s7  ;;  %s1116_s13 = smov 127   ;;  %v1074_v24 = vld [vmem:[%s1388_s1 + $0x4] ss:$8 sps:$4 sm:$0xff]   ;;  %vm414_vm0 = vcmask 130048   ;;  %vm386_vm1 = vcmask 1039360   ;;  %s1113_s7 = sphi %s1186_s7, %s213_s7  }
  0x92   : >> { %969 = vmatprep.mubr.msk.bf16.mxu1 %vm414_vm0, %v1074_v24  ;;  %v1077_v30 = vld [vmem:[%s1388_s1 + $0x34] ss:$8 sps:$4 sm:$0xff]   ;;  %s1117_s18 = smov 126   ;;  %v1072_v33 = vld [vmem:[%s1388_s1] ss:$8 sps:$4 sm:$0xff]   ;;  %vm674_vm2 = vcmask 1031168  }
  0x93   : >> { %s1192_s9 = sshra.s32 %s214_s8, 3  ;;  %960 = vmatprep.mubr.msk.bf16.mxu0 %vm414_vm0, %v1077_v30  ;;  %v1080_v34 = vld [vmem:[%s1388_s1 + $0x14] ss:$8 sps:$4 sm:$0xff]   ;;  %v1083_v35 = vld [vmem:[%s1388_s1 + $0x10] ss:$8 sps:$4 sm:$0xff]   ;;  %vm848_vm3 = vcmask 1043456  }
  0x94   : >> { %s996_s10 = sshll.u32 %s1192_s9, 3  ;;  %v1086_v36 = vld [vmem:[%s1388_s1 + $0x24] ss:$8 sps:$4 sm:$0xff]   ;;  %v1089_v37 = vld [vmem:[%s1388_s1 + $0x20] ss:$8 sps:$4 sm:$0xff]   ;;  %vm849_vm4 = vcmask 605188  }
  0x95   : >> { %s1198_s11 = scalar_lea.vmem %s1161_s26, %s996_s10  ;;  %v1092_v38 = vld [vmem:[%s1388_s1 + $0x74] ss:$8 sps:$4 sm:$0xff]   ;;  %v1075_v5 = vld [vmem:[%s1388_s1 + $0x30] ss:$8 sps:$4 sm:$0xff]   ;;  %s1346_s4 = scalar_lea.vmem %s1172_s6, %s996_s10  ;;  %vm1350_vm5 = vmor %vm849_vm4, %vm848_vm3 }
  0x96   : >> { %v1045_v13 = vld [vmem:[%s1198_s11 + $0x70] ss:$8 sps:$4 sm:$0xff]   ;;  %v1202_v14 = vld [vmem:[%s1198_s11 + $0x60] ss:$8 sps:$4 sm:$0xff]   ;;  %v1049_v15 = vld [vmem:[%s1198_s11 + $0x74] ss:$8 sps:$4 sm:$0xff]  }
  0x97   : >> { %378 = vrot.lane.b32.xlu0 %v1045_v13, %s1116_s13  ;;  %374 = vrot.lane.b32.xlu1 %v1202_v14, %s1116_s13  ;;  %v1050_v16 = vld [vmem:[%s1198_s11 + $0x64] ss:$8 sps:$4 sm:$0xff]   ;;  %v1053_v17 = vld [vmem:[%s1198_s11 + $0x50] ss:$8 sps:$4 sm:$0xff]   ;;  %s213_s7 = sadd.s32 1, %s1113_s7  }
  0x98   : >> { %541 = vmatprep.subr.bf16.mxu1 %v1049_v15  ;;  %v1051_v18 = vld [vmem:[%s1198_s11 + $0x54] ss:$8 sps:$4 sm:$0xff]   ;;  %v1056_v19 = vld [vmem:[%s1198_s11 + $0x40] ss:$8 sps:$4 sm:$0xff]   ;;  %v1054_v20 = vld [vmem:[%s1198_s11 + $0x44] ss:$8 sps:$4 sm:$0xff]  }
  0x99   : >> { %542 = vmatpush1.bf16.msra.mxu1 %v1045_v13  ;;  %v1059_v21 = vld [vmem:[%s1198_s11 + $0x30] ss:$8 sps:$4 sm:$0xff]   ;;  %v1057_v22 = vld [vmem:[%s1198_s11 + $0x34] ss:$8 sps:$4 sm:$0xff]   ;;  %v1062_v23 = vld [vmem:[%s1198_s11 + $0x20] ss:$8 sps:$4 sm:$0xff]  }
  0x9a   : >> { %543 = vmatprep.subr.bf16.mxu1 %v1050_v16  ;;  %v1060_v25 = vld [vmem:[%s1198_s11 + $0x24] ss:$8 sps:$4 sm:$0xff]   ;;  %v1065_v26 = vld [vmem:[%s1198_s11 + $0x10] ss:$8 sps:$4 sm:$0xff]   ;;  %v1063_v27 = vld [vmem:[%s1198_s11 + $0x14] ss:$8 sps:$4 sm:$0xff]  }
  0x9b   : >> { %380 = vrot.lane.b32.xlu0 %v1049_v15, %s1116_s13  ;;  %376 = vrot.lane.b32.xlu1 %v1050_v16, %s1116_s13  ;;  %v1068_v28 = vld [vmem:[%s1198_s11] ss:$8 sps:$4 sm:$0xff]   ;;  %v1066_v29 = vld [vmem:[%s1198_s11 + $0x4] ss:$8 sps:$4 sm:$0xff]   ;;  %p210_p4 = scmp.ge.s32.totalorder %s213_s7, 202  }
  0x9c   : >> { %v1069_v31 = vld [vmem:[%s1198_s11 + $0x84] ss:$8 sps:$4 sm:$0xff]   ;;  %v1071_v32 = vld [vmem:[%s1198_s11 + $0x80] ss:$8 sps:$4 sm:$0xff]  }
  0x9d   : >> { %544 = vmatpush1.bf16.msra.mxu1 %v1202_v14 }
  0x9e   : >> { %545 = vmatprep.subr.bf16.mxu1 %v1051_v18 }
  0x9f   : >> { %370 = vrot.lane.b32.xlu0 %v1053_v17, %s1116_s13  ;;  %372 = vrot.lane.b32.xlu1 %v1051_v18, %s1116_s13 }
  0xa1   : >> { %546 = vmatpush1.bf16.msra.mxu1 %v1053_v17 }
  0xa2   : >> { %547 = vmatprep.subr.bf16.mxu1 %v1054_v20 }
  0xa3   : >> { %366 = vrot.lane.b32.xlu0 %v1056_v19, %s1116_s13  ;;  %368 = vrot.lane.b32.xlu1 %v1054_v20, %s1116_s13 }
  0xa5   : >> { %548 = vmatpush1.bf16.msra.mxu1 %v1056_v19 }
  0xa6   : >> { %549 = vmatprep.subr.bf16.mxu1 %v1057_v22 }
  0xa7   : >> { %362 = vrot.lane.b32.xlu0 %v1059_v21, %s1116_s13  ;;  %364 = vrot.lane.b32.xlu1 %v1057_v22, %s1116_s13 }
  0xa9   : >> { %550 = vmatpush1.bf16.msra.mxu1 %v1059_v21 }
  0xaa   : >> { %551 = vmatprep.subr.bf16.mxu1 %v1060_v25 }
  0xab   : >> { %358 = vrot.lane.b32.xlu0 %v1062_v23, %s1116_s13  ;;  %360 = vrot.lane.b32.xlu1 %v1060_v25, %s1116_s13 }
  0xad   : >> { %552 = vmatpush1.bf16.msra.mxu1 %v1062_v23 }
  0xae   : >> { %553 = vmatprep.subr.bf16.mxu1 %v1063_v27 }
  0xaf   : >> { %354 = vrot.lane.b32.xlu0 %v1065_v26, %s1116_s13  ;;  %356 = vrot.lane.b32.xlu1 %v1063_v27, %s1116_s13 }
  0xb1   : >> { %554 = vmatpush1.bf16.msra.mxu1 %v1065_v26 }
  0xb2   : >> { %555 = vmatprep.subr.bf16.mxu1 %v1066_v29 }
  0xb3   : >> { %350 = vrot.lane.b32.xlu0 %v1068_v28, %s1116_s13  ;;  %352 = vrot.lane.b32.xlu1 %v1066_v29, %s1116_s13 }
  0xb5   : >> { %556 = vmatpush1.bf16.msra.mxu1 %v1068_v28 }
  0xb6   : >> { %571 = vmatprep.subr.bf16.mxu1 %v1069_v31 }
  0xb7   : >> { %666 = vrot.lane.b32.xlu0 %v1045_v13, %s1117_s18  ;;  %668 = vrot.lane.b32.xlu1 %v1049_v15, %s1117_s18  ;;  %v1078_v13 = vld [vmem:[%s1388_s1 + $0x44] ss:$8 sps:$4 sm:$0xff]  }
  0xb9   : >> { %572 = vmatpush2.bf16.msra.mxu1 %v1071_v32 }
  0xbb   : >> { %382 = vrot.lane.b32.xlu0 %v1071_v32, %s1116_s13  ;;  %384 = vrot.lane.b32.xlu1 %v1069_v31, %s1116_s13 }
  0xbc   : >> { %574 = vmatmul.mubr.bf16.vlgmr.msra.gmra.mxu1 %v1072_v33 }
  0xbd   : >> { %970 = vmatprep.mubr.msk.bf16.mxu1 %vm414_vm0, %v1080_v34 }
  0xbf   : >> { %662 = vrot.lane.b32.xlu0 %v1202_v14, %s1117_s18  ;;  %664 = vrot.lane.b32.xlu1 %v1050_v16, %s1117_s18 }
  0xc3   : >> { %658 = vrot.lane.b32.xlu0 %v1053_v17, %s1117_s18  ;;  %660 = vrot.lane.b32.xlu1 %v1051_v18, %s1117_s18 }
  0xc4   : >> { %584 = vmatmul.mubr.bf16.gmra.mxu1 %v1083_v35 }
  0xc5   : >> { %971 = vmatprep.mubr.msk.bf16.mxu1 %vm414_vm0, %v1086_v36 }
  0xc7   : >> { %654 = vrot.lane.b32.xlu0 %v1056_v19, %s1117_s18  ;;  %656 = vrot.lane.b32.xlu1 %v1054_v20, %s1117_s18  ;;  %v1082_v19 = vld [vmem:[%s1388_s1 + $0x40] ss:$8 sps:$4 sm:$0xff]  }
  0xcb   : >> { %650 = vrot.lane.b32.xlu0 %v1059_v21, %s1117_s18  ;;  %652 = vrot.lane.b32.xlu1 %v1057_v22, %s1117_s18  ;;  %v1084_v21 = vld [vmem:[%s1388_s1 + $0x54] ss:$8 sps:$4 sm:$0xff]  }
  0xcc   : >> { %594 = vmatmul.mubr.bf16.gmra.mxu1 %v1089_v37 }
  0xcd   : >> { %985 = vmatprep.mubr.msk.bf16.mxu1 %vm414_vm0, %v1092_v38 }
  0xcf   : >> { %646 = vrot.lane.b32.xlu0 %v1062_v23, %s1117_s18  ;;  %648 = vrot.lane.b32.xlu1 %v1060_v25, %s1117_s18 }
  0xd3   : >> { %642 = vrot.lane.b32.xlu0 %v1065_v26, %s1117_s18  ;;  %644 = vrot.lane.b32.xlu1 %v1063_v27, %s1117_s18  ;;  %v1088_v27 = vld [vmem:[%s1388_s1 + $0x50] ss:$8 sps:$4 sm:$0xff]  }
  0xd7   : >> { %638 = vrot.lane.b32.xlu0 %v1068_v28, %s1117_s18  ;;  %640 = vrot.lane.b32.xlu1 %v1066_v29, %s1117_s18  ;;  %v1095_v29 = vld [vmem:[%s1388_s1 + $0x64] ss:$8 sps:$4 sm:$0xff]  }
  0xdb   : >> { %670 = vrot.lane.b32.xlu0 %v1071_v32, %s1117_s18  ;;  %672 = vrot.lane.b32.xlu1 %v1069_v31, %s1117_s18 }
 0x109   : >> { %v379_v39 = vpop.permute.xlu0 %378  ;;  %v375_v40 = vpop.permute.xlu1 %374 }
 0x10d   : >> { %v381_v41 = vpop.permute.xlu0 %380  ;;  %v377_v42 = vpop.permute.xlu1 %376 }
 0x10e   : >> { %424 = vmatprep.subr.bf16.mxu0 %v381_v41  ;;  %v394_v43 = vsel %vm386_vm1, %v379_v39, %v381_v41  ;;  %v393_v46 = vsel %vm386_vm1, %v375_v40, %v377_v42  ;;  %v1090_v41 = vld [vmem:[%s1388_s1 + $0x70] ss:$8 sps:$4 sm:$0xff]  }
 0x10f   : >> { %425 = vmatpush1.bf16.msra.mxu0 %v394_v43  ;;  %v1093_v43 = vld [vmem:[%s1388_s1 + $0x60] ss:$8 sps:$4 sm:$0xff]  }
 0x110   : >> { %426 = vmatprep.subr.bf16.mxu0 %v377_v42  ;;  %v1096_v42 = vld [vmem:[%s1388_s1 + $0x84] ss:$8 sps:$4 sm:$0xff]  }
 0x111   : >> { %v371_v44 = vpop.permute.xlu0 %370  ;;  %v373_v45 = vpop.permute.xlu1 %372 }
 0x112   : >> { %v392_v49 = vsel %vm386_vm1, %v371_v44, %v373_v45  ;;  %v1098_v44 = vld [vmem:[%s1388_s1 + $0x80] ss:$8 sps:$4 sm:$0xff]  }
 0x113   : >> { %427 = vmatpush1.bf16.msra.mxu0 %v393_v46 }
 0x114   : >> { %428 = vmatprep.subr.bf16.mxu0 %v373_v45 }
 0x115   : >> { %v367_v47 = vpop.permute.xlu0 %366  ;;  %v369_v48 = vpop.permute.xlu1 %368 }
 0x116   : >> { %v391_v52 = vsel %vm386_vm1, %v367_v47, %v369_v48 }
 0x117   : >> { %429 = vmatpush1.bf16.msra.mxu0 %v392_v49 }
 0x118   : >> { %430 = vmatprep.subr.bf16.mxu0 %v369_v48 }
 0x119   : >> { %v363_v50 = vpop.permute.xlu0 %362  ;;  %v365_v51 = vpop.permute.xlu1 %364 }
 0x11a   : >> { %v390_v55 = vsel %vm386_vm1, %v363_v50, %v365_v51 }
 0x11b   : >> { %431 = vmatpush1.bf16.msra.mxu0 %v391_v52 }
 0x11c   : >> { %432 = vmatprep.subr.bf16.mxu0 %v365_v51 }
 0x11d   : >> { %v359_v53 = vpop.permute.xlu0 %358  ;;  %v361_v54 = vpop.permute.xlu1 %360 }
 0x11e   : >> { %v389_v58 = vsel %vm386_vm1, %v359_v53, %v361_v54 }
 0x11f   : >> { %433 = vmatpush1.bf16.msra.mxu0 %v390_v55 }
 0x120   : >> { %434 = vmatprep.subr.bf16.mxu0 %v361_v54 }
 0x121   : >> { %v355_v56 = vpop.permute.xlu0 %354  ;;  %v357_v57 = vpop.permute.xlu1 %356 }
 0x122   : >> { %v388_v61 = vsel %vm386_vm1, %v355_v56, %v357_v57 }
 0x123   : >> { %435 = vmatpush1.bf16.msra.mxu0 %v389_v58 }
 0x124   : >> { %436 = vmatprep.subr.bf16.mxu0 %v357_v57 }
 0x125   : >> { %v351_v59 = vpop.permute.xlu0 %350  ;;  %v353_v60 = vpop.permute.xlu1 %352 }
 0x126   : >> { %v387_v0 = vsel %vm386_vm1, %v351_v59, %v353_v60 }
 0x127   : >> { %437 = vmatpush1.bf16.msra.mxu0 %v388_v61 }
 0x128   : >> { %438 = vmatprep.subr.bf16.mxu0 %v353_v60 }
 0x129   : >> { %v667_v62 = vpop.permute.xlu0 %666  ;;  %v669_v63 = vpop.permute.xlu1 %668 }
 0x12a   : >> { %v682_v1 = vsel %vm674_vm2, %v667_v62, %v669_v63  ;;  %1004 = vmatprep.subr.bf16.mxu1 %v669_v63 }
 0x12b   : >> { %439 = vmatpush1.bf16.msra.mxu0 %v387_v0  ;;  %1013 = vmatpush1.bf16.msra.mxu1 %v682_v1 }
 0x12d   : >> { %v383_v2 = vpop.permute.xlu0 %382  ;;  %v385_v3 = vpop.permute.xlu1 %384 }
 0x12e   : >> { %454 = vmatprep.subr.bf16.mxu0 %v385_v3  ;;  %v395_v4 = vsel %vm386_vm1, %v383_v2, %v385_v3 }
 0x12f   : >> { %455 = vmatpush2.bf16.msra.mxu0 %v395_v4 }
 0x130   : >> { %711 = vmatprep.subr.bf16.mxu0 %v669_v63 }
 0x131   : >> { %v663_v6 = vpop.permute.xlu0 %662  ;;  %v665_v14 = vpop.permute.xlu1 %664 }
 0x132   : >> { %v681_v15 = vsel %vm674_vm2, %v663_v6, %v665_v14  ;;  %457 = vmatmul.mubr.bf16.vlgmr.msra.gmra.mxu0 %v1075_v5  ;;  %1005 = vmatprep.subr.bf16.mxu1 %v665_v14 }
 0x133   : >> { %712 = vmatpush1.bf16.msra.mxu0 %v682_v1  ;;  %1014 = vmatpush1.bf16.msra.mxu1 %v681_v15 }
 0x134   : >> { %713 = vmatprep.subr.bf16.mxu0 %v665_v14  ;;  %961 = vmatprep.mubr.msk.bf16.mxu0 %vm414_vm0, %v1078_v13 }
 0x135   : >> { %v659_v16 = vpop.permute.xlu0 %658  ;;  %v661_v17 = vpop.permute.xlu1 %660 }
 0x136   : >> { %v680_v18 = vsel %vm674_vm2, %v659_v16, %v661_v17  ;;  %1006 = vmatprep.subr.bf16.mxu1 %v661_v17 }
 0x137   : >> { %714 = vmatpush1.bf16.msra.mxu0 %v681_v15  ;;  %1015 = vmatpush1.bf16.msra.mxu1 %v680_v18 }
 0x138   : >> { %715 = vmatprep.subr.bf16.mxu0 %v661_v17 }
 0x139   : >> { %v655_v20 = vpop.permute.xlu0 %654  ;;  %v657_v22 = vpop.permute.xlu1 %656 }
 0x13a   : >> { %v679_v23 = vsel %vm674_vm2, %v655_v20, %v657_v22  ;;  %1007 = vmatprep.subr.bf16.mxu1 %v657_v22  ;;  %467 = vmatmul.mubr.bf16.gmra.mxu0 %v1082_v19 }
 0x13b   : >> { %716 = vmatpush1.bf16.msra.mxu0 %v680_v18  ;;  %1016 = vmatpush1.bf16.msra.mxu1 %v679_v23 }
 0x13c   : >> { %717 = vmatprep.subr.bf16.mxu0 %v657_v22  ;;  %962 = vmatprep.mubr.msk.bf16.mxu0 %vm414_vm0, %v1084_v21 }
 0x13d   : >> { %v651_v24 = vpop.permute.xlu0 %650  ;;  %v653_v25 = vpop.permute.xlu1 %652 }
 0x13e   : >> { %v678_v26 = vsel %vm674_vm2, %v651_v24, %v653_v25  ;;  %1008 = vmatprep.subr.bf16.mxu1 %v653_v25 }
 0x13f   : >> { %718 = vmatpush1.bf16.msra.mxu0 %v679_v23  ;;  %1017 = vmatpush1.bf16.msra.mxu1 %v678_v26 }
 0x140   : >> { %719 = vmatprep.subr.bf16.mxu0 %v653_v25 }
 0x141   : >> { %v647_v28 = vpop.permute.xlu0 %646  ;;  %v649_v30 = vpop.permute.xlu1 %648 }
 0x142   : >> { %v677_v31 = vsel %vm674_vm2, %v647_v28, %v649_v30  ;;  %1009 = vmatprep.subr.bf16.mxu1 %v649_v30  ;;  %477 = vmatmul.mubr.bf16.gmra.mxu0 %v1088_v27 }
 0x143   : >> { %720 = vmatpush1.bf16.msra.mxu0 %v678_v26  ;;  %1018 = vmatpush1.bf16.msra.mxu1 %v677_v31 }
 0x144   : >> { %721 = vmatprep.subr.bf16.mxu0 %v649_v30  ;;  %984 = vmatprep.mubr.msk.bf16.mxu0 %vm414_vm0, %v1095_v29 }
 0x145   : >> { %v643_v32 = vpop.permute.xlu0 %642  ;;  %v645_v33 = vpop.permute.xlu1 %644 }
 0x146   : >> { %v676_v34 = vsel %vm674_vm2, %v643_v32, %v645_v33  ;;  %1010 = vmatprep.subr.bf16.mxu1 %v645_v33 }
 0x147   : >> { %722 = vmatpush1.bf16.msra.mxu0 %v677_v31  ;;  %1019 = vmatpush1.bf16.msra.mxu1 %v676_v34 }
 0x148   : >> { %723 = vmatprep.subr.bf16.mxu0 %v645_v33 }
 0x149   : >> { %v639_v35 = vpop.permute.xlu0 %638  ;;  %v641_v36 = vpop.permute.xlu1 %640 }
 0x14a   : >> { %v675_v37 = vsel %vm674_vm2, %v639_v35, %v641_v36  ;;  %1011 = vmatprep.subr.bf16.mxu1 %v641_v36 }
 0x14b   : >> { %724 = vmatpush1.bf16.msra.mxu0 %v676_v34  ;;  %1020 = vmatpush1.bf16.msra.mxu1 %v675_v37 }
 0x14c   : >> { %725 = vmatprep.subr.bf16.mxu0 %v641_v36 }
 0x14d   : >> { %v671_v38 = vpop.permute.xlu0 %670  ;;  %v673_v39 = vpop.permute.xlu1 %672 }
 0x14e   : >> { %v683_v40 = vsel %vm674_vm2, %v671_v38, %v673_v39  ;;  %1012 = vmatprep.subr.bf16.mxu1 %v673_v39 }
 0x14f   : >> { %726 = vmatpush1.bf16.msra.mxu0 %v675_v37  ;;  %1021 = vmatpush2.bf16.msra.mxu1 %v683_v40 }
 0x150   : >> { %741 = vmatprep.subr.bf16.mxu0 %v673_v39 }
 0x152   : >> { %754 = vmatmul.mubr.bf16.vlgmr.msra.gmra.mxu1 %v1090_v41 }
 0x153   : >> { %742 = vmatpush2.bf16.msra.mxu0 %v683_v40  ;;  %986 = vmatprep.mubr.msk.bf16.mxu1 %vm414_vm0, %v1096_v42 }
 0x156   : >> { %744 = vmatmul.mubr.bf16.vlgmr.msra.gmra.mxu0 %v1093_v43 }
 0x15a   : >> { %764 = vmatmul.mubr.bf16.gmra.mxu1 %v1098_v44 }
 0x17c   : >> { %v575_v45 = vpop.f32.mrf.mxu1 }
 0x17e   : >> { %v577_v46 = vpop.f32.mrf.mxu1 }
 0x180   : >> { %v579_v47 = vpop.f32.mrf.mxu1 }
 0x182   : >> { %v581_v48 = vpop.f32.mrf.mxu1 }
 0x184   : >> { %v585_v51 = vpop.f32.mrf.mxu1 }
 0x186   : >> { %v587_v54 = vpop.f32.mrf.mxu1 }
 0x188   : >> { %v589_v57 = vpop.f32.mrf.mxu1 }
 0x18a   : >> { %v591_v59 = vpop.f32.mrf.mxu1 }
 0x18c   : >> { %v595_v61 = vpop.f32.mrf.mxu1 }
 0x18e   : >> { %v597_v63 = vpop.f32.mrf.mxu1 }
 0x190   : >> { %v599_v1 = vpop.f32.mrf.mxu1 }
 0x192   : >> { %v601_v3 = vpop.f32.mrf.mxu1 }
 0x1f2   : >> { %v458_v49 = vpop.f32.mrf.mxu0 }
 0x1f3   : >> { %v576_v16 = vadd.f32 %v575_v45, %v458_v49 }
 0x1f4   : >> { %v460_v50 = vpop.f32.mrf.mxu0 }
 0x1f5   : >> { %v578_v22 = vadd.f32 %v577_v46, %v460_v50 }
 0x1f6   : >> { %v462_v52 = vpop.f32.mrf.mxu0 }
 0x1f7   : >> { %v580_v26 = vadd.f32 %v579_v47, %v462_v52 }
 0x1f8   : >> { %v464_v53 = vpop.f32.mrf.mxu0 }
 0x1f9   : >> { %v582_v34 = vadd.f32 %v581_v48, %v464_v53 }
 0x1fa   : >> { %v468_v55 = vpop.f32.mrf.mxu0 }
 0x1fb   : >> { %v586_v4 = vadd.f32 %v585_v51, %v468_v55 }
 0x1fc   : >> { %v470_v56 = vpop.f32.mrf.mxu0 }
 0x1fd   : >> { %v588_v6 = vadd.f32 %v587_v54, %v470_v56 }
 0x1fe   : >> { %v472_v58 = vpop.f32.mrf.mxu0 }
 0x1ff   : >> { %v590_v17 = vadd.f32 %v589_v57, %v472_v58 }
 0x200   : >> { %v474_v60 = vpop.f32.mrf.mxu0 }
 0x201   : >> { %v592_v27 = vadd.f32 %v591_v59, %v474_v60 }
 0x202   : >> { %v478_v62 = vpop.f32.mrf.mxu0 }
 0x203   : >> { %v596_v35 = vadd.f32 %v595_v61, %v478_v62 }
 0x204   : >> { %v480_v0 = vpop.f32.mrf.mxu0 }
 0x205   : >> { %v598_v41 = vadd.f32 %v597_v63, %v480_v0 }
 0x206   : >> { %v482_v2 = vpop.f32.mrf.mxu0 }
 0x207   : >> { %v600_v42 = vadd.f32 %v599_v1, %v482_v2 }
 0x208   : >> { %v484_v14 = vpop.f32.mrf.mxu0 }
 0x209   : >> { %v602_v45 = vadd.f32 %v601_v3, %v484_v14 }
 0x212   : >> { %v755_v5 = vpop.f32.mrf.mxu1 }
 0x213   : >> { %v778_v13 = vadd.f32 %v755_v5, %v586_v4 }
 0x214   : >> { %v757_v15 = vpop.f32.mrf.mxu1 }
 0x215   : >> { %v790_v18 = vadd.f32 %v778_v13, %v1174_v7  ;;  %v779_v19 = vadd.f32 %v757_v15, %v588_v6 }
 0x216   : >> { %v745_v20 = vpop.f32.mrf.mxu0  ;;  %v759_v21 = vpop.f32.mrf.mxu1 }
 0x217   : >> { %v791_v23 = vadd.f32 %v779_v19, %v1174_v7  ;;  %v774_v24 = vadd.f32 %v745_v20, %v576_v16  ;;  %v780_v25 = vadd.f32 %v759_v21, %v590_v17  ;;  %v802_v30 = vmax.f32 %v790_v18, 0.0 }
 0x218   : >> { %v747_v28 = vpop.f32.mrf.mxu0  ;;  %v761_v29 = vpop.f32.mrf.mxu1 }
 0x219   : >> { %v803_v31 = vmax.f32 %v791_v23, 0.0  ;;  %v786_v32 = vadd.f32 %v774_v24, %v1176_v8  ;;  %v775_v33 = vadd.f32 %v747_v28, %v578_v22  ;;  %v792_v37 = vadd.f32 %v780_v25, %v1178_v9 }
 0x21a   : >> { %v781_v38 = vadd.f32 %v761_v29, %v592_v27  ;;  %v749_v39 = vpop.f32.mrf.mxu0  ;;  %v765_v40 = vpop.f32.mrf.mxu1 }
 0x21b   : >> { %v999_v43 = vpack.c.bf16 %v803_v31, %v802_v30  ;;  %v787_v44 = vadd.f32 %v775_v33, %v1176_v8  ;;  %v776_v47 = vadd.f32 %v749_v39, %v580_v26  ;;  %v782_v48 = vadd.f32 %v765_v40, %v596_v35 }
 0x21c   : >> { %v793_v46 = vadd.f32 %v781_v38, %v1178_v9  ;;  %v751_v49 = vpop.f32.mrf.mxu0  ;;  %v767_v50 = vpop.f32.mrf.mxu1  ;;  %v798_v51 = vmax.f32 %v786_v32, 0.0  ;;  %v804_v55 = vmax.f32 %v792_v37, 0.0 }
 0x21d   : >> { %853 = vst.msk [vmem:[%s1346_s4 + $0x10] sm:$0xff] %vm1350_vm5, %v999_v43  ;;  %v799_v52 = vmax.f32 %v787_v44, 0.0  ;;  %v777_v53 = vadd.f32 %v751_v49, %v582_v34  ;;  %v783_v54 = vadd.f32 %v767_v50, %v598_v41  ;;  %v788_v57 = vadd.f32 %v776_v47, %v1180_v10 }
 0x21e   : >> { %v805_v56 = vmax.f32 %v793_v46, 0.0  ;;  %v794_v58 = vadd.f32 %v782_v48, %v1184_v12  ;;  %v769_v59 = vpop.f32.mrf.mxu1 }
 0x21f   : >> { %v997_v60 = vpack.c.bf16 %v799_v52, %v798_v51  ;;  %v789_v61 = vadd.f32 %v777_v53, %v1180_v10  ;;  %v795_v62 = vadd.f32 %v783_v54, %v1184_v12  ;;  %v784_v63 = vadd.f32 %v769_v59, %v600_v42 }
 0x220   : >> { %v1000_v0 = vpack.c.bf16 %v805_v56, %v804_v55  ;;  %v800_v1 = vmax.f32 %v788_v57, 0.0  ;;  %v806_v2 = vmax.f32 %v794_v58, 0.0  ;;  %v771_v3 = vpop.f32.mrf.mxu1 }
 0x221   : >> { %851 = vst.msk [vmem:[%s1346_s4] sm:$0xff] %vm1350_vm5, %v997_v60  ;;  %v801_v4 = vmax.f32 %v789_v61, 0.0  ;;  %v807_v5 = vmax.f32 %v795_v62, 0.0  ;;  %v796_v6 = vadd.f32 %v784_v63, %v1182_v11  ;;  %v785_v13 = vadd.f32 %v771_v3, %v602_v45 }
 0x222   : >> { %854 = vst.msk [vmem:[%s1346_s4 + $0x18] sm:$0xff] %vm1350_vm5, %v1000_v0 }
 0x223   : >> { %v998_v14 = vpack.c.bf16 %v801_v4, %v800_v1  ;;  %v1001_v15 = vpack.c.bf16 %v807_v5, %v806_v2  ;;  %v797_v16 = vadd.f32 %v785_v13, %v1182_v11  ;;  %v808_v17 = vmax.f32 %v796_v6, 0.0 }
 0x225   : >> { %852 = vst.msk [vmem:[%s1346_s4 + $0x8] sm:$0xff] %vm1350_vm5, %v998_v14  ;;  %855 = vst.msk [vmem:[%s1346_s4 + $0x20] sm:$0xff] %vm1350_vm5, %v1001_v15  ;;  %v809_v18 = vmax.f32 %v797_v16, 0.0  ;;  %212 = sbr.rel (!%p210_p4) target bundleno = 145 (0x91), region = 73 }
 0x227   : >> { %v1002_v19 = vpack.c.bf16 %v809_v18, %v808_v17 }
 0x229   : >> { %856 = vst.msk [vmem:[%s1346_s4 + $0x28] sm:$0xff] %vm1350_vm5, %v1002_v19 }
 0x22a PF: > { %s13_s12 = sadd.s32 1, %s1109_s12  }
 0x22b   : > { %p10_p5 = scmp.ge.s32.totalorder %s13_s12, 4  }
 0x22d   :  { %12 = sbr.rel (!%p10_p5) target bundleno = 1 (0x1), region = 84 }

// kernel: forward.19
= control target key start
LH: loop header
LB: loop body
LE: loop exit
PB: predicated region body
PF: predicated region fallthrough
CT: control target
= control target key end

     0   :  { %s1138_s12 = smov 0   ;;  %s1387_s0 = inlined_call_operand.vmem [shape: bf16[2,9600,200], index: 0, kind: input, shape index: {}]   ;;  %s1388_s1 = inlined_call_operand.vmem [shape: bf16[3,48,144], index: 1, kind: input, shape index: {}]   ;;  %s1389_s2 = inlined_call_operand.vmem [shape: f32[48,1], index: 2, kind: input, shape index: {}]   ;;  %s1390_s3 = inlined_call_operand.vmem [shape: bf16[2,9504,198], index: 3, kind: output, shape index: {}]  }
   0x1 LB: > { %s921_s13 = sadd.s32 4294967295, %s1109_s12   ;;  %p925_p0 = scmp.ge.s32.totalorder %s1109_s12, 1  ;;  %s1109_s12 = sphi %s1138_s12, %s13_s12  }
   0x2   : > { %p137_p1 = scmp.lt.s32.totalorder %s1109_s12, 3 }
   0x4   : > { %p138_p2 = pnand %p925_p0, %p137_p1 }
   0x5   : > { %p161_p3 = scmp.lt.s32.totalorder (!%p138_p2), %s921_s13, 1  ;;  %s1186_s7 = smov (!%p138_p2), 0  }
   0x6   : > { %141 = sbr.rel (%p138_p2) target bundleno = 554 (0x22a), region = 32 }
   0xb   : > { %v174_v0 = vld [vmem:[%s1389_s2 + $0x10] sm:$0xff]  ;;  %v172_v1 = vld [vmem:[%s1389_s2] sm:$0xff]  ;;  %v1115_v2 = vmov 0   ;;  %s1394_s13 = smov (!%p161_p3, %s921_s13), 1  ;;  %v175_v3 = vld [vmem:[%s1389_s2 + $0x18] sm:$0xff] }
   0xc   : > { %1044 = vset.pattern.permute.xlu1 %v1115_v2  ;;  %1043 = vset.pattern.permute.xlu0 %v1115_v2  ;;  %v173_v4 = vld [vmem:[%s1389_s2 + $0x8] sm:$0xff]  ;;  %s1022_s22 = smul.u32 9600, %s1394_s13  ;;  %v176_v6 = vld [vmem:[%s1389_s2 + $0x20] sm:$0xff] }
   0xd   : > { %190 = vperm.xlu1 %1044, %v174_v0   ;;  %180 = vperm.xlu0 %1043, %v172_v1   ;;  %s1023_s23 = smul.u32 9504, %s1394_s13  ;;  %v177_v5 = vld [vmem:[%s1389_s2 + $0x28] sm:$0xff] }
   0xe   : > { %s1161_s26 = scalar_lea.vmem %s1387_s0, %s1022_s22 }
   0xf   : > { %s1172_s6 = scalar_lea.vmem %s1390_s3, %s1023_s23 }
  0x11   : > { %195 = vperm.xlu1 %1044, %v175_v3   ;;  %185 = vperm.xlu0 %1043, %v173_v4  }
  0x15   : > { %205 = vperm.xlu1 %1044, %v177_v5   ;;  %200 = vperm.xlu0 %1043, %v176_v6  }
  0x88   : > { %v1174_v7 = vpop.permute.xlu1 %190  ;;  %v1176_v8 = vpop.permute.xlu0 %180 }
  0x8c   : > { %v1178_v9 = vpop.permute.xlu1 %195  ;;  %v1180_v10 = vpop.permute.xlu0 %185 }
  0x90   : > { %v1182_v11 = vpop.permute.xlu1 %205  ;;  %v1184_v12 = vpop.permute.xlu0 %200 }
  0x91 LB: >> { %s214_s8 = smul.u32 48, %s1113_s7  ;;  %s1116_s13 = smov 127   ;;  %v1074_v24 = vld [vmem:[%s1388_s1 + $0x4] ss:$8 sps:$4 sm:$0xff]   ;;  %vm414_vm0 = vcmask 130048   ;;  %vm386_vm1 = vcmask 1039360   ;;  %s1113_s7 = sphi %s1186_s7, %s213_s7  }
  0x92   : >> { %969 = vmatprep.mubr.msk.bf16.mxu1 %vm414_vm0, %v1074_v24  ;;  %v1077_v30 = vld [vmem:[%s1388_s1 + $0x34] ss:$8 sps:$4 sm:$0xff]   ;;  %s1117_s18 = smov 126   ;;  %v1072_v33 = vld [vmem:[%s1388_s1] ss:$8 sps:$4 sm:$0xff]   ;;  %vm674_vm2 = vcmask 1031168  }
  0x93   : >> { %s1192_s9 = sshra.s32 %s214_s8, 3  ;;  %960 = vmatprep.mubr.msk.bf16.mxu0 %vm414_vm0, %v1077_v30  ;;  %v1080_v34 = vld [vmem:[%s1388_s1 + $0x14] ss:$8 sps:$4 sm:$0xff]   ;;  %v1083_v35 = vld [vmem:[%s1388_s1 + $0x10] ss:$8 sps:$4 sm:$0xff]   ;;  %vm848_vm3 = vcmask 1043456  }
  0x94   : >> { %s996_s10 = sshll.u32 %s1192_s9, 3  ;;  %v1086_v36 = vld [vmem:[%s1388_s1 + $0x24] ss:$8 sps:$4 sm:$0xff]   ;;  %v1089_v37 = vld [vmem:[%s1388_s1 + $0x20] ss:$8 sps:$4 sm:$0xff]   ;;  %vm849_vm4 = vcmask 572420  }
  0x95   : >> { %s1198_s11 = scalar_lea.vmem %s1161_s26, %s996_s10  ;;  %v1092_v38 = vld [vmem:[%s1388_s1 + $0x74] ss:$8 sps:$4 sm:$0xff]   ;;  %v1075_v5 = vld [vmem:[%s1388_s1 + $0x30] ss:$8 sps:$4 sm:$0xff]   ;;  %s1346_s4 = scalar_lea.vmem %s1172_s6, %s996_s10  ;;  %vm1350_vm5 = vmor %vm849_vm4, %vm848_vm3 }
  0x96   : >> { %v1045_v13 = vld [vmem:[%s1198_s11 + $0x70] ss:$8 sps:$4 sm:$0xff]   ;;  %v1202_v14 = vld [vmem:[%s1198_s11 + $0x60] ss:$8 sps:$4 sm:$0xff]   ;;  %v1049_v15 = vld [vmem:[%s1198_s11 + $0x74] ss:$8 sps:$4 sm:$0xff]  }
  0x97   : >> { %378 = vrot.lane.b32.xlu0 %v1045_v13, %s1116_s13  ;;  %374 = vrot.lane.b32.xlu1 %v1202_v14, %s1116_s13  ;;  %v1050_v16 = vld [vmem:[%s1198_s11 + $0x64] ss:$8 sps:$4 sm:$0xff]   ;;  %v1053_v17 = vld [vmem:[%s1198_s11 + $0x50] ss:$8 sps:$4 sm:$0xff]   ;;  %s213_s7 = sadd.s32 1, %s1113_s7  }
  0x98   : >> { %541 = vmatprep.subr.bf16.mxu1 %v1049_v15  ;;  %v1051_v18 = vld [vmem:[%s1198_s11 + $0x54] ss:$8 sps:$4 sm:$0xff]   ;;  %v1056_v19 = vld [vmem:[%s1198_s11 + $0x40] ss:$8 sps:$4 sm:$0xff]   ;;  %v1054_v20 = vld [vmem:[%s1198_s11 + $0x44] ss:$8 sps:$4 sm:$0xff]  }
  0x99   : >> { %542 = vmatpush1.bf16.msra.mxu1 %v1045_v13  ;;  %v1059_v21 = vld [vmem:[%s1198_s11 + $0x30] ss:$8 sps:$4 sm:$0xff]   ;;  %v1057_v22 = vld [vmem:[%s1198_s11 + $0x34] ss:$8 sps:$4 sm:$0xff]   ;;  %v1062_v23 = vld [vmem:[%s1198_s11 + $0x20] ss:$8 sps:$4 sm:$0xff]  }
  0x9a   : >> { %543 = vmatprep.subr.bf16.mxu1 %v1050_v16  ;;  %v1060_v25 = vld [vmem:[%s1198_s11 + $0x24] ss:$8 sps:$4 sm:$0xff]   ;;  %v1065_v26 = vld [vmem:[%s1198_s11 + $0x10] ss:$8 sps:$4 sm:$0xff]   ;;  %v1063_v27 = vld [vmem:[%s1198_s11 + $0x14] ss:$8 sps:$4 sm:$0xff]  }
  0x9b   : >> { %380 = vrot.lane.b32.xlu0 %v1049_v15, %s1116_s13  ;;  %376 = vrot.lane.b32.xlu1 %v1050_v16, %s1116_s13  ;;  %v1068_v28 = vld [vmem:[%s1198_s11] ss:$8 sps:$4 sm:$0xff]   ;;  %v1066_v29 = vld [vmem:[%s1198_s11 + $0x4] ss:$8 sps:$4 sm:$0xff]   ;;  %p210_p4 = scmp.ge.s32.totalorder %s213_s7, 198  }
  0x9c   : >> { %v1069_v31 = vld [vmem:[%s1198_s11 + $0x84] ss:$8 sps:$4 sm:$0xff]   ;;  %v1071_v32 = vld [vmem:[%s1198_s11 + $0x80] ss:$8 sps:$4 sm:$0xff]  }
  0x9d   : >> { %544 = vmatpush1.bf16.msra.mxu1 %v1202_v14 }
  0x9e   : >> { %545 = vmatprep.subr.bf16.mxu1 %v1051_v18 }
  0x9f   : >> { %370 = vrot.lane.b32.xlu0 %v1053_v17, %s1116_s13  ;;  %372 = vrot.lane.b32.xlu1 %v1051_v18, %s1116_s13 }
  0xa1   : >> { %546 = vmatpush1.bf16.msra.mxu1 %v1053_v17 }
  0xa2   : >> { %547 = vmatprep.subr.bf16.mxu1 %v1054_v20 }
  0xa3   : >> { %366 = vrot.lane.b32.xlu0 %v1056_v19, %s1116_s13  ;;  %368 = vrot.lane.b32.xlu1 %v1054_v20, %s1116_s13 }
  0xa5   : >> { %548 = vmatpush1.bf16.msra.mxu1 %v1056_v19 }
  0xa6   : >> { %549 = vmatprep.subr.bf16.mxu1 %v1057_v22 }
  0xa7   : >> { %362 = vrot.lane.b32.xlu0 %v1059_v21, %s1116_s13  ;;  %364 = vrot.lane.b32.xlu1 %v1057_v22, %s1116_s13 }
  0xa9   : >> { %550 = vmatpush1.bf16.msra.mxu1 %v1059_v21 }
  0xaa   : >> { %551 = vmatprep.subr.bf16.mxu1 %v1060_v25 }
  0xab   : >> { %358 = vrot.lane.b32.xlu0 %v1062_v23, %s1116_s13  ;;  %360 = vrot.lane.b32.xlu1 %v1060_v25, %s1116_s13 }
  0xad   : >> { %552 = vmatpush1.bf16.msra.mxu1 %v1062_v23 }
  0xae   : >> { %553 = vmatprep.subr.bf16.mxu1 %v1063_v27 }
  0xaf   : >> { %354 = vrot.lane.b32.xlu0 %v1065_v26, %s1116_s13  ;;  %356 = vrot.lane.b32.xlu1 %v1063_v27, %s1116_s13 }
  0xb1   : >> { %554 = vmatpush1.bf16.msra.mxu1 %v1065_v26 }
  0xb2   : >> { %555 = vmatprep.subr.bf16.mxu1 %v1066_v29 }
  0xb3   : >> { %350 = vrot.lane.b32.xlu0 %v1068_v28, %s1116_s13  ;;  %352 = vrot.lane.b32.xlu1 %v1066_v29, %s1116_s13 }
  0xb5   : >> { %556 = vmatpush1.bf16.msra.mxu1 %v1068_v28 }
  0xb6   : >> { %571 = vmatprep.subr.bf16.mxu1 %v1069_v31 }
  0xb7   : >> { %666 = vrot.lane.b32.xlu0 %v1045_v13, %s1117_s18  ;;  %668 = vrot.lane.b32.xlu1 %v1049_v15, %s1117_s18  ;;  %v1078_v13 = vld [vmem:[%s1388_s1 + $0x44] ss:$8 sps:$4 sm:$0xff]  }
  0xb9   : >> { %572 = vmatpush2.bf16.msra.mxu1 %v1071_v32 }
  0xbb   : >> { %382 = vrot.lane.b32.xlu0 %v1071_v32, %s1116_s13  ;;  %384 = vrot.lane.b32.xlu1 %v1069_v31, %s1116_s13 }
  0xbc   : >> { %574 = vmatmul.mubr.bf16.vlgmr.msra.gmra.mxu1 %v1072_v33 }
  0xbd   : >> { %970 = vmatprep.mubr.msk.bf16.mxu1 %vm414_vm0, %v1080_v34 }
  0xbf   : >> { %662 = vrot.lane.b32.xlu0 %v1202_v14, %s1117_s18  ;;  %664 = vrot.lane.b32.xlu1 %v1050_v16, %s1117_s18 }
  0xc3   : >> { %658 = vrot.lane.b32.xlu0 %v1053_v17, %s1117_s18  ;;  %660 = vrot.lane.b32.xlu1 %v1051_v18, %s1117_s18 }
  0xc4   : >> { %584 = vmatmul.mubr.bf16.gmra.mxu1 %v1083_v35 }
  0xc5   : >> { %971 = vmatprep.mubr.msk.bf16.mxu1 %vm414_vm0, %v1086_v36 }
  0xc7   : >> { %654 = vrot.lane.b32.xlu0 %v1056_v19, %s1117_s18  ;;  %656 = vrot.lane.b32.xlu1 %v1054_v20, %s1117_s18  ;;  %v1082_v19 = vld [vmem:[%s1388_s1 + $0x40] ss:$8 sps:$4 sm:$0xff]  }
  0xcb   : >> { %650 = vrot.lane.b32.xlu0 %v1059_v21, %s1117_s18  ;;  %652 = vrot.lane.b32.xlu1 %v1057_v22, %s1117_s18  ;;  %v1084_v21 = vld [vmem:[%s1388_s1 + $0x54] ss:$8 sps:$4 sm:$0xff]  }
  0xcc   : >> { %594 = vmatmul.mubr.bf16.gmra.mxu1 %v1089_v37 }
  0xcd   : >> { %985 = vmatprep.mubr.msk.bf16.mxu1 %vm414_vm0, %v1092_v38 }
  0xcf   : >> { %646 = vrot.lane.b32.xlu0 %v1062_v23, %s1117_s18  ;;  %648 = vrot.lane.b32.xlu1 %v1060_v25, %s1117_s18 }
  0xd3   : >> { %642 = vrot.lane.b32.xlu0 %v1065_v26, %s1117_s18  ;;  %644 = vrot.lane.b32.xlu1 %v1063_v27, %s1117_s18  ;;  %v1088_v27 = vld [vmem:[%s1388_s1 + $0x50] ss:$8 sps:$4 sm:$0xff]  }
  0xd7   : >> { %638 = vrot.lane.b32.xlu0 %v1068_v28, %s1117_s18  ;;  %640 = vrot.lane.b32.xlu1 %v1066_v29, %s1117_s18  ;;  %v1095_v29 = vld [vmem:[%s1388_s1 + $0x64] ss:$8 sps:$4 sm:$0xff]  }
  0xdb   : >> { %670 = vrot.lane.b32.xlu0 %v1071_v32, %s1117_s18  ;;  %672 = vrot.lane.b32.xlu1 %v1069_v31, %s1117_s18 }
 0x109   : >> { %v379_v39 = vpop.permute.xlu0 %378  ;;  %v375_v40 = vpop.permute.xlu1 %374 }
 0x10d   : >> { %v381_v41 = vpop.permute.xlu0 %380  ;;  %v377_v42 = vpop.permute.xlu1 %376 }
 0x10e   : >> { %424 = vmatprep.subr.bf16.mxu0 %v381_v41  ;;  %v394_v43 = vsel %vm386_vm1, %v379_v39, %v381_v41  ;;  %v393_v46 = vsel %vm386_vm1, %v375_v40, %v377_v42  ;;  %v1090_v41 = vld [vmem:[%s1388_s1 + $0x70] ss:$8 sps:$4 sm:$0xff]  }
 0x10f   : >> { %425 = vmatpush1.bf16.msra.mxu0 %v394_v43  ;;  %v1093_v43 = vld [vmem:[%s1388_s1 + $0x60] ss:$8 sps:$4 sm:$0xff]  }
 0x110   : >> { %426 = vmatprep.subr.bf16.mxu0 %v377_v42  ;;  %v1096_v42 = vld [vmem:[%s1388_s1 + $0x84] ss:$8 sps:$4 sm:$0xff]  }
 0x111   : >> { %v371_v44 = vpop.permute.xlu0 %370  ;;  %v373_v45 = vpop.permute.xlu1 %372 }
 0x112   : >> { %v392_v49 = vsel %vm386_vm1, %v371_v44, %v373_v45  ;;  %v1098_v44 = vld [vmem:[%s1388_s1 + $0x80] ss:$8 sps:$4 sm:$0xff]  }
 0x113   : >> { %427 = vmatpush1.bf16.msra.mxu0 %v393_v46 }
 0x114   : >> { %428 = vmatprep.subr.bf16.mxu0 %v373_v45 }
 0x115   : >> { %v367_v47 = vpop.permute.xlu0 %366  ;;  %v369_v48 = vpop.permute.xlu1 %368 }
 0x116   : >> { %v391_v52 = vsel %vm386_vm1, %v367_v47, %v369_v48 }
 0x117   : >> { %429 = vmatpush1.bf16.msra.mxu0 %v392_v49 }
 0x118   : >> { %430 = vmatprep.subr.bf16.mxu0 %v369_v48 }
 0x119   : >> { %v363_v50 = vpop.permute.xlu0 %362  ;;  %v365_v51 = vpop.permute.xlu1 %364 }
 0x11a   : >> { %v390_v55 = vsel %vm386_vm1, %v363_v50, %v365_v51 }
 0x11b   : >> { %431 = vmatpush1.bf16.msra.mxu0 %v391_v52 }
 0x11c   : >> { %432 = vmatprep.subr.bf16.mxu0 %v365_v51 }
 0x11d   : >> { %v359_v53 = vpop.permute.xlu0 %358  ;;  %v361_v54 = vpop.permute.xlu1 %360 }
 0x11e   : >> { %v389_v58 = vsel %vm386_vm1, %v359_v53, %v361_v54 }
 0x11f   : >> { %433 = vmatpush1.bf16.msra.mxu0 %v390_v55 }
 0x120   : >> { %434 = vmatprep.subr.bf16.mxu0 %v361_v54 }
 0x121   : >> { %v355_v56 = vpop.permute.xlu0 %354  ;;  %v357_v57 = vpop.permute.xlu1 %356 }
 0x122   : >> { %v388_v61 = vsel %vm386_vm1, %v355_v56, %v357_v57 }
 0x123   : >> { %435 = vmatpush1.bf16.msra.mxu0 %v389_v58 }
 0x124   : >> { %436 = vmatprep.subr.bf16.mxu0 %v357_v57 }
 0x125   : >> { %v351_v59 = vpop.permute.xlu0 %350  ;;  %v353_v60 = vpop.permute.xlu1 %352 }
 0x126   : >> { %v387_v0 = vsel %vm386_vm1, %v351_v59, %v353_v60 }
 0x127   : >> { %437 = vmatpush1.bf16.msra.mxu0 %v388_v61 }
 0x128   : >> { %438 = vmatprep.subr.bf16.mxu0 %v353_v60 }
 0x129   : >> { %v667_v62 = vpop.permute.xlu0 %666  ;;  %v669_v63 = vpop.permute.xlu1 %668 }
 0x12a   : >> { %v682_v1 = vsel %vm674_vm2, %v667_v62, %v669_v63  ;;  %1004 = vmatprep.subr.bf16.mxu1 %v669_v63 }
 0x12b   : >> { %439 = vmatpush1.bf16.msra.mxu0 %v387_v0  ;;  %1013 = vmatpush1.bf16.msra.mxu1 %v682_v1 }
 0x12d   : >> { %v383_v2 = vpop.permute.xlu0 %382  ;;  %v385_v3 = vpop.permute.xlu1 %384 }
 0x12e   : >> { %454 = vmatprep.subr.bf16.mxu0 %v385_v3  ;;  %v395_v4 = vsel %vm386_vm1, %v383_v2, %v385_v3 }
 0x12f   : >> { %455 = vmatpush2.bf16.msra.mxu0 %v395_v4 }
 0x130   : >> { %711 = vmatprep.subr.bf16.mxu0 %v669_v63 }
 0x131   : >> { %v663_v6 = vpop.permute.xlu0 %662  ;;  %v665_v14 = vpop.permute.xlu1 %664 }
 0x132   : >> { %v681_v15 = vsel %vm674_vm2, %v663_v6, %v665_v14  ;;  %457 = vmatmul.mubr.bf16.vlgmr.msra.gmra.mxu0 %v1075_v5  ;;  %1005 = vmatprep.subr.bf16.mxu1 %v665_v14 }
 0x133   : >> { %712 = vmatpush1.bf16.msra.mxu0 %v682_v1  ;;  %1014 = vmatpush1.bf16.msra.mxu1 %v681_v15 }
 0x134   : >> { %713 = vmatprep.subr.bf16.mxu0 %v665_v14  ;;  %961 = vmatprep.mubr.msk.bf16.mxu0 %vm414_vm0, %v1078_v13 }
 0x135   : >> { %v659_v16 = vpop.permute.xlu0 %658  ;;  %v661_v17 = vpop.permute.xlu1 %660 }
 0x136   : >> { %v680_v18 = vsel %vm674_vm2, %v659_v16, %v661_v17  ;;  %1006 = vmatprep.subr.bf16.mxu1 %v661_v17 }
 0x137   : >> { %714 = vmatpush1.bf16.msra.mxu0 %v681_v15  ;;  %1015 = vmatpush1.bf16.msra.mxu1 %v680_v18 }
 0x138   : >> { %715 = vmatprep.subr.bf16.mxu0 %v661_v17 }
 0x139   : >> { %v655_v20 = vpop.permute.xlu0 %654  ;;  %v657_v22 = vpop.permute.xlu1 %656 }
 0x13a   : >> { %v679_v23 = vsel %vm674_vm2, %v655_v20, %v657_v22  ;;  %1007 = vmatprep.subr.bf16.mxu1 %v657_v22  ;;  %467 = vmatmul.mubr.bf16.gmra.mxu0 %v1082_v19 }
 0x13b   : >> { %716 = vmatpush1.bf16.msra.mxu0 %v680_v18  ;;  %1016 = vmatpush1.bf16.msra.mxu1 %v679_v23 }
 0x13c   : >> { %717 = vmatprep.subr.bf16.mxu0 %v657_v22  ;;  %962 = vmatprep.mubr.msk.bf16.mxu0 %vm414_vm0, %v1084_v21 }
 0x13d   : >> { %v651_v24 = vpop.permute.xlu0 %650  ;;  %v653_v25 = vpop.permute.xlu1 %652 }
 0x13e   : >> { %v678_v26 = vsel %vm674_vm2, %v651_v24, %v653_v25  ;;  %1008 = vmatprep.subr.bf16.mxu1 %v653_v25 }
 0x13f   : >> { %718 = vmatpush1.bf16.msra.mxu0 %v679_v23  ;;  %1017 = vmatpush1.bf16.msra.mxu1 %v678_v26 }
 0x140   : >> { %719 = vmatprep.subr.bf16.mxu0 %v653_v25 }
 0x141   : >> { %v647_v28 = vpop.permute.xlu0 %646  ;;  %v649_v30 = vpop.permute.xlu1 %648 }
 0x142   : >> { %v677_v31 = vsel %vm674_vm2, %v647_v28, %v649_v30  ;;  %1009 = vmatprep.subr.bf16.mxu1 %v649_v30  ;;  %477 = vmatmul.mubr.bf16.gmra.mxu0 %v1088_v27 }
 0x143   : >> { %720 = vmatpush1.bf16.msra.mxu0 %v678_v26  ;;  %1018 = vmatpush1.bf16.msra.mxu1 %v677_v31 }
 0x144   : >> { %721 = vmatprep.subr.bf16.mxu0 %v649_v30  ;;  %984 = vmatprep.mubr.msk.bf16.mxu0 %vm414_vm0, %v1095_v29 }
 0x145   : >> { %v643_v32 = vpop.permute.xlu0 %642  ;;  %v645_v33 = vpop.permute.xlu1 %644 }
 0x146   : >> { %v676_v34 = vsel %vm674_vm2, %v643_v32, %v645_v33  ;;  %1010 = vmatprep.subr.bf16.mxu1 %v645_v33 }
 0x147   : >> { %722 = vmatpush1.bf16.msra.mxu0 %v677_v31  ;;  %1019 = vmatpush1.bf16.msra.mxu1 %v676_v34 }
 0x148   : >> { %723 = vmatprep.subr.bf16.mxu0 %v645_v33 }
 0x149   : >> { %v639_v35 = vpop.permute.xlu0 %638  ;;  %v641_v36 = vpop.permute.xlu1 %640 }
 0x14a   : >> { %v675_v37 = vsel %vm674_vm2, %v639_v35, %v641_v36  ;;  %1011 = vmatprep.subr.bf16.mxu1 %v641_v36 }
 0x14b   : >> { %724 = vmatpush1.bf16.msra.mxu0 %v676_v34  ;;  %1020 = vmatpush1.bf16.msra.mxu1 %v675_v37 }
 0x14c   : >> { %725 = vmatprep.subr.bf16.mxu0 %v641_v36 }
 0x14d   : >> { %v671_v38 = vpop.permute.xlu0 %670  ;;  %v673_v39 = vpop.permute.xlu1 %672 }
 0x14e   : >> { %v683_v40 = vsel %vm674_vm2, %v671_v38, %v673_v39  ;;  %1012 = vmatprep.subr.bf16.mxu1 %v673_v39 }
 0x14f   : >> { %726 = vmatpush1.bf16.msra.mxu0 %v675_v37  ;;  %1021 = vmatpush2.bf16.msra.mxu1 %v683_v40 }
 0x150   : >> { %741 = vmatprep.subr.bf16.mxu0 %v673_v39 }
 0x152   : >> { %754 = vmatmul.mubr.bf16.vlgmr.msra.gmra.mxu1 %v1090_v41 }
 0x153   : >> { %742 = vmatpush2.bf16.msra.mxu0 %v683_v40  ;;  %986 = vmatprep.mubr.msk.bf16.mxu1 %vm414_vm0, %v1096_v42 }
 0x156   : >> { %744 = vmatmul.mubr.bf16.vlgmr.msra.gmra.mxu0 %v1093_v43 }
 0x15a   : >> { %764 = vmatmul.mubr.bf16.gmra.mxu1 %v1098_v44 }
 0x17c   : >> { %v575_v45 = vpop.f32.mrf.mxu1 }
 0x17e   : >> { %v577_v46 = vpop.f32.mrf.mxu1 }
 0x180   : >> { %v579_v47 = vpop.f32.mrf.mxu1 }
 0x182   : >> { %v581_v48 = vpop.f32.mrf.mxu1 }
 0x184   : >> { %v585_v51 = vpop.f32.mrf.mxu1 }
 0x186   : >> { %v587_v54 = vpop.f32.mrf.mxu1 }
 0x188   : >> { %v589_v57 = vpop.f32.mrf.mxu1 }
 0x18a   : >> { %v591_v59 = vpop.f32.mrf.mxu1 }
 0x18c   : >> { %v595_v61 = vpop.f32.mrf.mxu1 }
 0x18e   : >> { %v597_v63 = vpop.f32.mrf.mxu1 }
 0x190   : >> { %v599_v1 = vpop.f32.mrf.mxu1 }
 0x192   : >> { %v601_v3 = vpop.f32.mrf.mxu1 }
 0x1f2   : >> { %v458_v49 = vpop.f32.mrf.mxu0 }
 0x1f3   : >> { %v576_v16 = vadd.f32 %v575_v45, %v458_v49 }
 0x1f4   : >> { %v460_v50 = vpop.f32.mrf.mxu0 }
 0x1f5   : >> { %v578_v22 = vadd.f32 %v577_v46, %v460_v50 }
 0x1f6   : >> { %v462_v52 = vpop.f32.mrf.mxu0 }
 0x1f7   : >> { %v580_v26 = vadd.f32 %v579_v47, %v462_v52 }
 0x1f8   : >> { %v464_v53 = vpop.f32.mrf.mxu0 }
 0x1f9   : >> { %v582_v34 = vadd.f32 %v581_v48, %v464_v53 }
 0x1fa   : >> { %v468_v55 = vpop.f32.mrf.mxu0 }
 0x1fb   : >> { %v586_v4 = vadd.f32 %v585_v51, %v468_v55 }
 0x1fc   : >> { %v470_v56 = vpop.f32.mrf.mxu0 }
 0x1fd   : >> { %v588_v6 = vadd.f32 %v587_v54, %v470_v56 }
 0x1fe   : >> { %v472_v58 = vpop.f32.mrf.mxu0 }
 0x1ff   : >> { %v590_v17 = vadd.f32 %v589_v57, %v472_v58 }
 0x200   : >> { %v474_v60 = vpop.f32.mrf.mxu0 }
 0x201   : >> { %v592_v27 = vadd.f32 %v591_v59, %v474_v60 }
 0x202   : >> { %v478_v62 = vpop.f32.mrf.mxu0 }
 0x203   : >> { %v596_v35 = vadd.f32 %v595_v61, %v478_v62 }
 0x204   : >> { %v480_v0 = vpop.f32.mrf.mxu0 }
 0x205   : >> { %v598_v41 = vadd.f32 %v597_v63, %v480_v0 }
 0x206   : >> { %v482_v2 = vpop.f32.mrf.mxu0 }
 0x207   : >> { %v600_v42 = vadd.f32 %v599_v1, %v482_v2 }
 0x208   : >> { %v484_v14 = vpop.f32.mrf.mxu0 }
 0x209   : >> { %v602_v45 = vadd.f32 %v601_v3, %v484_v14 }
 0x212   : >> { %v755_v5 = vpop.f32.mrf.mxu1 }
 0x213   : >> { %v778_v13 = vadd.f32 %v755_v5, %v586_v4 }
 0x214   : >> { %v757_v15 = vpop.f32.mrf.mxu1 }
 0x215   : >> { %v790_v18 = vadd.f32 %v778_v13, %v1174_v7  ;;  %v779_v19 = vadd.f32 %v757_v15, %v588_v6 }
 0x216   : >> { %v745_v20 = vpop.f32.mrf.mxu0  ;;  %v759_v21 = vpop.f32.mrf.mxu1 }
 0x217   : >> { %v791_v23 = vadd.f32 %v779_v19, %v1174_v7  ;;  %v774_v24 = vadd.f32 %v745_v20, %v576_v16  ;;  %v780_v25 = vadd.f32 %v759_v21, %v590_v17  ;;  %v802_v30 = vmax.f32 %v790_v18, 0.0 }
 0x218   : >> { %v747_v28 = vpop.f32.mrf.mxu0  ;;  %v761_v29 = vpop.f32.mrf.mxu1 }
 0x219   : >> { %v803_v31 = vmax.f32 %v791_v23, 0.0  ;;  %v786_v32 = vadd.f32 %v774_v24, %v1176_v8  ;;  %v775_v33 = vadd.f32 %v747_v28, %v578_v22  ;;  %v792_v37 = vadd.f32 %v780_v25, %v1178_v9 }
 0x21a   : >> { %v781_v38 = vadd.f32 %v761_v29, %v592_v27  ;;  %v749_v39 = vpop.f32.mrf.mxu0  ;;  %v765_v40 = vpop.f32.mrf.mxu1 }
 0x21b   : >> { %v999_v43 = vpack.c.bf16 %v803_v31, %v802_v30  ;;  %v787_v44 = vadd.f32 %v775_v33, %v1176_v8  ;;  %v776_v47 = vadd.f32 %v749_v39, %v580_v26  ;;  %v782_v48 = vadd.f32 %v765_v40, %v596_v35 }
 0x21c   : >> { %v793_v46 = vadd.f32 %v781_v38, %v1178_v9  ;;  %v751_v49 = vpop.f32.mrf.mxu0  ;;  %v767_v50 = vpop.f32.mrf.mxu1  ;;  %v798_v51 = vmax.f32 %v786_v32, 0.0  ;;  %v804_v55 = vmax.f32 %v792_v37, 0.0 }
 0x21d   : >> { %853 = vst.msk [vmem:[%s1346_s4 + $0x10] sm:$0xff] %vm1350_vm5, %v999_v43  ;;  %v799_v52 = vmax.f32 %v787_v44, 0.0  ;;  %v777_v53 = vadd.f32 %v751_v49, %v582_v34  ;;  %v783_v54 = vadd.f32 %v767_v50, %v598_v41  ;;  %v788_v57 = vadd.f32 %v776_v47, %v1180_v10 }
 0x21e   : >> { %v805_v56 = vmax.f32 %v793_v46, 0.0  ;;  %v794_v58 = vadd.f32 %v782_v48, %v1184_v12  ;;  %v769_v59 = vpop.f32.mrf.mxu1 }
 0x21f   : >> { %v997_v60 = vpack.c.bf16 %v799_v52, %v798_v51  ;;  %v789_v61 = vadd.f32 %v777_v53, %v1180_v10  ;;  %v795_v62 = vadd.f32 %v783_v54, %v1184_v12  ;;  %v784_v63 = vadd.f32 %v769_v59, %v600_v42 }
 0x220   : >> { %v1000_v0 = vpack.c.bf16 %v805_v56, %v804_v55  ;;  %v800_v1 = vmax.f32 %v788_v57, 0.0  ;;  %v806_v2 = vmax.f32 %v794_v58, 0.0  ;;  %v771_v3 = vpop.f32.mrf.mxu1 }
 0x221   : >> { %851 = vst.msk [vmem:[%s1346_s4] sm:$0xff] %vm1350_vm5, %v997_v60  ;;  %v801_v4 = vmax.f32 %v789_v61, 0.0  ;;  %v807_v5 = vmax.f32 %v795_v62, 0.0  ;;  %v796_v6 = vadd.f32 %v784_v63, %v1182_v11  ;;  %v785_v13 = vadd.f32 %v771_v3, %v602_v45 }
 0x222   : >> { %854 = vst.msk [vmem:[%s1346_s4 + $0x18] sm:$0xff] %vm1350_vm5, %v1000_v0 }
 0x223   : >> { %v998_v14 = vpack.c.bf16 %v801_v4, %v800_v1  ;;  %v1001_v15 = vpack.c.bf16 %v807_v5, %v806_v2  ;;  %v797_v16 = vadd.f32 %v785_v13, %v1182_v11  ;;  %v808_v17 = vmax.f32 %v796_v6, 0.0 }
 0x225   : >> { %852 = vst.msk [vmem:[%s1346_s4 + $0x8] sm:$0xff] %vm1350_vm5, %v998_v14  ;;  %855 = vst.msk [vmem:[%s1346_s4 + $0x20] sm:$0xff] %vm1350_vm5, %v1001_v15  ;;  %v809_v18 = vmax.f32 %v797_v16, 0.0  ;;  %212 = sbr.rel (!%p210_p4) target bundleno = 145 (0x91), region = 73 }
 0x227   : >> { %v1002_v19 = vpack.c.bf16 %v809_v18, %v808_v17 }
 0x229   : >> { %856 = vst.msk [vmem:[%s1346_s4 + $0x28] sm:$0xff] %vm1350_vm5, %v1002_v19 }
 0x22a PF: > { %s13_s12 = sadd.s32 1, %s1109_s12  }
 0x22b   : > { %p10_p5 = scmp.ge.s32.totalorder %s13_s12, 4  }
 0x22d   :  { %12 = sbr.rel (!%p10_p5) target bundleno = 1 (0x1), region = 84 }

// kernel: forward.18
= control target key start
LH: loop header
LB: loop body
LE: loop exit
PB: predicated region body
PF: predicated region fallthrough
CT: control target
= control target key end

     0   :  { %s1138_s12 = smov 0   ;;  %s1387_s0 = inlined_call_operand.vmem [shape: bf16[2,9696,202], index: 0, kind: input, shape index: {}]   ;;  %s1388_s1 = inlined_call_operand.vmem [shape: bf16[3,48,144], index: 1, kind: input, shape index: {}]   ;;  %s1389_s2 = inlined_call_operand.vmem [shape: f32[48,1], index: 2, kind: input, shape index: {}]   ;;  %s1390_s3 = inlined_call_operand.vmem [shape: bf16[2,9600,200], index: 3, kind: output, shape index: {}]  }
   0x1 LB: > { %s921_s13 = sadd.s32 4294967295, %s1109_s12   ;;  %p925_p0 = scmp.ge.s32.totalorder %s1109_s12, 1  ;;  %s1109_s12 = sphi %s1138_s12, %s13_s12  }
   0x2   : > { %p137_p1 = scmp.lt.s32.totalorder %s1109_s12, 3 }
   0x4   : > { %p138_p2 = pnand %p925_p0, %p137_p1 }
   0x5   : > { %p161_p3 = scmp.lt.s32.totalorder (!%p138_p2), %s921_s13, 1  ;;  %s1186_s7 = smov (!%p138_p2), 0  }
   0x6   : > { %141 = sbr.rel (%p138_p2) target bundleno = 554 (0x22a), region = 32 }
   0xb   : > { %v174_v0 = vld [vmem:[%s1389_s2 + $0x10] sm:$0xff]  ;;  %v172_v1 = vld [vmem:[%s1389_s2] sm:$0xff]  ;;  %v1115_v2 = vmov 0   ;;  %s1394_s13 = smov (!%p161_p3, %s921_s13), 1  ;;  %v175_v3 = vld [vmem:[%s1389_s2 + $0x18] sm:$0xff] }
   0xc   : > { %1044 = vset.pattern.permute.xlu1 %v1115_v2  ;;  %1043 = vset.pattern.permute.xlu0 %v1115_v2  ;;  %v173_v4 = vld [vmem:[%s1389_s2 + $0x8] sm:$0xff]  ;;  %s1022_s22 = smul.u32 9696, %s1394_s13  ;;  %v176_v6 = vld [vmem:[%s1389_s2 + $0x20] sm:$0xff] }
   0xd   : > { %190 = vperm.xlu1 %1044, %v174_v0   ;;  %180 = vperm.xlu0 %1043, %v172_v1   ;;  %s1023_s23 = smul.u32 9600, %s1394_s13  ;;  %v177_v5 = vld [vmem:[%s1389_s2 + $0x28] sm:$0xff] }
   0xe   : > { %s1161_s26 = scalar_lea.vmem %s1387_s0, %s1022_s22 }
   0xf   : > { %s1172_s6 = scalar_lea.vmem %s1390_s3, %s1023_s23 }
  0x11   : > { %195 = vperm.xlu1 %1044, %v175_v3   ;;  %185 = vperm.xlu0 %1043, %v173_v4  }
  0x15   : > { %205 = vperm.xlu1 %1044, %v177_v5   ;;  %200 = vperm.xlu0 %1043, %v176_v6  }
  0x88   : > { %v1174_v7 = vpop.permute.xlu1 %190  ;;  %v1176_v8 = vpop.permute.xlu0 %180 }
  0x8c   : > { %v1178_v9 = vpop.permute.xlu1 %195  ;;  %v1180_v10 = vpop.permute.xlu0 %185 }
  0x90   : > { %v1182_v11 = vpop.permute.xlu1 %205  ;;  %v1184_v12 = vpop.permute.xlu0 %200 }
  0x91 LB: >> { %s214_s8 = smul.u32 48, %s1113_s7  ;;  %s1116_s13 = smov 127   ;;  %v1074_v24 = vld [vmem:[%s1388_s1 + $0x4] ss:$8 sps:$4 sm:$0xff]   ;;  %vm414_vm0 = vcmask 130048   ;;  %vm386_vm1 = vcmask 1039360   ;;  %s1113_s7 = sphi %s1186_s7, %s213_s7  }
  0x92   : >> { %969 = vmatprep.mubr.msk.bf16.mxu1 %vm414_vm0, %v1074_v24  ;;  %v1077_v30 = vld [vmem:[%s1388_s1 + $0x34] ss:$8 sps:$4 sm:$0xff]   ;;  %s1117_s18 = smov 126   ;;  %v1072_v33 = vld [vmem:[%s1388_s1] ss:$8 sps:$4 sm:$0xff]   ;;  %vm674_vm2 = vcmask 1031168  }
  0x93   : >> { %s1192_s9 = sshra.s32 %s214_s8, 3  ;;  %960 = vmatprep.mubr.msk.bf16.mxu0 %vm414_vm0, %v1077_v30  ;;  %v1080_v34 = vld [vmem:[%s1388_s1 + $0x14] ss:$8 sps:$4 sm:$0xff]   ;;  %v1083_v35 = vld [vmem:[%s1388_s1 + $0x10] ss:$8 sps:$4 sm:$0xff]   ;;  %vm848_vm3 = vcmask 1043456  }
  0x94   : >> { %s996_s10 = sshll.u32 %s1192_s9, 3  ;;  %v1086_v36 = vld [vmem:[%s1388_s1 + $0x24] ss:$8 sps:$4 sm:$0xff]   ;;  %v1089_v37 = vld [vmem:[%s1388_s1 + $0x20] ss:$8 sps:$4 sm:$0xff]   ;;  %vm849_vm4 = vcmask 588804  }
  0x95   : >> { %s1198_s11 = scalar_lea.vmem %s1161_s26, %s996_s10  ;;  %v1092_v38 = vld [vmem:[%s1388_s1 + $0x74] ss:$8 sps:$4 sm:$0xff]   ;;  %v1075_v5 = vld [vmem:[%s1388_s1 + $0x30] ss:$8 sps:$4 sm:$0xff]   ;;  %s1346_s4 = scalar_lea.vmem %s1172_s6, %s996_s10  ;;  %vm1350_vm5 = vmor %vm849_vm4, %vm848_vm3 }
  0x96   : >> { %v1045_v13 = vld [vmem:[%s1198_s11 + $0x70] ss:$8 sps:$4 sm:$0xff]   ;;  %v1202_v14 = vld [vmem:[%s1198_s11 + $0x60] ss:$8 sps:$4 sm:$0xff]   ;;  %v1049_v15 = vld [vmem:[%s1198_s11 + $0x74] ss:$8 sps:$4 sm:$0xff]  }
  0x97   : >> { %378 = vrot.lane.b32.xlu0 %v1045_v13, %s1116_s13  ;;  %374 = vrot.lane.b32.xlu1 %v1202_v14, %s1116_s13  ;;  %v1050_v16 = vld [vmem:[%s1198_s11 + $0x64] ss:$8 sps:$4 sm:$0xff]   ;;  %v1053_v17 = vld [vmem:[%s1198_s11 + $0x50] ss:$8 sps:$4 sm:$0xff]   ;;  %s213_s7 = sadd.s32 1, %s1113_s7  }
  0x98   : >> { %541 = vmatprep.subr.bf16.mxu1 %v1049_v15  ;;  %v1051_v18 = vld [vmem:[%s1198_s11 + $0x54] ss:$8 sps:$4 sm:$0xff]   ;;  %v1056_v19 = vld [vmem:[%s1198_s11 + $0x40] ss:$8 sps:$4 sm:$0xff]   ;;  %v1054_v20 = vld [vmem:[%s1198_s11 + $0x44] ss:$8 sps:$4 sm:$0xff]  }
  0x99   : >> { %542 = vmatpush1.bf16.msra.mxu1 %v1045_v13  ;;  %v1059_v21 = vld [vmem:[%s1198_s11 + $0x30] ss:$8 sps:$4 sm:$0xff]   ;;  %v1057_v22 = vld [vmem:[%s1198_s11 + $0x34] ss:$8 sps:$4 sm:$0xff]   ;;  %v1062_v23 = vld [vmem:[%s1198_s11 + $0x20] ss:$8 sps:$4 sm:$0xff]  }
  0x9a   : >> { %543 = vmatprep.subr.bf16.mxu1 %v1050_v16  ;;  %v1060_v25 = vld [vmem:[%s1198_s11 + $0x24] ss:$8 sps:$4 sm:$0xff]   ;;  %v1065_v26 = vld [vmem:[%s1198_s11 + $0x10] ss:$8 sps:$4 sm:$0xff]   ;;  %v1063_v27 = vld [vmem:[%s1198_s11 + $0x14] ss:$8 sps:$4 sm:$0xff]  }
  0x9b   : >> { %380 = vrot.lane.b32.xlu0 %v1049_v15, %s1116_s13  ;;  %376 = vrot.lane.b32.xlu1 %v1050_v16, %s1116_s13  ;;  %v1068_v28 = vld [vmem:[%s1198_s11] ss:$8 sps:$4 sm:$0xff]   ;;  %v1066_v29 = vld [vmem:[%s1198_s11 + $0x4] ss:$8 sps:$4 sm:$0xff]   ;;  %p210_p4 = scmp.ge.s32.totalorder %s213_s7, 200  }
  0x9c   : >> { %v1069_v31 = vld [vmem:[%s1198_s11 + $0x84] ss:$8 sps:$4 sm:$0xff]   ;;  %v1071_v32 = vld [vmem:[%s1198_s11 + $0x80] ss:$8 sps:$4 sm:$0xff]  }
  0x9d   : >> { %544 = vmatpush1.bf16.msra.mxu1 %v1202_v14 }
  0x9e   : >> { %545 = vmatprep.subr.bf16.mxu1 %v1051_v18 }
  0x9f   : >> { %370 = vrot.lane.b32.xlu0 %v1053_v17, %s1116_s13  ;;  %372 = vrot.lane.b32.xlu1 %v1051_v18, %s1116_s13 }
  0xa1   : >> { %546 = vmatpush1.bf16.msra.mxu1 %v1053_v17 }
  0xa2   : >> { %547 = vmatprep.subr.bf16.mxu1 %v1054_v20 }
  0xa3   : >> { %366 = vrot.lane.b32.xlu0 %v1056_v19, %s1116_s13  ;;  %368 = vrot.lane.b32.xlu1 %v1054_v20, %s1116_s13 }
  0xa5   : >> { %548 = vmatpush1.bf16.msra.mxu1 %v1056_v19 }
  0xa6   : >> { %549 = vmatprep.subr.bf16.mxu1 %v1057_v22 }
  0xa7   : >> { %362 = vrot.lane.b32.xlu0 %v1059_v21, %s1116_s13  ;;  %364 = vrot.lane.b32.xlu1 %v1057_v22, %s1116_s13 }
  0xa9   : >> { %550 = vmatpush1.bf16.msra.mxu1 %v1059_v21 }
  0xaa   : >> { %551 = vmatprep.subr.bf16.mxu1 %v1060_v25 }
  0xab   : >> { %358 = vrot.lane.b32.xlu0 %v1062_v23, %s1116_s13  ;;  %360 = vrot.lane.b32.xlu1 %v1060_v25, %s1116_s13 }
  0xad   : >> { %552 = vmatpush1.bf16.msra.mxu1 %v1062_v23 }
  0xae   : >> { %553 = vmatprep.subr.bf16.mxu1 %v1063_v27 }
  0xaf   : >> { %354 = vrot.lane.b32.xlu0 %v1065_v26, %s1116_s13  ;;  %356 = vrot.lane.b32.xlu1 %v1063_v27, %s1116_s13 }
  0xb1   : >> { %554 = vmatpush1.bf16.msra.mxu1 %v1065_v26 }
  0xb2   : >> { %555 = vmatprep.subr.bf16.mxu1 %v1066_v29 }
  0xb3   : >> { %350 = vrot.lane.b32.xlu0 %v1068_v28, %s1116_s13  ;;  %352 = vrot.lane.b32.xlu1 %v1066_v29, %s1116_s13 }
  0xb5   : >> { %556 = vmatpush1.bf16.msra.mxu1 %v1068_v28 }
  0xb6   : >> { %571 = vmatprep.subr.bf16.mxu1 %v1069_v31 }
  0xb7   : >> { %666 = vrot.lane.b32.xlu0 %v1045_v13, %s1117_s18  ;;  %668 = vrot.lane.b32.xlu1 %v1049_v15, %s1117_s18  ;;  %v1078_v13 = vld [vmem:[%s1388_s1 + $0x44] ss:$8 sps:$4 sm:$0xff]  }
  0xb9   : >> { %572 = vmatpush2.bf16.msra.mxu1 %v1071_v32 }
  0xbb   : >> { %382 = vrot.lane.b32.xlu0 %v1071_v32, %s1116_s13  ;;  %384 = vrot.lane.b32.xlu1 %v1069_v31, %s1116_s13 }
  0xbc   : >> { %574 = vmatmul.mubr.bf16.vlgmr.msra.gmra.mxu1 %v1072_v33 }
  0xbd   : >> { %970 = vmatprep.mubr.msk.bf16.mxu1 %vm414_vm0, %v1080_v34 }
  0xbf   : >> { %662 = vrot.lane.b32.xlu0 %v1202_v14, %s1117_s18  ;;  %664 = vrot.lane.b32.xlu1 %v1050_v16, %s1117_s18 }
  0xc3   : >> { %658 = vrot.lane.b32.xlu0 %v1053_v17, %s1117_s18  ;;  %660 = vrot.lane.b32.xlu1 %v1051_v18, %s1117_s18 }
  0xc4   : >> { %584 = vmatmul.mubr.bf16.gmra.mxu1 %v1083_v35 }
  0xc5   : >> { %971 = vmatprep.mubr.msk.bf16.mxu1 %vm414_vm0, %v1086_v36 }
  0xc7   : >> { %654 = vrot.lane.b32.xlu0 %v1056_v19, %s1117_s18  ;;  %656 = vrot.lane.b32.xlu1 %v1054_v20, %s1117_s18  ;;  %v1082_v19 = vld [vmem:[%s1388_s1 + $0x40] ss:$8 sps:$4 sm:$0xff]  }
  0xcb   : >> { %650 = vrot.lane.b32.xlu0 %v1059_v21, %s1117_s18  ;;  %652 = vrot.lane.b32.xlu1 %v1057_v22, %s1117_s18  ;;  %v1084_v21 = vld [vmem:[%s1388_s1 + $0x54] ss:$8 sps:$4 sm:$0xff]  }
  0xcc   : >> { %594 = vmatmul.mubr.bf16.gmra.mxu1 %v1089_v37 }
  0xcd   : >> { %985 = vmatprep.mubr.msk.bf16.mxu1 %vm414_vm0, %v1092_v38 }
  0xcf   : >> { %646 = vrot.lane.b32.xlu0 %v1062_v23, %s1117_s18  ;;  %648 = vrot.lane.b32.xlu1 %v1060_v25, %s1117_s18 }
  0xd3   : >> { %642 = vrot.lane.b32.xlu0 %v1065_v26, %s1117_s18  ;;  %644 = vrot.lane.b32.xlu1 %v1063_v27, %s1117_s18  ;;  %v1088_v27 = vld [vmem:[%s1388_s1 + $0x50] ss:$8 sps:$4 sm:$0xff]  }
  0xd7   : >> { %638 = vrot.lane.b32.xlu0 %v1068_v28, %s1117_s18  ;;  %640 = vrot.lane.b32.xlu1 %v1066_v29, %s1117_s18  ;;  %v1095_v29 = vld [vmem:[%s1388_s1 + $0x64] ss:$8 sps:$4 sm:$0xff]  }
  0xdb   : >> { %670 = vrot.lane.b32.xlu0 %v1071_v32, %s1117_s18  ;;  %672 = vrot.lane.b32.xlu1 %v1069_v31, %s1117_s18 }
 0x109   : >> { %v379_v39 = vpop.permute.xlu0 %378  ;;  %v375_v40 = vpop.permute.xlu1 %374 }
 0x10d   : >> { %v381_v41 = vpop.permute.xlu0 %380  ;;  %v377_v42 = vpop.permute.xlu1 %376 }
 0x10e   : >> { %424 = vmatprep.subr.bf16.mxu0 %v381_v41  ;;  %v394_v43 = vsel %vm386_vm1, %v379_v39, %v381_v41  ;;  %v393_v46 = vsel %vm386_vm1, %v375_v40, %v377_v42  ;;  %v1090_v41 = vld [vmem:[%s1388_s1 + $0x70] ss:$8 sps:$4 sm:$0xff]  }
 0x10f   : >> { %425 = vmatpush1.bf16.msra.mxu0 %v394_v43  ;;  %v1093_v43 = vld [vmem:[%s1388_s1 + $0x60] ss:$8 sps:$4 sm:$0xff]  }
 0x110   : >> { %426 = vmatprep.subr.bf16.mxu0 %v377_v42  ;;  %v1096_v42 = vld [vmem:[%s1388_s1 + $0x84] ss:$8 sps:$4 sm:$0xff]  }
 0x111   : >> { %v371_v44 = vpop.permute.xlu0 %370  ;;  %v373_v45 = vpop.permute.xlu1 %372 }
 0x112   : >> { %v392_v49 = vsel %vm386_vm1, %v371_v44, %v373_v45  ;;  %v1098_v44 = vld [vmem:[%s1388_s1 + $0x80] ss:$8 sps:$4 sm:$0xff]  }
 0x113   : >> { %427 = vmatpush1.bf16.msra.mxu0 %v393_v46 }
 0x114   : >> { %428 = vmatprep.subr.bf16.mxu0 %v373_v45 }
 0x115   : >> { %v367_v47 = vpop.permute.xlu0 %366  ;;  %v369_v48 = vpop.permute.xlu1 %368 }
 0x116   : >> { %v391_v52 = vsel %vm386_vm1, %v367_v47, %v369_v48 }
 0x117   : >> { %429 = vmatpush1.bf16.msra.mxu0 %v392_v49 }
 0x118   : >> { %430 = vmatprep.subr.bf16.mxu0 %v369_v48 }
 0x119   : >> { %v363_v50 = vpop.permute.xlu0 %362  ;;  %v365_v51 = vpop.permute.xlu1 %364 }
 0x11a   : >> { %v390_v55 = vsel %vm386_vm1, %v363_v50, %v365_v51 }
 0x11b   : >> { %431 = vmatpush1.bf16.msra.mxu0 %v391_v52 }
 0x11c   : >> { %432 = vmatprep.subr.bf16.mxu0 %v365_v51 }
 0x11d   : >> { %v359_v53 = vpop.permute.xlu0 %358  ;;  %v361_v54 = vpop.permute.xlu1 %360 }
 0x11e   : >> { %v389_v58 = vsel %vm386_vm1, %v359_v53, %v361_v54 }
 0x11f   : >> { %433 = vmatpush1.bf16.msra.mxu0 %v390_v55 }
 0x120   : >> { %434 = vmatprep.subr.bf16.mxu0 %v361_v54 }
 0x121   : >> { %v355_v56 = vpop.permute.xlu0 %354  ;;  %v357_v57 = vpop.permute.xlu1 %356 }
 0x122   : >> { %v388_v61 = vsel %vm386_vm1, %v355_v56, %v357_v57 }
 0x123   : >> { %435 = vmatpush1.bf16.msra.mxu0 %v389_v58 }
 0x124   : >> { %436 = vmatprep.subr.bf16.mxu0 %v357_v57 }
 0x125   : >> { %v351_v59 = vpop.permute.xlu0 %350  ;;  %v353_v60 = vpop.permute.xlu1 %352 }
 0x126   : >> { %v387_v0 = vsel %vm386_vm1, %v351_v59, %v353_v60 }
 0x127   : >> { %437 = vmatpush1.bf16.msra.mxu0 %v388_v61 }
 0x128   : >> { %438 = vmatprep.subr.bf16.mxu0 %v353_v60 }
 0x129   : >> { %v667_v62 = vpop.permute.xlu0 %666  ;;  %v669_v63 = vpop.permute.xlu1 %668 }
 0x12a   : >> { %v682_v1 = vsel %vm674_vm2, %v667_v62, %v669_v63  ;;  %1004 = vmatprep.subr.bf16.mxu1 %v669_v63 }
 0x12b   : >> { %439 = vmatpush1.bf16.msra.mxu0 %v387_v0  ;;  %1013 = vmatpush1.bf16.msra.mxu1 %v682_v1 }
 0x12d   : >> { %v383_v2 = vpop.permute.xlu0 %382  ;;  %v385_v3 = vpop.permute.xlu1 %384 }
 0x12e   : >> { %454 = vmatprep.subr.bf16.mxu0 %v385_v3  ;;  %v395_v4 = vsel %vm386_vm1, %v383_v2, %v385_v3 }
 0x12f   : >> { %455 = vmatpush2.bf16.msra.mxu0 %v395_v4 }
 0x130   : >> { %711 = vmatprep.subr.bf16.mxu0 %v669_v63 }
 0x131   : >> { %v663_v6 = vpop.permute.xlu0 %662  ;;  %v665_v14 = vpop.permute.xlu1 %664 }
 0x132   : >> { %v681_v15 = vsel %vm674_vm2, %v663_v6, %v665_v14  ;;  %457 = vmatmul.mubr.bf16.vlgmr.msra.gmra.mxu0 %v1075_v5  ;;  %1005 = vmatprep.subr.bf16.mxu1 %v665_v14 }
 0x133   : >> { %712 = vmatpush1.bf16.msra.mxu0 %v682_v1  ;;  %1014 = vmatpush1.bf16.msra.mxu1 %v681_v15 }
 0x134   : >> { %713 = vmatprep.subr.bf16.mxu0 %v665_v14  ;;  %961 = vmatprep.mubr.msk.bf16.mxu0 %vm414_vm0, %v1078_v13 }
 0x135   : >> { %v659_v16 = vpop.permute.xlu0 %658  ;;  %v661_v17 = vpop.permute.xlu1 %660 }
 0x136   : >> { %v680_v18 = vsel %vm674_vm2, %v659_v16, %v661_v17  ;;  %1006 = vmatprep.subr.bf16.mxu1 %v661_v17 }
 0x137   : >> { %714 = vmatpush1.bf16.msra.mxu0 %v681_v15  ;;  %1015 = vmatpush1.bf16.msra.mxu1 %v680_v18 }
 0x138   : >> { %715 = vmatprep.subr.bf16.mxu0 %v661_v17 }
 0x139   : >> { %v655_v20 = vpop.permute.xlu0 %654  ;;  %v657_v22 = vpop.permute.xlu1 %656 }
 0x13a   : >> { %v679_v23 = vsel %vm674_vm2, %v655_v20, %v657_v22  ;;  %1007 = vmatprep.subr.bf16.mxu1 %v657_v22  ;;  %467 = vmatmul.mubr.bf16.gmra.mxu0 %v1082_v19 }
 0x13b   : >> { %716 = vmatpush1.bf16.msra.mxu0 %v680_v18  ;;  %1016 = vmatpush1.bf16.msra.mxu1 %v679_v23 }
 0x13c   : >> { %717 = vmatprep.subr.bf16.mxu0 %v657_v22  ;;  %962 = vmatprep.mubr.msk.bf16.mxu0 %vm414_vm0, %v1084_v21 }
 0x13d   : >> { %v651_v24 = vpop.permute.xlu0 %650  ;;  %v653_v25 = vpop.permute.xlu1 %652 }
 0x13e   : >> { %v678_v26 = vsel %vm674_vm2, %v651_v24, %v653_v25  ;;  %1008 = vmatprep.subr.bf16.mxu1 %v653_v25 }
 0x13f   : >> { %718 = vmatpush1.bf16.msra.mxu0 %v679_v23  ;;  %1017 = vmatpush1.bf16.msra.mxu1 %v678_v26 }
 0x140   : >> { %719 = vmatprep.subr.bf16.mxu0 %v653_v25 }
 0x141   : >> { %v647_v28 = vpop.permute.xlu0 %646  ;;  %v649_v30 = vpop.permute.xlu1 %648 }
 0x142   : >> { %v677_v31 = vsel %vm674_vm2, %v647_v28, %v649_v30  ;;  %1009 = vmatprep.subr.bf16.mxu1 %v649_v30  ;;  %477 = vmatmul.mubr.bf16.gmra.mxu0 %v1088_v27 }
 0x143   : >> { %720 = vmatpush1.bf16.msra.mxu0 %v678_v26  ;;  %1018 = vmatpush1.bf16.msra.mxu1 %v677_v31 }
 0x144   : >> { %721 = vmatprep.subr.bf16.mxu0 %v649_v30  ;;  %984 = vmatprep.mubr.msk.bf16.mxu0 %vm414_vm0, %v1095_v29 }
 0x145   : >> { %v643_v32 = vpop.permute.xlu0 %642  ;;  %v645_v33 = vpop.permute.xlu1 %644 }
 0x146   : >> { %v676_v34 = vsel %vm674_vm2, %v643_v32, %v645_v33  ;;  %1010 = vmatprep.subr.bf16.mxu1 %v645_v33 }
 0x147   : >> { %722 = vmatpush1.bf16.msra.mxu0 %v677_v31  ;;  %1019 = vmatpush1.bf16.msra.mxu1 %v676_v34 }
 0x148   : >> { %723 = vmatprep.subr.bf16.mxu0 %v645_v33 }
 0x149   : >> { %v639_v35 = vpop.permute.xlu0 %638  ;;  %v641_v36 = vpop.permute.xlu1 %640 }
 0x14a   : >> { %v675_v37 = vsel %vm674_vm2, %v639_v35, %v641_v36  ;;  %1011 = vmatprep.subr.bf16.mxu1 %v641_v36 }
 0x14b   : >> { %724 = vmatpush1.bf16.msra.mxu0 %v676_v34  ;;  %1020 = vmatpush1.bf16.msra.mxu1 %v675_v37 }
 0x14c   : >> { %725 = vmatprep.subr.bf16.mxu0 %v641_v36 }
 0x14d   : >> { %v671_v38 = vpop.permute.xlu0 %670  ;;  %v673_v39 = vpop.permute.xlu1 %672 }
 0x14e   : >> { %v683_v40 = vsel %vm674_vm2, %v671_v38, %v673_v39  ;;  %1012 = vmatprep.subr.bf16.mxu1 %v673_v39 }
 0x14f   : >> { %726 = vmatpush1.bf16.msra.mxu0 %v675_v37  ;;  %1021 = vmatpush2.bf16.msra.mxu1 %v683_v40 }
 0x150   : >> { %741 = vmatprep.subr.bf16.mxu0 %v673_v39 }
 0x152   : >> { %754 = vmatmul.mubr.bf16.vlgmr.msra.gmra.mxu1 %v1090_v41 }
 0x153   : >> { %742 = vmatpush2.bf16.msra.mxu0 %v683_v40  ;;  %986 = vmatprep.mubr.msk.bf16.mxu1 %vm414_vm0, %v1096_v42 }
 0x156   : >> { %744 = vmatmul.mubr.bf16.vlgmr.msra.gmra.mxu0 %v1093_v43 }
 0x15a   : >> { %764 = vmatmul.mubr.bf16.gmra.mxu1 %v1098_v44 }
 0x17c   : >> { %v575_v45 = vpop.f32.mrf.mxu1 }
 0x17e   : >> { %v577_v46 = vpop.f32.mrf.mxu1 }
 0x180   : >> { %v579_v47 = vpop.f32.mrf.mxu1 }
 0x182   : >> { %v581_v48 = vpop.f32.mrf.mxu1 }
 0x184   : >> { %v585_v51 = vpop.f32.mrf.mxu1 }
 0x186   : >> { %v587_v54 = vpop.f32.mrf.mxu1 }
 0x188   : >> { %v589_v57 = vpop.f32.mrf.mxu1 }
 0x18a   : >> { %v591_v59 = vpop.f32.mrf.mxu1 }
 0x18c   : >> { %v595_v61 = vpop.f32.mrf.mxu1 }
 0x18e   : >> { %v597_v63 = vpop.f32.mrf.mxu1 }
 0x190   : >> { %v599_v1 = vpop.f32.mrf.mxu1 }
 0x192   : >> { %v601_v3 = vpop.f32.mrf.mxu1 }
 0x1f2   : >> { %v458_v49 = vpop.f32.mrf.mxu0 }
 0x1f3   : >> { %v576_v16 = vadd.f32 %v575_v45, %v458_v49 }
 0x1f4   : >> { %v460_v50 = vpop.f32.mrf.mxu0 }
 0x1f5   : >> { %v578_v22 = vadd.f32 %v577_v46, %v460_v50 }
 0x1f6   : >> { %v462_v52 = vpop.f32.mrf.mxu0 }
 0x1f7   : >> { %v580_v26 = vadd.f32 %v579_v47, %v462_v52 }
 0x1f8   : >> { %v464_v53 = vpop.f32.mrf.mxu0 }
 0x1f9   : >> { %v582_v34 = vadd.f32 %v581_v48, %v464_v53 }
 0x1fa   : >> { %v468_v55 = vpop.f32.mrf.mxu0 }
 0x1fb   : >> { %v586_v4 = vadd.f32 %v585_v51, %v468_v55 }
 0x1fc   : >> { %v470_v56 = vpop.f32.mrf.mxu0 }
 0x1fd   : >> { %v588_v6 = vadd.f32 %v587_v54, %v470_v56 }
 0x1fe   : >> { %v472_v58 = vpop.f32.mrf.mxu0 }
 0x1ff   : >> { %v590_v17 = vadd.f32 %v589_v57, %v472_v58 }
 0x200   : >> { %v474_v60 = vpop.f32.mrf.mxu0 }
 0x201   : >> { %v592_v27 = vadd.f32 %v591_v59, %v474_v60 }
 0x202   : >> { %v478_v62 = vpop.f32.mrf.mxu0 }
 0x203   : >> { %v596_v35 = vadd.f32 %v595_v61, %v478_v62 }
 0x204   : >> { %v480_v0 = vpop.f32.mrf.mxu0 }
 0x205   : >> { %v598_v41 = vadd.f32 %v597_v63, %v480_v0 }
 0x206   : >> { %v482_v2 = vpop.f32.mrf.mxu0 }
 0x207   : >> { %v600_v42 = vadd.f32 %v599_v1, %v482_v2 }
 0x208   : >> { %v484_v14 = vpop.f32.mrf.mxu0 }
 0x209   : >> { %v602_v45 = vadd.f32 %v601_v3, %v484_v14 }
 0x212   : >> { %v755_v5 = vpop.f32.mrf.mxu1 }
 0x213   : >> { %v778_v13 = vadd.f32 %v755_v5, %v586_v4 }
 0x214   : >> { %v757_v15 = vpop.f32.mrf.mxu1 }
 0x215   : >> { %v790_v18 = vadd.f32 %v778_v13, %v1174_v7  ;;  %v779_v19 = vadd.f32 %v757_v15, %v588_v6 }
 0x216   : >> { %v745_v20 = vpop.f32.mrf.mxu0  ;;  %v759_v21 = vpop.f32.mrf.mxu1 }
 0x217   : >> { %v791_v23 = vadd.f32 %v779_v19, %v1174_v7  ;;  %v774_v24 = vadd.f32 %v745_v20, %v576_v16  ;;  %v780_v25 = vadd.f32 %v759_v21, %v590_v17  ;;  %v802_v30 = vmax.f32 %v790_v18, 0.0 }
 0x218   : >> { %v747_v28 = vpop.f32.mrf.mxu0  ;;  %v761_v29 = vpop.f32.mrf.mxu1 }
 0x219   : >> { %v803_v31 = vmax.f32 %v791_v23, 0.0  ;;  %v786_v32 = vadd.f32 %v774_v24, %v1176_v8  ;;  %v775_v33 = vadd.f32 %v747_v28, %v578_v22  ;;  %v792_v37 = vadd.f32 %v780_v25, %v1178_v9 }
 0x21a   : >> { %v781_v38 = vadd.f32 %v761_v29, %v592_v27  ;;  %v749_v39 = vpop.f32.mrf.mxu0  ;;  %v765_v40 = vpop.f32.mrf.mxu1 }
 0x21b   : >> { %v999_v43 = vpack.c.bf16 %v803_v31, %v802_v30  ;;  %v787_v44 = vadd.f32 %v775_v33, %v1176_v8  ;;  %v776_v47 = vadd.f32 %v749_v39, %v580_v26  ;;  %v782_v48 = vadd.f32 %v765_v40, %v596_v35 }
 0x21c   : >> { %v793_v46 = vadd.f32 %v781_v38, %v1178_v9  ;;  %v751_v49 = vpop.f32.mrf.mxu0  ;;  %v767_v50 = vpop.f32.mrf.mxu1  ;;  %v798_v51 = vmax.f32 %v786_v32, 0.0  ;;  %v804_v55 = vmax.f32 %v792_v37, 0.0 }
 0x21d   : >> { %853 = vst.msk [vmem:[%s1346_s4 + $0x10] sm:$0xff] %vm1350_vm5, %v999_v43  ;;  %v799_v52 = vmax.f32 %v787_v44, 0.0  ;;  %v777_v53 = vadd.f32 %v751_v49, %v582_v34  ;;  %v783_v54 = vadd.f32 %v767_v50, %v598_v41  ;;  %v788_v57 = vadd.f32 %v776_v47, %v1180_v10 }
 0x21e   : >> { %v805_v56 = vmax.f32 %v793_v46, 0.0  ;;  %v794_v58 = vadd.f32 %v782_v48, %v1184_v12  ;;  %v769_v59 = vpop.f32.mrf.mxu1 }
 0x21f   : >> { %v997_v60 = vpack.c.bf16 %v799_v52, %v798_v51  ;;  %v789_v61 = vadd.f32 %v777_v53, %v1180_v10  ;;  %v795_v62 = vadd.f32 %v783_v54, %v1184_v12  ;;  %v784_v63 = vadd.f32 %v769_v59, %v600_v42 }
 0x220   : >> { %v1000_v0 = vpack.c.bf16 %v805_v56, %v804_v55  ;;  %v800_v1 = vmax.f32 %v788_v57, 0.0  ;;  %v806_v2 = vmax.f32 %v794_v58, 0.0  ;;  %v771_v3 = vpop.f32.mrf.mxu1 }
 0x221   : >> { %851 = vst.msk [vmem:[%s1346_s4] sm:$0xff] %vm1350_vm5, %v997_v60  ;;  %v801_v4 = vmax.f32 %v789_v61, 0.0  ;;  %v807_v5 = vmax.f32 %v795_v62, 0.0  ;;  %v796_v6 = vadd.f32 %v784_v63, %v1182_v11  ;;  %v785_v13 = vadd.f32 %v771_v3, %v602_v45 }
 0x222   : >> { %854 = vst.msk [vmem:[%s1346_s4 + $0x18] sm:$0xff] %vm1350_vm5, %v1000_v0 }
 0x223   : >> { %v998_v14 = vpack.c.bf16 %v801_v4, %v800_v1  ;;  %v1001_v15 = vpack.c.bf16 %v807_v5, %v806_v2  ;;  %v797_v16 = vadd.f32 %v785_v13, %v1182_v11  ;;  %v808_v17 = vmax.f32 %v796_v6, 0.0 }
 0x225   : >> { %852 = vst.msk [vmem:[%s1346_s4 + $0x8] sm:$0xff] %vm1350_vm5, %v998_v14  ;;  %855 = vst.msk [vmem:[%s1346_s4 + $0x20] sm:$0xff] %vm1350_vm5, %v1001_v15  ;;  %v809_v18 = vmax.f32 %v797_v16, 0.0  ;;  %212 = sbr.rel (!%p210_p4) target bundleno = 145 (0x91), region = 73 }
 0x227   : >> { %v1002_v19 = vpack.c.bf16 %v809_v18, %v808_v17 }
 0x229   : >> { %856 = vst.msk [vmem:[%s1346_s4 + $0x28] sm:$0xff] %vm1350_vm5, %v1002_v19 }
 0x22a PF: > { %s13_s12 = sadd.s32 1, %s1109_s12  }
 0x22b   : > { %p10_p5 = scmp.ge.s32.totalorder %s13_s12, 4  }
 0x22d   :  { %12 = sbr.rel (!%p10_p5) target bundleno = 1 (0x1), region = 84 }

// kernel: forward.20
= control target key start
LH: loop header
LB: loop body
LE: loop exit
PB: predicated region body
PF: predicated region fallthrough
CT: control target
= control target key end

     0   :  { %s802_s6 = smov 0   ;;  %s1286_s0 = inlined_call_operand.vmem [shape: bf16[2,9504,198], index: 0, kind: input, shape index: {}]   ;;  %s1287_s1 = inlined_call_operand.vmem [shape: bf16[2,4848,101], index: 1, kind: output, shape index: {}]  }
   0x1 LB: > { %s611_s7 = sadd.s32 4294967295, %s780_s6   ;;  %p615_p0 = scmp.ge.s32.totalorder %s780_s6, 1  ;;  %s780_s6 = sphi %s802_s6, %s11_s6  }
   0x2   : > { %p87_p1 = scmp.lt.s32.totalorder %s780_s6, 3 }
   0x4   : > { %p88_p2 = pnand %p615_p0, %p87_p1 }
   0x5   : > { %p107_p3 = scmp.lt.s32.totalorder (!%p88_p2), %s611_s7, 1  ;;  %s1027_s16 = smov (!%p88_p2), 0  }
   0x6   : > { %91 = sbr.rel (%p88_p2) target bundleno = 424 (0x1a8), region = 24 }
   0xb   : > { %s1394_s7 = smov (!%p107_p3, %s611_s7), 1  ;;  %vm1288_vm0 = vcmask 822272   ;;  %v118_v0 = vlaneseq  ;;  %v786_v1 = vmov 0   ;;  %v1319_v13 = vmov 0 }
   0xc   : > { %s746_s8 = smul.u32 9504, %s1394_s7  ;;  %v1321_v15 = vmov 0  ;;  %v1323_v17 = vmov 0  ;;  %v1325_v19 = vmov 0  ;;  %v1327_v21 = vmov 0 }
   0xd   : > { %s747_s9 = smul.u32 2424, %s1394_s7  ;;  %v145_v2 = vand.u32 127, %v118_v0  ;;  %v844_v3 = vshrl.u32 %v118_v0, 7  ;;  %v1329_v23 = vmov 0  ;;  %v1331_v25 = vmov 0 }
   0xe   : > { %s813_s12 = scalar_lea.vmem %s1286_s0, %s746_s8  ;;  %v1333_v27 = vmov 0  ;;  %v1335_v29 = vmov 0  ;;  %v1337_v31 = vmov 0  ;;  %v1339_v33 = vmov 0 }
   0xf   : > { %s818_s15 = scalar_lea.vmem %s1287_s1, %s747_s9  ;;  %v846_v4 = vmul.u32 2, %v145_v2  ;;  %v120_v5 = vadd.s32 8, %v844_v3  ;;  %v121_v6 = vadd.s32 16, %v844_v3  ;;  %v122_v7 = vadd.s32 24, %v844_v3 }
  0x10   : > { %274 = vst.msk [vmem:[%s818_s15] sm:$0xf] %vm1288_vm0, %v786_v1  ;;  %275 = vst.msk [vmem:[%s818_s15 + $0x4] sm:$0xf] %vm1288_vm0, %v786_v1  ;;  %v123_v8 = vadd.s32 32, %v844_v3  ;;  %v124_v10 = vadd.s32 40, %v844_v3 }
  0x11   : > { %276 = vst.msk [vmem:[%s818_s15 + $0x8] sm:$0xf] %vm1288_vm0, %v786_v1  ;;  %277 = vst.msk [vmem:[%s818_s15 + $0xc] sm:$0xf] %vm1288_vm0, %v786_v1  ;;  %vm147_vm1 = vcmp.ge.s32.totalorder %v844_v3, %v846_v4  ;;  %v855_v9 = vadd.s32 2, %v846_v4  ;;  %v125_v11 = vadd.s32 48, %v844_v3  ;;  %vm148_vm2 = vcmp.ge.s32.totalorder %v120_v5, %v846_v4 }
  0x12   : > { %278 = vst.msk [vmem:[%s818_s15 + $0x10] sm:$0xf] %vm1288_vm0, %v786_v1  ;;  %279 = vst.msk [vmem:[%s818_s15 + $0x14] sm:$0xf] %vm1288_vm0, %v786_v1  ;;  %vm149_vm3 = vcmp.ge.s32.totalorder %v121_v6, %v846_v4  ;;  %v126_v12 = vadd.s32 56, %v844_v3  ;;  %vm150_vm7 = vcmp.ge.s32.totalorder %v122_v7, %v846_v4  ;;  %v127_v14 = vadd.s32 64, %v844_v3 }
  0x13   : > { %280 = vst.msk [vmem:[%s818_s15 + $0x960] sm:$0xf] %vm1288_vm0, %v786_v1  ;;  %281 = vst.msk [vmem:[%s818_s15 + $0x964] sm:$0xf] %vm1288_vm0, %v786_v1  ;;  %vm173_vm4 = vcmp.lt.s32.totalorder %v844_v3, %v855_v9  ;;  %vm174_vm5 = vcmp.lt.s32.totalorder %v120_v5, %v855_v9  ;;  %vm175_vm6 = vcmp.lt.s32.totalorder %v121_v6, %v855_v9  ;;  %v128_v16 = vadd.s32 72, %v844_v3 }
  0x14   : > { %282 = vst.msk [vmem:[%s818_s15 + $0x968] sm:$0xf] %vm1288_vm0, %v786_v1  ;;  %283 = vst.msk [vmem:[%s818_s15 + $0x96c] sm:$0xf] %vm1288_vm0, %v786_v1  ;;  %vm176_vm8 = vcmp.lt.s32.totalorder %v122_v7, %v855_v9  ;;  %vm151_vm10 = vcmp.ge.s32.totalorder %v123_v8, %v846_v4  ;;  %vm177_vm11 = vcmp.lt.s32.totalorder %v123_v8, %v855_v9  ;;  %v129_v18 = vadd.s32 80, %v844_v3 }
  0x15   : > { %284 = vst.msk [vmem:[%s818_s15 + $0x970] sm:$0xf] %vm1288_vm0, %v786_v1  ;;  %285 = vst.msk [vmem:[%s818_s15 + $0x974] sm:$0xf] %vm1288_vm0, %v786_v1  ;;  %vm152_vm13 = vcmp.ge.s32.totalorder %v124_v10, %v846_v4  ;;  %vm178_vm14 = vcmp.lt.s32.totalorder %v124_v10, %v855_v9  ;;  %v130_v20 = vadd.s32 88, %v844_v3  ;;  %vm180_vm0 = vcmp.lt.s32.totalorder %v126_v12, %v855_v9 }
  0x16   : > { %vm868_vm9 = vmand %vm147_vm1, %vm173_vm4  ;;  %vm153_vm1 = vcmp.ge.s32.totalorder %v125_v11, %v846_v4  ;;  %v131_v22 = vadd.s32 96, %v844_v3  ;;  %v132_v24 = vadd.s32 104, %v844_v3  ;;  %v133_v26 = vadd.s32 112, %v844_v3 }
  0x17   : > { %v1320_v13 = vsel %vm868_vm9, 4294967295, %v1319_v13  ;;  %vm875_vm12 = vmand %vm148_vm2, %vm174_vm5  ;;  %vm179_vm2 = vcmp.lt.s32.totalorder %v125_v11, %v855_v9  ;;  %vm154_vm5 = vcmp.ge.s32.totalorder %v126_v12, %v846_v4  ;;  %vm181_vm9 = vcmp.lt.s32.totalorder %v127_v14, %v855_v9 }
  0x18   : > { %v1322_v15 = vsel %vm875_vm12, 4294967295, %v1321_v15  ;;  %vm884_vm15 = vmand %vm149_vm3, %vm175_vm6  ;;  %vm155_vm6 = vcmp.ge.s32.totalorder %v127_v14, %v846_v4  ;;  %vm182_vm12 = vcmp.lt.s32.totalorder %v128_v16, %v855_v9  ;;  %v134_v28 = vadd.s32 120, %v844_v3 }
  0x19   : > { %v1324_v17 = vsel %vm884_vm15, 4294967295, %v1323_v17  ;;  %vm891_vm4 = vmand %vm150_vm7, %vm176_vm8  ;;  %vm156_vm8 = vcmp.ge.s32.totalorder %v128_v16, %v846_v4  ;;  %vm183_vm15 = vcmp.lt.s32.totalorder %v129_v18, %v855_v9  ;;  %v135_v30 = vadd.s32 128, %v844_v3 }
  0x1a   : > { %v1326_v19 = vsel %vm891_vm4, 4294967295, %v1325_v19  ;;  %vm898_vm3 = vmand %vm151_vm10, %vm177_vm11  ;;  %vm157_vm11 = vcmp.ge.s32.totalorder %v129_v18, %v846_v4  ;;  %vm184_vm4 = vcmp.lt.s32.totalorder %v130_v20, %v855_v9  ;;  %v136_v32 = vadd.s32 136, %v844_v3 }
  0x1b   : > { %v1328_v21 = vsel %vm898_vm3, 4294967295, %v1327_v21  ;;  %vm905_vm7 = vmand %vm152_vm13, %vm178_vm14  ;;  %vm158_vm14 = vcmp.ge.s32.totalorder %v130_v20, %v846_v4  ;;  %vm185_vm3 = vcmp.lt.s32.totalorder %v131_v22, %v855_v9  ;;  %v137_v34 = vadd.s32 144, %v844_v3 }
  0x1c   : > { %v1330_v23 = vsel %vm905_vm7, 4294967295, %v1329_v23  ;;  %vm912_vm10 = vmand %vm153_vm1, %vm179_vm2  ;;  %vm159_vm2 = vcmp.ge.s32.totalorder %v131_v22, %v846_v4  ;;  %vm186_vm7 = vcmp.lt.s32.totalorder %v132_v24, %v855_v9  ;;  %v1341_v35 = vmov 0 }
  0x1d   : > { %v1332_v25 = vsel %vm912_vm10, 4294967295, %v1331_v25  ;;  %vm919_vm13 = vmand %vm154_vm5, %vm180_vm0  ;;  %vm160_vm5 = vcmp.ge.s32.totalorder %v132_v24, %v846_v4  ;;  %vm187_vm10 = vcmp.lt.s32.totalorder %v133_v26, %v855_v9  ;;  %v138_v36 = vadd.s32 152, %v844_v3 }
  0x1e   : > { %v1334_v27 = vsel %vm919_vm13, 4294967295, %v1333_v27  ;;  %vm926_vm1 = vmand %vm155_vm6, %vm181_vm9  ;;  %vm161_vm6 = vcmp.ge.s32.totalorder %v133_v26, %v846_v4  ;;  %vm188_vm13 = vcmp.lt.s32.totalorder %v134_v28, %v855_v9  ;;  %v1343_v37 = vmov 0 }
  0x1f   : > { %v1336_v29 = vsel %vm926_vm1, 4294967295, %v1335_v29  ;;  %vm933_vm0 = vmand %vm156_vm8, %vm182_vm12  ;;  %vm162_vm8 = vcmp.ge.s32.totalorder %v134_v28, %v846_v4  ;;  %v139_v38 = vadd.s32 160, %v844_v3  ;;  %vm189_vm1 = vcmp.lt.s32.totalorder %v135_v30, %v855_v9 }
  0x20   : > { %v1338_v31 = vsel %vm933_vm0, 4294967295, %v1337_v31  ;;  %vm940_vm9 = vmand %vm157_vm11, %vm183_vm15  ;;  %vm163_vm11 = vcmp.ge.s32.totalorder %v135_v30, %v846_v4  ;;  %v1345_v39 = vmov 0  ;;  %v140_v40 = vadd.s32 168, %v844_v3 }
  0x21   : > { %v1340_v33 = vsel %vm940_vm9, 4294967295, %v1339_v33  ;;  %vm947_vm12 = vmand %vm158_vm14, %vm184_vm4  ;;  %vm164_vm14 = vcmp.ge.s32.totalorder %v136_v32, %v846_v4  ;;  %vm190_vm0 = vcmp.lt.s32.totalorder %v136_v32, %v855_v9  ;;  %v1347_v41 = vmov 0 }
  0x22   : > { %v1342_v35 = vsel %vm947_vm12, 4294967295, %v1341_v35  ;;  %vm954_vm15 = vmand %vm159_vm2, %vm185_vm3  ;;  %v141_v42 = vadd.s32 176, %v844_v3  ;;  %vm165_vm2 = vcmp.ge.s32.totalorder %v137_v34, %v846_v4  ;;  %vm191_vm9 = vcmp.lt.s32.totalorder %v137_v34, %v855_v9 }
  0x23   : > { %v1344_v37 = vsel %vm954_vm15, 4294967295, %v1343_v37  ;;  %vm961_vm4 = vmand %vm160_vm5, %vm186_vm7  ;;  %v142_v44 = vadd.s32 184, %v844_v3  ;;  %vm166_vm5 = vcmp.ge.s32.totalorder %v138_v36, %v846_v4  ;;  %vm192_vm12 = vcmp.lt.s32.totalorder %v138_v36, %v855_v9 }
  0x24   : > { %v1346_v39 = vsel %vm961_vm4, 4294967295, %v1345_v39  ;;  %vm968_vm3 = vmand %vm161_vm6, %vm187_vm10  ;;  %v1351_v45 = vmov 0  ;;  %v143_v46 = vadd.s32 192, %v844_v3  ;;  %vm167_vm6 = vcmp.ge.s32.totalorder %v139_v38, %v846_v4 }
  0x25   : > { %v1348_v41 = vsel %vm968_vm3, 4294967295, %v1347_v41  ;;  %vm975_vm7 = vmand %vm162_vm8, %vm188_vm13  ;;  %vm193_vm15 = vcmp.lt.s32.totalorder %v139_v38, %v855_v9  ;;  %v1353_v47 = vmov 0  ;;  %vm168_vm8 = vcmp.ge.s32.totalorder %v140_v40, %v846_v4 }
  0x26   : > { %vm982_vm10 = vmand %vm163_vm11, %vm189_vm1  ;;  %vm194_vm4 = vcmp.lt.s32.totalorder %v140_v40, %v855_v9  ;;  %v1355_v48 = vmov 0  ;;  %vm169_vm1 = vcmp.ge.s32.totalorder %v141_v42, %v846_v4  ;;  %vm195_vm11 = vcmp.lt.s32.totalorder %v141_v42, %v855_v9 }
  0x27   : > { %v1352_v45 = vsel %vm982_vm10, 4294967295, %v1351_v45  ;;  %vm989_vm13 = vmand %vm164_vm14, %vm190_vm0  ;;  %vm170_vm0 = vcmp.ge.s32.totalorder %v142_v44, %v846_v4  ;;  %vm196_vm14 = vcmp.lt.s32.totalorder %v142_v44, %v855_v9  ;;  %v1361_v51 = vmov 0 }
  0x28   : > { %v1354_v47 = vsel %vm989_vm13, 4294967295, %v1353_v47  ;;  %vm995_vm3 = vmand %vm165_vm2, %vm191_vm9  ;;  %vm171_vm9 = vcmp.ge.s32.totalorder %v143_v46, %v846_v4  ;;  %vm197_vm2 = vcmp.lt.s32.totalorder %v143_v46, %v855_v9  ;;  %v1365_v53 = vmov 0 }
  0x29   : > { %v1356_v48 = vsel %vm995_vm3, 4294967295, %v1355_v48  ;;  %vm1001_vm10 = vmand %vm166_vm5, %vm192_vm12  ;;  %v787_v54 = vmov 0.0  }
  0x2a   : > { %vm1007_vm13 = vmand %vm167_vm6, %vm193_vm15 }
  0x2b   : > { %vm1013_vm3 = vmand %vm168_vm8, %vm194_vm4 }
  0x2c   : > { %v1362_v51 = vsel %vm1013_vm3, 4294967295, %v1361_v51  ;;  %vm1017_vm12 = vmand %vm169_vm1, %vm195_vm11 }
  0x2d   : > { %vm1021_vm5 = vmand %vm170_vm0, %vm196_vm14 }
  0x2e   : > { %v1366_v53 = vsel %vm1021_vm5, 4294967295, %v1365_v53  ;;  %vm222_vm15 = vmand %vm171_vm9, %vm197_vm2 }
  0x2f   : > { %v1025_v55 = vsel %vm222_vm15, 1.0, %v787_v54 }
  0x30 LB: >> { %v788_v56 = vmov 0.0   ;;  %v789_v57 = vmov 1.0   ;;  %vm1367_vm4 = vnez %v1348_v41  ;;  %vm1368_vm6 = vnez %v1346_v39  ;;  %s645_s17 = sshll.u32 %s784_s16, 1  ;;  %s292_s19 = smul.u32 96, %s784_s16  ;;  %s784_s16 = sphi %s1027_s16, %s1255_s16  }
  0x31   : >> { %389 = vmatprep.subr.mxu0 %v788_v56  ;;  %696 = vmatprep.subr.mxu1 %v788_v56  ;;  %vm1369_vm8 = vnez %v1344_v37  ;;  %vm1370_vm1 = vnez %v1342_v35  ;;  %vm1371_vm11 = vnez %v1340_v33  ;;  %vm1372_vm0 = vnez %v1338_v31  ;;  %s329_s18 = sadd.s32 1, %s645_s17  ;;  %s1255_s16 = sadd.s32 1, %s784_s16  }
  0x32   : >> { %648 = vmatpush1.msk.msra.mxu0 %vm975_vm7, %v789_v57  ;;  %721 = vmatpush1.msk.msra.mxu1 %vm975_vm7, %v789_v57  ;;  %vm1373_vm14 = vnez %v1336_v29  ;;  %vm1374_vm9 = vnez %v1334_v27  ;;  %vm1375_vm2 = vnez %v1332_v25  ;;  %vm1376_vm15 = vnez %v1330_v23  ;;  %s330_s20 = smul.u32 48, %s329_s18  ;;  %s293_s21 = sshra.s32 %s292_s19, 3 }
  0x33   : >> { %391 = vmatprep.subr.mxu0 %v788_v56  ;;  %697 = vmatprep.subr.mxu1 %v788_v56  ;;  %s688_s23 = sshll.u32 %s293_s21, 3  ;;  %vm1382_vm5 = vnez %v1366_v53  ;;  %vm1383_vm3 = vnez %v1362_v51  ;;  %s494_s27 = smul.u32 48, %s1255_s16 }
  0x34   : >> { %649 = vmatpush1.msk.msra.mxu0 %vm1367_vm4, %v789_v57  ;;  %722 = vmatpush1.msk.msra.mxu1 %vm1367_vm4, %v789_v57  ;;  %s331_s22 = sshra.s32 %s330_s20, 3  ;;  %s1169_s25 = scalar_lea.vmem %s813_s12, %s688_s23 }
  0x35   : >> { %393 = vmatprep.subr.mxu0 %v788_v56  ;;  %698 = vmatprep.subr.mxu1 %v788_v56  ;;  %s689_s24 = sshll.u32 %s331_s22, 3  ;;  %v298_v58 = vld [vmem:[%s1169_s25] sm:$0xff]  ;;  %v301_v60 = vld [vmem:[%s1169_s25 + $0x18] sm:$0xff]  ;;  %v299_v0 = vld [vmem:[%s1169_s25 + $0x8] sm:$0xff]  ;;  %s495_s28 = sshra.s32 %s494_s27, 3 }
  0x36   : >> { %650 = vmatpush1.msk.msra.mxu0 %vm1368_vm6, %v789_v57  ;;  %723 = vmatpush1.msk.msra.mxu1 %vm1368_vm6, %v789_v57  ;;  %s1172_s26 = scalar_lea.vmem %s813_s12, %s689_s24  ;;  %v305_v61 = vunpack.c.h.bf16 %v298_v58  ;;  %v304_v2 = vunpack.c.l.bf16 %v298_v58  ;;  %v302_v4 = vld [vmem:[%s1169_s25 + $0x20] sm:$0xff]  ;;  %v311_v6 = vunpack.c.h.bf16 %v301_v60  ;;  %v307_v8 = vunpack.c.h.bf16 %v299_v0  ;;  %v300_v14 = vld [vmem:[%s1169_s25 + $0x10] sm:$0xff]  ;;  %v303_v28 = vld [vmem:[%s1169_s25 + $0x28] sm:$0xff]  ;;  %s679_s29 = sshll.u32 %s495_s28, 2 }
  0x37   : >> { %395 = vmatprep.subr.mxu0 %v788_v56  ;;  %699 = vmatprep.subr.mxu1 %v788_v56  ;;  %v336_v59 = vld [vmem:[%s1172_s26] sm:$0xff]  ;;  %v339_v63 = vld [vmem:[%s1172_s26 + $0x18] sm:$0xff]  ;;  %v337_v1 = vld [vmem:[%s1172_s26 + $0x8] sm:$0xff]  ;;  %v310_v11 = vunpack.c.l.bf16 %v301_v60  ;;  %v313_v18 = vunpack.c.h.bf16 %v302_v4  ;;  %v306_v24 = vunpack.c.l.bf16 %v299_v0  ;;  %v309_v36 = vunpack.c.h.bf16 %v300_v14  ;;  %s1259_s30 = scalar_lea.vmem %s818_s15, %s679_s29  ;;  %s791_s2 = smov 1  }
  0x38   : >> { %651 = vmatpush1.msk.msra.mxu0 %vm1369_vm8, %v789_v57  ;;  %724 = vmatpush1.msk.msra.mxu1 %vm1369_vm8, %v789_v57  ;;  %v343_v62 = vunpack.c.h.bf16 %v336_v59  ;;  %v342_v3 = vunpack.c.l.bf16 %v336_v59  ;;  %v340_v5 = vld [vmem:[%s1172_s26 + $0x20] sm:$0xff]  ;;  %v349_v7 = vunpack.c.h.bf16 %v339_v63  ;;  %v345_v9 = vunpack.c.h.bf16 %v337_v1  ;;  %v338_v16 = vld [vmem:[%s1172_s26 + $0x10] sm:$0xff]  ;;  %v341_v30 = vld [vmem:[%s1172_s26 + $0x28] sm:$0xff]  ;;  %p288_p4 = scmp.ge.s32.totalorder %s1255_s16, 99  }
  0x39   : >> { %397 = vmatprep.subr.mxu0 %v788_v56  ;;  %700 = vmatprep.subr.mxu1 %v788_v56  ;;  %v348_v12 = vunpack.c.l.bf16 %v339_v63  ;;  %v351_v20 = vunpack.c.h.bf16 %v340_v5  ;;  %v344_v26 = vunpack.c.l.bf16 %v337_v1  ;;  %v347_v38 = vunpack.c.h.bf16 %v338_v16 }
  0x3a   : >> { %652 = vmatpush1.msk.msra.mxu0 %vm1370_vm1, %v789_v57  ;;  %725 = vmatpush1.msk.msra.mxu1 %vm1370_vm1, %v789_v57  ;;  %vm1378_vm1 = vnez %v1326_v19  ;;  %v355_v10 = vadd.f32 %v343_v62, %v305_v61  ;;  %v354_v22 = vadd.f32 %v342_v3, %v304_v2  ;;  %v361_v32 = vadd.f32 %v349_v7, %v311_v6 }
  0x3b   : >> { %399 = vmatprep.subr.mxu0 %v788_v56  ;;  %701 = vmatprep.subr.mxu1 %v788_v56  ;;  %v357_v34 = vadd.f32 %v345_v9, %v307_v8  ;;  %v360_v40 = vadd.f32 %v348_v12, %v310_v11  ;;  %v312_v42 = vunpack.c.l.bf16 %v302_v4  ;;  %v350_v44 = vunpack.c.l.bf16 %v340_v5 }
  0x3c   : >> { %653 = vmatpush1.msk.msra.mxu0 %vm1371_vm11, %v789_v57  ;;  %726 = vmatpush1.msk.msra.mxu1 %vm1371_vm11, %v789_v57  ;;  %v363_v46 = vadd.f32 %v351_v20, %v313_v18  ;;  %v315_v54 = vunpack.c.h.bf16 %v303_v28  ;;  %v353_v58 = vunpack.c.h.bf16 %v341_v30  ;;  %v356_v59 = vadd.f32 %v344_v26, %v306_v24 }
  0x3d   : >> { %401 = vmatprep.subr.mxu0 %v788_v56  ;;  %702 = vmatprep.subr.mxu1 %v788_v56  ;;  %v308_v60 = vunpack.c.l.bf16 %v300_v14  ;;  %v346_v61 = vunpack.c.l.bf16 %v338_v16  ;;  %v359_v62 = vadd.f32 %v347_v38, %v309_v36  ;;  %v362_v63 = vadd.f32 %v350_v44, %v312_v42 }
  0x3e   : >> { %654 = vmatpush1.msk.msra.mxu0 %vm1372_vm0, %v789_v57  ;;  %727 = vmatpush1.msk.msra.mxu1 %vm1372_vm0, %v789_v57  ;;  %vm1377_vm0 = vnez %v1328_v21  ;;  %v352_v0 = vunpack.c.l.bf16 %v341_v30  ;;  %v365_v1 = vadd.f32 %v353_v58, %v315_v54  ;;  %v790_v3 = vmov 0  }
  0x3f   : >> { %403 = vmatprep.subr.mxu0 %v788_v56  ;;  %703 = vmatprep.subr.mxu1 %v788_v56  ;;  %v358_v2 = vadd.f32 %v346_v61, %v308_v60 }
  0x40   : >> { %655 = vmatpush1.msk.msra.mxu0 %vm1373_vm14, %v789_v57  ;;  %728 = vmatpush1.msk.msra.mxu1 %vm1373_vm14, %v789_v57 }
  0x41   : >> { %405 = vmatprep.subr.mxu0 %v788_v56  ;;  %704 = vmatprep.subr.mxu1 %v788_v56 }
  0x42   : >> { %656 = vmatpush1.msk.msra.mxu0 %vm1374_vm9, %v789_v57  ;;  %729 = vmatpush1.msk.msra.mxu1 %vm1374_vm9, %v789_v57 }
  0x43   : >> { %407 = vmatprep.subr.mxu0 %v788_v56  ;;  %705 = vmatprep.subr.mxu1 %v788_v56 }
  0x44   : >> { %657 = vmatpush1.msk.msra.mxu0 %vm1375_vm2, %v789_v57  ;;  %730 = vmatpush1.msk.msra.mxu1 %vm1375_vm2, %v789_v57  ;;  %vm1381_vm2 = vnez %v1320_v13 }
  0x45   : >> { %409 = vmatprep.subr.mxu0 %v788_v56  ;;  %706 = vmatprep.subr.mxu1 %v788_v56 }
  0x46   : >> { %658 = vmatpush1.msk.msra.mxu0 %vm1376_vm15, %v789_v57  ;;  %731 = vmatpush1.msk.msra.mxu1 %vm1376_vm15, %v789_v57 }
  0x47   : >> { %411 = vmatprep.subr.mxu0 %v788_v56  ;;  %707 = vmatprep.subr.mxu1 %v788_v56 }
  0x48   : >> { %659 = vmatpush1.msk.msra.mxu0 %vm1377_vm0, %v789_v57  ;;  %732 = vmatpush1.msk.msra.mxu1 %vm1377_vm0, %v789_v57  ;;  %vm1379_vm0 = vnez %v1324_v17 }
  0x49   : >> { %413 = vmatprep.subr.mxu0 %v788_v56  ;;  %708 = vmatprep.subr.mxu1 %v788_v56 }
  0x4a   : >> { %660 = vmatpush1.msk.msra.mxu0 %vm1378_vm1, %v789_v57  ;;  %733 = vmatpush1.msk.msra.mxu1 %vm1378_vm1, %v789_v57  ;;  %vm1380_vm1 = vnez %v1322_v15 }
  0x4b   : >> { %415 = vmatprep.subr.mxu0 %v788_v56  ;;  %709 = vmatprep.subr.mxu1 %v788_v56 }
  0x4c   : >> { %661 = vmatpush1.msk.msra.mxu0 %vm1379_vm0, %v789_v57  ;;  %734 = vmatpush1.msk.msra.mxu1 %vm1379_vm0, %v789_v57  ;;  %vm385_vm0 = vcmask 1045504  }
  0x4d   : >> { %417 = vmatprep.subr.mxu0 %v788_v56  ;;  %710 = vmatprep.subr.mxu1 %v788_v56 }
  0x4e   : >> { %662 = vmatpush1.msk.msra.mxu0 %vm1380_vm1, %v789_v57  ;;  %735 = vmatpush1.msk.msra.mxu1 %vm1380_vm1, %v789_v57  ;;  %vm366_vm1 = vcmask 572416  }
  0x4f   : >> { %419 = vmatprep.subr.mxu0 %v788_v56  ;;  %711 = vmatprep.subr.mxu1 %v788_v56 }
  0x50   : >> { %663 = vmatpush1.msk.msra.mxu0 %vm1381_vm2, %v789_v57  ;;  %736 = vmatpush1.msk.msra.mxu1 %vm1381_vm2, %v789_v57  ;;  %vm1385_vm2 = vnez %v1354_v47 }
  0x51   : >> { %435 = vmatprep.subr.mxu0 %v788_v56  ;;  %712 = vmatprep.subr.mxu1 %v788_v56 }
  0x52   : >> { %664 = vmatpush2.msk.msra.mxu0 %vm385_vm0, %v1025_v55  ;;  %737 = vmatpush2.msk.msra.mxu1 %vm385_vm0, %v1025_v55  ;;  %vm1384_vm0 = vnez %v1356_v48 }
  0x53   : >> { %437 = vmatprep.subr.mxu0 %v788_v56  ;;  %713 = vmatprep.subr.mxu1 %v788_v56 }
  0x54   : >> { %665 = vmatpush2.msk.msra.mxu0 %vm1382_vm5, %v789_v57  ;;  %738 = vmatpush2.msk.msra.mxu1 %vm1382_vm5, %v789_v57 }
  0x55   : >> { %439 = vmatprep.subr.mxu0 %v788_v56  ;;  %714 = vmatprep.subr.mxu1 %v788_v56 }
  0x56   : >> { %666 = vmatpush2.msk.msra.mxu0 %vm1017_vm12, %v789_v57  ;;  %739 = vmatpush2.msk.msra.mxu1 %vm1017_vm12, %v789_v57 }
  0x57   : >> { %441 = vmatprep.subr.mxu0 %v788_v56  ;;  %715 = vmatprep.subr.mxu1 %v788_v56 }
  0x58   : >> { %667 = vmatpush2.msk.msra.mxu0 %vm1383_vm3, %v789_v57  ;;  %740 = vmatpush2.msk.msra.mxu1 %vm1383_vm3, %v789_v57 }
  0x59   : >> { %443 = vmatprep.subr.mxu0 %v788_v56  ;;  %716 = vmatprep.subr.mxu1 %v788_v56 }
  0x5a   : >> { %668 = vmatpush2.msk.msra.mxu0 %vm1007_vm13, %v789_v57  ;;  %741 = vmatpush2.msk.msra.mxu1 %vm1007_vm13, %v789_v57 }
  0x5b   : >> { %445 = vmatprep.subr.mxu0 %v788_v56  ;;  %717 = vmatprep.subr.mxu1 %v788_v56 }
  0x5c   : >> { %669 = vmatpush2.msk.msra.mxu0 %vm1001_vm10, %v789_v57  ;;  %742 = vmatpush2.msk.msra.mxu1 %vm1001_vm10, %v789_v57 }
  0x5d   : >> { %447 = vmatprep.subr.mxu0 %v788_v56  ;;  %718 = vmatprep.subr.mxu1 %v788_v56 }
  0x5e   : >> { %670 = vmatpush2.msk.msra.mxu0 %vm1384_vm0, %v789_v57  ;;  %743 = vmatpush2.msk.msra.mxu1 %vm1384_vm0, %v789_v57  ;;  %vm1386_vm0 = vnez %v1352_v45 }
  0x5f   : >> { %449 = vmatprep.subr.mxu0 %v788_v56  ;;  %719 = vmatprep.subr.mxu1 %v788_v56 }
  0x60   : >> { %671 = vmatpush2.msk.msra.mxu0 %vm1385_vm2, %v789_v57  ;;  %744 = vmatpush2.msk.msra.mxu1 %vm1385_vm2, %v789_v57 }
  0x61   : >> { %451 = vmatprep.subr.mxu0 %v788_v56  ;;  %673 = vmatprep.mubr.msk.f32.mxu0 %vm366_vm1, %v355_v10 }
  0x62   : >> { %672 = vmatpush2.msk.msra.mxu0 %vm1386_vm0, %v789_v57  ;;  %720 = vmatprep.subr.mxu1 %v788_v56  ;;  %v314_v56 = vunpack.c.l.bf16 %v303_v28 }
  0x63   : >> { %454 = vmatmul.mubr.f32.vlgmr.msra.gmra.mxu0 %v354_v22  ;;  %745 = vmatpush2.msk.msra.mxu1 %vm1386_vm0, %v789_v57  ;;  %vm1387_vm0 = vcmask 822272  }
  0x64   : >> { %676 = vmatprep.mubr.msk.f32.mxu1 %vm366_vm1, %v361_v32  ;;  %674 = vmatprep.mubr.msk.f32.mxu0 %vm366_vm1, %v357_v34  ;;  %v364_v57 = vadd.f32 %v352_v0, %v314_v56  ;;  %499 = vst.msk [vmem:[%s1259_s30] sm:$0xf] %vm1387_vm0, %v790_v3  ;;  %vm1389_vm2 = vmmov %vm1387_vm0 }
  0x65   : >> { %469 = vmatmul.mubr.f32.vlgmr.msra.gmra.mxu1 %v360_v40  ;;  %501 = vst.msk [vmem:[%s1259_s30 + $0x8] sm:$0xf] %vm1389_vm2, %v790_v3  ;;  %vm1390_vm3 = vmmov %vm1387_vm0 }
  0x66   : >> { %677 = vmatprep.mubr.msk.f32.mxu1 %vm366_vm1, %v363_v46  ;;  %502 = vst.msk [vmem:[%s1259_s30 + $0xc] sm:$0xf] %vm1390_vm3, %v790_v3  ;;  %vm1391_vm4 = vmmov %vm1387_vm0  ;;  %vm538_vm3 = vcmask 814088  }
  0x67   : >> { %459 = vmatmul.mubr.f32.gmra.mxu0 %v356_v59  ;;  %503 = vst.msk [vmem:[%s1259_s30 + $0x10] sm:$0xf] %vm1391_vm4, %v790_v3  ;;  %vm1392_vm5 = vmmov %vm1387_vm0 }
  0x68   : >> { %675 = vmatprep.mubr.msk.f32.mxu0 %vm366_vm1, %v359_v62  ;;  %504 = vst.msk [vmem:[%s1259_s30 + $0x14] sm:$0xf] %vm1392_vm5, %v790_v3 }
  0x69   : >> { %474 = vmatmul.mubr.f32.gmra.mxu1 %v362_v63 }
  0x6a   : >> { %678 = vmatprep.mubr.msk.f32.mxu1 %vm366_vm1, %v365_v1  ;;  %vm1388_vm1 = vmmov %vm1387_vm0 }
  0x6b   : >> { %464 = vmatmul.mubr.f32.gmra.mxu0 %v358_v2  ;;  %500 = vst.msk [vmem:[%s1259_s30 + $0x4] sm:$0xf] %vm1388_vm1, %v790_v3 }
  0x6d   : >> { %479 = vmatmul.mubr.f32.gmra.mxu1 %v364_v57 }
 0x123   : >> { %v455_v4 = vpop.f32.mrf.mxu0 }
 0x124   : >> { %v484_v5 = vmul.f32 0.25, %v455_v4 }
 0x125   : >> { %v457_v6 = vpop.f32.mrf.mxu0  ;;  %v470_v7 = vpop.f32.mrf.mxu1 }
 0x126   : >> { %v690_v8 = vpack.c.bf16 %v484_v5, %v484_v5  ;;  %v487_v9 = vmul.f32 0.25, %v470_v7 }
 0x127   : >> { %v460_v10 = vpop.f32.mrf.mxu0  ;;  %v472_v11 = vpop.f32.mrf.mxu1 }
 0x128   : >> { %v693_v12 = vpack.c.bf16 %v487_v9, %v487_v9  ;;  %v485_v14 = vmul.f32 0.25, %v460_v10  ;;  %520 = vrot.lane.b32.xlu0 %v690_v8, %s791_s2 }
 0x129   : >> { %v462_v16 = vpop.f32.mrf.mxu0  ;;  %v475_v18 = vpop.f32.mrf.mxu1 }
 0x12a   : >> { %v691_v20 = vpack.c.bf16 %v485_v14, %v485_v14  ;;  %v488_v22 = vmul.f32 0.25, %v475_v18  ;;  %526 = vrot.lane.b32.xlu1 %v693_v12, %s791_s2 }
 0x12b   : >> { %v465_v24 = vpop.f32.mrf.mxu0  ;;  %v477_v26 = vpop.f32.mrf.mxu1 }
 0x12c   : >> { %v694_v28 = vpack.c.bf16 %v488_v22, %v488_v22  ;;  %v486_v30 = vmul.f32 0.25, %v465_v24  ;;  %522 = vrot.lane.b32.xlu0 %v691_v20, %s791_s2 }
 0x12d   : >> { %v467_v32 = vpop.f32.mrf.mxu0  ;;  %v480_v34 = vpop.f32.mrf.mxu1 }
 0x12e   : >> { %v692_v36 = vpack.c.bf16 %v486_v30, %v486_v30  ;;  %v489_v38 = vmul.f32 0.25, %v480_v34 }
 0x12f   : >> { %v482_v40 = vpop.f32.mrf.mxu1 }
 0x130   : >> { %v695_v42 = vpack.c.bf16 %v489_v38, %v489_v38  ;;  %528 = vrot.lane.b32.xlu0 %v694_v28, %s791_s2  ;;  %524 = vrot.lane.b32.xlu1 %v692_v36, %s791_s2 }
 0x134   : >> { %530 = vrot.lane.b32.xlu1 %v695_v42, %s791_s2 }
 0x19a   : >> { %v521_v44 = vpop.permute.xlu0 %520 }
 0x19b   : >> { %539 = vst.msk [vmem:[%s1259_s30] sm:$0xf] %vm538_vm3, %v521_v44 }
 0x19c   : >> { %v527_v46 = vpop.permute.xlu1 %526 }
 0x19d   : >> { %542 = vst.msk [vmem:[%s1259_s30 + $0xc] sm:$0xf] %vm538_vm3, %v527_v46 }
 0x19e   : >> { %v523_v54 = vpop.permute.xlu0 %522 }
 0x19f   : >> { %540 = vst.msk [vmem:[%s1259_s30 + $0x4] sm:$0xf] %vm538_vm3, %v523_v54 }
 0x1a2   : >> { %v529_v58 = vpop.permute.xlu0 %528  ;;  %v525_v59 = vpop.permute.xlu1 %524 }
 0x1a3   : >> { %543 = vst.msk [vmem:[%s1259_s30 + $0x10] sm:$0xf] %vm538_vm3, %v529_v58  ;;  %541 = vst.msk [vmem:[%s1259_s30 + $0x8] sm:$0xf] %vm538_vm3, %v525_v59  ;;  %290 = sbr.rel (!%p288_p4) target bundleno = 48 (0x30), region = 64 }
 0x1a6   : >> { %v531_v60 = vpop.permute.xlu1 %530 }
 0x1a7   : >> { %544 = vst.msk [vmem:[%s1259_s30 + $0x14] sm:$0xf] %vm538_vm3, %v531_v60 }
 0x1a8 PF: > { %s11_s6 = sadd.s32 1, %s780_s6  }
 0x1a9   : > { %p8_p5 = scmp.ge.s32.totalorder %s11_s6, 4  }
 0x1ab   :  { %10 = sbr.rel (!%p8_p5) target bundleno = 1 (0x1), region = 75 }

// kernel: forward.21
= control target key start
LH: loop header
LB: loop body
LE: loop exit
PB: predicated region body
PF: predicated region fallthrough
CT: control target
= control target key end

     0   :  { %s985_s12 = smov 0   ;;  %s1222_s0 = inlined_call_operand.vmem [shape: bf16[2,4848,101], index: 0, kind: input, shape index: {}]   ;;  %s1223_s1 = inlined_call_operand.vmem [shape: bf16[3,48,144], index: 1, kind: input, shape index: {}]   ;;  %s1224_s2 = inlined_call_operand.vmem [shape: f32[48,1], index: 2, kind: input, shape index: {}]   ;;  %s1225_s3 = inlined_call_operand.vmem [shape: bf16[2,4848,101], index: 3, kind: output, shape index: {}]  }
   0x1 LB: > { %s795_s13 = sadd.s32 4294967295, %s954_s12   ;;  %p799_p0 = scmp.ge.s32.totalorder %s954_s12, 1  ;;  %s954_s12 = sphi %s985_s12, %s13_s12  }
   0x2   : > { %p137_p1 = scmp.lt.s32.totalorder %s954_s12, 3 }
   0x4   : > { %p138_p2 = pnand %p799_p0, %p137_p1 }
   0x5   : > { %p161_p3 = scmp.lt.s32.totalorder (!%p138_p2), %s795_s13, 1  ;;  %s1057_s6 = smov (!%p138_p2), 0  }
   0x6   : > { %141 = sbr.rel (%p138_p2) target bundleno = 662 (0x296), region = 32 }
   0xb   : > { %v174_v0 = vld [vmem:[%s1224_s2 + $0x10] sm:$0xff]  ;;  %v172_v1 = vld [vmem:[%s1224_s2] sm:$0xff]  ;;  %v960_v2 = vmov 0   ;;  %s1227_s13 = smov (!%p161_p3, %s795_s13), 1  ;;  %v175_v3 = vld [vmem:[%s1224_s2 + $0x18] sm:$0xff]  ;;  %vm208_vm0 = vcmask 822272  }
   0xc   : > { %907 = vset.pattern.permute.xlu1 %v960_v2  ;;  %906 = vset.pattern.permute.xlu0 %v960_v2  ;;  %v173_v4 = vld [vmem:[%s1224_s2 + $0x8] sm:$0xff]  ;;  %s884_s22 = smul.u32 2424, %s1227_s13  ;;  %v176_v6 = vld [vmem:[%s1224_s2 + $0x20] sm:$0xff] }
   0xd   : > { %190 = vperm.xlu1 %907, %v174_v0   ;;  %180 = vperm.xlu0 %906, %v172_v1   ;;  %v177_v5 = vld [vmem:[%s1224_s2 + $0x28] sm:$0xff] }
   0xe   : > { %s1008_s25 = scalar_lea.vmem %s1222_s0, %s884_s22  ;;  %s1013_s28 = scalar_lea.vmem %s1225_s3, %s884_s22 }
   0xf   : > { %209 = vst.msk [vmem:[%s1013_s28] sm:$0xf] %vm208_vm0, %v960_v2  ;;  %210 = vst.msk [vmem:[%s1013_s28 + $0x4] sm:$0xf] %vm208_vm0, %v960_v2 }
  0x10   : > { %211 = vst.msk [vmem:[%s1013_s28 + $0x8] sm:$0xf] %vm208_vm0, %v960_v2  ;;  %212 = vst.msk [vmem:[%s1013_s28 + $0xc] sm:$0xf] %vm208_vm0, %v960_v2 }
  0x11   : > { %195 = vperm.xlu1 %907, %v175_v3   ;;  %185 = vperm.xlu0 %906, %v173_v4   ;;  %213 = vst.msk [vmem:[%s1013_s28 + $0x10] sm:$0xf] %vm208_vm0, %v960_v2  ;;  %214 = vst.msk [vmem:[%s1013_s28 + $0x14] sm:$0xf] %vm208_vm0, %v960_v2 }
  0x12   : > { %215 = vst.msk [vmem:[%s1013_s28 + $0x960] sm:$0xf] %vm208_vm0, %v960_v2  ;;  %216 = vst.msk [vmem:[%s1013_s28 + $0x964] sm:$0xf] %vm208_vm0, %v960_v2 }
  0x13   : > { %217 = vst.msk [vmem:[%s1013_s28 + $0x968] sm:$0xf] %vm208_vm0, %v960_v2  ;;  %218 = vst.msk [vmem:[%s1013_s28 + $0x96c] sm:$0xf] %vm208_vm0, %v960_v2 }
  0x14   : > { %219 = vst.msk [vmem:[%s1013_s28 + $0x970] sm:$0xf] %vm208_vm0, %v960_v2  ;;  %220 = vst.msk [vmem:[%s1013_s28 + $0x974] sm:$0xf] %vm208_vm0, %v960_v2 }
  0x15   : > { %205 = vperm.xlu1 %907, %v177_v5   ;;  %200 = vperm.xlu0 %906, %v176_v6  }
  0x88   : > { %v1045_v7 = vpop.permute.xlu1 %190  ;;  %v1047_v8 = vpop.permute.xlu0 %180 }
  0x8c   : > { %v1049_v9 = vpop.permute.xlu1 %195  ;;  %v1051_v10 = vpop.permute.xlu0 %185 }
  0x90   : > { %v1053_v11 = vpop.permute.xlu1 %205  ;;  %v1055_v12 = vpop.permute.xlu0 %200 }
  0x91 LB: >> { %v961_v13 = vmov 0   ;;  %s227_s7 = smul.u32 48, %s958_s6  ;;  %s962_s11 = smov 127   ;;  %vm362_vm1 = vcmask 130048   ;;  %v919_v20 = vld [vmem:[%s1223_s1 + $0x4] ss:$8 sps:$4 sm:$0xff]   ;;  %s958_s6 = sphi %s1057_s6, %s1173_s6  }
  0x92   : >> { %474 = vmatprep.subr.bf16.mxu1 %v961_v13  ;;  %372 = vmatprep.subr.bf16.mxu0 %v961_v13  ;;  %s963_s15 = smov 126   ;;  %v922_v24 = vld [vmem:[%s1223_s1 + $0x34] ss:$8 sps:$4 sm:$0xff]   ;;  %v917_v25 = vld [vmem:[%s1223_s1] ss:$8 sps:$4 sm:$0xff]   ;;  %s1173_s6 = sadd.s32 1, %s958_s6  }
  0x93   : >> { %s228_s8 = sshra.s32 %s227_s7, 3  ;;  %833 = vmatprep.mubr.msk.bf16.mxu1 %vm362_vm1, %v919_v20  ;;  %824 = vmatprep.mubr.msk.bf16.mxu0 %vm362_vm1, %v922_v24  ;;  %v923_v26 = vld [vmem:[%s1223_s1 + $0x14] ss:$8 sps:$4 sm:$0xff]   ;;  %v925_v27 = vld [vmem:[%s1223_s1 + $0x10] ss:$8 sps:$4 sm:$0xff]   ;;  %s680_s29 = smul.u32 48, %s1173_s6 }
  0x94   : >> { %s802_s9 = sshll.u32 %s228_s8, 2  ;;  %v926_v28 = vld [vmem:[%s1223_s1 + $0x24] ss:$8 sps:$4 sm:$0xff]   ;;  %v928_v29 = vld [vmem:[%s1223_s1 + $0x20] ss:$8 sps:$4 sm:$0xff]   ;;  %s964_s7 = smov 1  }
  0x95   : >> { %s231_s10 = scalar_lea.vmem %s1008_s25, %s802_s9  ;;  %v934_v30 = vld [vmem:[%s1223_s1 + $0x74] ss:$8 sps:$4 sm:$0xff]   ;;  %v920_v45 = vld [vmem:[%s1223_s1 + $0x30] ss:$8 sps:$4 sm:$0xff]   ;;  %v929_v47 = vld [vmem:[%s1223_s1 + $0x44] ss:$8 sps:$4 sm:$0xff]  }
  0x96   : >> { %v908_v14 = vld [vmem:[%s231_s10 + $0x38] sm:$0xff]   ;;  %v909_v15 = vld [vmem:[%s231_s10 + $0x30] sm:$0xff]   ;;  %v910_v16 = vld [vmem:[%s231_s10 + $0x28] sm:$0xff]   ;;  %s681_s30 = sshra.s32 %s680_s29, 3  ;;  %vm724_vm2 = vcmask 814088   ;;  %p223_p4 = scmp.ge.s32.totalorder %s1173_s6, 99  }
  0x97   : >> { %349 = vrot.lane.b32.xlu0 %v908_v14, %s962_s11  ;;  %475 = vmatpush1.bf16.msra.mxu1 %v908_v14  ;;  %v911_v17 = vld [vmem:[%s231_s10 + $0x20] sm:$0xff]   ;;  %v912_v18 = vld [vmem:[%s231_s10 + $0x18] sm:$0xff]   ;;  %v913_v19 = vld [vmem:[%s231_s10 + $0x10] sm:$0xff]   ;;  %s851_s4 = sshll.u32 %s681_s30, 2 }
  0x98   : >> { %476 = vmatprep.subr.bf16.mxu1 %v961_v13  ;;  %345 = vrot.lane.b32.xlu1 %v910_v16, %s962_s11  ;;  %v914_v21 = vld [vmem:[%s231_s10 + $0x8] sm:$0xff]   ;;  %v915_v22 = vld [vmem:[%s231_s10] sm:$0xff]   ;;  %v935_v51 = vld [vmem:[%s1223_s1 + $0x54] ss:$8 sps:$4 sm:$0xff]   ;;  %s1177_s5 = scalar_lea.vmem %s1013_s28, %s851_s4 }
  0x99   : >> { %v916_v23 = vld [vmem:[%s231_s10 + $0x40] sm:$0xff]   ;;  %v932_v53 = vld [vmem:[%s1223_s1 + $0x70] ss:$8 sps:$4 sm:$0xff]   ;;  %687 = vst.msk [vmem:[%s1177_s5 + $0x8] sm:$0xf] %vm208_vm0, %v961_v13 }
  0x9a   : >> { %v931_v49 = vld [vmem:[%s1223_s1 + $0x40] ss:$8 sps:$4 sm:$0xff]   ;;  %v937_v54 = vld [vmem:[%s1223_s1 + $0x50] ss:$8 sps:$4 sm:$0xff]   ;;  %v938_v55 = vld [vmem:[%s1223_s1 + $0x84] ss:$8 sps:$4 sm:$0xff]  }
  0x9b   : >> { %347 = vrot.lane.b32.xlu0 %v909_v15, %s962_s11  ;;  %477 = vmatpush1.bf16.msra.mxu1 %v909_v15  ;;  %v943_v56 = vld [vmem:[%s1223_s1 + $0x64] ss:$8 sps:$4 sm:$0xff]   ;;  %v940_v57 = vld [vmem:[%s1223_s1 + $0x80] ss:$8 sps:$4 sm:$0xff]   ;;  %685 = vst.msk [vmem:[%s1177_s5] sm:$0xf] %vm208_vm0, %v961_v13 }
  0x9c   : >> { %478 = vmatprep.subr.bf16.mxu1 %v961_v13  ;;  %343 = vrot.lane.b32.xlu1 %v911_v17, %s962_s11  ;;  %v941_v58 = vld [vmem:[%s1223_s1 + $0x60] ss:$8 sps:$4 sm:$0xff]   ;;  %686 = vst.msk [vmem:[%s1177_s5 + $0x4] sm:$0xf] %vm208_vm0, %v961_v13  ;;  %688 = vst.msk [vmem:[%s1177_s5 + $0xc] sm:$0xf] %vm208_vm0, %v961_v13 }
  0x9d   : >> { %689 = vst.msk [vmem:[%s1177_s5 + $0x10] sm:$0xf] %vm208_vm0, %v961_v13  ;;  %690 = vst.msk [vmem:[%s1177_s5 + $0x14] sm:$0xf] %vm208_vm0, %v961_v13 }
  0x9f   : >> { %341 = vrot.lane.b32.xlu0 %v912_v18, %s962_s11  ;;  %479 = vmatpush1.bf16.msra.mxu1 %v910_v16 }
  0xa0   : >> { %480 = vmatprep.subr.bf16.mxu1 %v961_v13  ;;  %339 = vrot.lane.b32.xlu1 %v913_v19, %s962_s11 }
  0xa3   : >> { %337 = vrot.lane.b32.xlu0 %v914_v21, %s962_s11  ;;  %481 = vmatpush1.bf16.msra.mxu1 %v911_v17 }
  0xa4   : >> { %482 = vmatprep.subr.bf16.mxu1 %v961_v13  ;;  %335 = vrot.lane.b32.xlu1 %v915_v22, %s962_s11 }
  0xa7   : >> { %579 = vrot.lane.b32.xlu0 %v908_v14, %s963_s15  ;;  %483 = vmatpush1.bf16.msra.mxu1 %v912_v18 }
  0xa8   : >> { %484 = vmatprep.subr.bf16.mxu1 %v961_v13  ;;  %351 = vrot.lane.b32.xlu1 %v916_v23, %s962_s11 }
  0xab   : >> { %577 = vrot.lane.b32.xlu0 %v909_v15, %s963_s15  ;;  %485 = vmatpush1.bf16.msra.mxu1 %v913_v19 }
  0xac   : >> { %486 = vmatprep.subr.bf16.mxu1 %v961_v13  ;;  %575 = vrot.lane.b32.xlu1 %v910_v16, %s963_s15 }
  0xaf   : >> { %573 = vrot.lane.b32.xlu0 %v911_v17, %s963_s15  ;;  %487 = vmatpush1.bf16.msra.mxu1 %v914_v21 }
  0xb0   : >> { %488 = vmatprep.subr.bf16.mxu1 %v961_v13  ;;  %571 = vrot.lane.b32.xlu1 %v912_v18, %s963_s15 }
  0xb3   : >> { %569 = vrot.lane.b32.xlu0 %v913_v19, %s963_s15  ;;  %489 = vmatpush1.bf16.msra.mxu1 %v915_v22 }
  0xb4   : >> { %504 = vmatprep.subr.bf16.mxu1 %v961_v13  ;;  %567 = vrot.lane.b32.xlu1 %v914_v21, %s963_s15 }
  0xb7   : >> { %565 = vrot.lane.b32.xlu0 %v915_v22, %s963_s15  ;;  %505 = vmatpush2.bf16.msra.mxu1 %v916_v23 }
  0xb8   : >> { %866 = vmatprep.subr.bf16.mxu1 %v961_v13  ;;  %581 = vrot.lane.b32.xlu1 %v916_v23, %s963_s15 }
  0xba   : >> { %507 = vmatmul.mubr.bf16.vlgmr.msra.gmra.mxu1 %v917_v25 }
  0xbb   : >> { %834 = vmatprep.mubr.msk.bf16.mxu1 %vm362_vm1, %v923_v26 }
  0xc2   : >> { %515 = vmatmul.mubr.bf16.gmra.mxu1 %v925_v27 }
  0xc3   : >> { %835 = vmatprep.mubr.msk.bf16.mxu1 %vm362_vm1, %v926_v28 }
  0xca   : >> { %523 = vmatmul.mubr.bf16.gmra.mxu1 %v928_v29 }
  0xcb   : >> { %849 = vmatprep.mubr.msk.bf16.mxu1 %vm362_vm1, %v934_v30 }
 0x109   : >> { %v350_v31 = vpop.permute.xlu0 %349 }
 0x10a   : >> { %373 = vmatpush1.bf16.msra.mxu0 %v350_v31  ;;  %v346_v32 = vpop.permute.xlu1 %345 }
 0x10b   : >> { %374 = vmatprep.subr.bf16.mxu0 %v961_v13 }
 0x10d   : >> { %v348_v33 = vpop.permute.xlu0 %347 }
 0x10e   : >> { %375 = vmatpush1.bf16.msra.mxu0 %v348_v33  ;;  %v344_v34 = vpop.permute.xlu1 %343 }
 0x10f   : >> { %376 = vmatprep.subr.bf16.mxu0 %v961_v13 }
 0x111   : >> { %v342_v35 = vpop.permute.xlu0 %341 }
 0x112   : >> { %377 = vmatpush1.bf16.msra.mxu0 %v346_v32  ;;  %v340_v36 = vpop.permute.xlu1 %339 }
 0x113   : >> { %378 = vmatprep.subr.bf16.mxu0 %v961_v13 }
 0x115   : >> { %v338_v37 = vpop.permute.xlu0 %337 }
 0x116   : >> { %379 = vmatpush1.bf16.msra.mxu0 %v344_v34  ;;  %v336_v38 = vpop.permute.xlu1 %335 }
 0x117   : >> { %380 = vmatprep.subr.bf16.mxu0 %v961_v13 }
 0x119   : >> { %v580_v39 = vpop.permute.xlu0 %579 }
 0x11a   : >> { %381 = vmatpush1.bf16.msra.mxu0 %v342_v35  ;;  %875 = vmatpush1.bf16.msra.mxu1 %v580_v39  ;;  %v352_v40 = vpop.permute.xlu1 %351 }
 0x11b   : >> { %382 = vmatprep.subr.bf16.mxu0 %v961_v13  ;;  %867 = vmatprep.subr.bf16.mxu1 %v961_v13 }
 0x11d   : >> { %v578_v41 = vpop.permute.xlu0 %577 }
 0x11e   : >> { %383 = vmatpush1.bf16.msra.mxu0 %v340_v36  ;;  %876 = vmatpush1.bf16.msra.mxu1 %v578_v41  ;;  %v576_v42 = vpop.permute.xlu1 %575 }
 0x11f   : >> { %384 = vmatprep.subr.bf16.mxu0 %v961_v13  ;;  %868 = vmatprep.subr.bf16.mxu1 %v961_v13 }
 0x121   : >> { %v574_v43 = vpop.permute.xlu0 %573 }
 0x122   : >> { %385 = vmatpush1.bf16.msra.mxu0 %v338_v37  ;;  %877 = vmatpush1.bf16.msra.mxu1 %v576_v42  ;;  %v572_v44 = vpop.permute.xlu1 %571 }
 0x123   : >> { %386 = vmatprep.subr.bf16.mxu0 %v961_v13  ;;  %869 = vmatprep.subr.bf16.mxu1 %v961_v13 }
 0x125   : >> { %v570_v46 = vpop.permute.xlu0 %569 }
 0x126   : >> { %387 = vmatpush1.bf16.msra.mxu0 %v336_v38  ;;  %878 = vmatpush1.bf16.msra.mxu1 %v574_v43  ;;  %v568_v48 = vpop.permute.xlu1 %567 }
 0x127   : >> { %402 = vmatprep.subr.bf16.mxu0 %v961_v13  ;;  %870 = vmatprep.subr.bf16.mxu1 %v961_v13 }
 0x129   : >> { %v566_v50 = vpop.permute.xlu0 %565 }
 0x12a   : >> { %403 = vmatpush2.bf16.msra.mxu0 %v352_v40  ;;  %879 = vmatpush1.bf16.msra.mxu1 %v572_v44  ;;  %v582_v52 = vpop.permute.xlu1 %581 }
 0x12b   : >> { %601 = vmatprep.subr.bf16.mxu0 %v961_v13  ;;  %871 = vmatprep.subr.bf16.mxu1 %v961_v13 }
 0x12d   : >> { %405 = vmatmul.mubr.bf16.vlgmr.msra.gmra.mxu0 %v920_v45 }
 0x12e   : >> { %602 = vmatpush1.bf16.msra.mxu0 %v580_v39  ;;  %880 = vmatpush1.bf16.msra.mxu1 %v570_v46 }
 0x12f   : >> { %603 = vmatprep.subr.bf16.mxu0 %v961_v13  ;;  %872 = vmatprep.subr.bf16.mxu1 %v961_v13 }
 0x130   : >> { %825 = vmatprep.mubr.msk.bf16.mxu0 %vm362_vm1, %v929_v47 }
 0x132   : >> { %604 = vmatpush1.bf16.msra.mxu0 %v578_v41  ;;  %881 = vmatpush1.bf16.msra.mxu1 %v568_v48 }
 0x133   : >> { %605 = vmatprep.subr.bf16.mxu0 %v961_v13  ;;  %873 = vmatprep.subr.bf16.mxu1 %v961_v13 }
 0x135   : >> { %413 = vmatmul.mubr.bf16.gmra.mxu0 %v931_v49 }
 0x136   : >> { %606 = vmatpush1.bf16.msra.mxu0 %v576_v42  ;;  %882 = vmatpush1.bf16.msra.mxu1 %v566_v50 }
 0x137   : >> { %607 = vmatprep.subr.bf16.mxu0 %v961_v13  ;;  %874 = vmatprep.subr.bf16.mxu1 %v961_v13 }
 0x138   : >> { %826 = vmatprep.mubr.msk.bf16.mxu0 %vm362_vm1, %v935_v51 }
 0x13a   : >> { %608 = vmatpush1.bf16.msra.mxu0 %v574_v43  ;;  %883 = vmatpush2.bf16.msra.mxu1 %v582_v52 }
 0x13b   : >> { %609 = vmatprep.subr.bf16.mxu0 %v961_v13 }
 0x13d   : >> { %642 = vmatmul.mubr.bf16.vlgmr.msra.gmra.mxu1 %v932_v53  ;;  %421 = vmatmul.mubr.bf16.gmra.mxu0 %v937_v54 }
 0x13e   : >> { %610 = vmatpush1.bf16.msra.mxu0 %v572_v44  ;;  %850 = vmatprep.mubr.msk.bf16.mxu1 %vm362_vm1, %v938_v55 }
 0x13f   : >> { %611 = vmatprep.subr.bf16.mxu0 %v961_v13  ;;  %848 = vmatprep.mubr.msk.bf16.mxu0 %vm362_vm1, %v943_v56 }
 0x142   : >> { %612 = vmatpush1.bf16.msra.mxu0 %v570_v46 }
 0x143   : >> { %613 = vmatprep.subr.bf16.mxu0 %v961_v13 }
 0x145   : >> { %650 = vmatmul.mubr.bf16.gmra.mxu1 %v940_v57 }
 0x146   : >> { %614 = vmatpush1.bf16.msra.mxu0 %v568_v48 }
 0x147   : >> { %615 = vmatprep.subr.bf16.mxu0 %v961_v13 }
 0x14a   : >> { %616 = vmatpush1.bf16.msra.mxu0 %v566_v50 }
 0x14b   : >> { %631 = vmatprep.subr.bf16.mxu0 %v961_v13 }
 0x14e   : >> { %632 = vmatpush2.bf16.msra.mxu0 %v582_v52 }
 0x151   : >> { %634 = vmatmul.mubr.bf16.vlgmr.msra.gmra.mxu0 %v941_v58 }
 0x17a   : >> { %v508_v59 = vpop.f32.mrf.mxu1 }
 0x17c   : >> { %v510_v60 = vpop.f32.mrf.mxu1 }
 0x17e   : >> { %v511_v61 = vpop.f32.mrf.mxu1 }
 0x180   : >> { %v513_v62 = vpop.f32.mrf.mxu1 }
 0x182   : >> { %v516_v63 = vpop.f32.mrf.mxu1 }
 0x184   : >> { %v518_v0 = vpop.f32.mrf.mxu1 }
 0x186   : >> { %v519_v1 = vpop.f32.mrf.mxu1 }
 0x188   : >> { %v521_v2 = vpop.f32.mrf.mxu1 }
 0x18a   : >> { %v524_v3 = vpop.f32.mrf.mxu1 }
 0x18c   : >> { %v526_v4 = vpop.f32.mrf.mxu1 }
 0x18e   : >> { %v527_v5 = vpop.f32.mrf.mxu1 }
 0x190   : >> { %v529_v6 = vpop.f32.mrf.mxu1 }
 0x1ed   : >> { %v406_v14 = vpop.f32.mrf.mxu0 }
 0x1ee   : >> { %v509_v44 = vadd.f32 %v508_v59, %v406_v14 }
 0x1ef   : >> { %v408_v15 = vpop.f32.mrf.mxu0 }
 0x1f1   : >> { %v409_v16 = vpop.f32.mrf.mxu0 }
 0x1f2   : >> { %v512_v50 = vadd.f32 %v511_v61, %v409_v16 }
 0x1f3   : >> { %v411_v17 = vpop.f32.mrf.mxu0 }
 0x1f5   : >> { %v414_v18 = vpop.f32.mrf.mxu0 }
 0x1f6   : >> { %v517_v21 = vadd.f32 %v516_v63, %v414_v18 }
 0x1f7   : >> { %v416_v19 = vpop.f32.mrf.mxu0 }
 0x1f9   : >> { %v417_v20 = vpop.f32.mrf.mxu0 }
 0x1fa   : >> { %v520_v28 = vadd.f32 %v519_v1, %v417_v20 }
 0x1fb   : >> { %v419_v22 = vpop.f32.mrf.mxu0 }
 0x1fd   : >> { %v643_v23 = vpop.f32.mrf.mxu1  ;;  %v422_v24 = vpop.f32.mrf.mxu0 }
 0x1fe   : >> { %v660_v25 = vadd.f32 %v643_v23, %v517_v21  ;;  %v525_v43 = vadd.f32 %v524_v3, %v422_v24 }
 0x1ff   : >> { %v645_v26 = vpop.f32.mrf.mxu1  ;;  %v424_v27 = vpop.f32.mrf.mxu0 }
 0x200   : >> { %v666_v29 = vadd.f32 %v660_v25, %v1045_v7 }
 0x201   : >> { %v646_v30 = vpop.f32.mrf.mxu1  ;;  %v425_v31 = vpop.f32.mrf.mxu0 }
 0x202   : >> { %v672_v13 = vmax.f32 %v666_v29, 0.0  ;;  %v661_v32 = vadd.f32 %v646_v30, %v520_v28  ;;  %v528_v47 = vadd.f32 %v527_v5, %v425_v31 }
 0x203   : >> { %v648_v33 = vpop.f32.mrf.mxu1  ;;  %v427_v34 = vpop.f32.mrf.mxu0 }
 0x204   : >> { %v862_v35 = vpack.c.bf16 %v672_v13, %v672_v13  ;;  %v667_v36 = vadd.f32 %v661_v32, %v1049_v9 }
 0x205   : >> { %v651_v37 = vpop.f32.mrf.mxu1 }
 0x206   : >> { %v673_v38 = vmax.f32 %v667_v36, 0.0  ;;  %710 = vrot.lane.b32.xlu0 %v862_v35, %s964_s7  ;;  %v662_v45 = vadd.f32 %v651_v37, %v525_v43 }
 0x207   : >> { %v653_v39 = vpop.f32.mrf.mxu1 }
 0x208   : >> { %v863_v40 = vpack.c.bf16 %v673_v38, %v673_v38  ;;  %v668_v51 = vadd.f32 %v662_v45, %v1055_v12 }
 0x209   : >> { %v654_v41 = vpop.f32.mrf.mxu1 }
 0x20a   : >> { %712 = vrot.lane.b32.xlu1 %v863_v40, %s964_s7  ;;  %v663_v52 = vadd.f32 %v654_v41, %v528_v47  ;;  %v674_v58 = vmax.f32 %v668_v51, 0.0 }
 0x20b   : >> { %v656_v42 = vpop.f32.mrf.mxu1 }
 0x20c   : >> { %v669_v60 = vadd.f32 %v663_v52, %v1053_v11  ;;  %v864_v61 = vpack.c.bf16 %v674_v58, %v674_v58 }
 0x20e   : >> { %v675_v0 = vmax.f32 %v669_v60, 0.0 }
 0x210   : >> { %v865_v2 = vpack.c.bf16 %v675_v0, %v675_v0 }
 0x211   : >> { %v635_v46 = vpop.f32.mrf.mxu0 }
 0x212   : >> { %v658_v48 = vadd.f32 %v635_v46, %v509_v44 }
 0x213   : >> { %v637_v49 = vpop.f32.mrf.mxu0 }
 0x214   : >> { %v664_v53 = vadd.f32 %v658_v48, %v1047_v8 }
 0x215   : >> { %v638_v54 = vpop.f32.mrf.mxu0 }
 0x216   : >> { %v670_v55 = vmax.f32 %v664_v53, 0.0  ;;  %v659_v56 = vadd.f32 %v638_v54, %v512_v50 }
 0x217   : >> { %v640_v57 = vpop.f32.mrf.mxu0 }
 0x218   : >> { %v860_v59 = vpack.c.bf16 %v670_v55, %v670_v55  ;;  %v665_v62 = vadd.f32 %v659_v56, %v1051_v10 }
 0x21a   : >> { %v671_v63 = vmax.f32 %v665_v62, 0.0  ;;  %706 = vrot.lane.b32.xlu0 %v860_v59, %s964_s7 }
 0x21c   : >> { %v861_v1 = vpack.c.bf16 %v671_v63, %v671_v63 }
 0x21e   : >> { %708 = vrot.lane.b32.xlu1 %v861_v1, %s964_s7  ;;  %714 = vrot.lane.b32.xlu0 %v864_v61, %s964_s7 }
 0x222   : >> { %716 = vrot.lane.b32.xlu1 %v865_v2, %s964_s7 }
 0x278   : >> { %v711_v3 = vpop.permute.xlu0 %710 }
 0x279   : >> { %727 = vst.msk [vmem:[%s1177_s5 + $0x8] sm:$0xf] %vm724_vm2, %v711_v3 }
 0x27c   : >> { %v713_v4 = vpop.permute.xlu1 %712 }
 0x27d   : >> { %728 = vst.msk [vmem:[%s1177_s5 + $0xc] sm:$0xf] %vm724_vm2, %v713_v4 }
 0x28c   : >> { %v707_v5 = vpop.permute.xlu0 %706 }
 0x28d   : >> { %725 = vst.msk [vmem:[%s1177_s5] sm:$0xf] %vm724_vm2, %v707_v5 }
 0x290   : >> { %v709_v6 = vpop.permute.xlu1 %708  ;;  %v715_v14 = vpop.permute.xlu0 %714 }
 0x291   : >> { %726 = vst.msk [vmem:[%s1177_s5 + $0x4] sm:$0xf] %vm724_vm2, %v709_v6  ;;  %729 = vst.msk [vmem:[%s1177_s5 + $0x10] sm:$0xf] %vm724_vm2, %v715_v14  ;;  %225 = sbr.rel (!%p223_p4) target bundleno = 145 (0x91), region = 73 }
 0x294   : >> { %v717_v15 = vpop.permute.xlu1 %716 }
 0x295   : >> { %730 = vst.msk [vmem:[%s1177_s5 + $0x14] sm:$0xf] %vm724_vm2, %v717_v15 }
 0x296 PF: > { %s13_s12 = sadd.s32 1, %s954_s12  }
 0x297   : > { %p10_p5 = scmp.ge.s32.totalorder %s13_s12, 4  }
 0x299   :  { %12 = sbr.rel (!%p10_p5) target bundleno = 1 (0x1), region = 84 }

// kernel: forward.22
= control target key start
LH: loop header
LB: loop body
LE: loop exit
PB: predicated region body
PF: predicated region fallthrough
CT: control target
= control target key end

     0   :  { %s1093_s15 = smov 0   ;;  %s1293_s0 = inlined_call_operand.vmem [shape: bf16[2,4848,101], index: 0, kind: input, shape index: {}]   ;;  %s1294_s1 = inlined_call_operand.vmem [shape: bf16[3,48,144], index: 1, kind: input, shape index: {}]   ;;  %s1295_s2 = inlined_call_operand.vmem [shape: f32[48,1], index: 2, kind: input, shape index: {}]   ;;  %s1296_s3 = inlined_call_operand.vmem [shape: bf16[2,4848,101], index: 3, kind: input, shape index: {}]   ;;  %s1297_s4 = inlined_call_operand.vmem [shape: bf16[2,4752,99], index: 4, kind: output, shape index: {}]  }
   0x1 LB: > { %s881_s16 = sadd.s32 4294967295, %s1057_s15   ;;  %p885_p0 = scmp.ge.s32.totalorder %s1057_s15, 1  ;;  %s1057_s15 = sphi %s1093_s15, %s14_s15  }
   0x2   : > { %p172_p1 = scmp.lt.s32.totalorder %s1057_s15, 3 }
   0x4   : > { %p173_p2 = pnand %p885_p0, %p172_p1 }
   0x5   : > { %p203_p3 = scmp.lt.s32.totalorder (!%p173_p2), %s881_s16, 1  ;;  %s1146_s14 = smov (!%p173_p2), 0  }
   0x6   : > { %176 = sbr.rel (%p173_p2) target bundleno = 779 (0x30b), region = 36 }
   0xb   : > { %v221_v0 = vld [vmem:[%s1295_s2 + $0x10] sm:$0xff]  ;;  %v219_v1 = vld [vmem:[%s1295_s2] sm:$0xff]  ;;  %v1063_v2 = vmov 0   ;;  %s1299_s16 = smov (!%p203_p3, %s881_s16), 1  ;;  %v222_v3 = vld [vmem:[%s1295_s2 + $0x18] sm:$0xff] }
   0xc   : > { %1010 = vset.pattern.permute.xlu1 %v1063_v2  ;;  %1009 = vset.pattern.permute.xlu0 %v1063_v2  ;;  %v220_v4 = vld [vmem:[%s1295_s2 + $0x8] sm:$0xff]  ;;  %s986_s25 = smul.u32 2424, %s1299_s16  ;;  %v223_v6 = vld [vmem:[%s1295_s2 + $0x20] sm:$0xff] }
   0xd   : > { %237 = vperm.xlu1 %1010, %v221_v0   ;;  %227 = vperm.xlu0 %1009, %v219_v1   ;;  %s987_s26 = smul.u32 2376, %s1299_s16  ;;  %v224_v5 = vld [vmem:[%s1295_s2 + $0x28] sm:$0xff] }
   0xe   : > { %s1116_s29 = scalar_lea.vmem %s1293_s0, %s986_s25  ;;  %s1121_s6 = scalar_lea.vmem %s1296_s3, %s986_s25 }
   0xf   : > { %s1132_s13 = scalar_lea.vmem %s1297_s4, %s987_s26 }
  0x11   : > { %242 = vperm.xlu1 %1010, %v222_v3   ;;  %232 = vperm.xlu0 %1009, %v220_v4  }
  0x15   : > { %252 = vperm.xlu1 %1010, %v224_v5   ;;  %247 = vperm.xlu0 %1009, %v223_v6  }
  0x88   : > { %v1134_v7 = vpop.permute.xlu1 %237  ;;  %v1136_v8 = vpop.permute.xlu0 %227 }
  0x8c   : > { %v1138_v9 = vpop.permute.xlu1 %242  ;;  %v1140_v10 = vpop.permute.xlu0 %232 }
  0x90   : > { %v1142_v11 = vpop.permute.xlu1 %252  ;;  %v1144_v12 = vpop.permute.xlu0 %247 }
  0x91 LB: >> { %v1064_v13 = vmov 0   ;;  %s261_s16 = smul.u32 48, %s1061_s14  ;;  %s1065_s20 = smov 127   ;;  %vm396_vm0 = vcmask 130048   ;;  %v1022_v20 = vld [vmem:[%s1294_s1 + $0x4] ss:$8 sps:$4 sm:$0xff]   ;;  %s1061_s14 = sphi %s1146_s14, %s1273_s14  }
  0x92   : >> { %508 = vmatprep.subr.bf16.mxu1 %v1064_v13  ;;  %406 = vmatprep.subr.bf16.mxu0 %v1064_v13  ;;  %s1066_s23 = smov 126   ;;  %v1025_v24 = vld [vmem:[%s1294_s1 + $0x34] ss:$8 sps:$4 sm:$0xff]   ;;  %v1020_v25 = vld [vmem:[%s1294_s1] ss:$8 sps:$4 sm:$0xff]   ;;  %s1067_s22 = smov 1  }
  0x93   : >> { %s1154_s17 = sshra.s32 %s261_s16, 3  ;;  %920 = vmatprep.mubr.msk.bf16.mxu1 %vm396_vm0, %v1022_v20  ;;  %911 = vmatprep.mubr.msk.bf16.mxu0 %vm396_vm0, %v1025_v24  ;;  %v1026_v26 = vld [vmem:[%s1294_s1 + $0x14] ss:$8 sps:$4 sm:$0xff]   ;;  %v1028_v27 = vld [vmem:[%s1294_s1 + $0x10] ss:$8 sps:$4 sm:$0xff]   ;;  %s1273_s14 = sadd.s32 1, %s1061_s14  }
  0x94   : >> { %s889_s18 = sshll.u32 %s1154_s17, 2  ;;  %v1029_v28 = vld [vmem:[%s1294_s1 + $0x24] ss:$8 sps:$4 sm:$0xff]   ;;  %v1031_v29 = vld [vmem:[%s1294_s1 + $0x20] ss:$8 sps:$4 sm:$0xff]   ;;  %vm796_vm1 = vcmask 805888  }
  0x95   : >> { %s265_s19 = scalar_lea.vmem %s1116_s29, %s889_s18  ;;  %v1037_v30 = vld [vmem:[%s1294_s1 + $0x74] ss:$8 sps:$4 sm:$0xff]   ;;  %v1023_v45 = vld [vmem:[%s1294_s1 + $0x30] ss:$8 sps:$4 sm:$0xff]   ;;  %v1032_v47 = vld [vmem:[%s1294_s1 + $0x44] ss:$8 sps:$4 sm:$0xff]   ;;  %s795_s27 = scalar_lea.vmem %s1132_s13, %s889_s18 }
  0x96   : >> { %v1011_v14 = vld [vmem:[%s265_s19 + $0x38] sm:$0xff]   ;;  %v1012_v15 = vld [vmem:[%s265_s19 + $0x30] sm:$0xff]   ;;  %v1013_v16 = vld [vmem:[%s265_s19 + $0x28] sm:$0xff]   ;;  %p257_p4 = scmp.ge.s32.totalorder %s1273_s14, 99  }
  0x97   : >> { %383 = vrot.lane.b32.xlu0 %v1011_v14, %s1065_s20  ;;  %509 = vmatpush1.bf16.msra.mxu1 %v1011_v14  ;;  %v1014_v17 = vld [vmem:[%s265_s19 + $0x20] sm:$0xff]   ;;  %v1015_v18 = vld [vmem:[%s265_s19 + $0x18] sm:$0xff]   ;;  %v1016_v19 = vld [vmem:[%s265_s19 + $0x10] sm:$0xff]  }
  0x98   : >> { %510 = vmatprep.subr.bf16.mxu1 %v1064_v13  ;;  %379 = vrot.lane.b32.xlu1 %v1013_v16, %s1065_s20  ;;  %v1017_v21 = vld [vmem:[%s265_s19 + $0x8] sm:$0xff]   ;;  %v1018_v22 = vld [vmem:[%s265_s19] sm:$0xff]   ;;  %v1038_v51 = vld [vmem:[%s1294_s1 + $0x54] ss:$8 sps:$4 sm:$0xff]  }
  0x99   : >> { %v1019_v23 = vld [vmem:[%s265_s19 + $0x40] sm:$0xff]   ;;  %v1035_v53 = vld [vmem:[%s1294_s1 + $0x70] ss:$8 sps:$4 sm:$0xff]  }
  0x9a   : >> { %v1034_v49 = vld [vmem:[%s1294_s1 + $0x40] ss:$8 sps:$4 sm:$0xff]   ;;  %v1040_v54 = vld [vmem:[%s1294_s1 + $0x50] ss:$8 sps:$4 sm:$0xff]   ;;  %v1041_v55 = vld [vmem:[%s1294_s1 + $0x84] ss:$8 sps:$4 sm:$0xff]  }
  0x9b   : >> { %381 = vrot.lane.b32.xlu0 %v1012_v15, %s1065_s20  ;;  %511 = vmatpush1.bf16.msra.mxu1 %v1012_v15  ;;  %v1046_v56 = vld [vmem:[%s1294_s1 + $0x64] ss:$8 sps:$4 sm:$0xff]   ;;  %v1043_v57 = vld [vmem:[%s1294_s1 + $0x80] ss:$8 sps:$4 sm:$0xff]  }
  0x9c   : >> { %512 = vmatprep.subr.bf16.mxu1 %v1064_v13  ;;  %377 = vrot.lane.b32.xlu1 %v1014_v17, %s1065_s20  ;;  %v1044_v58 = vld [vmem:[%s1294_s1 + $0x60] ss:$8 sps:$4 sm:$0xff]  }
  0x9f   : >> { %375 = vrot.lane.b32.xlu0 %v1015_v18, %s1065_s20  ;;  %513 = vmatpush1.bf16.msra.mxu1 %v1013_v16 }
  0xa0   : >> { %514 = vmatprep.subr.bf16.mxu1 %v1064_v13  ;;  %373 = vrot.lane.b32.xlu1 %v1016_v19, %s1065_s20 }
  0xa3   : >> { %371 = vrot.lane.b32.xlu0 %v1017_v21, %s1065_s20  ;;  %515 = vmatpush1.bf16.msra.mxu1 %v1014_v17 }
  0xa4   : >> { %516 = vmatprep.subr.bf16.mxu1 %v1064_v13  ;;  %369 = vrot.lane.b32.xlu1 %v1018_v22, %s1065_s20 }
  0xa7   : >> { %613 = vrot.lane.b32.xlu0 %v1011_v14, %s1066_s23  ;;  %517 = vmatpush1.bf16.msra.mxu1 %v1015_v18 }
  0xa8   : >> { %518 = vmatprep.subr.bf16.mxu1 %v1064_v13  ;;  %385 = vrot.lane.b32.xlu1 %v1019_v23, %s1065_s20 }
  0xab   : >> { %611 = vrot.lane.b32.xlu0 %v1012_v15, %s1066_s23  ;;  %519 = vmatpush1.bf16.msra.mxu1 %v1016_v19 }
  0xac   : >> { %520 = vmatprep.subr.bf16.mxu1 %v1064_v13  ;;  %609 = vrot.lane.b32.xlu1 %v1013_v16, %s1066_s23 }
  0xaf   : >> { %607 = vrot.lane.b32.xlu0 %v1014_v17, %s1066_s23  ;;  %521 = vmatpush1.bf16.msra.mxu1 %v1017_v21 }
  0xb0   : >> { %522 = vmatprep.subr.bf16.mxu1 %v1064_v13  ;;  %605 = vrot.lane.b32.xlu1 %v1015_v18, %s1066_s23 }
  0xb3   : >> { %603 = vrot.lane.b32.xlu0 %v1016_v19, %s1066_s23  ;;  %523 = vmatpush1.bf16.msra.mxu1 %v1018_v22 }
  0xb4   : >> { %538 = vmatprep.subr.bf16.mxu1 %v1064_v13  ;;  %601 = vrot.lane.b32.xlu1 %v1017_v21, %s1066_s23 }
  0xb7   : >> { %599 = vrot.lane.b32.xlu0 %v1018_v22, %s1066_s23  ;;  %539 = vmatpush2.bf16.msra.mxu1 %v1019_v23 }
  0xb8   : >> { %968 = vmatprep.subr.bf16.mxu1 %v1064_v13  ;;  %615 = vrot.lane.b32.xlu1 %v1019_v23, %s1066_s23  ;;  %s705_s23 = smul.u32 48, %s1273_s14 }
  0xba   : >> { %541 = vmatmul.mubr.bf16.vlgmr.msra.gmra.mxu1 %v1020_v25  ;;  %s706_s24 = sshra.s32 %s705_s23, 3 }
  0xbb   : >> { %921 = vmatprep.mubr.msk.bf16.mxu1 %vm396_vm0, %v1026_v26  ;;  %s938_s25 = sshll.u32 %s706_s24, 2 }
  0xbc   : >> { %s709_s26 = scalar_lea.vmem %s1121_s6, %s938_s25 }
  0xc2   : >> { %549 = vmatmul.mubr.bf16.gmra.mxu1 %v1028_v27 }
  0xc3   : >> { %922 = vmatprep.mubr.msk.bf16.mxu1 %vm396_vm0, %v1029_v28 }
  0xca   : >> { %557 = vmatmul.mubr.bf16.gmra.mxu1 %v1031_v29 }
  0xcb   : >> { %936 = vmatprep.mubr.msk.bf16.mxu1 %vm396_vm0, %v1037_v30 }
 0x109   : >> { %v384_v31 = vpop.permute.xlu0 %383 }
 0x10a   : >> { %407 = vmatpush1.bf16.msra.mxu0 %v384_v31  ;;  %v380_v32 = vpop.permute.xlu1 %379 }
 0x10b   : >> { %408 = vmatprep.subr.bf16.mxu0 %v1064_v13 }
 0x10d   : >> { %v382_v33 = vpop.permute.xlu0 %381 }
 0x10e   : >> { %409 = vmatpush1.bf16.msra.mxu0 %v382_v33  ;;  %v378_v34 = vpop.permute.xlu1 %377 }
 0x10f   : >> { %410 = vmatprep.subr.bf16.mxu0 %v1064_v13 }
 0x111   : >> { %v376_v35 = vpop.permute.xlu0 %375 }
 0x112   : >> { %411 = vmatpush1.bf16.msra.mxu0 %v380_v32  ;;  %v374_v36 = vpop.permute.xlu1 %373 }
 0x113   : >> { %412 = vmatprep.subr.bf16.mxu0 %v1064_v13 }
 0x115   : >> { %v372_v37 = vpop.permute.xlu0 %371 }
 0x116   : >> { %413 = vmatpush1.bf16.msra.mxu0 %v378_v34  ;;  %v370_v38 = vpop.permute.xlu1 %369 }
 0x117   : >> { %414 = vmatprep.subr.bf16.mxu0 %v1064_v13 }
 0x119   : >> { %v614_v39 = vpop.permute.xlu0 %613 }
 0x11a   : >> { %415 = vmatpush1.bf16.msra.mxu0 %v376_v35  ;;  %977 = vmatpush1.bf16.msra.mxu1 %v614_v39  ;;  %v386_v40 = vpop.permute.xlu1 %385 }
 0x11b   : >> { %416 = vmatprep.subr.bf16.mxu0 %v1064_v13  ;;  %969 = vmatprep.subr.bf16.mxu1 %v1064_v13 }
 0x11d   : >> { %v612_v41 = vpop.permute.xlu0 %611 }
 0x11e   : >> { %417 = vmatpush1.bf16.msra.mxu0 %v374_v36  ;;  %978 = vmatpush1.bf16.msra.mxu1 %v612_v41  ;;  %v610_v42 = vpop.permute.xlu1 %609 }
 0x11f   : >> { %418 = vmatprep.subr.bf16.mxu0 %v1064_v13  ;;  %970 = vmatprep.subr.bf16.mxu1 %v1064_v13 }
 0x121   : >> { %v608_v43 = vpop.permute.xlu0 %607 }
 0x122   : >> { %419 = vmatpush1.bf16.msra.mxu0 %v372_v37  ;;  %979 = vmatpush1.bf16.msra.mxu1 %v610_v42  ;;  %v606_v44 = vpop.permute.xlu1 %605 }
 0x123   : >> { %420 = vmatprep.subr.bf16.mxu0 %v1064_v13  ;;  %971 = vmatprep.subr.bf16.mxu1 %v1064_v13 }
 0x125   : >> { %v604_v46 = vpop.permute.xlu0 %603 }
 0x126   : >> { %421 = vmatpush1.bf16.msra.mxu0 %v370_v38  ;;  %980 = vmatpush1.bf16.msra.mxu1 %v608_v43  ;;  %v602_v48 = vpop.permute.xlu1 %601 }
 0x127   : >> { %436 = vmatprep.subr.bf16.mxu0 %v1064_v13  ;;  %972 = vmatprep.subr.bf16.mxu1 %v1064_v13 }
 0x129   : >> { %v600_v50 = vpop.permute.xlu0 %599 }
 0x12a   : >> { %437 = vmatpush2.bf16.msra.mxu0 %v386_v40  ;;  %981 = vmatpush1.bf16.msra.mxu1 %v606_v44  ;;  %v616_v52 = vpop.permute.xlu1 %615 }
 0x12b   : >> { %635 = vmatprep.subr.bf16.mxu0 %v1064_v13  ;;  %973 = vmatprep.subr.bf16.mxu1 %v1064_v13 }
 0x12d   : >> { %439 = vmatmul.mubr.bf16.vlgmr.msra.gmra.mxu0 %v1023_v45 }
 0x12e   : >> { %636 = vmatpush1.bf16.msra.mxu0 %v614_v39  ;;  %982 = vmatpush1.bf16.msra.mxu1 %v604_v46 }
 0x12f   : >> { %637 = vmatprep.subr.bf16.mxu0 %v1064_v13  ;;  %974 = vmatprep.subr.bf16.mxu1 %v1064_v13 }
 0x130   : >> { %912 = vmatprep.mubr.msk.bf16.mxu0 %vm396_vm0, %v1032_v47 }
 0x132   : >> { %638 = vmatpush1.bf16.msra.mxu0 %v612_v41  ;;  %983 = vmatpush1.bf16.msra.mxu1 %v602_v48 }
 0x133   : >> { %639 = vmatprep.subr.bf16.mxu0 %v1064_v13  ;;  %975 = vmatprep.subr.bf16.mxu1 %v1064_v13 }
 0x135   : >> { %447 = vmatmul.mubr.bf16.gmra.mxu0 %v1034_v49 }
 0x136   : >> { %640 = vmatpush1.bf16.msra.mxu0 %v610_v42  ;;  %984 = vmatpush1.bf16.msra.mxu1 %v600_v50 }
 0x137   : >> { %641 = vmatprep.subr.bf16.mxu0 %v1064_v13  ;;  %976 = vmatprep.subr.bf16.mxu1 %v1064_v13 }
 0x138   : >> { %913 = vmatprep.mubr.msk.bf16.mxu0 %vm396_vm0, %v1038_v51 }
 0x13a   : >> { %642 = vmatpush1.bf16.msra.mxu0 %v608_v43  ;;  %985 = vmatpush2.bf16.msra.mxu1 %v616_v52 }
 0x13b   : >> { %643 = vmatprep.subr.bf16.mxu0 %v1064_v13 }
 0x13d   : >> { %676 = vmatmul.mubr.bf16.vlgmr.msra.gmra.mxu1 %v1035_v53  ;;  %455 = vmatmul.mubr.bf16.gmra.mxu0 %v1040_v54 }
 0x13e   : >> { %644 = vmatpush1.bf16.msra.mxu0 %v606_v44  ;;  %937 = vmatprep.mubr.msk.bf16.mxu1 %vm396_vm0, %v1041_v55  ;;  %v966_v55 = vld [vmem:[%s709_s26 + $0x8] sm:$0xff]  }
 0x13f   : >> { %645 = vmatprep.subr.bf16.mxu0 %v1064_v13  ;;  %935 = vmatprep.mubr.msk.bf16.mxu0 %vm396_vm0, %v1046_v56  ;;  %v960_v56 = vunpack.c.l.bf16 %v966_v55 }
 0x142   : >> { %646 = vmatpush1.bf16.msra.mxu0 %v604_v46 }
 0x143   : >> { %647 = vmatprep.subr.bf16.mxu0 %v1064_v13 }
 0x145   : >> { %684 = vmatmul.mubr.bf16.gmra.mxu1 %v1043_v57 }
 0x146   : >> { %648 = vmatpush1.bf16.msra.mxu0 %v602_v48 }
 0x147   : >> { %649 = vmatprep.subr.bf16.mxu0 %v1064_v13 }
 0x14a   : >> { %650 = vmatpush1.bf16.msra.mxu0 %v600_v50 }
 0x14b   : >> { %665 = vmatprep.subr.bf16.mxu0 %v1064_v13 }
 0x14e   : >> { %666 = vmatpush2.bf16.msra.mxu0 %v616_v52 }
 0x151   : >> { %668 = vmatmul.mubr.bf16.vlgmr.msra.gmra.mxu0 %v1044_v58 }
 0x17a   : >> { %v542_v59 = vpop.f32.mrf.mxu1 }
 0x17c   : >> { %v544_v60 = vpop.f32.mrf.mxu1 }
 0x17e   : >> { %v545_v61 = vpop.f32.mrf.mxu1 }
 0x180   : >> { %v547_v62 = vpop.f32.mrf.mxu1 }
 0x182   : >> { %v550_v63 = vpop.f32.mrf.mxu1 }
 0x184   : >> { %v552_v0 = vpop.f32.mrf.mxu1 }
 0x186   : >> { %v553_v1 = vpop.f32.mrf.mxu1 }
 0x188   : >> { %v555_v2 = vpop.f32.mrf.mxu1 }
 0x189   : >> { %v955_v2 = vld [vmem:[%s709_s26] sm:$0xff]  }
 0x18a   : >> { %v558_v3 = vpop.f32.mrf.mxu1 }
 0x18c   : >> { %v560_v4 = vpop.f32.mrf.mxu1 }
 0x18d   : >> { %v967_v4 = vld [vmem:[%s709_s26 + $0x10] sm:$0xff]  }
 0x18e   : >> { %v561_v5 = vpop.f32.mrf.mxu1 }
 0x190   : >> { %v563_v6 = vpop.f32.mrf.mxu1 }
 0x1ed   : >> { %v440_v14 = vpop.f32.mrf.mxu0 }
 0x1ee   : >> { %v543_v39 = vadd.f32 %v542_v59, %v440_v14  ;;  %v961_v59 = vunpack.c.h.bf16 %v966_v55  ;;  %v957_v14 = vunpack.c.h.bf16 %v955_v2 }
 0x1ef   : >> { %v442_v13 = vpop.f32.mrf.mxu0 }
 0x1f0   : >> { %v964_v13 = vunpack.c.l.bf16 %v967_v4 }
 0x1f1   : >> { %v443_v15 = vpop.f32.mrf.mxu0 }
 0x1f2   : >> { %v546_v44 = vadd.f32 %v545_v61, %v443_v15 }
 0x1f3   : >> { %v445_v16 = vpop.f32.mrf.mxu0 }
 0x1f5   : >> { %v448_v17 = vpop.f32.mrf.mxu0 }
 0x1f6   : >> { %v551_v20 = vadd.f32 %v550_v63, %v448_v17 }
 0x1f7   : >> { %v450_v18 = vpop.f32.mrf.mxu0 }
 0x1f9   : >> { %v451_v19 = vpop.f32.mrf.mxu0 }
 0x1fa   : >> { %v554_v27 = vadd.f32 %v553_v1, %v451_v19 }
 0x1fb   : >> { %v453_v21 = vpop.f32.mrf.mxu0 }
 0x1fc   : >> { %v965_v21 = vunpack.c.h.bf16 %v967_v4 }
 0x1fd   : >> { %v677_v22 = vpop.f32.mrf.mxu1  ;;  %v456_v23 = vpop.f32.mrf.mxu0 }
 0x1fe   : >> { %v694_v24 = vadd.f32 %v677_v22, %v551_v20  ;;  %v559_v40 = vadd.f32 %v558_v3, %v456_v23  ;;  %v956_v3 = vunpack.c.l.bf16 %v955_v2 }
 0x1ff   : >> { %v679_v25 = vpop.f32.mrf.mxu1  ;;  %v458_v26 = vpop.f32.mrf.mxu0 }
 0x200   : >> { %v700_v28 = vadd.f32 %v694_v24, %v1134_v7 }
 0x201   : >> { %v680_v29 = vpop.f32.mrf.mxu1  ;;  %v459_v30 = vpop.f32.mrf.mxu0 }
 0x202   : >> { %v695_v31 = vadd.f32 %v680_v29, %v554_v27  ;;  %732 = vrot.lane.b32.xlu0 %v700_v28, %s1067_s22  ;;  %v562_v48 = vadd.f32 %v561_v5, %v459_v30 }
 0x203   : >> { %v682_v32 = vpop.f32.mrf.mxu1  ;;  %v461_v33 = vpop.f32.mrf.mxu0 }
 0x204   : >> { %v701_v34 = vadd.f32 %v695_v31, %v1138_v9 }
 0x205   : >> { %v685_v35 = vpop.f32.mrf.mxu1 }
 0x206   : >> { %734 = vrot.lane.b32.xlu1 %v701_v34, %s1067_s22  ;;  %v696_v45 = vadd.f32 %v685_v35, %v559_v40 }
 0x207   : >> { %v687_v36 = vpop.f32.mrf.mxu1 }
 0x208   : >> { %v702_v51 = vadd.f32 %v696_v45, %v1144_v12 }
 0x209   : >> { %v688_v37 = vpop.f32.mrf.mxu1 }
 0x20a   : >> { %v697_v52 = vadd.f32 %v688_v37, %v562_v48 }
 0x20b   : >> { %v690_v38 = vpop.f32.mrf.mxu1 }
 0x20c   : >> { %v703_v54 = vadd.f32 %v697_v52, %v1142_v11 }
 0x211   : >> { %v669_v41 = vpop.f32.mrf.mxu0 }
 0x212   : >> { %v692_v42 = vadd.f32 %v669_v41, %v543_v39 }
 0x213   : >> { %v671_v43 = vpop.f32.mrf.mxu0 }
 0x214   : >> { %v698_v46 = vadd.f32 %v692_v42, %v1136_v8 }
 0x215   : >> { %v672_v47 = vpop.f32.mrf.mxu0 }
 0x216   : >> { %v693_v49 = vadd.f32 %v672_v47, %v546_v44  ;;  %728 = vrot.lane.b32.xlu0 %v698_v46, %s1067_s22 }
 0x217   : >> { %v674_v50 = vpop.f32.mrf.mxu0 }
 0x218   : >> { %v699_v53 = vadd.f32 %v693_v49, %v1140_v10 }
 0x21a   : >> { %730 = vrot.lane.b32.xlu1 %v699_v53, %s1067_s22  ;;  %736 = vrot.lane.b32.xlu0 %v702_v51, %s1067_s22 }
 0x21e   : >> { %738 = vrot.lane.b32.xlu1 %v703_v54, %s1067_s22 }
 0x274   : >> { %v733_v57 = vpop.permute.xlu0 %732 }
 0x275   : >> { %v748_v58 = vsub.f32 %v960_v56, %v733_v57 }
 0x277   : >> { %v754_v60 = vmax.f32 %v748_v58, 0.0 }
 0x278   : >> { %v735_v61 = vpop.permute.xlu1 %734 }
 0x279   : >> { %v950_v62 = vpack.c.bf16 %v754_v60, %v754_v60  ;;  %v749_v63 = vsub.f32 %v961_v59, %v735_v61 }
 0x27b   : >> { %v755_v0 = vmax.f32 %v749_v63, 0.0  ;;  %780 = vrot.lane.b32.xlu0 %v950_v62, %s1065_s20 }
 0x27d   : >> { %v951_v1 = vpack.c.bf16 %v755_v0, %v755_v0 }
 0x27f   : >> { %782 = vrot.lane.b32.xlu1 %v951_v1, %s1065_s20 }
 0x288   : >> { %v729_v5 = vpop.permute.xlu0 %728 }
 0x289   : >> { %v746_v6 = vsub.f32 %v956_v3, %v729_v5 }
 0x28b   : >> { %v752_v15 = vmax.f32 %v746_v6, 0.0 }
 0x28c   : >> { %v731_v16 = vpop.permute.xlu1 %730  ;;  %v737_v17 = vpop.permute.xlu0 %736 }
 0x28d   : >> { %v948_v18 = vpack.c.bf16 %v752_v15, %v752_v15  ;;  %v747_v19 = vsub.f32 %v957_v14, %v731_v16  ;;  %v750_v20 = vsub.f32 %v964_v13, %v737_v17 }
 0x28f   : >> { %v753_v22 = vmax.f32 %v747_v19, 0.0  ;;  %v756_v23 = vmax.f32 %v750_v20, 0.0  ;;  %776 = vrot.lane.b32.xlu0 %v948_v18, %s1065_s20 }
 0x290   : >> { %v739_v24 = vpop.permute.xlu1 %738 }
 0x291   : >> { %v949_v25 = vpack.c.bf16 %v753_v22, %v753_v22  ;;  %v952_v26 = vpack.c.bf16 %v756_v23, %v756_v23  ;;  %v751_v27 = vsub.f32 %v965_v21, %v739_v24 }
 0x293   : >> { %v757_v28 = vmax.f32 %v751_v27, 0.0  ;;  %778 = vrot.lane.b32.xlu1 %v949_v25, %s1065_s20  ;;  %784 = vrot.lane.b32.xlu0 %v952_v26, %s1065_s20 }
 0x295   : >> { %v953_v29 = vpack.c.bf16 %v757_v28, %v757_v28 }
 0x297   : >> { %786 = vrot.lane.b32.xlu1 %v953_v29, %s1065_s20 }
 0x2ed   : >> { %v781_v30 = vpop.permute.xlu0 %780 }
 0x2ee   : >> { %799 = vst.msk [vmem:[%s795_s27 + $0x8] sm:$0xf] %vm796_vm1, %v781_v30 }
 0x2f1   : >> { %v783_v31 = vpop.permute.xlu1 %782 }
 0x2f2   : >> { %800 = vst.msk [vmem:[%s795_s27 + $0xc] sm:$0xf] %vm796_vm1, %v783_v31 }
 0x301   : >> { %v777_v32 = vpop.permute.xlu0 %776 }
 0x302   : >> { %797 = vst.msk [vmem:[%s795_s27] sm:$0xf] %vm796_vm1, %v777_v32 }
 0x305   : >> { %v779_v33 = vpop.permute.xlu1 %778  ;;  %v785_v34 = vpop.permute.xlu0 %784 }
 0x306   : >> { %798 = vst.msk [vmem:[%s795_s27 + $0x4] sm:$0xf] %vm796_vm1, %v779_v33  ;;  %801 = vst.msk [vmem:[%s795_s27 + $0x10] sm:$0xf] %vm796_vm1, %v785_v34  ;;  %259 = sbr.rel (!%p257_p4) target bundleno = 145 (0x91), region = 81 }
 0x309   : >> { %v787_v35 = vpop.permute.xlu1 %786 }
 0x30a   : >> { %802 = vst.msk [vmem:[%s795_s27 + $0x14] sm:$0xf] %vm796_vm1, %v787_v35 }
 0x30b PF: > { %s14_s15 = sadd.s32 1, %s1057_s15  }
 0x30c   : > { %p11_p5 = scmp.ge.s32.totalorder %s14_s15, 4  }
 0x30e   :  { %13 = sbr.rel (!%p11_p5) target bundleno = 1 (0x1), region = 92 }

// kernel: forward.23
= control target key start
LH: loop header
LB: loop body
LE: loop exit
PB: predicated region body
PF: predicated region fallthrough
CT: control target
= control target key end

     0   :  { %s773_s6 = smov 0   ;;  %s1079_s0 = inlined_call_operand.vmem [shape: bf16[2,4752,99], index: 0, kind: input, shape index: {}]   ;;  %s1080_s1 = inlined_call_operand.vmem [shape: bf16[2,2448,51], index: 1, kind: output, shape index: {}]  }
   0x1 LB: > { %s539_s7 = sadd.s32 4294967295, %s752_s6   ;;  %p543_p0 = scmp.ge.s32.totalorder %s752_s6, 1  ;;  %s752_s6 = sphi %s773_s6, %s11_s6  }
   0x2   : > { %p87_p1 = scmp.lt.s32.totalorder %s752_s6, 3 }
   0x4   : > { %p88_p2 = pnand %p543_p0, %p87_p1 }
   0x5   : > { %p107_p3 = scmp.lt.s32.totalorder (!%p88_p2), %s539_s7, 1  ;;  %s883_s16 = smov (!%p88_p2), 0  }
   0x6   : > { %91 = sbr.rel (%p88_p2) target bundleno = 385 (0x181), region = 24 }
   0xb   : > { %v118_v0 = vlaneseq  ;;  %s1129_s7 = smov (!%p107_p3, %s539_s7), 1  ;;  %vm1081_vm0 = vcmask 412672   ;;  %v758_v4 = vmov 0   ;;  %v1089_v13 = vmov 0 }
   0xc   : > { %s719_s8 = smul.u32 2376, %s1129_s7  ;;  %v1091_v15 = vmov 0  ;;  %v1093_v17 = vmov 0  ;;  %v1095_v19 = vmov 0  ;;  %v1097_v21 = vmov 0 }
   0xd   : > { %v133_v1 = vand.u32 127, %v118_v0  ;;  %s720_s9 = smul.u32 1224, %s1129_s7  ;;  %v119_v2 = vshrl.u32 %v118_v0, 7  ;;  %v1099_v23 = vmov 0  ;;  %v1101_v24 = vmov 0 }
   0xe   : > { %s784_s12 = scalar_lea.vmem %s1079_s0, %s719_s8  ;;  %v1103_v25 = vmov 0  ;;  %v1111_v29 = vmov 0  ;;  %v759_v30 = vmov 0.0  }
   0xf   : > { %s789_s15 = scalar_lea.vmem %s1080_s1, %s720_s9  ;;  %v791_v3 = vmul.u32 2, %v133_v1  ;;  %v120_v5 = vadd.s32 8, %v119_v2  ;;  %v121_v6 = vadd.s32 16, %v119_v2  ;;  %v122_v7 = vadd.s32 24, %v119_v2 }
  0x10   : > { %202 = vst.msk [vmem:[%s789_s15] sm:$0xf] %vm1081_vm0, %v758_v4  ;;  %203 = vst.msk [vmem:[%s789_s15 + $0x4] sm:$0xf] %vm1081_vm0, %v758_v4  ;;  %v123_v8 = vadd.s32 32, %v119_v2  ;;  %v124_v10 = vadd.s32 40, %v119_v2 }
  0x11   : > { %204 = vst.msk [vmem:[%s789_s15 + $0x8] sm:$0xf] %vm1081_vm0, %v758_v4  ;;  %205 = vst.msk [vmem:[%s789_s15 + $0xc] sm:$0xf] %vm1081_vm0, %v758_v4  ;;  %vm135_vm1 = vcmp.ge.s32.totalorder %v119_v2, %v791_v3  ;;  %v148_v9 = vadd.s32 3, %v791_v3  ;;  %v125_v11 = vadd.s32 48, %v119_v2  ;;  %vm136_vm2 = vcmp.ge.s32.totalorder %v120_v5, %v791_v3 }
  0x12   : > { %206 = vst.msk [vmem:[%s789_s15 + $0x10] sm:$0xf] %vm1081_vm0, %v758_v4  ;;  %207 = vst.msk [vmem:[%s789_s15 + $0x14] sm:$0xf] %vm1081_vm0, %v758_v4  ;;  %vm137_vm3 = vcmp.ge.s32.totalorder %v121_v6, %v791_v3  ;;  %v126_v12 = vadd.s32 56, %v119_v2  ;;  %vm138_vm7 = vcmp.ge.s32.totalorder %v122_v7, %v791_v3  ;;  %v127_v14 = vadd.s32 64, %v119_v2 }
  0x13   : > { %208 = vst.msk [vmem:[%s789_s15 + $0x4b0] sm:$0xf] %vm1081_vm0, %v758_v4  ;;  %209 = vst.msk [vmem:[%s789_s15 + $0x4b4] sm:$0xf] %vm1081_vm0, %v758_v4  ;;  %vm149_vm4 = vcmp.lt.s32.totalorder %v119_v2, %v148_v9  ;;  %vm150_vm5 = vcmp.lt.s32.totalorder %v120_v5, %v148_v9  ;;  %vm151_vm6 = vcmp.lt.s32.totalorder %v121_v6, %v148_v9  ;;  %v128_v16 = vadd.s32 72, %v119_v2 }
  0x14   : > { %210 = vst.msk [vmem:[%s789_s15 + $0x4b8] sm:$0xf] %vm1081_vm0, %v758_v4  ;;  %211 = vst.msk [vmem:[%s789_s15 + $0x4bc] sm:$0xf] %vm1081_vm0, %v758_v4  ;;  %vm152_vm8 = vcmp.lt.s32.totalorder %v122_v7, %v148_v9  ;;  %vm139_vm10 = vcmp.ge.s32.totalorder %v123_v8, %v791_v3  ;;  %vm153_vm11 = vcmp.lt.s32.totalorder %v123_v8, %v148_v9  ;;  %v129_v18 = vadd.s32 80, %v119_v2 }
  0x15   : > { %212 = vst.msk [vmem:[%s789_s15 + $0x4c0] sm:$0xf] %vm1081_vm0, %v758_v4  ;;  %213 = vst.msk [vmem:[%s789_s15 + $0x4c4] sm:$0xf] %vm1081_vm0, %v758_v4  ;;  %vm140_vm13 = vcmp.ge.s32.totalorder %v124_v10, %v791_v3  ;;  %vm154_vm14 = vcmp.lt.s32.totalorder %v124_v10, %v148_v9  ;;  %v130_v20 = vadd.s32 88, %v119_v2  ;;  %v131_v22 = vadd.s32 96, %v119_v2 }
  0x16   : > { %vm822_vm9 = vmand %vm135_vm1, %vm149_vm4  ;;  %vm141_vm1 = vcmp.ge.s32.totalorder %v125_v11, %v791_v3  ;;  %vm155_vm4 = vcmp.lt.s32.totalorder %v125_v11, %v148_v9 }
  0x17   : > { %v1090_v13 = vsel %vm822_vm9, 4294967295, %v1089_v13  ;;  %vm827_vm12 = vmand %vm136_vm2, %vm150_vm5  ;;  %vm142_vm2 = vcmp.ge.s32.totalorder %v126_v12, %v791_v3  ;;  %vm156_vm5 = vcmp.lt.s32.totalorder %v126_v12, %v148_v9 }
  0x18   : > { %v1092_v15 = vsel %vm827_vm12, 4294967295, %v1091_v15  ;;  %vm834_vm15 = vmand %vm137_vm3, %vm151_vm6  ;;  %vm143_vm3 = vcmp.ge.s32.totalorder %v127_v14, %v791_v3  ;;  %vm157_vm6 = vcmp.lt.s32.totalorder %v127_v14, %v148_v9 }
  0x19   : > { %v1094_v17 = vsel %vm834_vm15, 4294967295, %v1093_v17  ;;  %vm839_vm0 = vmand %vm138_vm7, %vm152_vm8  ;;  %vm144_vm7 = vcmp.ge.s32.totalorder %v128_v16, %v791_v3  ;;  %vm158_vm8 = vcmp.lt.s32.totalorder %v128_v16, %v148_v9 }
  0x1a   : > { %v1096_v19 = vsel %vm839_vm0, 4294967295, %v1095_v19  ;;  %vm844_vm9 = vmand %vm139_vm10, %vm153_vm11  ;;  %vm145_vm10 = vcmp.ge.s32.totalorder %v129_v18, %v791_v3  ;;  %vm159_vm11 = vcmp.lt.s32.totalorder %v129_v18, %v148_v9 }
  0x1b   : > { %v1098_v21 = vsel %vm844_vm9, 4294967295, %v1097_v21  ;;  %vm849_vm12 = vmand %vm140_vm13, %vm154_vm14  ;;  %vm146_vm9 = vcmp.ge.s32.totalorder %v130_v20, %v791_v3  ;;  %vm160_vm13 = vcmp.lt.s32.totalorder %v130_v20, %v148_v9 }
  0x1c   : > { %v1100_v23 = vsel %vm849_vm12, 4294967295, %v1099_v23  ;;  %vm854_vm15 = vmand %vm141_vm1, %vm155_vm4  ;;  %vm147_vm12 = vcmp.ge.s32.totalorder %v131_v22, %v791_v3  ;;  %vm161_vm1 = vcmp.lt.s32.totalorder %v131_v22, %v148_v9 }
  0x1d   : > { %v1102_v24 = vsel %vm854_vm15, 4294967295, %v1101_v24  ;;  %vm859_vm0 = vmand %vm142_vm2, %vm156_vm5 }
  0x1e   : > { %v1104_v25 = vsel %vm859_vm0, 4294967295, %v1103_v25  ;;  %vm864_vm14 = vmand %vm143_vm3, %vm157_vm6 }
  0x1f   : > { %vm869_vm4 = vmand %vm144_vm7, %vm158_vm8 }
  0x20   : > { %vm873_vm15 = vmand %vm145_vm10, %vm159_vm11 }
  0x21   : > { %vm877_vm2 = vmand %vm146_vm9, %vm160_vm13 }
  0x22   : > { %v1112_v29 = vsel %vm877_vm2, 4294967295, %v1111_v29  ;;  %vm174_vm5 = vmand %vm147_vm12, %vm161_vm1 }
  0x23   : > { %v881_v31 = vsel %vm174_vm5, 1.0, %v759_v30 }
  0x24 LB: >> { %vm311_vm3 = vcmask 1042432   ;;  %s220_s17 = smul.u32 96, %s756_s16  ;;  %s560_s18 = sshll.u32 %s756_s16, 1  ;;  %v760_v32 = vmov 1.0   ;;  %vm1113_vm2 = vnez %v1112_v29  ;;  %vm1114_vm0 = vnez %v1104_v25  ;;  %s756_s16 = sphi %s883_s16, %s1048_s16  }
  0x25   : >> { %658 = vmatprep.subr.msk.mxu0 %vm311_vm3, %v881_v31  ;;  %693 = vmatprep.subr.msk.mxu1 %vm311_vm3, %v881_v31  ;;  %s244_s19 = sadd.s32 1, %s560_s18  ;;  %s268_s20 = sadd.s32 2, %s560_s18  ;;  %vm1115_vm9 = vnez %v1102_v24  ;;  %vm1116_vm12 = vnez %v1100_v23  ;;  %vm1117_vm6 = vnez %v1098_v21  ;;  %vm1118_vm7 = vnez %v1096_v19 }
  0x26   : >> { %659 = vmatpush3.msk.msra.mxu0 %vm311_vm3, %v881_v31  ;;  %706 = vmatpush3.msk.msra.mxu1 %vm311_vm3, %v881_v31  ;;  %s221_s21 = sshra.s32 %s220_s17, 3  ;;  %s245_s22 = smul.u32 48, %s244_s19  ;;  %vm1119_vm8 = vnez %v1094_v17  ;;  %vm1120_vm10 = vnez %v1092_v15  ;;  %vm292_vm11 = vcmask 809984   ;;  %vm1121_vm13 = vnez %v1090_v13 }
  0x27   : >> { %660 = vmatprep.subr.msk.mxu0 %vm1113_vm2, %v760_v32  ;;  %694 = vmatprep.subr.msk.mxu1 %vm1113_vm2, %v760_v32  ;;  %s559_s23 = sshll.u32 %s221_s21, 2  ;;  %s269_s24 = smul.u32 48, %s268_s20  ;;  %v761_v8 = vmov 0   ;;  %vm1122_vm1 = vcmask 412672  }
  0x28   : >> { %661 = vmatpush3.msk.msra.mxu0 %vm1113_vm2, %v760_v32  ;;  %707 = vmatpush3.msk.msra.mxu1 %vm1113_vm2, %v760_v32  ;;  %s246_s25 = sshra.s32 %s245_s22, 3  ;;  %s224_s28 = scalar_lea.vmem %s784_s12, %s559_s23  ;;  %vm1123_vm5 = vmmov %vm1122_vm1 }
  0x29   : >> { %662 = vmatprep.subr.msk.mxu0 %vm873_vm15, %v760_v32  ;;  %695 = vmatprep.subr.msk.mxu1 %vm873_vm15, %v760_v32  ;;  %s561_s26 = sshll.u32 %s246_s25, 2  ;;  %s270_s27 = sshra.s32 %s269_s24, 3  ;;  %v598_v33 = vld [vmem:[%s224_s28] sm:$0xff]   ;;  %v633_v35 = vld [vmem:[%s224_s28 + $0x8] sm:$0xff]   ;;  %v634_v37 = vld [vmem:[%s224_s28 + $0x10] sm:$0xff]  }
  0x2a   : >> { %663 = vmatpush3.msk.msra.mxu0 %vm873_vm15, %v760_v32  ;;  %708 = vmatpush3.msk.msra.mxu1 %vm873_vm15, %v760_v32  ;;  %s249_s29 = scalar_lea.vmem %s784_s12, %s561_s26  ;;  %s562_s30 = sshll.u32 %s270_s27, 2  ;;  %v599_v39 = vunpack.c.l.bf16 %v598_v33  ;;  %v603_v42 = vunpack.c.l.bf16 %v633_v35  ;;  %v600_v44 = vunpack.c.h.bf16 %v598_v33  ;;  %v604_v46 = vunpack.c.h.bf16 %v633_v35  ;;  %vm1124_vm3 = vmmov %vm1122_vm1 }
  0x2b   : >> { %664 = vmatprep.subr.msk.mxu0 %vm869_vm4, %v760_v32  ;;  %696 = vmatprep.subr.msk.mxu1 %vm869_vm4, %v760_v32  ;;  %v610_v34 = vld [vmem:[%s249_s29] sm:$0xff]   ;;  %s273_s2 = scalar_lea.vmem %s784_s12, %s562_s30  ;;  %v635_v36 = vld [vmem:[%s249_s29 + $0x8] sm:$0xff]   ;;  %v636_v38 = vld [vmem:[%s249_s29 + $0x10] sm:$0xff]   ;;  %v607_v49 = vunpack.c.l.bf16 %v634_v37  ;;  %v608_v53 = vunpack.c.h.bf16 %v634_v37  ;;  %s1048_s16 = sadd.s32 1, %s756_s16  }
  0x2c   : >> { %665 = vmatpush3.msk.msra.mxu0 %vm869_vm4, %v760_v32  ;;  %709 = vmatpush3.msk.msra.mxu1 %vm869_vm4, %v760_v32  ;;  %v611_v40 = vunpack.c.l.bf16 %v610_v34  ;;  %v622_v41 = vld [vmem:[%s273_s2] sm:$0xff]   ;;  %v615_v43 = vunpack.c.l.bf16 %v635_v36  ;;  %v612_v45 = vunpack.c.h.bf16 %v610_v34  ;;  %v616_v47 = vunpack.c.h.bf16 %v635_v36  ;;  %v637_v48 = vld [vmem:[%s273_s2 + $0x8] sm:$0xff]   ;;  %v638_v52 = vld [vmem:[%s273_s2 + $0x10] sm:$0xff]   ;;  %s420_s3 = smul.u32 48, %s1048_s16  ;;  %s762_s8 = smov 1  }
  0x2d   : >> { %666 = vmatprep.subr.msk.mxu0 %vm864_vm14, %v760_v32  ;;  %697 = vmatprep.subr.msk.mxu1 %vm864_vm14, %v760_v32  ;;  %v619_v50 = vunpack.c.l.bf16 %v636_v38  ;;  %v623_v51 = vunpack.c.l.bf16 %v622_v41  ;;  %v624_v55 = vunpack.c.h.bf16 %v622_v41  ;;  %v627_v57 = vunpack.c.l.bf16 %v637_v48  ;;  %p216_p4 = scmp.ge.s32.totalorder %s1048_s16, 49  }
  0x2e   : >> { %667 = vmatpush3.msk.msra.mxu0 %vm864_vm14, %v760_v32  ;;  %710 = vmatpush3.msk.msra.mxu1 %vm864_vm14, %v760_v32  ;;  %v262_v54 = vadd.f32 %v611_v40, %v599_v39  ;;  %v264_v56 = vadd.f32 %v615_v43, %v603_v42  ;;  %v628_v58 = vunpack.c.h.bf16 %v637_v48  ;;  %v263_v59 = vadd.f32 %v612_v45, %v600_v44  ;;  %s421_s4 = sshra.s32 %s420_s3, 3 }
  0x2f   : >> { %668 = vmatprep.subr.msk.mxu0 %vm1114_vm0, %v760_v32  ;;  %698 = vmatprep.subr.msk.mxu1 %vm1114_vm0, %v760_v32  ;;  %v265_v60 = vadd.f32 %v616_v47, %v604_v46  ;;  %v620_v61 = vunpack.c.h.bf16 %v636_v38  ;;  %v266_v62 = vadd.f32 %v619_v50, %v607_v49  ;;  %v631_v63 = vunpack.c.l.bf16 %v638_v52  ;;  %s582_s5 = sshll.u32 %s421_s4, 2 }
  0x30   : >> { %669 = vmatpush3.msk.msra.mxu0 %vm1114_vm0, %v760_v32  ;;  %711 = vmatpush3.msk.msra.mxu1 %vm1114_vm0, %v760_v32  ;;  %v286_v0 = vadd.f32 %v623_v51, %v262_v54  ;;  %v288_v1 = vadd.f32 %v627_v57, %v264_v56  ;;  %v287_v2 = vadd.f32 %v624_v55, %v263_v59  ;;  %v632_v5 = vunpack.c.h.bf16 %v638_v52  ;;  %s1052_s7 = scalar_lea.vmem %s789_s15, %s582_s5  ;;  %vm1126_vm0 = vmmov %vm1122_vm1 }
  0x31   : >> { %670 = vmatprep.subr.msk.mxu0 %vm1115_vm9, %v760_v32  ;;  %699 = vmatprep.subr.msk.mxu1 %vm1115_vm9, %v760_v32  ;;  %v289_v3 = vadd.f32 %v628_v58, %v265_v60  ;;  %v267_v4 = vadd.f32 %v620_v61, %v608_v53  ;;  %v290_v6 = vadd.f32 %v631_v63, %v266_v62  ;;  %vm1127_vm2 = vmmov %vm1126_vm0 }
  0x32   : >> { %671 = vmatpush3.msk.msra.mxu0 %vm1115_vm9, %v760_v32  ;;  %712 = vmatpush3.msk.msra.mxu1 %vm1115_vm9, %v760_v32  ;;  %428 = vst.msk [vmem:[%s1052_s7 + $0xc] sm:$0xf] %vm1122_vm1, %v761_v8 }
  0x33   : >> { %672 = vmatprep.subr.msk.mxu0 %vm1116_vm12, %v760_v32  ;;  %700 = vmatprep.subr.msk.mxu1 %vm1116_vm12, %v760_v32  ;;  %v291_v7 = vadd.f32 %v632_v5, %v267_v4  ;;  %425 = vst.msk [vmem:[%s1052_s7] sm:$0xf] %vm1123_vm5, %v761_v8 }
  0x34   : >> { %673 = vmatpush3.msk.msra.mxu0 %vm1116_vm12, %v760_v32  ;;  %713 = vmatpush3.msk.msra.mxu1 %vm1116_vm12, %v760_v32  ;;  %426 = vst.msk [vmem:[%s1052_s7 + $0x4] sm:$0xf] %vm1124_vm3, %v761_v8 }
  0x35   : >> { %674 = vmatprep.subr.msk.mxu0 %vm1117_vm6, %v760_v32  ;;  %701 = vmatprep.subr.msk.mxu1 %vm1117_vm6, %v760_v32  ;;  %429 = vst.msk [vmem:[%s1052_s7 + $0x10] sm:$0xf] %vm1126_vm0, %v761_v8  ;;  %vm464_vm0 = vcmask 404488  }
  0x36   : >> { %675 = vmatpush3.msk.msra.mxu0 %vm1117_vm6, %v760_v32  ;;  %714 = vmatpush3.msk.msra.mxu1 %vm1117_vm6, %v760_v32  ;;  %430 = vst.msk [vmem:[%s1052_s7 + $0x14] sm:$0xf] %vm1127_vm2, %v761_v8 }
  0x37   : >> { %676 = vmatprep.subr.msk.mxu0 %vm1118_vm7, %v760_v32  ;;  %702 = vmatprep.subr.msk.mxu1 %vm1118_vm7, %v760_v32 }
  0x38   : >> { %677 = vmatpush3.msk.msra.mxu0 %vm1118_vm7, %v760_v32  ;;  %715 = vmatpush3.msk.msra.mxu1 %vm1118_vm7, %v760_v32 }
  0x39   : >> { %678 = vmatprep.subr.msk.mxu0 %vm1119_vm8, %v760_v32  ;;  %703 = vmatprep.subr.msk.mxu1 %vm1119_vm8, %v760_v32 }
  0x3a   : >> { %679 = vmatpush3.msk.msra.mxu0 %vm1119_vm8, %v760_v32  ;;  %716 = vmatpush3.msk.msra.mxu1 %vm1119_vm8, %v760_v32 }
  0x3b   : >> { %680 = vmatprep.subr.msk.mxu0 %vm1120_vm10, %v760_v32  ;;  %704 = vmatprep.subr.msk.mxu1 %vm1120_vm10, %v760_v32 }
  0x3c   : >> { %681 = vmatpush3.msk.msra.mxu0 %vm1120_vm10, %v760_v32  ;;  %717 = vmatpush3.msk.msra.mxu1 %vm1120_vm10, %v760_v32 }
  0x3d   : >> { %682 = vmatprep.subr.msk.mxu0 %vm1121_vm13, %v760_v32  ;;  %705 = vmatprep.subr.msk.mxu1 %vm1121_vm13, %v760_v32 }
  0x3e   : >> { %683 = vmatpush3.msk.msra.mxu0 %vm1121_vm13, %v760_v32  ;;  %718 = vmatpush3.msk.msra.mxu1 %vm1121_vm13, %v760_v32 }
  0x3f   : >> { %684 = vmatprep.mubr.msk.f32.mxu0 %vm292_vm11, %v286_v0  ;;  %687 = vmatprep.mubr.msk.f32.mxu1 %vm292_vm11, %v288_v1 }
  0x40   : >> { %685 = vmatmul.mubr.msk.f32.vlgmr.msra.gmra.mxu0 %vm292_vm11, %v287_v2  ;;  %688 = vmatmul.mubr.msk.f32.vlgmr.msra.gmra.mxu1 %vm292_vm11, %v289_v3 }
  0x41   : >> { %690 = vmatprep.mubr.msk.f32.mxu1 %vm292_vm11, %v290_v6 }
  0x44   : >> { %691 = vmatmul.mubr.msk.f32.gmra.mxu1 %vm292_vm11, %v291_v7  ;;  %vm1125_vm11 = vmmov %vm1122_vm1 }
  0x45   : >> { %427 = vst.msk [vmem:[%s1052_s7 + $0x8] sm:$0xf] %vm1125_vm11, %v761_v8 }
 0x100   : >> { %v686_v9 = vpop.f32.mrf.mxu0  ;;  %v689_v10 = vpop.f32.mrf.mxu1 }
 0x101   : >> { %v411_v11 = vmul.f32 0.11111111, %v686_v9  ;;  %v413_v12 = vmul.f32 0.11111111, %v689_v10 }
 0x102   : >> { %v381_v14 = vpop.f32.mrf.mxu0  ;;  %v391_v16 = vpop.f32.mrf.mxu1 }
 0x103   : >> { %v592_v18 = vpack.c.bf16 %v411_v11, %v411_v11  ;;  %v594_v20 = vpack.c.bf16 %v413_v12, %v413_v12  ;;  %v410_v22 = vmul.f32 0.11111111, %v381_v14  ;;  %v412_v30 = vmul.f32 0.11111111, %v391_v16 }
 0x104   : >> { %v692_v32 = vpop.f32.mrf.mxu1 }
 0x105   : >> { %452 = vrot.lane.b32.xlu1 %v594_v20, %s762_s8  ;;  %448 = vrot.lane.b32.xlu0 %v592_v18, %s762_s8  ;;  %v591_v34 = vpack.c.bf16 %v410_v22, %v410_v22  ;;  %v593_v35 = vpack.c.bf16 %v412_v30, %v412_v30  ;;  %v415_v36 = vmul.f32 0.11111111, %v692_v32 }
 0x106   : >> { %v401_v33 = vpop.f32.mrf.mxu1 }
 0x107   : >> { %v414_v37 = vmul.f32 0.11111111, %v401_v33  ;;  %v596_v38 = vpack.c.bf16 %v415_v36, %v415_v36 }
 0x109   : >> { %450 = vrot.lane.b32.xlu1 %v593_v35, %s762_s8  ;;  %446 = vrot.lane.b32.xlu0 %v591_v34, %s762_s8  ;;  %v595_v39 = vpack.c.bf16 %v414_v37, %v414_v37 }
 0x10d   : >> { %456 = vrot.lane.b32.xlu1 %v596_v38, %s762_s8  ;;  %454 = vrot.lane.b32.xlu0 %v595_v39, %s762_s8 }
 0x177   : >> { %v453_v40 = vpop.permute.xlu1 %452  ;;  %v449_v41 = vpop.permute.xlu0 %448 }
 0x178   : >> { %468 = vst.msk [vmem:[%s1052_s7 + $0xc] sm:$0xf] %vm464_vm0, %v453_v40  ;;  %466 = vst.msk [vmem:[%s1052_s7 + $0x4] sm:$0xf] %vm464_vm0, %v449_v41 }
 0x17b   : >> { %v451_v42 = vpop.permute.xlu1 %450  ;;  %v447_v43 = vpop.permute.xlu0 %446 }
 0x17c   : >> { %467 = vst.msk [vmem:[%s1052_s7 + $0x8] sm:$0xf] %vm464_vm0, %v451_v42  ;;  %465 = vst.msk [vmem:[%s1052_s7] sm:$0xf] %vm464_vm0, %v447_v43  ;;  %218 = sbr.rel (!%p216_p4) target bundleno = 36 (0x24), region = 65 }
 0x17f   : >> { %v457_v44 = vpop.permute.xlu1 %456  ;;  %v455_v45 = vpop.permute.xlu0 %454 }
 0x180   : >> { %470 = vst.msk [vmem:[%s1052_s7 + $0x14] sm:$0xf] %vm464_vm0, %v457_v44  ;;  %469 = vst.msk [vmem:[%s1052_s7 + $0x10] sm:$0xf] %vm464_vm0, %v455_v45 }
 0x181 PF: > { %s11_s6 = sadd.s32 1, %s752_s6  }
 0x182   : > { %p8_p5 = scmp.ge.s32.totalorder %s11_s6, 4  }
 0x184   :  { %10 = sbr.rel (!%p8_p5) target bundleno = 1 (0x1), region = 76 }

// kernel: forward.24
= control target key start
LH: loop header
LB: loop body
LE: loop exit
PB: predicated region body
PF: predicated region fallthrough
CT: control target
= control target key end

     0   :  { %s985_s12 = smov 0   ;;  %s1222_s0 = inlined_call_operand.vmem [shape: bf16[2,2448,51], index: 0, kind: input, shape index: {}]   ;;  %s1223_s1 = inlined_call_operand.vmem [shape: bf16[3,48,144], index: 1, kind: input, shape index: {}]   ;;  %s1224_s2 = inlined_call_operand.vmem [shape: f32[48,1], index: 2, kind: input, shape index: {}]   ;;  %s1225_s3 = inlined_call_operand.vmem [shape: bf16[2,2448,51], index: 3, kind: output, shape index: {}]  }
   0x1 LB: > { %s795_s13 = sadd.s32 4294967295, %s954_s12   ;;  %p799_p0 = scmp.ge.s32.totalorder %s954_s12, 1  ;;  %s954_s12 = sphi %s985_s12, %s13_s12  }
   0x2   : > { %p137_p1 = scmp.lt.s32.totalorder %s954_s12, 3 }
   0x4   : > { %p138_p2 = pnand %p799_p0, %p137_p1 }
   0x5   : > { %p161_p3 = scmp.lt.s32.totalorder (!%p138_p2), %s795_s13, 1  ;;  %s1057_s6 = smov (!%p138_p2), 0  }
   0x6   : > { %141 = sbr.rel (%p138_p2) target bundleno = 662 (0x296), region = 32 }
   0xb   : > { %v174_v0 = vld [vmem:[%s1224_s2 + $0x10] sm:$0xff]  ;;  %v172_v1 = vld [vmem:[%s1224_s2] sm:$0xff]  ;;  %v960_v2 = vmov 0   ;;  %s1227_s13 = smov (!%p161_p3, %s795_s13), 1  ;;  %v175_v3 = vld [vmem:[%s1224_s2 + $0x18] sm:$0xff]  ;;  %vm208_vm0 = vcmask 412672  }
   0xc   : > { %907 = vset.pattern.permute.xlu1 %v960_v2  ;;  %906 = vset.pattern.permute.xlu0 %v960_v2  ;;  %v173_v4 = vld [vmem:[%s1224_s2 + $0x8] sm:$0xff]  ;;  %s884_s22 = smul.u32 1224, %s1227_s13  ;;  %v176_v6 = vld [vmem:[%s1224_s2 + $0x20] sm:$0xff] }
   0xd   : > { %190 = vperm.xlu1 %907, %v174_v0   ;;  %180 = vperm.xlu0 %906, %v172_v1   ;;  %v177_v5 = vld [vmem:[%s1224_s2 + $0x28] sm:$0xff] }
   0xe   : > { %s1008_s25 = scalar_lea.vmem %s1222_s0, %s884_s22  ;;  %s1013_s28 = scalar_lea.vmem %s1225_s3, %s884_s22 }
   0xf   : > { %209 = vst.msk [vmem:[%s1013_s28] sm:$0xf] %vm208_vm0, %v960_v2  ;;  %210 = vst.msk [vmem:[%s1013_s28 + $0x4] sm:$0xf] %vm208_vm0, %v960_v2 }
  0x10   : > { %211 = vst.msk [vmem:[%s1013_s28 + $0x8] sm:$0xf] %vm208_vm0, %v960_v2  ;;  %212 = vst.msk [vmem:[%s1013_s28 + $0xc] sm:$0xf] %vm208_vm0, %v960_v2 }
  0x11   : > { %195 = vperm.xlu1 %907, %v175_v3   ;;  %185 = vperm.xlu0 %906, %v173_v4   ;;  %213 = vst.msk [vmem:[%s1013_s28 + $0x10] sm:$0xf] %vm208_vm0, %v960_v2  ;;  %214 = vst.msk [vmem:[%s1013_s28 + $0x14] sm:$0xf] %vm208_vm0, %v960_v2 }
  0x12   : > { %215 = vst.msk [vmem:[%s1013_s28 + $0x4b0] sm:$0xf] %vm208_vm0, %v960_v2  ;;  %216 = vst.msk [vmem:[%s1013_s28 + $0x4b4] sm:$0xf] %vm208_vm0, %v960_v2 }
  0x13   : > { %217 = vst.msk [vmem:[%s1013_s28 + $0x4b8] sm:$0xf] %vm208_vm0, %v960_v2  ;;  %218 = vst.msk [vmem:[%s1013_s28 + $0x4bc] sm:$0xf] %vm208_vm0, %v960_v2 }
  0x14   : > { %219 = vst.msk [vmem:[%s1013_s28 + $0x4c0] sm:$0xf] %vm208_vm0, %v960_v2  ;;  %220 = vst.msk [vmem:[%s1013_s28 + $0x4c4] sm:$0xf] %vm208_vm0, %v960_v2 }
  0x15   : > { %205 = vperm.xlu1 %907, %v177_v5   ;;  %200 = vperm.xlu0 %906, %v176_v6  }
  0x88   : > { %v1045_v7 = vpop.permute.xlu1 %190  ;;  %v1047_v8 = vpop.permute.xlu0 %180 }
  0x8c   : > { %v1049_v9 = vpop.permute.xlu1 %195  ;;  %v1051_v10 = vpop.permute.xlu0 %185 }
  0x90   : > { %v1053_v11 = vpop.permute.xlu1 %205  ;;  %v1055_v12 = vpop.permute.xlu0 %200 }
  0x91 LB: >> { %v961_v13 = vmov 0   ;;  %s227_s7 = smul.u32 48, %s958_s6  ;;  %s962_s11 = smov 127   ;;  %vm362_vm1 = vcmask 130048   ;;  %v919_v20 = vld [vmem:[%s1223_s1 + $0x4] ss:$8 sps:$4 sm:$0xff]   ;;  %s958_s6 = sphi %s1057_s6, %s1173_s6  }
  0x92   : >> { %474 = vmatprep.subr.bf16.mxu1 %v961_v13  ;;  %372 = vmatprep.subr.bf16.mxu0 %v961_v13  ;;  %s963_s15 = smov 126   ;;  %v922_v24 = vld [vmem:[%s1223_s1 + $0x34] ss:$8 sps:$4 sm:$0xff]   ;;  %v917_v25 = vld [vmem:[%s1223_s1] ss:$8 sps:$4 sm:$0xff]   ;;  %s1173_s6 = sadd.s32 1, %s958_s6  }
  0x93   : >> { %s228_s8 = sshra.s32 %s227_s7, 3  ;;  %833 = vmatprep.mubr.msk.bf16.mxu1 %vm362_vm1, %v919_v20  ;;  %824 = vmatprep.mubr.msk.bf16.mxu0 %vm362_vm1, %v922_v24  ;;  %v923_v26 = vld [vmem:[%s1223_s1 + $0x14] ss:$8 sps:$4 sm:$0xff]   ;;  %v925_v27 = vld [vmem:[%s1223_s1 + $0x10] ss:$8 sps:$4 sm:$0xff]   ;;  %s680_s29 = smul.u32 48, %s1173_s6 }
  0x94   : >> { %s802_s9 = sshll.u32 %s228_s8, 2  ;;  %v926_v28 = vld [vmem:[%s1223_s1 + $0x24] ss:$8 sps:$4 sm:$0xff]   ;;  %v928_v29 = vld [vmem:[%s1223_s1 + $0x20] ss:$8 sps:$4 sm:$0xff]   ;;  %s964_s7 = smov 1  }
  0x95   : >> { %s231_s10 = scalar_lea.vmem %s1008_s25, %s802_s9  ;;  %v934_v30 = vld [vmem:[%s1223_s1 + $0x74] ss:$8 sps:$4 sm:$0xff]   ;;  %v920_v45 = vld [vmem:[%s1223_s1 + $0x30] ss:$8 sps:$4 sm:$0xff]   ;;  %v929_v47 = vld [vmem:[%s1223_s1 + $0x44] ss:$8 sps:$4 sm:$0xff]  }
  0x96   : >> { %v908_v14 = vld [vmem:[%s231_s10 + $0x38] sm:$0xff]   ;;  %v909_v15 = vld [vmem:[%s231_s10 + $0x30] sm:$0xff]   ;;  %v910_v16 = vld [vmem:[%s231_s10 + $0x28] sm:$0xff]   ;;  %s681_s30 = sshra.s32 %s680_s29, 3  ;;  %vm724_vm2 = vcmask 404488   ;;  %p223_p4 = scmp.ge.s32.totalorder %s1173_s6, 49  }
  0x97   : >> { %349 = vrot.lane.b32.xlu0 %v908_v14, %s962_s11  ;;  %475 = vmatpush1.bf16.msra.mxu1 %v908_v14  ;;  %v911_v17 = vld [vmem:[%s231_s10 + $0x20] sm:$0xff]   ;;  %v912_v18 = vld [vmem:[%s231_s10 + $0x18] sm:$0xff]   ;;  %v913_v19 = vld [vmem:[%s231_s10 + $0x10] sm:$0xff]   ;;  %s851_s4 = sshll.u32 %s681_s30, 2 }
  0x98   : >> { %476 = vmatprep.subr.bf16.mxu1 %v961_v13  ;;  %345 = vrot.lane.b32.xlu1 %v910_v16, %s962_s11  ;;  %v914_v21 = vld [vmem:[%s231_s10 + $0x8] sm:$0xff]   ;;  %v915_v22 = vld [vmem:[%s231_s10] sm:$0xff]   ;;  %v935_v51 = vld [vmem:[%s1223_s1 + $0x54] ss:$8 sps:$4 sm:$0xff]   ;;  %s1177_s5 = scalar_lea.vmem %s1013_s28, %s851_s4 }
  0x99   : >> { %v916_v23 = vld [vmem:[%s231_s10 + $0x40] sm:$0xff]   ;;  %v932_v53 = vld [vmem:[%s1223_s1 + $0x70] ss:$8 sps:$4 sm:$0xff]   ;;  %687 = vst.msk [vmem:[%s1177_s5 + $0x8] sm:$0xf] %vm208_vm0, %v961_v13 }
  0x9a   : >> { %v931_v49 = vld [vmem:[%s1223_s1 + $0x40] ss:$8 sps:$4 sm:$0xff]   ;;  %v937_v54 = vld [vmem:[%s1223_s1 + $0x50] ss:$8 sps:$4 sm:$0xff]   ;;  %v938_v55 = vld [vmem:[%s1223_s1 + $0x84] ss:$8 sps:$4 sm:$0xff]  }
  0x9b   : >> { %347 = vrot.lane.b32.xlu0 %v909_v15, %s962_s11  ;;  %477 = vmatpush1.bf16.msra.mxu1 %v909_v15  ;;  %v943_v56 = vld [vmem:[%s1223_s1 + $0x64] ss:$8 sps:$4 sm:$0xff]   ;;  %v940_v57 = vld [vmem:[%s1223_s1 + $0x80] ss:$8 sps:$4 sm:$0xff]   ;;  %685 = vst.msk [vmem:[%s1177_s5] sm:$0xf] %vm208_vm0, %v961_v13 }
  0x9c   : >> { %478 = vmatprep.subr.bf16.mxu1 %v961_v13  ;;  %343 = vrot.lane.b32.xlu1 %v911_v17, %s962_s11  ;;  %v941_v58 = vld [vmem:[%s1223_s1 + $0x60] ss:$8 sps:$4 sm:$0xff]   ;;  %686 = vst.msk [vmem:[%s1177_s5 + $0x4] sm:$0xf] %vm208_vm0, %v961_v13  ;;  %688 = vst.msk [vmem:[%s1177_s5 + $0xc] sm:$0xf] %vm208_vm0, %v961_v13 }
  0x9d   : >> { %689 = vst.msk [vmem:[%s1177_s5 + $0x10] sm:$0xf] %vm208_vm0, %v961_v13  ;;  %690 = vst.msk [vmem:[%s1177_s5 + $0x14] sm:$0xf] %vm208_vm0, %v961_v13 }
  0x9f   : >> { %341 = vrot.lane.b32.xlu0 %v912_v18, %s962_s11  ;;  %479 = vmatpush1.bf16.msra.mxu1 %v910_v16 }
  0xa0   : >> { %480 = vmatprep.subr.bf16.mxu1 %v961_v13  ;;  %339 = vrot.lane.b32.xlu1 %v913_v19, %s962_s11 }
  0xa3   : >> { %337 = vrot.lane.b32.xlu0 %v914_v21, %s962_s11  ;;  %481 = vmatpush1.bf16.msra.mxu1 %v911_v17 }
  0xa4   : >> { %482 = vmatprep.subr.bf16.mxu1 %v961_v13  ;;  %335 = vrot.lane.b32.xlu1 %v915_v22, %s962_s11 }
  0xa7   : >> { %579 = vrot.lane.b32.xlu0 %v908_v14, %s963_s15  ;;  %483 = vmatpush1.bf16.msra.mxu1 %v912_v18 }
  0xa8   : >> { %484 = vmatprep.subr.bf16.mxu1 %v961_v13  ;;  %351 = vrot.lane.b32.xlu1 %v916_v23, %s962_s11 }
  0xab   : >> { %577 = vrot.lane.b32.xlu0 %v909_v15, %s963_s15  ;;  %485 = vmatpush1.bf16.msra.mxu1 %v913_v19 }
  0xac   : >> { %486 = vmatprep.subr.bf16.mxu1 %v961_v13  ;;  %575 = vrot.lane.b32.xlu1 %v910_v16, %s963_s15 }
  0xaf   : >> { %573 = vrot.lane.b32.xlu0 %v911_v17, %s963_s15  ;;  %487 = vmatpush1.bf16.msra.mxu1 %v914_v21 }
  0xb0   : >> { %488 = vmatprep.subr.bf16.mxu1 %v961_v13  ;;  %571 = vrot.lane.b32.xlu1 %v912_v18, %s963_s15 }
  0xb3   : >> { %569 = vrot.lane.b32.xlu0 %v913_v19, %s963_s15  ;;  %489 = vmatpush1.bf16.msra.mxu1 %v915_v22 }
  0xb4   : >> { %504 = vmatprep.subr.bf16.mxu1 %v961_v13  ;;  %567 = vrot.lane.b32.xlu1 %v914_v21, %s963_s15 }
  0xb7   : >> { %565 = vrot.lane.b32.xlu0 %v915_v22, %s963_s15  ;;  %505 = vmatpush2.bf16.msra.mxu1 %v916_v23 }
  0xb8   : >> { %866 = vmatprep.subr.bf16.mxu1 %v961_v13  ;;  %581 = vrot.lane.b32.xlu1 %v916_v23, %s963_s15 }
  0xba   : >> { %507 = vmatmul.mubr.bf16.vlgmr.msra.gmra.mxu1 %v917_v25 }
  0xbb   : >> { %834 = vmatprep.mubr.msk.bf16.mxu1 %vm362_vm1, %v923_v26 }
  0xc2   : >> { %515 = vmatmul.mubr.bf16.gmra.mxu1 %v925_v27 }
  0xc3   : >> { %835 = vmatprep.mubr.msk.bf16.mxu1 %vm362_vm1, %v926_v28 }
  0xca   : >> { %523 = vmatmul.mubr.bf16.gmra.mxu1 %v928_v29 }
  0xcb   : >> { %849 = vmatprep.mubr.msk.bf16.mxu1 %vm362_vm1, %v934_v30 }
 0x109   : >> { %v350_v31 = vpop.permute.xlu0 %349 }
 0x10a   : >> { %373 = vmatpush1.bf16.msra.mxu0 %v350_v31  ;;  %v346_v32 = vpop.permute.xlu1 %345 }
 0x10b   : >> { %374 = vmatprep.subr.bf16.mxu0 %v961_v13 }
 0x10d   : >> { %v348_v33 = vpop.permute.xlu0 %347 }
 0x10e   : >> { %375 = vmatpush1.bf16.msra.mxu0 %v348_v33  ;;  %v344_v34 = vpop.permute.xlu1 %343 }
 0x10f   : >> { %376 = vmatprep.subr.bf16.mxu0 %v961_v13 }
 0x111   : >> { %v342_v35 = vpop.permute.xlu0 %341 }
 0x112   : >> { %377 = vmatpush1.bf16.msra.mxu0 %v346_v32  ;;  %v340_v36 = vpop.permute.xlu1 %339 }
 0x113   : >> { %378 = vmatprep.subr.bf16.mxu0 %v961_v13 }
 0x115   : >> { %v338_v37 = vpop.permute.xlu0 %337 }
 0x116   : >> { %379 = vmatpush1.bf16.msra.mxu0 %v344_v34  ;;  %v336_v38 = vpop.permute.xlu1 %335 }
 0x117   : >> { %380 = vmatprep.subr.bf16.mxu0 %v961_v13 }
 0x119   : >> { %v580_v39 = vpop.permute.xlu0 %579 }
 0x11a   : >> { %381 = vmatpush1.bf16.msra.mxu0 %v342_v35  ;;  %875 = vmatpush1.bf16.msra.mxu1 %v580_v39  ;;  %v352_v40 = vpop.permute.xlu1 %351 }
 0x11b   : >> { %382 = vmatprep.subr.bf16.mxu0 %v961_v13  ;;  %867 = vmatprep.subr.bf16.mxu1 %v961_v13 }
 0x11d   : >> { %v578_v41 = vpop.permute.xlu0 %577 }
 0x11e   : >> { %383 = vmatpush1.bf16.msra.mxu0 %v340_v36  ;;  %876 = vmatpush1.bf16.msra.mxu1 %v578_v41  ;;  %v576_v42 = vpop.permute.xlu1 %575 }
 0x11f   : >> { %384 = vmatprep.subr.bf16.mxu0 %v961_v13  ;;  %868 = vmatprep.subr.bf16.mxu1 %v961_v13 }
 0x121   : >> { %v574_v43 = vpop.permute.xlu0 %573 }
 0x122   : >> { %385 = vmatpush1.bf16.msra.mxu0 %v338_v37  ;;  %877 = vmatpush1.bf16.msra.mxu1 %v576_v42  ;;  %v572_v44 = vpop.permute.xlu1 %571 }
 0x123   : >> { %386 = vmatprep.subr.bf16.mxu0 %v961_v13  ;;  %869 = vmatprep.subr.bf16.mxu1 %v961_v13 }
 0x125   : >> { %v570_v46 = vpop.permute.xlu0 %569 }
 0x126   : >> { %387 = vmatpush1.bf16.msra.mxu0 %v336_v38  ;;  %878 = vmatpush1.bf16.msra.mxu1 %v574_v43  ;;  %v568_v48 = vpop.permute.xlu1 %567 }
 0x127   : >> { %402 = vmatprep.subr.bf16.mxu0 %v961_v13  ;;  %870 = vmatprep.subr.bf16.mxu1 %v961_v13 }
 0x129   : >> { %v566_v50 = vpop.permute.xlu0 %565 }
 0x12a   : >> { %403 = vmatpush2.bf16.msra.mxu0 %v352_v40  ;;  %879 = vmatpush1.bf16.msra.mxu1 %v572_v44  ;;  %v582_v52 = vpop.permute.xlu1 %581 }
 0x12b   : >> { %601 = vmatprep.subr.bf16.mxu0 %v961_v13  ;;  %871 = vmatprep.subr.bf16.mxu1 %v961_v13 }
 0x12d   : >> { %405 = vmatmul.mubr.bf16.vlgmr.msra.gmra.mxu0 %v920_v45 }
 0x12e   : >> { %602 = vmatpush1.bf16.msra.mxu0 %v580_v39  ;;  %880 = vmatpush1.bf16.msra.mxu1 %v570_v46 }
 0x12f   : >> { %603 = vmatprep.subr.bf16.mxu0 %v961_v13  ;;  %872 = vmatprep.subr.bf16.mxu1 %v961_v13 }
 0x130   : >> { %825 = vmatprep.mubr.msk.bf16.mxu0 %vm362_vm1, %v929_v47 }
 0x132   : >> { %604 = vmatpush1.bf16.msra.mxu0 %v578_v41  ;;  %881 = vmatpush1.bf16.msra.mxu1 %v568_v48 }
 0x133   : >> { %605 = vmatprep.subr.bf16.mxu0 %v961_v13  ;;  %873 = vmatprep.subr.bf16.mxu1 %v961_v13 }
 0x135   : >> { %413 = vmatmul.mubr.bf16.gmra.mxu0 %v931_v49 }
 0x136   : >> { %606 = vmatpush1.bf16.msra.mxu0 %v576_v42  ;;  %882 = vmatpush1.bf16.msra.mxu1 %v566_v50 }
 0x137   : >> { %607 = vmatprep.subr.bf16.mxu0 %v961_v13  ;;  %874 = vmatprep.subr.bf16.mxu1 %v961_v13 }
 0x138   : >> { %826 = vmatprep.mubr.msk.bf16.mxu0 %vm362_vm1, %v935_v51 }
 0x13a   : >> { %608 = vmatpush1.bf16.msra.mxu0 %v574_v43  ;;  %883 = vmatpush2.bf16.msra.mxu1 %v582_v52 }
 0x13b   : >> { %609 = vmatprep.subr.bf16.mxu0 %v961_v13 }
 0x13d   : >> { %642 = vmatmul.mubr.bf16.vlgmr.msra.gmra.mxu1 %v932_v53  ;;  %421 = vmatmul.mubr.bf16.gmra.mxu0 %v937_v54 }
 0x13e   : >> { %610 = vmatpush1.bf16.msra.mxu0 %v572_v44  ;;  %850 = vmatprep.mubr.msk.bf16.mxu1 %vm362_vm1, %v938_v55 }
 0x13f   : >> { %611 = vmatprep.subr.bf16.mxu0 %v961_v13  ;;  %848 = vmatprep.mubr.msk.bf16.mxu0 %vm362_vm1, %v943_v56 }
 0x142   : >> { %612 = vmatpush1.bf16.msra.mxu0 %v570_v46 }
 0x143   : >> { %613 = vmatprep.subr.bf16.mxu0 %v961_v13 }
 0x145   : >> { %650 = vmatmul.mubr.bf16.gmra.mxu1 %v940_v57 }
 0x146   : >> { %614 = vmatpush1.bf16.msra.mxu0 %v568_v48 }
 0x147   : >> { %615 = vmatprep.subr.bf16.mxu0 %v961_v13 }
 0x14a   : >> { %616 = vmatpush1.bf16.msra.mxu0 %v566_v50 }
 0x14b   : >> { %631 = vmatprep.subr.bf16.mxu0 %v961_v13 }
 0x14e   : >> { %632 = vmatpush2.bf16.msra.mxu0 %v582_v52 }
 0x151   : >> { %634 = vmatmul.mubr.bf16.vlgmr.msra.gmra.mxu0 %v941_v58 }
 0x17a   : >> { %v508_v59 = vpop.f32.mrf.mxu1 }
 0x17c   : >> { %v510_v60 = vpop.f32.mrf.mxu1 }
 0x17e   : >> { %v511_v61 = vpop.f32.mrf.mxu1 }
 0x180   : >> { %v513_v62 = vpop.f32.mrf.mxu1 }
 0x182   : >> { %v516_v63 = vpop.f32.mrf.mxu1 }
 0x184   : >> { %v518_v0 = vpop.f32.mrf.mxu1 }
 0x186   : >> { %v519_v1 = vpop.f32.mrf.mxu1 }
 0x188   : >> { %v521_v2 = vpop.f32.mrf.mxu1 }
 0x18a   : >> { %v524_v3 = vpop.f32.mrf.mxu1 }
 0x18c   : >> { %v526_v4 = vpop.f32.mrf.mxu1 }
 0x18e   : >> { %v527_v5 = vpop.f32.mrf.mxu1 }
 0x190   : >> { %v529_v6 = vpop.f32.mrf.mxu1 }
 0x1ed   : >> { %v406_v14 = vpop.f32.mrf.mxu0 }
 0x1ee   : >> { %v509_v44 = vadd.f32 %v508_v59, %v406_v14 }
 0x1ef   : >> { %v408_v15 = vpop.f32.mrf.mxu0 }
 0x1f1   : >> { %v409_v16 = vpop.f32.mrf.mxu0 }
 0x1f2   : >> { %v512_v50 = vadd.f32 %v511_v61, %v409_v16 }
 0x1f3   : >> { %v411_v17 = vpop.f32.mrf.mxu0 }
 0x1f5   : >> { %v414_v18 = vpop.f32.mrf.mxu0 }
 0x1f6   : >> { %v517_v21 = vadd.f32 %v516_v63, %v414_v18 }
 0x1f7   : >> { %v416_v19 = vpop.f32.mrf.mxu0 }
 0x1f9   : >> { %v417_v20 = vpop.f32.mrf.mxu0 }
 0x1fa   : >> { %v520_v28 = vadd.f32 %v519_v1, %v417_v20 }
 0x1fb   : >> { %v419_v22 = vpop.f32.mrf.mxu0 }
 0x1fd   : >> { %v643_v23 = vpop.f32.mrf.mxu1  ;;  %v422_v24 = vpop.f32.mrf.mxu0 }
 0x1fe   : >> { %v660_v25 = vadd.f32 %v643_v23, %v517_v21  ;;  %v525_v43 = vadd.f32 %v524_v3, %v422_v24 }
 0x1ff   : >> { %v645_v26 = vpop.f32.mrf.mxu1  ;;  %v424_v27 = vpop.f32.mrf.mxu0 }
 0x200   : >> { %v666_v29 = vadd.f32 %v660_v25, %v1045_v7 }
 0x201   : >> { %v646_v30 = vpop.f32.mrf.mxu1  ;;  %v425_v31 = vpop.f32.mrf.mxu0 }
 0x202   : >> { %v672_v13 = vmax.f32 %v666_v29, 0.0  ;;  %v661_v32 = vadd.f32 %v646_v30, %v520_v28  ;;  %v528_v47 = vadd.f32 %v527_v5, %v425_v31 }
 0x203   : >> { %v648_v33 = vpop.f32.mrf.mxu1  ;;  %v427_v34 = vpop.f32.mrf.mxu0 }
 0x204   : >> { %v862_v35 = vpack.c.bf16 %v672_v13, %v672_v13  ;;  %v667_v36 = vadd.f32 %v661_v32, %v1049_v9 }
 0x205   : >> { %v651_v37 = vpop.f32.mrf.mxu1 }
 0x206   : >> { %v673_v38 = vmax.f32 %v667_v36, 0.0  ;;  %710 = vrot.lane.b32.xlu0 %v862_v35, %s964_s7  ;;  %v662_v45 = vadd.f32 %v651_v37, %v525_v43 }
 0x207   : >> { %v653_v39 = vpop.f32.mrf.mxu1 }
 0x208   : >> { %v863_v40 = vpack.c.bf16 %v673_v38, %v673_v38  ;;  %v668_v51 = vadd.f32 %v662_v45, %v1055_v12 }
 0x209   : >> { %v654_v41 = vpop.f32.mrf.mxu1 }
 0x20a   : >> { %712 = vrot.lane.b32.xlu1 %v863_v40, %s964_s7  ;;  %v663_v52 = vadd.f32 %v654_v41, %v528_v47  ;;  %v674_v58 = vmax.f32 %v668_v51, 0.0 }
 0x20b   : >> { %v656_v42 = vpop.f32.mrf.mxu1 }
 0x20c   : >> { %v669_v60 = vadd.f32 %v663_v52, %v1053_v11  ;;  %v864_v61 = vpack.c.bf16 %v674_v58, %v674_v58 }
 0x20e   : >> { %v675_v0 = vmax.f32 %v669_v60, 0.0 }
 0x210   : >> { %v865_v2 = vpack.c.bf16 %v675_v0, %v675_v0 }
 0x211   : >> { %v635_v46 = vpop.f32.mrf.mxu0 }
 0x212   : >> { %v658_v48 = vadd.f32 %v635_v46, %v509_v44 }
 0x213   : >> { %v637_v49 = vpop.f32.mrf.mxu0 }
 0x214   : >> { %v664_v53 = vadd.f32 %v658_v48, %v1047_v8 }
 0x215   : >> { %v638_v54 = vpop.f32.mrf.mxu0 }
 0x216   : >> { %v670_v55 = vmax.f32 %v664_v53, 0.0  ;;  %v659_v56 = vadd.f32 %v638_v54, %v512_v50 }
 0x217   : >> { %v640_v57 = vpop.f32.mrf.mxu0 }
 0x218   : >> { %v860_v59 = vpack.c.bf16 %v670_v55, %v670_v55  ;;  %v665_v62 = vadd.f32 %v659_v56, %v1051_v10 }
 0x21a   : >> { %v671_v63 = vmax.f32 %v665_v62, 0.0  ;;  %706 = vrot.lane.b32.xlu0 %v860_v59, %s964_s7 }
 0x21c   : >> { %v861_v1 = vpack.c.bf16 %v671_v63, %v671_v63 }
 0x21e   : >> { %708 = vrot.lane.b32.xlu1 %v861_v1, %s964_s7  ;;  %714 = vrot.lane.b32.xlu0 %v864_v61, %s964_s7 }
 0x222   : >> { %716 = vrot.lane.b32.xlu1 %v865_v2, %s964_s7 }
 0x278   : >> { %v711_v3 = vpop.permute.xlu0 %710 }
 0x279   : >> { %727 = vst.msk [vmem:[%s1177_s5 + $0x8] sm:$0xf] %vm724_vm2, %v711_v3 }
 0x27c   : >> { %v713_v4 = vpop.permute.xlu1 %712 }
 0x27d   : >> { %728 = vst.msk [vmem:[%s1177_s5 + $0xc] sm:$0xf] %vm724_vm2, %v713_v4 }
 0x28c   : >> { %v707_v5 = vpop.permute.xlu0 %706 }
 0x28d   : >> { %725 = vst.msk [vmem:[%s1177_s5] sm:$0xf] %vm724_vm2, %v707_v5 }
 0x290   : >> { %v709_v6 = vpop.permute.xlu1 %708  ;;  %v715_v14 = vpop.permute.xlu0 %714 }
 0x291   : >> { %726 = vst.msk [vmem:[%s1177_s5 + $0x4] sm:$0xf] %vm724_vm2, %v709_v6  ;;  %729 = vst.msk [vmem:[%s1177_s5 + $0x10] sm:$0xf] %vm724_vm2, %v715_v14  ;;  %225 = sbr.rel (!%p223_p4) target bundleno = 145 (0x91), region = 73 }
 0x294   : >> { %v717_v15 = vpop.permute.xlu1 %716 }
 0x295   : >> { %730 = vst.msk [vmem:[%s1177_s5 + $0x14] sm:$0xf] %vm724_vm2, %v717_v15 }
 0x296 PF: > { %s13_s12 = sadd.s32 1, %s954_s12  }
 0x297   : > { %p10_p5 = scmp.ge.s32.totalorder %s13_s12, 4  }
 0x299   :  { %12 = sbr.rel (!%p10_p5) target bundleno = 1 (0x1), region = 84 }

// kernel: forward.26
= control target key start
LH: loop header
LB: loop body
LE: loop exit
PB: predicated region body
PF: predicated region fallthrough
CT: control target
= control target key end

     0   :  { %s656_s6 = smov 0   ;;  %s806_s0 = inlined_call_operand.vmem [shape: bf16[2,2352,49], index: 0, kind: input, shape index: {}]   ;;  %s807_s1 = inlined_call_operand.vmem [shape: bf16[2,1152,24], index: 1, kind: output, shape index: {}]  }
   0x1 LB: > { %s470_s7 = sadd.s32 4294967295, %s638_s6   ;;  %p474_p0 = scmp.ge.s32.totalorder %s638_s6, 1  ;;  %s638_s6 = sphi %s656_s6, %s11_s6  }
   0x2   : > { %p87_p1 = scmp.lt.s32.totalorder %s638_s6, 3 }
   0x4   : > { %p88_p2 = pnand %p474_p0, %p87_p1 }
   0x5   : > { %p107_p3 = scmp.lt.s32.totalorder (!%p88_p2), %s470_s7, 1  ;;  %s700_s16 = smov (!%p88_p2), 0  }
   0x6   : > { %91 = sbr.rel (%p88_p2) target bundleno = 249 (0xf9), region = 24 }
   0xb   : > { %v117_v0 = vlaneseq  ;;  %s823_s7 = smov (!%p107_p3, %s470_s7), 1  ;;  %v809_v11 = vmov 0  ;;  %v644_v17 = vmov 0.0  }
   0xc   : > { %s608_s8 = smul.u32 1176, %s823_s7 }
   0xd   : > { %v118_v1 = vshrl.u32 %v117_v0, 7  ;;  %v126_v2 = vand.u32 127, %v117_v0  ;;  %s609_s9 = smul.u32 576, %s823_s7 }
   0xe   : > { %s667_s12 = scalar_lea.vmem %s806_s0, %s608_s8 }
   0xf   : > { %v119_v3 = vadd.s32 8, %v118_v1  ;;  %v127_v4 = vmul.u32 2, %v126_v2  ;;  %v120_v5 = vadd.s32 16, %v118_v1  ;;  %s672_s15 = scalar_lea.vmem %s807_s1, %s609_s9  ;;  %v121_v6 = vadd.s32 24, %v118_v1 }
  0x10   : > { %v122_v7 = vadd.s32 32, %v118_v1  ;;  %v123_v9 = vadd.s32 40, %v118_v1  ;;  %v124_v10 = vadd.s32 48, %v118_v1 }
  0x11   : > { %vm128_vm0 = vcmp.ge.s32.totalorder %v118_v1, %v127_v4  ;;  %v135_v8 = vadd.s32 3, %v127_v4  ;;  %vm129_vm1 = vcmp.ge.s32.totalorder %v119_v3, %v127_v4  ;;  %vm130_vm2 = vcmp.ge.s32.totalorder %v120_v5, %v127_v4 }
  0x12   : > { %vm131_vm6 = vcmp.ge.s32.totalorder %v121_v6, %v127_v4  ;;  %vm132_vm9 = vcmp.ge.s32.totalorder %v122_v7, %v127_v4  ;;  %vm133_vm12 = vcmp.ge.s32.totalorder %v123_v9, %v127_v4  ;;  %vm134_vm15 = vcmp.ge.s32.totalorder %v124_v10, %v127_v4 }
  0x13   : > { %vm136_vm3 = vcmp.lt.s32.totalorder %v118_v1, %v135_v8  ;;  %vm137_vm4 = vcmp.lt.s32.totalorder %v119_v3, %v135_v8  ;;  %vm138_vm5 = vcmp.lt.s32.totalorder %v120_v5, %v135_v8  ;;  %vm139_vm7 = vcmp.lt.s32.totalorder %v121_v6, %v135_v8 }
  0x14   : > { %vm674_vm8 = vmand %vm128_vm0, %vm136_vm3  ;;  %vm140_vm10 = vcmp.lt.s32.totalorder %v122_v7, %v135_v8  ;;  %vm141_vm13 = vcmp.lt.s32.totalorder %v123_v9, %v135_v8  ;;  %vm142_vm0 = vcmp.lt.s32.totalorder %v124_v10, %v135_v8 }
  0x15   : > { %v810_v11 = vsel %vm674_vm8, 4294967295, %v809_v11  ;;  %vm678_vm11 = vmand %vm129_vm1, %vm137_vm4 }
  0x16   : > { %vm682_vm14 = vmand %vm130_vm2, %vm138_vm5 }
  0x17   : > { %vm686_vm3 = vmand %vm131_vm6, %vm139_vm7 }
  0x18   : > { %vm690_vm8 = vmand %vm132_vm9, %vm140_vm10 }
  0x19   : > { %vm694_vm1 = vmand %vm133_vm12, %vm141_vm13 }
  0x1a   : > { %vm149_vm4 = vmand %vm134_vm15, %vm142_vm0 }
  0x1b   : > { %v698_v18 = vsel %vm149_vm4, 1.0, %v644_v17 }
  0x1c LB: >> { %vm261_vm2 = vcmask 1040384   ;;  %s170_s17 = smul.u32 96, %s642_s16  ;;  %s485_s18 = sshll.u32 %s642_s16, 1  ;;  %v645_v19 = vmov 1.0   ;;  %vm242_vm5 = vcmask 400384   ;;  %vm821_vm6 = vnez %v810_v11  ;;  %s642_s16 = sphi %s700_s16, %s169_s16  }
  0x1d   : >> { %594 = vmatprep.subr.msk.mxu1 %vm261_vm2, %v698_v18  ;;  %571 = vmatprep.subr.msk.mxu0 %vm261_vm2, %v698_v18  ;;  %s194_s19 = sadd.s32 1, %s485_s18  ;;  %s218_s20 = sadd.s32 2, %s485_s18  ;;  %vm395_vm7 = vcmask 191488  }
  0x1e   : >> { %601 = vmatpush3.msk.msra.mxu1 %vm261_vm2, %v698_v18  ;;  %572 = vmatpush3.msk.msra.mxu0 %vm261_vm2, %v698_v18  ;;  %s171_s21 = sshra.s32 %s170_s17, 3  ;;  %s195_s22 = smul.u32 48, %s194_s19 }
  0x1f   : >> { %595 = vmatprep.subr.msk.mxu1 %vm694_vm1, %v645_v19  ;;  %573 = vmatprep.subr.msk.mxu0 %vm694_vm1, %v645_v19  ;;  %s484_s23 = sshll.u32 %s171_s21, 2  ;;  %s219_s24 = smul.u32 48, %s218_s20 }
  0x20   : >> { %602 = vmatpush3.msk.msra.mxu1 %vm694_vm1, %v645_v19  ;;  %574 = vmatpush3.msk.msra.mxu0 %vm694_vm1, %v645_v19  ;;  %s174_s25 = scalar_lea.vmem %s667_s12, %s484_s23  ;;  %s196_s26 = sshra.s32 %s195_s22, 3 }
  0x21   : >> { %596 = vmatprep.subr.msk.mxu1 %vm690_vm8, %v645_v19  ;;  %575 = vmatprep.subr.msk.mxu0 %vm690_vm8, %v645_v19  ;;  %v552_v20 = vld [vmem:[%s174_s25 + $0x8] sm:$0xff]   ;;  %v553_v21 = vld [vmem:[%s174_s25 + $0x10] sm:$0xff]   ;;  %s486_s27 = sshll.u32 %s196_s26, 2  ;;  %s220_s28 = sshra.s32 %s219_s24, 3  ;;  %v517_v22 = vld [vmem:[%s174_s25] sm:$0xff]  }
  0x22   : >> { %603 = vmatpush3.msk.msra.mxu1 %vm690_vm8, %v645_v19  ;;  %576 = vmatpush3.msk.msra.mxu0 %vm690_vm8, %v645_v19  ;;  %v522_v23 = vunpack.c.l.bf16 %v552_v20  ;;  %v523_v24 = vunpack.c.h.bf16 %v552_v20  ;;  %s199_s29 = scalar_lea.vmem %s667_s12, %s486_s27  ;;  %s487_s30 = sshll.u32 %s220_s28, 2  ;;  %v518_v25 = vunpack.c.l.bf16 %v517_v22  ;;  %v519_v28 = vunpack.c.h.bf16 %v517_v22 }
  0x23   : >> { %597 = vmatprep.subr.msk.mxu1 %vm686_vm3, %v645_v19  ;;  %577 = vmatprep.subr.msk.mxu0 %vm686_vm3, %v645_v19  ;;  %v554_v26 = vld [vmem:[%s199_s29 + $0x8] sm:$0xff]   ;;  %v555_v27 = vld [vmem:[%s199_s29 + $0x10] sm:$0xff]   ;;  %s223_s2 = scalar_lea.vmem %s667_s12, %s487_s30  ;;  %v529_v29 = vld [vmem:[%s199_s29] sm:$0xff]   ;;  %v526_v30 = vunpack.c.l.bf16 %v553_v21  ;;  %v527_v31 = vunpack.c.h.bf16 %v553_v21  ;;  %s369_s3 = smul.u32 48, %s642_s16 }
  0x24   : >> { %604 = vmatpush3.msk.msra.mxu1 %vm686_vm3, %v645_v19  ;;  %578 = vmatpush3.msk.msra.mxu0 %vm686_vm3, %v645_v19  ;;  %v534_v32 = vunpack.c.l.bf16 %v554_v26  ;;  %v535_v33 = vunpack.c.h.bf16 %v554_v26  ;;  %v556_v34 = vld [vmem:[%s223_s2 + $0x8] sm:$0xff]   ;;  %v557_v35 = vld [vmem:[%s223_s2 + $0x10] sm:$0xff]   ;;  %v530_v36 = vunpack.c.l.bf16 %v529_v29  ;;  %v531_v37 = vunpack.c.h.bf16 %v529_v29  ;;  %v541_v38 = vld [vmem:[%s223_s2] sm:$0xff]   ;;  %s169_s16 = sadd.s32 1, %s642_s16  }
  0x25   : >> { %598 = vmatprep.subr.msk.mxu1 %vm682_vm14, %v645_v19  ;;  %579 = vmatprep.subr.msk.mxu0 %vm682_vm14, %v645_v19  ;;  %v546_v39 = vunpack.c.l.bf16 %v556_v34  ;;  %v547_v40 = vunpack.c.h.bf16 %v556_v34  ;;  %v542_v41 = vunpack.c.l.bf16 %v541_v38  ;;  %v543_v42 = vunpack.c.h.bf16 %v541_v38  ;;  %s391_s4 = sshra.s32 %s369_s3, 3  ;;  %p166_p4 = scmp.ge.s32.totalorder %s169_s16, 24  }
  0x26   : >> { %605 = vmatpush3.msk.msra.mxu1 %vm682_vm14, %v645_v19  ;;  %580 = vmatpush3.msk.msra.mxu0 %vm682_vm14, %v645_v19  ;;  %v214_v43 = vadd.f32 %v534_v32, %v522_v23  ;;  %v215_v44 = vadd.f32 %v535_v33, %v523_v24  ;;  %v212_v45 = vadd.f32 %v530_v36, %v518_v25  ;;  %v538_v46 = vunpack.c.l.bf16 %v555_v27  ;;  %s507_s5 = sshll.u32 %s391_s4, 2 }
  0x27   : >> { %599 = vmatprep.subr.msk.mxu1 %vm678_vm11, %v645_v19  ;;  %581 = vmatprep.subr.msk.mxu0 %vm678_vm11, %v645_v19  ;;  %v213_v47 = vadd.f32 %v531_v37, %v519_v28  ;;  %v550_v48 = vunpack.c.l.bf16 %v557_v35  ;;  %v539_v49 = vunpack.c.h.bf16 %v555_v27  ;;  %v551_v50 = vunpack.c.h.bf16 %v557_v35  ;;  %s394_s7 = scalar_lea.vmem %s672_s15, %s507_s5 }
  0x28   : >> { %606 = vmatpush3.msk.msra.mxu1 %vm678_vm11, %v645_v19  ;;  %582 = vmatpush3.msk.msra.mxu0 %vm678_vm11, %v645_v19  ;;  %v238_v51 = vadd.f32 %v546_v39, %v214_v43  ;;  %v239_v52 = vadd.f32 %v547_v40, %v215_v44  ;;  %v236_v53 = vadd.f32 %v542_v41, %v212_v45 }
  0x29   : >> { %600 = vmatprep.subr.msk.mxu1 %vm821_vm6, %v645_v19  ;;  %583 = vmatprep.subr.msk.mxu0 %vm821_vm6, %v645_v19  ;;  %v237_v54 = vadd.f32 %v543_v42, %v213_v47  ;;  %v216_v55 = vadd.f32 %v538_v46, %v526_v30  ;;  %v217_v56 = vadd.f32 %v539_v49, %v527_v31 }
  0x2a   : >> { %607 = vmatpush3.msk.msra.mxu1 %vm821_vm6, %v645_v19  ;;  %584 = vmatpush3.msk.msra.mxu0 %vm821_vm6, %v645_v19 }
  0x2b   : >> { %588 = vmatprep.mubr.msk.f32.mxu1 %vm242_vm5, %v238_v51  ;;  %585 = vmatprep.mubr.msk.f32.mxu0 %vm242_vm5, %v236_v53  ;;  %v240_v57 = vadd.f32 %v550_v48, %v216_v55  ;;  %v241_v58 = vadd.f32 %v551_v50, %v217_v56 }
  0x2c   : >> { %589 = vmatmul.mubr.msk.f32.vlgmr.msra.gmra.mxu1 %vm242_vm5, %v239_v52  ;;  %586 = vmatmul.mubr.msk.f32.vlgmr.msra.gmra.mxu0 %vm242_vm5, %v237_v54 }
  0x2d   : >> { %591 = vmatprep.mubr.msk.f32.mxu1 %vm242_vm5, %v240_v57 }
  0x30   : >> { %592 = vmatmul.mubr.msk.f32.gmra.mxu1 %vm242_vm5, %v241_v58 }
  0xec   : >> { %v590_v59 = vpop.f32.mrf.mxu1  ;;  %v587_v60 = vpop.f32.mrf.mxu0 }
  0xed   : >> { %v363_v61 = vmul.f32 0.11111111, %v590_v59  ;;  %v361_v62 = vmul.f32 0.11111111, %v587_v60 }
  0xee   : >> { %v341_v63 = vpop.f32.mrf.mxu1  ;;  %v331_v0 = vpop.f32.mrf.mxu0 }
  0xef   : >> { %v513_v1 = vpack.c.bf16 %v363_v61, %v363_v61  ;;  %v511_v2 = vpack.c.bf16 %v361_v62, %v361_v62  ;;  %v362_v3 = vmul.f32 0.11111111, %v341_v63  ;;  %v360_v4 = vmul.f32 0.11111111, %v331_v0 }
  0xf0   : >> { %v593_v5 = vpop.f32.mrf.mxu1 }
  0xf1   : >> { %399 = vst.msk [vmem:[%s394_s7 + $0xc] sm:$0xf] %vm395_vm7, %v513_v1  ;;  %397 = vst.msk [vmem:[%s394_s7 + $0x4] sm:$0xf] %vm395_vm7, %v511_v2  ;;  %v512_v6 = vpack.c.bf16 %v362_v3, %v362_v3  ;;  %v510_v7 = vpack.c.bf16 %v360_v4, %v360_v4  ;;  %v365_v8 = vmul.f32 0.11111111, %v593_v5 }
  0xf2   : >> { %v351_v9 = vpop.f32.mrf.mxu1 }
  0xf3   : >> { %398 = vst.msk [vmem:[%s394_s7 + $0x8] sm:$0xf] %vm395_vm7, %v512_v6  ;;  %396 = vst.msk [vmem:[%s394_s7] sm:$0xf] %vm395_vm7, %v510_v7  ;;  %v515_v10 = vpack.c.bf16 %v365_v8, %v365_v8  ;;  %v364_v17 = vmul.f32 0.11111111, %v351_v9 }
  0xf4   : > { %168 = sbr.rel (!%p166_p4) target bundleno = 28 (0x1c), region = 65 }
  0xf5   : >> { %401 = vst.msk [vmem:[%s394_s7 + $0x14] sm:$0xf] %vm395_vm7, %v515_v10  ;;  %v514_v19 = vpack.c.bf16 %v364_v17, %v364_v17 }
  0xf7   : >> { %400 = vst.msk [vmem:[%s394_s7 + $0x10] sm:$0xf] %vm395_vm7, %v514_v19 }
  0xf9 PF: > { %s11_s6 = sadd.s32 1, %s638_s6  }
  0xfa   : > { %p8_p5 = scmp.ge.s32.totalorder %s11_s6, 4  }
  0xfc   :  { %10 = sbr.rel (!%p8_p5) target bundleno = 1 (0x1), region = 76 }

// kernel: forward.25
= control target key start
LH: loop header
LB: loop body
LE: loop exit
PB: predicated region body
PF: predicated region fallthrough
CT: control target
= control target key end

     0   :  { %s1093_s15 = smov 0   ;;  %s1293_s0 = inlined_call_operand.vmem [shape: bf16[2,2448,51], index: 0, kind: input, shape index: {}]   ;;  %s1294_s1 = inlined_call_operand.vmem [shape: bf16[3,48,144], index: 1, kind: input, shape index: {}]   ;;  %s1295_s2 = inlined_call_operand.vmem [shape: f32[48,1], index: 2, kind: input, shape index: {}]   ;;  %s1296_s3 = inlined_call_operand.vmem [shape: bf16[2,2448,51], index: 3, kind: input, shape index: {}]   ;;  %s1297_s4 = inlined_call_operand.vmem [shape: bf16[2,2352,49], index: 4, kind: output, shape index: {}]  }
   0x1 LB: > { %s881_s16 = sadd.s32 4294967295, %s1057_s15   ;;  %p885_p0 = scmp.ge.s32.totalorder %s1057_s15, 1  ;;  %s1057_s15 = sphi %s1093_s15, %s14_s15  }
   0x2   : > { %p172_p1 = scmp.lt.s32.totalorder %s1057_s15, 3 }
   0x4   : > { %p173_p2 = pnand %p885_p0, %p172_p1 }
   0x5   : > { %p203_p3 = scmp.lt.s32.totalorder (!%p173_p2), %s881_s16, 1  ;;  %s1146_s14 = smov (!%p173_p2), 0  }
   0x6   : > { %176 = sbr.rel (%p173_p2) target bundleno = 779 (0x30b), region = 36 }
   0xb   : > { %v221_v0 = vld [vmem:[%s1295_s2 + $0x10] sm:$0xff]  ;;  %v219_v1 = vld [vmem:[%s1295_s2] sm:$0xff]  ;;  %v1063_v2 = vmov 0   ;;  %s1299_s16 = smov (!%p203_p3, %s881_s16), 1  ;;  %v222_v3 = vld [vmem:[%s1295_s2 + $0x18] sm:$0xff] }
   0xc   : > { %1010 = vset.pattern.permute.xlu1 %v1063_v2  ;;  %1009 = vset.pattern.permute.xlu0 %v1063_v2  ;;  %v220_v4 = vld [vmem:[%s1295_s2 + $0x8] sm:$0xff]  ;;  %s986_s25 = smul.u32 1224, %s1299_s16  ;;  %v223_v6 = vld [vmem:[%s1295_s2 + $0x20] sm:$0xff] }
   0xd   : > { %237 = vperm.xlu1 %1010, %v221_v0   ;;  %227 = vperm.xlu0 %1009, %v219_v1   ;;  %s987_s26 = smul.u32 1176, %s1299_s16  ;;  %v224_v5 = vld [vmem:[%s1295_s2 + $0x28] sm:$0xff] }
   0xe   : > { %s1116_s29 = scalar_lea.vmem %s1293_s0, %s986_s25  ;;  %s1121_s6 = scalar_lea.vmem %s1296_s3, %s986_s25 }
   0xf   : > { %s1132_s13 = scalar_lea.vmem %s1297_s4, %s987_s26 }
  0x11   : > { %242 = vperm.xlu1 %1010, %v222_v3   ;;  %232 = vperm.xlu0 %1009, %v220_v4  }
  0x15   : > { %252 = vperm.xlu1 %1010, %v224_v5   ;;  %247 = vperm.xlu0 %1009, %v223_v6  }
  0x88   : > { %v1134_v7 = vpop.permute.xlu1 %237  ;;  %v1136_v8 = vpop.permute.xlu0 %227 }
  0x8c   : > { %v1138_v9 = vpop.permute.xlu1 %242  ;;  %v1140_v10 = vpop.permute.xlu0 %232 }
  0x90   : > { %v1142_v11 = vpop.permute.xlu1 %252  ;;  %v1144_v12 = vpop.permute.xlu0 %247 }
  0x91 LB: >> { %v1064_v13 = vmov 0   ;;  %s261_s16 = smul.u32 48, %s1061_s14  ;;  %s1065_s20 = smov 127   ;;  %vm396_vm0 = vcmask 130048   ;;  %v1022_v20 = vld [vmem:[%s1294_s1 + $0x4] ss:$8 sps:$4 sm:$0xff]   ;;  %s1061_s14 = sphi %s1146_s14, %s1273_s14  }
  0x92   : >> { %508 = vmatprep.subr.bf16.mxu1 %v1064_v13  ;;  %406 = vmatprep.subr.bf16.mxu0 %v1064_v13  ;;  %s1066_s23 = smov 126   ;;  %v1025_v24 = vld [vmem:[%s1294_s1 + $0x34] ss:$8 sps:$4 sm:$0xff]   ;;  %v1020_v25 = vld [vmem:[%s1294_s1] ss:$8 sps:$4 sm:$0xff]   ;;  %s1067_s22 = smov 1  }
  0x93   : >> { %s1154_s17 = sshra.s32 %s261_s16, 3  ;;  %920 = vmatprep.mubr.msk.bf16.mxu1 %vm396_vm0, %v1022_v20  ;;  %911 = vmatprep.mubr.msk.bf16.mxu0 %vm396_vm0, %v1025_v24  ;;  %v1026_v26 = vld [vmem:[%s1294_s1 + $0x14] ss:$8 sps:$4 sm:$0xff]   ;;  %v1028_v27 = vld [vmem:[%s1294_s1 + $0x10] ss:$8 sps:$4 sm:$0xff]   ;;  %s1273_s14 = sadd.s32 1, %s1061_s14  }
  0x94   : >> { %s889_s18 = sshll.u32 %s1154_s17, 2  ;;  %v1029_v28 = vld [vmem:[%s1294_s1 + $0x24] ss:$8 sps:$4 sm:$0xff]   ;;  %v1031_v29 = vld [vmem:[%s1294_s1 + $0x20] ss:$8 sps:$4 sm:$0xff]   ;;  %vm796_vm1 = vcmask 396288  }
  0x95   : >> { %s265_s19 = scalar_lea.vmem %s1116_s29, %s889_s18  ;;  %v1037_v30 = vld [vmem:[%s1294_s1 + $0x74] ss:$8 sps:$4 sm:$0xff]   ;;  %v1023_v45 = vld [vmem:[%s1294_s1 + $0x30] ss:$8 sps:$4 sm:$0xff]   ;;  %v1032_v47 = vld [vmem:[%s1294_s1 + $0x44] ss:$8 sps:$4 sm:$0xff]   ;;  %s795_s27 = scalar_lea.vmem %s1132_s13, %s889_s18 }
  0x96   : >> { %v1011_v14 = vld [vmem:[%s265_s19 + $0x38] sm:$0xff]   ;;  %v1012_v15 = vld [vmem:[%s265_s19 + $0x30] sm:$0xff]   ;;  %v1013_v16 = vld [vmem:[%s265_s19 + $0x28] sm:$0xff]   ;;  %p257_p4 = scmp.ge.s32.totalorder %s1273_s14, 49  }
  0x97   : >> { %383 = vrot.lane.b32.xlu0 %v1011_v14, %s1065_s20  ;;  %509 = vmatpush1.bf16.msra.mxu1 %v1011_v14  ;;  %v1014_v17 = vld [vmem:[%s265_s19 + $0x20] sm:$0xff]   ;;  %v1015_v18 = vld [vmem:[%s265_s19 + $0x18] sm:$0xff]   ;;  %v1016_v19 = vld [vmem:[%s265_s19 + $0x10] sm:$0xff]  }
  0x98   : >> { %510 = vmatprep.subr.bf16.mxu1 %v1064_v13  ;;  %379 = vrot.lane.b32.xlu1 %v1013_v16, %s1065_s20  ;;  %v1017_v21 = vld [vmem:[%s265_s19 + $0x8] sm:$0xff]   ;;  %v1018_v22 = vld [vmem:[%s265_s19] sm:$0xff]   ;;  %v1038_v51 = vld [vmem:[%s1294_s1 + $0x54] ss:$8 sps:$4 sm:$0xff]  }
  0x99   : >> { %v1019_v23 = vld [vmem:[%s265_s19 + $0x40] sm:$0xff]   ;;  %v1035_v53 = vld [vmem:[%s1294_s1 + $0x70] ss:$8 sps:$4 sm:$0xff]  }
  0x9a   : >> { %v1034_v49 = vld [vmem:[%s1294_s1 + $0x40] ss:$8 sps:$4 sm:$0xff]   ;;  %v1040_v54 = vld [vmem:[%s1294_s1 + $0x50] ss:$8 sps:$4 sm:$0xff]   ;;  %v1041_v55 = vld [vmem:[%s1294_s1 + $0x84] ss:$8 sps:$4 sm:$0xff]  }
  0x9b   : >> { %381 = vrot.lane.b32.xlu0 %v1012_v15, %s1065_s20  ;;  %511 = vmatpush1.bf16.msra.mxu1 %v1012_v15  ;;  %v1046_v56 = vld [vmem:[%s1294_s1 + $0x64] ss:$8 sps:$4 sm:$0xff]   ;;  %v1043_v57 = vld [vmem:[%s1294_s1 + $0x80] ss:$8 sps:$4 sm:$0xff]  }
  0x9c   : >> { %512 = vmatprep.subr.bf16.mxu1 %v1064_v13  ;;  %377 = vrot.lane.b32.xlu1 %v1014_v17, %s1065_s20  ;;  %v1044_v58 = vld [vmem:[%s1294_s1 + $0x60] ss:$8 sps:$4 sm:$0xff]  }
  0x9f   : >> { %375 = vrot.lane.b32.xlu0 %v1015_v18, %s1065_s20  ;;  %513 = vmatpush1.bf16.msra.mxu1 %v1013_v16 }
  0xa0   : >> { %514 = vmatprep.subr.bf16.mxu1 %v1064_v13  ;;  %373 = vrot.lane.b32.xlu1 %v1016_v19, %s1065_s20 }
  0xa3   : >> { %371 = vrot.lane.b32.xlu0 %v1017_v21, %s1065_s20  ;;  %515 = vmatpush1.bf16.msra.mxu1 %v1014_v17 }
  0xa4   : >> { %516 = vmatprep.subr.bf16.mxu1 %v1064_v13  ;;  %369 = vrot.lane.b32.xlu1 %v1018_v22, %s1065_s20 }
  0xa7   : >> { %613 = vrot.lane.b32.xlu0 %v1011_v14, %s1066_s23  ;;  %517 = vmatpush1.bf16.msra.mxu1 %v1015_v18 }
  0xa8   : >> { %518 = vmatprep.subr.bf16.mxu1 %v1064_v13  ;;  %385 = vrot.lane.b32.xlu1 %v1019_v23, %s1065_s20 }
  0xab   : >> { %611 = vrot.lane.b32.xlu0 %v1012_v15, %s1066_s23  ;;  %519 = vmatpush1.bf16.msra.mxu1 %v1016_v19 }
  0xac   : >> { %520 = vmatprep.subr.bf16.mxu1 %v1064_v13  ;;  %609 = vrot.lane.b32.xlu1 %v1013_v16, %s1066_s23 }
  0xaf   : >> { %607 = vrot.lane.b32.xlu0 %v1014_v17, %s1066_s23  ;;  %521 = vmatpush1.bf16.msra.mxu1 %v1017_v21 }
  0xb0   : >> { %522 = vmatprep.subr.bf16.mxu1 %v1064_v13  ;;  %605 = vrot.lane.b32.xlu1 %v1015_v18, %s1066_s23 }
  0xb3   : >> { %603 = vrot.lane.b32.xlu0 %v1016_v19, %s1066_s23  ;;  %523 = vmatpush1.bf16.msra.mxu1 %v1018_v22 }
  0xb4   : >> { %538 = vmatprep.subr.bf16.mxu1 %v1064_v13  ;;  %601 = vrot.lane.b32.xlu1 %v1017_v21, %s1066_s23 }
  0xb7   : >> { %599 = vrot.lane.b32.xlu0 %v1018_v22, %s1066_s23  ;;  %539 = vmatpush2.bf16.msra.mxu1 %v1019_v23 }
  0xb8   : >> { %968 = vmatprep.subr.bf16.mxu1 %v1064_v13  ;;  %615 = vrot.lane.b32.xlu1 %v1019_v23, %s1066_s23  ;;  %s705_s23 = smul.u32 48, %s1273_s14 }
  0xba   : >> { %541 = vmatmul.mubr.bf16.vlgmr.msra.gmra.mxu1 %v1020_v25  ;;  %s706_s24 = sshra.s32 %s705_s23, 3 }
  0xbb   : >> { %921 = vmatprep.mubr.msk.bf16.mxu1 %vm396_vm0, %v1026_v26  ;;  %s938_s25 = sshll.u32 %s706_s24, 2 }
  0xbc   : >> { %s709_s26 = scalar_lea.vmem %s1121_s6, %s938_s25 }
  0xc2   : >> { %549 = vmatmul.mubr.bf16.gmra.mxu1 %v1028_v27 }
  0xc3   : >> { %922 = vmatprep.mubr.msk.bf16.mxu1 %vm396_vm0, %v1029_v28 }
  0xca   : >> { %557 = vmatmul.mubr.bf16.gmra.mxu1 %v1031_v29 }
  0xcb   : >> { %936 = vmatprep.mubr.msk.bf16.mxu1 %vm396_vm0, %v1037_v30 }
 0x109   : >> { %v384_v31 = vpop.permute.xlu0 %383 }
 0x10a   : >> { %407 = vmatpush1.bf16.msra.mxu0 %v384_v31  ;;  %v380_v32 = vpop.permute.xlu1 %379 }
 0x10b   : >> { %408 = vmatprep.subr.bf16.mxu0 %v1064_v13 }
 0x10d   : >> { %v382_v33 = vpop.permute.xlu0 %381 }
 0x10e   : >> { %409 = vmatpush1.bf16.msra.mxu0 %v382_v33  ;;  %v378_v34 = vpop.permute.xlu1 %377 }
 0x10f   : >> { %410 = vmatprep.subr.bf16.mxu0 %v1064_v13 }
 0x111   : >> { %v376_v35 = vpop.permute.xlu0 %375 }
 0x112   : >> { %411 = vmatpush1.bf16.msra.mxu0 %v380_v32  ;;  %v374_v36 = vpop.permute.xlu1 %373 }
 0x113   : >> { %412 = vmatprep.subr.bf16.mxu0 %v1064_v13 }
 0x115   : >> { %v372_v37 = vpop.permute.xlu0 %371 }
 0x116   : >> { %413 = vmatpush1.bf16.msra.mxu0 %v378_v34  ;;  %v370_v38 = vpop.permute.xlu1 %369 }
 0x117   : >> { %414 = vmatprep.subr.bf16.mxu0 %v1064_v13 }
 0x119   : >> { %v614_v39 = vpop.permute.xlu0 %613 }
 0x11a   : >> { %415 = vmatpush1.bf16.msra.mxu0 %v376_v35  ;;  %977 = vmatpush1.bf16.msra.mxu1 %v614_v39  ;;  %v386_v40 = vpop.permute.xlu1 %385 }
 0x11b   : >> { %416 = vmatprep.subr.bf16.mxu0 %v1064_v13  ;;  %969 = vmatprep.subr.bf16.mxu1 %v1064_v13 }
 0x11d   : >> { %v612_v41 = vpop.permute.xlu0 %611 }
 0x11e   : >> { %417 = vmatpush1.bf16.msra.mxu0 %v374_v36  ;;  %978 = vmatpush1.bf16.msra.mxu1 %v612_v41  ;;  %v610_v42 = vpop.permute.xlu1 %609 }
 0x11f   : >> { %418 = vmatprep.subr.bf16.mxu0 %v1064_v13  ;;  %970 = vmatprep.subr.bf16.mxu1 %v1064_v13 }
 0x121   : >> { %v608_v43 = vpop.permute.xlu0 %607 }
 0x122   : >> { %419 = vmatpush1.bf16.msra.mxu0 %v372_v37  ;;  %979 = vmatpush1.bf16.msra.mxu1 %v610_v42  ;;  %v606_v44 = vpop.permute.xlu1 %605 }
 0x123   : >> { %420 = vmatprep.subr.bf16.mxu0 %v1064_v13  ;;  %971 = vmatprep.subr.bf16.mxu1 %v1064_v13 }
 0x125   : >> { %v604_v46 = vpop.permute.xlu0 %603 }
 0x126   : >> { %421 = vmatpush1.bf16.msra.mxu0 %v370_v38  ;;  %980 = vmatpush1.bf16.msra.mxu1 %v608_v43  ;;  %v602_v48 = vpop.permute.xlu1 %601 }
 0x127   : >> { %436 = vmatprep.subr.bf16.mxu0 %v1064_v13  ;;  %972 = vmatprep.subr.bf16.mxu1 %v1064_v13 }
 0x129   : >> { %v600_v50 = vpop.permute.xlu0 %599 }
 0x12a   : >> { %437 = vmatpush2.bf16.msra.mxu0 %v386_v40  ;;  %981 = vmatpush1.bf16.msra.mxu1 %v606_v44  ;;  %v616_v52 = vpop.permute.xlu1 %615 }
 0x12b   : >> { %635 = vmatprep.subr.bf16.mxu0 %v1064_v13  ;;  %973 = vmatprep.subr.bf16.mxu1 %v1064_v13 }
 0x12d   : >> { %439 = vmatmul.mubr.bf16.vlgmr.msra.gmra.mxu0 %v1023_v45 }
 0x12e   : >> { %636 = vmatpush1.bf16.msra.mxu0 %v614_v39  ;;  %982 = vmatpush1.bf16.msra.mxu1 %v604_v46 }
 0x12f   : >> { %637 = vmatprep.subr.bf16.mxu0 %v1064_v13  ;;  %974 = vmatprep.subr.bf16.mxu1 %v1064_v13 }
 0x130   : >> { %912 = vmatprep.mubr.msk.bf16.mxu0 %vm396_vm0, %v1032_v47 }
 0x132   : >> { %638 = vmatpush1.bf16.msra.mxu0 %v612_v41  ;;  %983 = vmatpush1.bf16.msra.mxu1 %v602_v48 }
 0x133   : >> { %639 = vmatprep.subr.bf16.mxu0 %v1064_v13  ;;  %975 = vmatprep.subr.bf16.mxu1 %v1064_v13 }
 0x135   : >> { %447 = vmatmul.mubr.bf16.gmra.mxu0 %v1034_v49 }
 0x136   : >> { %640 = vmatpush1.bf16.msra.mxu0 %v610_v42  ;;  %984 = vmatpush1.bf16.msra.mxu1 %v600_v50 }
 0x137   : >> { %641 = vmatprep.subr.bf16.mxu0 %v1064_v13  ;;  %976 = vmatprep.subr.bf16.mxu1 %v1064_v13 }
 0x138   : >> { %913 = vmatprep.mubr.msk.bf16.mxu0 %vm396_vm0, %v1038_v51 }
 0x13a   : >> { %642 = vmatpush1.bf16.msra.mxu0 %v608_v43  ;;  %985 = vmatpush2.bf16.msra.mxu1 %v616_v52 }
 0x13b   : >> { %643 = vmatprep.subr.bf16.mxu0 %v1064_v13 }
 0x13d   : >> { %676 = vmatmul.mubr.bf16.vlgmr.msra.gmra.mxu1 %v1035_v53  ;;  %455 = vmatmul.mubr.bf16.gmra.mxu0 %v1040_v54 }
 0x13e   : >> { %644 = vmatpush1.bf16.msra.mxu0 %v606_v44  ;;  %937 = vmatprep.mubr.msk.bf16.mxu1 %vm396_vm0, %v1041_v55  ;;  %v966_v55 = vld [vmem:[%s709_s26 + $0x8] sm:$0xff]  }
 0x13f   : >> { %645 = vmatprep.subr.bf16.mxu0 %v1064_v13  ;;  %935 = vmatprep.mubr.msk.bf16.mxu0 %vm396_vm0, %v1046_v56  ;;  %v960_v56 = vunpack.c.l.bf16 %v966_v55 }
 0x142   : >> { %646 = vmatpush1.bf16.msra.mxu0 %v604_v46 }
 0x143   : >> { %647 = vmatprep.subr.bf16.mxu0 %v1064_v13 }
 0x145   : >> { %684 = vmatmul.mubr.bf16.gmra.mxu1 %v1043_v57 }
 0x146   : >> { %648 = vmatpush1.bf16.msra.mxu0 %v602_v48 }
 0x147   : >> { %649 = vmatprep.subr.bf16.mxu0 %v1064_v13 }
 0x14a   : >> { %650 = vmatpush1.bf16.msra.mxu0 %v600_v50 }
 0x14b   : >> { %665 = vmatprep.subr.bf16.mxu0 %v1064_v13 }
 0x14e   : >> { %666 = vmatpush2.bf16.msra.mxu0 %v616_v52 }
 0x151   : >> { %668 = vmatmul.mubr.bf16.vlgmr.msra.gmra.mxu0 %v1044_v58 }
 0x17a   : >> { %v542_v59 = vpop.f32.mrf.mxu1 }
 0x17c   : >> { %v544_v60 = vpop.f32.mrf.mxu1 }
 0x17e   : >> { %v545_v61 = vpop.f32.mrf.mxu1 }
 0x180   : >> { %v547_v62 = vpop.f32.mrf.mxu1 }
 0x182   : >> { %v550_v63 = vpop.f32.mrf.mxu1 }
 0x184   : >> { %v552_v0 = vpop.f32.mrf.mxu1 }
 0x186   : >> { %v553_v1 = vpop.f32.mrf.mxu1 }
 0x188   : >> { %v555_v2 = vpop.f32.mrf.mxu1 }
 0x189   : >> { %v955_v2 = vld [vmem:[%s709_s26] sm:$0xff]  }
 0x18a   : >> { %v558_v3 = vpop.f32.mrf.mxu1 }
 0x18c   : >> { %v560_v4 = vpop.f32.mrf.mxu1 }
 0x18d   : >> { %v967_v4 = vld [vmem:[%s709_s26 + $0x10] sm:$0xff]  }
 0x18e   : >> { %v561_v5 = vpop.f32.mrf.mxu1 }
 0x190   : >> { %v563_v6 = vpop.f32.mrf.mxu1 }
 0x1ed   : >> { %v440_v14 = vpop.f32.mrf.mxu0 }
 0x1ee   : >> { %v543_v39 = vadd.f32 %v542_v59, %v440_v14  ;;  %v961_v59 = vunpack.c.h.bf16 %v966_v55  ;;  %v957_v14 = vunpack.c.h.bf16 %v955_v2 }
 0x1ef   : >> { %v442_v13 = vpop.f32.mrf.mxu0 }
 0x1f0   : >> { %v964_v13 = vunpack.c.l.bf16 %v967_v4 }
 0x1f1   : >> { %v443_v15 = vpop.f32.mrf.mxu0 }
 0x1f2   : >> { %v546_v44 = vadd.f32 %v545_v61, %v443_v15 }
 0x1f3   : >> { %v445_v16 = vpop.f32.mrf.mxu0 }
 0x1f5   : >> { %v448_v17 = vpop.f32.mrf.mxu0 }
 0x1f6   : >> { %v551_v20 = vadd.f32 %v550_v63, %v448_v17 }
 0x1f7   : >> { %v450_v18 = vpop.f32.mrf.mxu0 }
 0x1f9   : >> { %v451_v19 = vpop.f32.mrf.mxu0 }
 0x1fa   : >> { %v554_v27 = vadd.f32 %v553_v1, %v451_v19 }
 0x1fb   : >> { %v453_v21 = vpop.f32.mrf.mxu0 }
 0x1fc   : >> { %v965_v21 = vunpack.c.h.bf16 %v967_v4 }
 0x1fd   : >> { %v677_v22 = vpop.f32.mrf.mxu1  ;;  %v456_v23 = vpop.f32.mrf.mxu0 }
 0x1fe   : >> { %v694_v24 = vadd.f32 %v677_v22, %v551_v20  ;;  %v559_v40 = vadd.f32 %v558_v3, %v456_v23  ;;  %v956_v3 = vunpack.c.l.bf16 %v955_v2 }
 0x1ff   : >> { %v679_v25 = vpop.f32.mrf.mxu1  ;;  %v458_v26 = vpop.f32.mrf.mxu0 }
 0x200   : >> { %v700_v28 = vadd.f32 %v694_v24, %v1134_v7 }
 0x201   : >> { %v680_v29 = vpop.f32.mrf.mxu1  ;;  %v459_v30 = vpop.f32.mrf.mxu0 }
 0x202   : >> { %v695_v31 = vadd.f32 %v680_v29, %v554_v27  ;;  %732 = vrot.lane.b32.xlu0 %v700_v28, %s1067_s22  ;;  %v562_v48 = vadd.f32 %v561_v5, %v459_v30 }
 0x203   : >> { %v682_v32 = vpop.f32.mrf.mxu1  ;;  %v461_v33 = vpop.f32.mrf.mxu0 }
 0x204   : >> { %v701_v34 = vadd.f32 %v695_v31, %v1138_v9 }
 0x205   : >> { %v685_v35 = vpop.f32.mrf.mxu1 }
 0x206   : >> { %734 = vrot.lane.b32.xlu1 %v701_v34, %s1067_s22  ;;  %v696_v45 = vadd.f32 %v685_v35, %v559_v40 }
 0x207   : >> { %v687_v36 = vpop.f32.mrf.mxu1 }
 0x208   : >> { %v702_v51 = vadd.f32 %v696_v45, %v1144_v12 }
 0x209   : >> { %v688_v37 = vpop.f32.mrf.mxu1 }
 0x20a   : >> { %v697_v52 = vadd.f32 %v688_v37, %v562_v48 }
 0x20b   : >> { %v690_v38 = vpop.f32.mrf.mxu1 }
 0x20c   : >> { %v703_v54 = vadd.f32 %v697_v52, %v1142_v11 }
 0x211   : >> { %v669_v41 = vpop.f32.mrf.mxu0 }
 0x212   : >> { %v692_v42 = vadd.f32 %v669_v41, %v543_v39 }
 0x213   : >> { %v671_v43 = vpop.f32.mrf.mxu0 }
 0x214   : >> { %v698_v46 = vadd.f32 %v692_v42, %v1136_v8 }
 0x215   : >> { %v672_v47 = vpop.f32.mrf.mxu0 }
 0x216   : >> { %v693_v49 = vadd.f32 %v672_v47, %v546_v44  ;;  %728 = vrot.lane.b32.xlu0 %v698_v46, %s1067_s22 }
 0x217   : >> { %v674_v50 = vpop.f32.mrf.mxu0 }
 0x218   : >> { %v699_v53 = vadd.f32 %v693_v49, %v1140_v10 }
 0x21a   : >> { %730 = vrot.lane.b32.xlu1 %v699_v53, %s1067_s22  ;;  %736 = vrot.lane.b32.xlu0 %v702_v51, %s1067_s22 }
 0x21e   : >> { %738 = vrot.lane.b32.xlu1 %v703_v54, %s1067_s22 }
 0x274   : >> { %v733_v57 = vpop.permute.xlu0 %732 }
 0x275   : >> { %v748_v58 = vsub.f32 %v960_v56, %v733_v57 }
 0x277   : >> { %v754_v60 = vmax.f32 %v748_v58, 0.0 }
 0x278   : >> { %v735_v61 = vpop.permute.xlu1 %734 }
 0x279   : >> { %v950_v62 = vpack.c.bf16 %v754_v60, %v754_v60  ;;  %v749_v63 = vsub.f32 %v961_v59, %v735_v61 }
 0x27b   : >> { %v755_v0 = vmax.f32 %v749_v63, 0.0  ;;  %780 = vrot.lane.b32.xlu0 %v950_v62, %s1065_s20 }
 0x27d   : >> { %v951_v1 = vpack.c.bf16 %v755_v0, %v755_v0 }
 0x27f   : >> { %782 = vrot.lane.b32.xlu1 %v951_v1, %s1065_s20 }
 0x288   : >> { %v729_v5 = vpop.permute.xlu0 %728 }
 0x289   : >> { %v746_v6 = vsub.f32 %v956_v3, %v729_v5 }
 0x28b   : >> { %v752_v15 = vmax.f32 %v746_v6, 0.0 }
 0x28c   : >> { %v731_v16 = vpop.permute.xlu1 %730  ;;  %v737_v17 = vpop.permute.xlu0 %736 }
 0x28d   : >> { %v948_v18 = vpack.c.bf16 %v752_v15, %v752_v15  ;;  %v747_v19 = vsub.f32 %v957_v14, %v731_v16  ;;  %v750_v20 = vsub.f32 %v964_v13, %v737_v17 }
 0x28f   : >> { %v753_v22 = vmax.f32 %v747_v19, 0.0  ;;  %v756_v23 = vmax.f32 %v750_v20, 0.0  ;;  %776 = vrot.lane.b32.xlu0 %v948_v18, %s1065_s20 }
 0x290   : >> { %v739_v24 = vpop.permute.xlu1 %738 }
 0x291   : >> { %v949_v25 = vpack.c.bf16 %v753_v22, %v753_v22  ;;  %v952_v26 = vpack.c.bf16 %v756_v23, %v756_v23  ;;  %v751_v27 = vsub.f32 %v965_v21, %v739_v24 }
 0x293   : >> { %v757_v28 = vmax.f32 %v751_v27, 0.0  ;;  %778 = vrot.lane.b32.xlu1 %v949_v25, %s1065_s20  ;;  %784 = vrot.lane.b32.xlu0 %v952_v26, %s1065_s20 }
 0x295   : >> { %v953_v29 = vpack.c.bf16 %v757_v28, %v757_v28 }
 0x297   : >> { %786 = vrot.lane.b32.xlu1 %v953_v29, %s1065_s20 }
 0x2ed   : >> { %v781_v30 = vpop.permute.xlu0 %780 }
 0x2ee   : >> { %799 = vst.msk [vmem:[%s795_s27 + $0x8] sm:$0xf] %vm796_vm1, %v781_v30 }
 0x2f1   : >> { %v783_v31 = vpop.permute.xlu1 %782 }
 0x2f2   : >> { %800 = vst.msk [vmem:[%s795_s27 + $0xc] sm:$0xf] %vm796_vm1, %v783_v31 }
 0x301   : >> { %v777_v32 = vpop.permute.xlu0 %776 }
 0x302   : >> { %797 = vst.msk [vmem:[%s795_s27] sm:$0xf] %vm796_vm1, %v777_v32 }
 0x305   : >> { %v779_v33 = vpop.permute.xlu1 %778  ;;  %v785_v34 = vpop.permute.xlu0 %784 }
 0x306   : >> { %798 = vst.msk [vmem:[%s795_s27 + $0x4] sm:$0xf] %vm796_vm1, %v779_v33  ;;  %801 = vst.msk [vmem:[%s795_s27 + $0x10] sm:$0xf] %vm796_vm1, %v785_v34  ;;  %259 = sbr.rel (!%p257_p4) target bundleno = 145 (0x91), region = 81 }
 0x309   : >> { %v787_v35 = vpop.permute.xlu1 %786 }
 0x30a   : >> { %802 = vst.msk [vmem:[%s795_s27 + $0x14] sm:$0xf] %vm796_vm1, %v787_v35 }
 0x30b PF: > { %s14_s15 = sadd.s32 1, %s1057_s15  }
 0x30c   : > { %p11_p5 = scmp.ge.s32.totalorder %s14_s15, 4  }
 0x30e   :  { %13 = sbr.rel (!%p11_p5) target bundleno = 1 (0x1), region = 92 }

// kernel: forward.28
= control target key start
LH: loop header
LB: loop body
LE: loop exit
PB: predicated region body
PF: predicated region fallthrough
CT: control target
= control target key end

     0   :  { %s508_s6 = smov 0   ;;  %s572_s0 = inlined_call_operand.vmem [shape: bf16[2,704,22], index: 0, kind: input, shape index: {}]   ;;  %s573_s1 = inlined_call_operand.vmem [shape: bf16[2,352,11], index: 1, kind: output, shape index: {}]  }
   0x1 LB: > { %s380_s7 = sadd.s32 4294967295, %s490_s6   ;;  %p384_p0 = scmp.ge.s32.totalorder %s490_s6, 1  ;;  %s490_s6 = sphi %s508_s6, %s11_s6  }
   0x2   : > { %p87_p1 = scmp.lt.s32.totalorder %s490_s6, 3 }
   0x4   : > { %p88_p2 = pnand %p384_p0, %p87_p1 }
   0x5   : > { %p107_p3 = scmp.lt.s32.totalorder (!%p88_p2), %s380_s7, 1  ;;  %s536_s16 = smov (!%p88_p2), 0  }
   0x6   : > { %91 = sbr.rel (%p88_p2) target bundleno = 235 (0xeb), region = 24 }
   0xb   : > { %v117_v0 = vlaneseq  ;;  %s579_s7 = smov (!%p107_p3, %s380_s7), 1  ;;  %v496_v9 = vmov 0.0  }
   0xc   : > { %s460_s8 = smul.u32 352, %s579_s7 }
   0xd   : > { %v118_v1 = vshrl.u32 %v117_v0, 7  ;;  %v122_v2 = vand.u32 127, %v117_v0  ;;  %s461_s9 = smul.u32 176, %s579_s7 }
   0xe   : > { %s519_s12 = scalar_lea.vmem %s572_s0, %s460_s8 }
   0xf   : > { %v119_v3 = vadd.s32 8, %v118_v1  ;;  %v120_v4 = vadd.s32 16, %v118_v1  ;;  %v123_v5 = vmul.u32 2, %v122_v2  ;;  %s524_s15 = scalar_lea.vmem %s573_s1, %s461_s9 }
  0x11   : > { %vm124_vm0 = vcmp.ge.s32.totalorder %v118_v1, %v123_v5  ;;  %v127_v6 = vadd.s32 2, %v123_v5  ;;  %vm125_vm1 = vcmp.ge.s32.totalorder %v119_v3, %v123_v5  ;;  %vm126_vm2 = vcmp.ge.s32.totalorder %v120_v4, %v123_v5 }
  0x13   : > { %vm128_vm3 = vcmp.lt.s32.totalorder %v118_v1, %v127_v6  ;;  %vm129_vm4 = vcmp.lt.s32.totalorder %v119_v3, %v127_v6  ;;  %vm130_vm5 = vcmp.lt.s32.totalorder %v120_v4, %v127_v6 }
  0x14   : > { %vm526_vm6 = vmand %vm124_vm0, %vm128_vm3 }
  0x15   : > { %vm530_vm7 = vmand %vm125_vm1, %vm129_vm4 }
  0x16   : > { %vm133_vm8 = vmand %vm126_vm2, %vm130_vm5 }
  0x17   : > { %v534_v10 = vsel %vm133_vm8, 1.0, %v496_v9 }
  0x18 LB: >> { %vm195_vm9 = vcmask 1045504   ;;  %s390_s17 = sshll.u32 %s494_s16, 6  ;;  %v497_v11 = vmov 1.0   ;;  %vm182_vm10 = vcmask 179200   ;;  %s402_s25 = sshll.u32 %s494_s16, 5  ;;  %vm309_vm11 = vcmask 84992   ;;  %s494_s16 = sphi %s536_s16, %s145_s16  }
  0x19   : >> { %442 = vmatprep.subr.msk.mxu0 %vm195_vm9, %v534_v10  ;;  %454 = vmatprep.subr.msk.mxu1 %vm195_vm9, %v534_v10  ;;  %s147_s18 = sshra.s32 %s390_s17, 3  ;;  %s411_s19 = sadd.s32 32, %s390_s17 }
  0x1a   : >> { %443 = vmatpush3.msk.msra.mxu0 %vm195_vm9, %v534_v10  ;;  %457 = vmatpush3.msk.msra.mxu1 %vm195_vm9, %v534_v10  ;;  %s391_s20 = sshll.u32 %s147_s18, 2  ;;  %s166_s21 = sshra.s32 %s411_s19, 3 }
  0x1b   : >> { %444 = vmatprep.subr.msk.mxu0 %vm530_vm7, %v497_v11  ;;  %455 = vmatprep.subr.msk.mxu1 %vm530_vm7, %v497_v11  ;;  %s150_s22 = scalar_lea.vmem %s519_s12, %s391_s20  ;;  %s394_s23 = sshll.u32 %s166_s21, 2 }
  0x1c   : >> { %445 = vmatpush3.msk.msra.mxu0 %vm530_vm7, %v497_v11  ;;  %458 = vmatpush3.msk.msra.mxu1 %vm530_vm7, %v497_v11  ;;  %v417_v12 = vld [vmem:[%s150_s22] sm:$0xff]   ;;  %s169_s24 = scalar_lea.vmem %s519_s12, %s394_s23  ;;  %v432_v13 = vld [vmem:[%s150_s22 + $0x8] sm:$0xff]   ;;  %s305_s26 = sshra.s32 %s402_s25, 3 }
  0x1d   : >> { %446 = vmatprep.subr.msk.mxu0 %vm526_vm6, %v497_v11  ;;  %456 = vmatprep.subr.msk.mxu1 %vm526_vm6, %v497_v11  ;;  %v418_v14 = vunpack.c.l.bf16 %v417_v12  ;;  %v419_v15 = vunpack.c.h.bf16 %v417_v12  ;;  %v425_v16 = vld [vmem:[%s169_s24] sm:$0xff]   ;;  %v422_v17 = vunpack.c.l.bf16 %v432_v13  ;;  %v423_v18 = vunpack.c.h.bf16 %v432_v13  ;;  %v434_v19 = vld [vmem:[%s169_s24 + $0x8] sm:$0xff]   ;;  %s407_s27 = sshll.u32 %s305_s26, 2  ;;  %s145_s16 = sadd.s32 1, %s494_s16  }
  0x1e   : >> { %447 = vmatpush3.msk.msra.mxu0 %vm526_vm6, %v497_v11  ;;  %459 = vmatpush3.msk.msra.mxu1 %vm526_vm6, %v497_v11  ;;  %v426_v20 = vunpack.c.l.bf16 %v425_v16  ;;  %v427_v21 = vunpack.c.h.bf16 %v425_v16  ;;  %v430_v22 = vunpack.c.l.bf16 %v434_v19  ;;  %v431_v23 = vunpack.c.h.bf16 %v434_v19  ;;  %s308_s28 = scalar_lea.vmem %s524_s15, %s407_s27  ;;  %p142_p4 = scmp.ge.s32.totalorder %s145_s16, 11  }
  0x20   : >> { %v178_v24 = vadd.f32 %v426_v20, %v418_v14  ;;  %v180_v25 = vadd.f32 %v430_v22, %v422_v17  ;;  %v179_v26 = vadd.f32 %v427_v21, %v419_v15  ;;  %v181_v27 = vadd.f32 %v431_v23, %v423_v18 }
  0x22   : >> { %448 = vmatprep.mubr.msk.f32.mxu0 %vm182_vm10, %v178_v24  ;;  %451 = vmatprep.mubr.msk.f32.mxu1 %vm182_vm10, %v180_v25 }
  0x23   : >> { %449 = vmatmul.mubr.msk.f32.vlgmr.msra.gmra.mxu0 %vm182_vm10, %v179_v26  ;;  %452 = vmatmul.mubr.msk.f32.vlgmr.msra.gmra.mxu1 %vm182_vm10, %v181_v27 }
  0xe3   : >> { %v450_v28 = vpop.f32.mrf.mxu0  ;;  %v453_v29 = vpop.f32.mrf.mxu1 }
  0xe4   : >> { %v285_v30 = vmul.f32 0.25, %v450_v28  ;;  %v287_v31 = vmul.f32 0.25, %v453_v29 }
  0xe5   : >> { %v265_v32 = vpop.f32.mrf.mxu0  ;;  %v275_v33 = vpop.f32.mrf.mxu1 }
  0xe6   : >> { %v413_v34 = vpack.c.bf16 %v285_v30, %v285_v30  ;;  %v415_v35 = vpack.c.bf16 %v287_v31, %v287_v31  ;;  %v284_v36 = vmul.f32 0.25, %v265_v32  ;;  %v286_v37 = vmul.f32 0.25, %v275_v33  ;;  %144 = sbr.rel (!%p142_p4) target bundleno = 24 (0x18), region = 64 }
  0xe8   : >> { %311 = vst.msk [vmem:[%s308_s28 + $0x4] sm:$0xf] %vm309_vm11, %v413_v34  ;;  %313 = vst.msk [vmem:[%s308_s28 + $0xc] sm:$0xf] %vm309_vm11, %v415_v35  ;;  %v412_v38 = vpack.c.bf16 %v284_v36, %v284_v36  ;;  %v414_v39 = vpack.c.bf16 %v286_v37, %v286_v37 }
  0xea   : >> { %310 = vst.msk [vmem:[%s308_s28] sm:$0xf] %vm309_vm11, %v412_v38  ;;  %312 = vst.msk [vmem:[%s308_s28 + $0x8] sm:$0xf] %vm309_vm11, %v414_v39 }
  0xeb PF: > { %s11_s6 = sadd.s32 1, %s490_s6  }
  0xec   : > { %p8_p5 = scmp.ge.s32.totalorder %s11_s6, 4  }
  0xee   :  { %10 = sbr.rel (!%p8_p5) target bundleno = 1 (0x1), region = 75 }

// kernel: forward.29
= control target key start
LH: loop header
LB: loop body
LE: loop exit
PB: predicated region body
PF: predicated region fallthrough
CT: control target
= control target key end

     0   :  { %s697_s12 = smov 0   ;;  %s778_s0 = inlined_call_operand.vmem [shape: bf16[2,352,11], index: 0, kind: input, shape index: {}]   ;;  %s779_s1 = inlined_call_operand.vmem [shape: bf16[3,16,96], index: 1, kind: input, shape index: {}]   ;;  %s780_s2 = inlined_call_operand.vmem [shape: f32[16,1], index: 2, kind: input, shape index: {}]   ;;  %s781_s3 = inlined_call_operand.vmem [shape: bf16[2,144,9], index: 3, kind: output, shape index: {}]  }
   0x1 LB: > { %s521_s13 = sadd.s32 4294967295, %s666_s12   ;;  %p525_p0 = scmp.ge.s32.totalorder %s666_s12, 1  ;;  %s666_s12 = sphi %s697_s12, %s13_s12  }
   0x2   : > { %p137_p1 = scmp.lt.s32.totalorder %s666_s12, 3 }
   0x4   : > { %p138_p2 = pnand %p525_p0, %p137_p1 }
   0x5   : > { %p161_p3 = scmp.lt.s32.totalorder (!%p138_p2), %s521_s13, 1  ;;  %s725_s26 = smov (!%p138_p2), 0  }
   0x6   : > { %141 = sbr.rel (%p138_p2) target bundleno = 514 (0x202), region = 32 }
   0xb   : > { %v172_v0 = vld [vmem:[%s780_s2] sm:$0xff]  ;;  %v672_v1 = vmov 0   ;;  %s783_s13 = smov (!%p161_p3, %s521_s13), 1  ;;  %v173_v2 = vld [vmem:[%s780_s2 + $0x8] sm:$0xff] }
   0xc   : > { %646 = vset.pattern.permute.xlu0 %v672_v1  ;;  %s623_s18 = smul.u32 176, %s783_s13 }
   0xd   : > { %176 = vperm.xlu0 %646, %v172_v0   ;;  %s624_s19 = smul.u32 72, %s783_s13 }
   0xe   : > { %s714_s22 = scalar_lea.vmem %s778_s0, %s623_s18 }
   0xf   : > { %s719_s25 = scalar_lea.vmem %s781_s3, %s624_s19 }
  0x11   : > { %181 = vperm.xlu0 %646, %v173_v2  }
  0x88   : > { %v721_v3 = vpop.permute.xlu0 %176 }
  0x8c   : > { %v723_v4 = vpop.permute.xlu0 %181 }
  0x8d LB: >> { %v673_v5 = vmov 0.0   ;;  %s528_s27 = sshll.u32 %s670_s26, 5  ;;  %s674_s4 = smov 127   ;;  %vm675_vm0 = vmmov 0   ;;  %v654_v12 = vld [vmem:[%s779_s1] sm:$0xff]   ;;  %vm265_vm1 = vcmask 785408   ;;  %s670_s26 = sphi %s725_s26, %s189_s26  }
  0x8e   : >> { %575 = vmatprep.subr.bf16.mxu0 %v673_v5  ;;  %591 = vmatprep.subr.bf16.mxu1 %v673_v5  ;;  %s191_s28 = sshra.s32 %s528_s27, 3  ;;  %s676_s5 = smov 126   ;;  %v653_v19 = vld [vmem:[%s779_s1 + $0x8] sm:$0xff]   ;;  %v655_v26 = vld [vmem:[%s779_s1 + $0x10] sm:$0xff]   ;;  %vm454_vm2 = vcmask 68608  }
  0x8f   : >> { %s529_s29 = sshll.u32 %s191_s28, 2  ;;  %587 = vmatprep.mubr.msk.bf16.mxu0 %vm675_vm0, %v673_v5  ;;  %603 = vmatprep.mubr.msk.bf16.mxu1 %vm675_vm0, %v673_v5  ;;  %s546_s13 = sshll.u32 %s670_s26, 4 }
  0x90   : >> { %s194_s30 = scalar_lea.vmem %s714_s22, %s529_s29  ;;  %s450_s14 = sshra.s32 %s546_s13, 3 }
  0x91   : >> { %v647_v6 = vld [vmem:[%s194_s30 + $0x28] sm:$0xff]   ;;  %v648_v7 = vld [vmem:[%s194_s30 + $0x20] sm:$0xff]   ;;  %v649_v8 = vld [vmem:[%s194_s30 + $0x18] sm:$0xff]   ;;  %s549_s15 = sshll.u32 %s450_s14, 2  ;;  %s189_s26 = sadd.s32 1, %s670_s26  }
  0x92   : >> { %257 = vrot.lane.b32.xlu0 %v647_v6, %s674_s4  ;;  %592 = vmatpush3.bf16.msra.mxu1 %v647_v6  ;;  %v650_v9 = vld [vmem:[%s194_s30 + $0x10] sm:$0xff]   ;;  %v651_v10 = vld [vmem:[%s194_s30 + $0x8] sm:$0xff]   ;;  %v652_v11 = vld [vmem:[%s194_s30] sm:$0xff]   ;;  %s453_s16 = scalar_lea.vmem %s719_s25, %s549_s15  ;;  %p186_p4 = scmp.ge.s32.totalorder %s189_s26, 9  }
  0x93   : >> { %593 = vmatprep.subr.bf16.mxu1 %v673_v5  ;;  %253 = vrot.lane.b32.xlu1 %v649_v8, %s674_s4 }
  0x96   : >> { %255 = vrot.lane.b32.xlu0 %v648_v7, %s674_s4  ;;  %594 = vmatpush3.bf16.msra.mxu1 %v648_v7 }
  0x97   : >> { %595 = vmatprep.subr.bf16.mxu1 %v673_v5  ;;  %251 = vrot.lane.b32.xlu1 %v650_v9, %s674_s4 }
  0x9a   : >> { %249 = vrot.lane.b32.xlu0 %v651_v10, %s674_s4  ;;  %596 = vmatpush3.bf16.msra.mxu1 %v649_v8 }
  0x9b   : >> { %597 = vmatprep.subr.bf16.mxu1 %v673_v5  ;;  %247 = vrot.lane.b32.xlu1 %v652_v11, %s674_s4 }
  0x9e   : >> { %383 = vrot.lane.b32.xlu0 %v647_v6, %s676_s5  ;;  %598 = vmatpush3.bf16.msra.mxu1 %v650_v9 }
  0x9f   : >> { %599 = vmatprep.subr.bf16.mxu1 %v673_v5  ;;  %381 = vrot.lane.b32.xlu1 %v648_v7, %s676_s5 }
  0xa2   : >> { %379 = vrot.lane.b32.xlu0 %v649_v8, %s676_s5  ;;  %600 = vmatpush3.bf16.msra.mxu1 %v651_v10 }
  0xa3   : >> { %601 = vmatprep.subr.bf16.mxu1 %v673_v5  ;;  %377 = vrot.lane.b32.xlu1 %v650_v9, %s676_s5 }
  0xa6   : >> { %375 = vrot.lane.b32.xlu0 %v651_v10, %s676_s5  ;;  %602 = vmatpush3.bf16.msra.mxu1 %v652_v11 }
  0xa7   : >> { %373 = vrot.lane.b32.xlu1 %v652_v11, %s676_s5 }
  0xa9   : >> { %604 = vmatmul.mubr.msk.bf16.vlgmr.msra.gmra.mxu1 %vm265_vm1, %v654_v12 }
 0x104   : >> { %v258_v13 = vpop.permute.xlu0 %257 }
 0x105   : >> { %576 = vmatpush3.bf16.msra.mxu0 %v258_v13  ;;  %v254_v15 = vpop.permute.xlu1 %253 }
 0x106   : >> { %577 = vmatprep.subr.bf16.mxu0 %v673_v5 }
 0x108   : >> { %v256_v14 = vpop.permute.xlu0 %255 }
 0x109   : >> { %578 = vmatpush3.bf16.msra.mxu0 %v256_v14  ;;  %v252_v16 = vpop.permute.xlu1 %251 }
 0x10a   : >> { %579 = vmatprep.subr.bf16.mxu0 %v673_v5 }
 0x10c   : >> { %v250_v17 = vpop.permute.xlu0 %249 }
 0x10d   : >> { %580 = vmatpush3.bf16.msra.mxu0 %v254_v15  ;;  %v248_v18 = vpop.permute.xlu1 %247 }
 0x10e   : >> { %581 = vmatprep.subr.bf16.mxu0 %v673_v5 }
 0x110   : >> { %v384_v20 = vpop.permute.xlu0 %383 }
 0x111   : >> { %582 = vmatpush3.bf16.msra.mxu0 %v252_v16  ;;  %v382_v21 = vpop.permute.xlu1 %381 }
 0x112   : >> { %583 = vmatprep.subr.bf16.mxu0 %v673_v5 }
 0x114   : >> { %v380_v22 = vpop.permute.xlu0 %379 }
 0x115   : >> { %584 = vmatpush3.bf16.msra.mxu0 %v250_v17  ;;  %v378_v23 = vpop.permute.xlu1 %377 }
 0x116   : >> { %585 = vmatprep.subr.bf16.mxu0 %v673_v5 }
 0x118   : >> { %v376_v24 = vpop.permute.xlu0 %375 }
 0x119   : >> { %586 = vmatpush3.bf16.msra.mxu0 %v248_v18  ;;  %v374_v25 = vpop.permute.xlu1 %373 }
 0x11a   : >> { %607 = vmatprep.subr.bf16.mxu0 %v673_v5 }
 0x11c   : >> { %588 = vmatmul.mubr.msk.bf16.vlgmr.msra.gmra.mxu0 %vm265_vm1, %v653_v19 }
 0x11d   : >> { %608 = vmatpush3.bf16.msra.mxu0 %v384_v20  ;;  %619 = vmatprep.mubr.msk.bf16.mxu0 %vm675_vm0, %v673_v5 }
 0x11e   : >> { %609 = vmatprep.subr.bf16.mxu0 %v673_v5 }
 0x121   : >> { %610 = vmatpush3.bf16.msra.mxu0 %v382_v21 }
 0x122   : >> { %611 = vmatprep.subr.bf16.mxu0 %v673_v5 }
 0x125   : >> { %612 = vmatpush3.bf16.msra.mxu0 %v380_v22 }
 0x126   : >> { %613 = vmatprep.subr.bf16.mxu0 %v673_v5 }
 0x129   : >> { %614 = vmatpush3.bf16.msra.mxu0 %v378_v23 }
 0x12a   : >> { %615 = vmatprep.subr.bf16.mxu0 %v673_v5 }
 0x12d   : >> { %616 = vmatpush3.bf16.msra.mxu0 %v376_v24 }
 0x12e   : >> { %617 = vmatprep.subr.bf16.mxu0 %v673_v5 }
 0x131   : >> { %618 = vmatpush3.bf16.msra.mxu0 %v374_v25 }
 0x134   : >> { %620 = vmatmul.mubr.msk.bf16.vlgmr.msra.gmra.mxu0 %vm265_vm1, %v655_v26 }
 0x169   : >> { %v358_v27 = vpop.f32.mrf.mxu1 }
 0x16b   : >> { %v605_v28 = vpop.f32.mrf.mxu1 }
 0x16d   : >> { %v361_v29 = vpop.f32.mrf.mxu1 }
 0x16f   : >> { %v606_v30 = vpop.f32.mrf.mxu1 }
 0x1dc   : >> { %v303_v31 = vpop.f32.mrf.mxu0 }
 0x1dd   : >> { %v359_v35 = vadd.f32 %v358_v27, %v303_v31 }
 0x1de   : >> { %v589_v32 = vpop.f32.mrf.mxu0 }
 0x1e0   : >> { %v306_v33 = vpop.f32.mrf.mxu0 }
 0x1e1   : >> { %v362_v39 = vadd.f32 %v361_v29, %v306_v33 }
 0x1e2   : >> { %v590_v34 = vpop.f32.mrf.mxu0 }
 0x1f4   : >> { %v428_v36 = vpop.f32.mrf.mxu0 }
 0x1f5   : >> { %v435_v37 = vadd.f32 %v428_v36, %v359_v35 }
 0x1f6   : >> { %v621_v38 = vpop.f32.mrf.mxu0 }
 0x1f7   : >> { %v437_v40 = vadd.f32 %v435_v37, %v721_v3 }
 0x1f8   : >> { %v431_v41 = vpop.f32.mrf.mxu0 }
 0x1f9   : >> { %v439_v42 = vmax.f32 %v437_v40, 0.0  ;;  %v436_v43 = vadd.f32 %v431_v41, %v362_v39 }
 0x1fa   : >> { %v622_v44 = vpop.f32.mrf.mxu0 }
 0x1fb   : >> { %v552_v45 = vpack.c.bf16 %v439_v42, %v439_v42  ;;  %v438_v46 = vadd.f32 %v436_v43, %v723_v4 }
 0x1fd   : >> { %455 = vst.msk [vmem:[%s453_s16] sm:$0xf] %vm454_vm2, %v552_v45  ;;  %v440_v47 = vmax.f32 %v438_v46, 0.0  ;;  %188 = sbr.rel (!%p186_p4) target bundleno = 141 (0x8d), region = 73 }
 0x1ff   : >> { %v553_v48 = vpack.c.bf16 %v440_v47, %v440_v47 }
 0x201   : >> { %456 = vst.msk [vmem:[%s453_s16 + $0x4] sm:$0xf] %vm454_vm2, %v553_v48 }
 0x202 PF: > { %s13_s12 = sadd.s32 1, %s666_s12  }
 0x203   : > { %p10_p5 = scmp.ge.s32.totalorder %s13_s12, 4  }
 0x205   :  { %12 = sbr.rel (!%p10_p5) target bundleno = 1 (0x1), region = 84 }

// kernel: forward.27
= control target key start
LH: loop header
LB: loop body
LE: loop exit
PB: predicated region body
PF: predicated region fallthrough
CT: control target
= control target key end

     0   :  { %s833_s12 = smov 0   ;;  %s972_s0 = inlined_call_operand.vmem [shape: bf16[2,1152,24], index: 0, kind: input, shape index: {}]   ;;  %s973_s1 = inlined_call_operand.vmem [shape: bf16[3,32,144], index: 1, kind: input, shape index: {}]   ;;  %s974_s2 = inlined_call_operand.vmem [shape: f32[32,1], index: 2, kind: input, shape index: {}]   ;;  %s975_s3 = inlined_call_operand.vmem [shape: bf16[2,704,22], index: 3, kind: output, shape index: {}]  }
   0x1 LB: > { %s669_s13 = sadd.s32 4294967295, %s803_s12   ;;  %p673_p0 = scmp.ge.s32.totalorder %s803_s12, 1  ;;  %s803_s12 = sphi %s833_s12, %s13_s12  }
   0x2   : > { %p137_p1 = scmp.lt.s32.totalorder %s803_s12, 3 }
   0x4   : > { %p138_p2 = pnand %p673_p0, %p137_p1 }
   0x5   : > { %p161_p3 = scmp.lt.s32.totalorder (!%p138_p2), %s669_s13, 1  ;;  %s871_s30 = smov (!%p138_p2), 0  }
   0x6   : > { %141 = sbr.rel (%p138_p2) target bundleno = 539 (0x21b), region = 32 }
   0xb   : > { %v174_v0 = vld [vmem:[%s974_s2 + $0x10] sm:$0xff]  ;;  %v172_v1 = vld [vmem:[%s974_s2] sm:$0xff]  ;;  %v809_v2 = vmov 0   ;;  %s977_s13 = smov (!%p161_p3, %s669_s13), 1  ;;  %v175_v3 = vld [vmem:[%s974_s2 + $0x18] sm:$0xff] }
   0xc   : > { %765 = vset.pattern.permute.xlu1 %v809_v2  ;;  %764 = vset.pattern.permute.xlu0 %v809_v2  ;;  %v173_v4 = vld [vmem:[%s974_s2 + $0x8] sm:$0xff]  ;;  %s742_s22 = smul.u32 576, %s977_s13 }
   0xd   : > { %188 = vperm.xlu1 %765, %v174_v0   ;;  %178 = vperm.xlu0 %764, %v172_v1   ;;  %s743_s23 = smul.u32 352, %s977_s13 }
   0xe   : > { %s856_s26 = scalar_lea.vmem %s972_s0, %s742_s22 }
   0xf   : > { %s861_s29 = scalar_lea.vmem %s975_s3, %s743_s23 }
  0x11   : > { %193 = vperm.xlu1 %765, %v175_v3   ;;  %183 = vperm.xlu0 %764, %v173_v4  }
  0x88   : > { %v863_v5 = vpop.permute.xlu1 %188  ;;  %v865_v6 = vpop.permute.xlu0 %178 }
  0x8c   : > { %v867_v7 = vpop.permute.xlu1 %193  ;;  %v869_v8 = vpop.permute.xlu0 %183 }
  0x8d LB: >> { %v810_v9 = vmov 0   ;;  %s202_s4 = smul.u32 48, %s807_s30  ;;  %s811_s8 = smov 127   ;;  %v777_v18 = vld [vmem:[%s973_s1 + $0x4] ss:$8 sps:$4 sm:$0xff]   ;;  %vm324_vm0 = vcmask 130048   ;;  %s807_s30 = sphi %s871_s30, %s201_s30  }
  0x8e   : >> { %413 = vmatprep.subr.bf16.mxu1 %v810_v9  ;;  %331 = vmatprep.subr.bf16.mxu0 %v810_v9  ;;  %s812_s11 = smov 126   ;;  %v780_v20 = vld [vmem:[%s973_s1 + $0x24] ss:$8 sps:$4 sm:$0xff]   ;;  %v775_v21 = vld [vmem:[%s973_s1] ss:$8 sps:$4 sm:$0xff]   ;;  %vm600_vm1 = vcmask 175104  }
  0x8f   : >> { %s203_s5 = sshra.s32 %s202_s4, 3  ;;  %700 = vmatprep.mubr.msk.bf16.mxu1 %vm324_vm0, %v777_v18  ;;  %694 = vmatprep.mubr.msk.bf16.mxu0 %vm324_vm0, %v780_v20  ;;  %v781_v22 = vld [vmem:[%s973_s1 + $0x14] ss:$8 sps:$4 sm:$0xff]   ;;  %v783_v23 = vld [vmem:[%s973_s1 + $0x10] ss:$8 sps:$4 sm:$0xff]  }
  0x90   : >> { %s676_s6 = sshll.u32 %s203_s5, 2  ;;  %v789_v24 = vld [vmem:[%s973_s1 + $0x54] ss:$8 sps:$4 sm:$0xff]   ;;  %v778_v38 = vld [vmem:[%s973_s1 + $0x20] ss:$8 sps:$4 sm:$0xff]  }
  0x91   : >> { %s206_s7 = scalar_lea.vmem %s856_s26, %s676_s6  ;;  %v784_v40 = vld [vmem:[%s973_s1 + $0x34] ss:$8 sps:$4 sm:$0xff]   ;;  %v786_v43 = vld [vmem:[%s973_s1 + $0x30] ss:$8 sps:$4 sm:$0xff]   ;;  %v792_v44 = vld [vmem:[%s973_s1 + $0x44] ss:$8 sps:$4 sm:$0xff]  }
  0x92   : >> { %v766_v10 = vld [vmem:[%s206_s7 + $0x38] sm:$0xff]   ;;  %v767_v11 = vld [vmem:[%s206_s7 + $0x30] sm:$0xff]   ;;  %v768_v12 = vld [vmem:[%s206_s7 + $0x28] sm:$0xff]  }
  0x93   : >> { %311 = vrot.lane.b32.xlu0 %v766_v10, %s811_s8  ;;  %414 = vmatpush1.bf16.msra.mxu1 %v766_v10  ;;  %v769_v13 = vld [vmem:[%s206_s7 + $0x20] sm:$0xff]   ;;  %v770_v14 = vld [vmem:[%s206_s7 + $0x18] sm:$0xff]   ;;  %v771_v15 = vld [vmem:[%s206_s7 + $0x10] sm:$0xff]  }
  0x94   : >> { %415 = vmatprep.subr.bf16.mxu1 %v810_v9  ;;  %307 = vrot.lane.b32.xlu1 %v768_v12, %s811_s8  ;;  %v772_v16 = vld [vmem:[%s206_s7 + $0x8] sm:$0xff]   ;;  %v773_v17 = vld [vmem:[%s206_s7] sm:$0xff]   ;;  %v787_v47 = vld [vmem:[%s973_s1 + $0x50] ss:$8 sps:$4 sm:$0xff]  }
  0x95   : >> { %v774_v19 = vld [vmem:[%s206_s7 + $0x40] sm:$0xff]  }
  0x96   : >> { %v790_v48 = vld [vmem:[%s973_s1 + $0x40] ss:$8 sps:$4 sm:$0xff]  }
  0x97   : >> { %309 = vrot.lane.b32.xlu0 %v767_v11, %s811_s8  ;;  %416 = vmatpush1.bf16.msra.mxu1 %v767_v11 }
  0x98   : >> { %417 = vmatprep.subr.bf16.mxu1 %v810_v9  ;;  %305 = vrot.lane.b32.xlu1 %v769_v13, %s811_s8 }
  0x9b   : >> { %303 = vrot.lane.b32.xlu0 %v770_v14, %s811_s8  ;;  %418 = vmatpush1.bf16.msra.mxu1 %v768_v12 }
  0x9c   : >> { %419 = vmatprep.subr.bf16.mxu1 %v810_v9  ;;  %301 = vrot.lane.b32.xlu1 %v771_v15, %s811_s8 }
  0x9f   : >> { %299 = vrot.lane.b32.xlu0 %v772_v16, %s811_s8  ;;  %420 = vmatpush1.bf16.msra.mxu1 %v769_v13 }
  0xa0   : >> { %421 = vmatprep.subr.bf16.mxu1 %v810_v9  ;;  %297 = vrot.lane.b32.xlu1 %v773_v17, %s811_s8 }
  0xa3   : >> { %313 = vrot.lane.b32.xlu0 %v774_v19, %s811_s8  ;;  %422 = vmatpush1.bf16.msra.mxu1 %v770_v14 }
  0xa4   : >> { %423 = vmatprep.subr.bf16.mxu1 %v810_v9  ;;  %499 = vrot.lane.b32.xlu1 %v766_v10, %s812_s11 }
  0xa7   : >> { %497 = vrot.lane.b32.xlu0 %v767_v11, %s812_s11  ;;  %424 = vmatpush1.bf16.msra.mxu1 %v771_v15 }
  0xa8   : >> { %425 = vmatprep.subr.bf16.mxu1 %v810_v9  ;;  %495 = vrot.lane.b32.xlu1 %v768_v12, %s812_s11 }
  0xab   : >> { %493 = vrot.lane.b32.xlu0 %v769_v13, %s812_s11  ;;  %426 = vmatpush1.bf16.msra.mxu1 %v772_v16 }
  0xac   : >> { %427 = vmatprep.subr.bf16.mxu1 %v810_v9  ;;  %491 = vrot.lane.b32.xlu1 %v770_v14, %s812_s11 }
  0xaf   : >> { %489 = vrot.lane.b32.xlu0 %v771_v15, %s812_s11  ;;  %428 = vmatpush1.bf16.msra.mxu1 %v773_v17 }
  0xb0   : >> { %443 = vmatprep.subr.bf16.mxu1 %v810_v9  ;;  %487 = vrot.lane.b32.xlu1 %v772_v16, %s812_s11 }
  0xb3   : >> { %485 = vrot.lane.b32.xlu0 %v773_v17, %s812_s11  ;;  %444 = vmatpush2.bf16.msra.mxu1 %v774_v19 }
  0xb4   : >> { %724 = vmatprep.subr.bf16.mxu1 %v810_v9  ;;  %501 = vrot.lane.b32.xlu1 %v774_v19, %s812_s11  ;;  %s712_s11 = sshll.u32 %s807_s30, 5  ;;  %s201_s30 = sadd.s32 1, %s807_s30  }
  0xb5   : >> { %s596_s13 = sshra.s32 %s712_s11, 3  ;;  %p198_p4 = scmp.ge.s32.totalorder %s201_s30, 22  }
  0xb6   : >> { %446 = vmatmul.mubr.bf16.vlgmr.msra.gmra.mxu1 %v775_v21  ;;  %s717_s14 = sshll.u32 %s596_s13, 2 }
  0xb7   : >> { %701 = vmatprep.mubr.msk.bf16.mxu1 %vm324_vm0, %v781_v22  ;;  %s599_s15 = scalar_lea.vmem %s861_s29, %s717_s14 }
  0xbe   : >> { %454 = vmatmul.mubr.bf16.gmra.mxu1 %v783_v23 }
  0xbf   : >> { %711 = vmatprep.mubr.msk.bf16.mxu1 %vm324_vm0, %v789_v24 }
 0x105   : >> { %v312_v25 = vpop.permute.xlu0 %311 }
 0x106   : >> { %332 = vmatpush1.bf16.msra.mxu0 %v312_v25  ;;  %v308_v26 = vpop.permute.xlu1 %307 }
 0x107   : >> { %333 = vmatprep.subr.bf16.mxu0 %v810_v9 }
 0x109   : >> { %v310_v27 = vpop.permute.xlu0 %309 }
 0x10a   : >> { %334 = vmatpush1.bf16.msra.mxu0 %v310_v27  ;;  %v306_v28 = vpop.permute.xlu1 %305 }
 0x10b   : >> { %335 = vmatprep.subr.bf16.mxu0 %v810_v9 }
 0x10d   : >> { %v304_v29 = vpop.permute.xlu0 %303 }
 0x10e   : >> { %336 = vmatpush1.bf16.msra.mxu0 %v308_v26  ;;  %v302_v30 = vpop.permute.xlu1 %301 }
 0x10f   : >> { %337 = vmatprep.subr.bf16.mxu0 %v810_v9 }
 0x111   : >> { %v300_v31 = vpop.permute.xlu0 %299 }
 0x112   : >> { %338 = vmatpush1.bf16.msra.mxu0 %v306_v28  ;;  %v298_v32 = vpop.permute.xlu1 %297 }
 0x113   : >> { %339 = vmatprep.subr.bf16.mxu0 %v810_v9 }
 0x115   : >> { %v314_v33 = vpop.permute.xlu0 %313 }
 0x116   : >> { %340 = vmatpush1.bf16.msra.mxu0 %v304_v29  ;;  %v500_v34 = vpop.permute.xlu1 %499 }
 0x117   : >> { %341 = vmatprep.subr.bf16.mxu0 %v810_v9  ;;  %733 = vmatpush1.bf16.msra.mxu1 %v500_v34 }
 0x118   : >> { %725 = vmatprep.subr.bf16.mxu1 %v810_v9 }
 0x119   : >> { %v498_v35 = vpop.permute.xlu0 %497 }
 0x11a   : >> { %342 = vmatpush1.bf16.msra.mxu0 %v302_v30  ;;  %v496_v36 = vpop.permute.xlu1 %495 }
 0x11b   : >> { %343 = vmatprep.subr.bf16.mxu0 %v810_v9  ;;  %734 = vmatpush1.bf16.msra.mxu1 %v498_v35 }
 0x11c   : >> { %726 = vmatprep.subr.bf16.mxu1 %v810_v9 }
 0x11d   : >> { %v494_v37 = vpop.permute.xlu0 %493 }
 0x11e   : >> { %344 = vmatpush1.bf16.msra.mxu0 %v300_v31  ;;  %v492_v39 = vpop.permute.xlu1 %491 }
 0x11f   : >> { %345 = vmatprep.subr.bf16.mxu0 %v810_v9  ;;  %735 = vmatpush1.bf16.msra.mxu1 %v496_v36 }
 0x120   : >> { %727 = vmatprep.subr.bf16.mxu1 %v810_v9 }
 0x121   : >> { %v490_v41 = vpop.permute.xlu0 %489 }
 0x122   : >> { %346 = vmatpush1.bf16.msra.mxu0 %v298_v32  ;;  %v488_v42 = vpop.permute.xlu1 %487 }
 0x123   : >> { %361 = vmatprep.subr.bf16.mxu0 %v810_v9  ;;  %736 = vmatpush1.bf16.msra.mxu1 %v494_v37 }
 0x124   : >> { %728 = vmatprep.subr.bf16.mxu1 %v810_v9 }
 0x125   : >> { %v486_v45 = vpop.permute.xlu0 %485 }
 0x126   : >> { %362 = vmatpush2.bf16.msra.mxu0 %v314_v33  ;;  %v502_v46 = vpop.permute.xlu1 %501 }
 0x127   : >> { %518 = vmatprep.subr.bf16.mxu0 %v810_v9  ;;  %737 = vmatpush1.bf16.msra.mxu1 %v492_v39 }
 0x128   : >> { %729 = vmatprep.subr.bf16.mxu1 %v810_v9 }
 0x129   : >> { %364 = vmatmul.mubr.bf16.vlgmr.msra.gmra.mxu0 %v778_v38 }
 0x12a   : >> { %519 = vmatpush1.bf16.msra.mxu0 %v500_v34  ;;  %695 = vmatprep.mubr.msk.bf16.mxu0 %vm324_vm0, %v784_v40 }
 0x12b   : >> { %520 = vmatprep.subr.bf16.mxu0 %v810_v9  ;;  %738 = vmatpush1.bf16.msra.mxu1 %v490_v41 }
 0x12c   : >> { %730 = vmatprep.subr.bf16.mxu1 %v810_v9 }
 0x12e   : >> { %521 = vmatpush1.bf16.msra.mxu0 %v498_v35 }
 0x12f   : >> { %522 = vmatprep.subr.bf16.mxu0 %v810_v9  ;;  %739 = vmatpush1.bf16.msra.mxu1 %v488_v42 }
 0x130   : >> { %731 = vmatprep.subr.bf16.mxu1 %v810_v9 }
 0x131   : >> { %372 = vmatmul.mubr.bf16.gmra.mxu0 %v786_v43 }
 0x132   : >> { %523 = vmatpush1.bf16.msra.mxu0 %v496_v36  ;;  %710 = vmatprep.mubr.msk.bf16.mxu0 %vm324_vm0, %v792_v44 }
 0x133   : >> { %524 = vmatprep.subr.bf16.mxu0 %v810_v9  ;;  %740 = vmatpush1.bf16.msra.mxu1 %v486_v45 }
 0x134   : >> { %732 = vmatprep.subr.bf16.mxu1 %v810_v9 }
 0x136   : >> { %525 = vmatpush1.bf16.msra.mxu0 %v494_v37 }
 0x137   : >> { %526 = vmatprep.subr.bf16.mxu0 %v810_v9  ;;  %741 = vmatpush2.bf16.msra.mxu1 %v502_v46 }
 0x13a   : >> { %527 = vmatpush1.bf16.msra.mxu0 %v492_v39  ;;  %559 = vmatmul.mubr.bf16.vlgmr.msra.gmra.mxu1 %v787_v47 }
 0x13b   : >> { %528 = vmatprep.subr.bf16.mxu0 %v810_v9 }
 0x13e   : >> { %529 = vmatpush1.bf16.msra.mxu0 %v490_v41 }
 0x13f   : >> { %530 = vmatprep.subr.bf16.mxu0 %v810_v9 }
 0x142   : >> { %531 = vmatpush1.bf16.msra.mxu0 %v488_v42 }
 0x143   : >> { %532 = vmatprep.subr.bf16.mxu0 %v810_v9 }
 0x146   : >> { %533 = vmatpush1.bf16.msra.mxu0 %v486_v45 }
 0x147   : >> { %548 = vmatprep.subr.bf16.mxu0 %v810_v9 }
 0x14a   : >> { %549 = vmatpush2.bf16.msra.mxu0 %v502_v46 }
 0x14d   : >> { %551 = vmatmul.mubr.bf16.vlgmr.msra.gmra.mxu0 %v790_v48 }
 0x176   : >> { %v447_v49 = vpop.f32.mrf.mxu1 }
 0x178   : >> { %v449_v50 = vpop.f32.mrf.mxu1 }
 0x17a   : >> { %v450_v51 = vpop.f32.mrf.mxu1 }
 0x17c   : >> { %v452_v52 = vpop.f32.mrf.mxu1 }
 0x17e   : >> { %v455_v53 = vpop.f32.mrf.mxu1 }
 0x180   : >> { %v457_v54 = vpop.f32.mrf.mxu1 }
 0x182   : >> { %v458_v55 = vpop.f32.mrf.mxu1 }
 0x184   : >> { %v460_v56 = vpop.f32.mrf.mxu1 }
 0x1e9   : >> { %v365_v57 = vpop.f32.mrf.mxu0 }
 0x1ea   : >> { %v448_v19 = vadd.f32 %v447_v49, %v365_v57 }
 0x1eb   : >> { %v367_v58 = vpop.f32.mrf.mxu0 }
 0x1ed   : >> { %v368_v59 = vpop.f32.mrf.mxu0 }
 0x1ee   : >> { %v451_v23 = vadd.f32 %v450_v51, %v368_v59 }
 0x1ef   : >> { %v370_v60 = vpop.f32.mrf.mxu0 }
 0x1f1   : >> { %v373_v61 = vpop.f32.mrf.mxu0 }
 0x1f2   : >> { %v456_v1 = vadd.f32 %v455_v53, %v373_v61 }
 0x1f3   : >> { %v375_v62 = vpop.f32.mrf.mxu0 }
 0x1f5   : >> { %v376_v63 = vpop.f32.mrf.mxu0 }
 0x1f6   : >> { %v459_v3 = vadd.f32 %v458_v55, %v376_v63 }
 0x1f7   : >> { %v378_v0 = vpop.f32.mrf.mxu0 }
 0x1fa   : >> { %v560_v2 = vpop.f32.mrf.mxu1 }
 0x1fb   : >> { %v569_v4 = vadd.f32 %v560_v2, %v456_v1 }
 0x1fc   : >> { %v562_v9 = vpop.f32.mrf.mxu1 }
 0x1fd   : >> { %v573_v10 = vadd.f32 %v569_v4, %v863_v5 }
 0x1fe   : >> { %v563_v11 = vpop.f32.mrf.mxu1 }
 0x1ff   : >> { %v577_v12 = vmax.f32 %v573_v10, 0.0  ;;  %v570_v13 = vadd.f32 %v563_v11, %v459_v3 }
 0x200   : >> { %v565_v14 = vpop.f32.mrf.mxu1 }
 0x201   : >> { %v722_v15 = vpack.c.bf16 %v577_v12, %v577_v12  ;;  %v574_v16 = vadd.f32 %v570_v13, %v867_v7 }
 0x203   : >> { %603 = vst.msk [vmem:[%s599_s15 + $0x8] sm:$0xf] %vm600_vm1, %v722_v15  ;;  %v578_v17 = vmax.f32 %v574_v16, 0.0 }
 0x205   : >> { %v723_v18 = vpack.c.bf16 %v578_v17, %v578_v17 }
 0x207   : >> { %604 = vst.msk [vmem:[%s599_s15 + $0xc] sm:$0xf] %vm600_vm1, %v723_v18 }
 0x20d   : >> { %v552_v20 = vpop.f32.mrf.mxu0 }
 0x20e   : >> { %v567_v21 = vadd.f32 %v552_v20, %v448_v19 }
 0x20f   : >> { %v554_v22 = vpop.f32.mrf.mxu0 }
 0x210   : >> { %v571_v24 = vadd.f32 %v567_v21, %v865_v6 }
 0x211   : >> { %v555_v25 = vpop.f32.mrf.mxu0 }
 0x212   : >> { %v575_v26 = vmax.f32 %v571_v24, 0.0  ;;  %v568_v27 = vadd.f32 %v555_v25, %v451_v23 }
 0x213   : >> { %v557_v28 = vpop.f32.mrf.mxu0 }
 0x214   : >> { %v720_v29 = vpack.c.bf16 %v575_v26, %v575_v26  ;;  %v572_v30 = vadd.f32 %v568_v27, %v869_v8 }
 0x216   : >> { %601 = vst.msk [vmem:[%s599_s15] sm:$0xf] %vm600_vm1, %v720_v29  ;;  %v576_v31 = vmax.f32 %v572_v30, 0.0  ;;  %200 = sbr.rel (!%p198_p4) target bundleno = 141 (0x8d), region = 73 }
 0x218   : >> { %v721_v32 = vpack.c.bf16 %v576_v31, %v576_v31 }
 0x21a   : >> { %602 = vst.msk [vmem:[%s599_s15 + $0x4] sm:$0xf] %vm600_vm1, %v721_v32 }
 0x21b PF: > { %s13_s12 = sadd.s32 1, %s803_s12  }
 0x21c   : > { %p10_p5 = scmp.ge.s32.totalorder %s13_s12, 4  }
 0x21e   :  { %12 = sbr.rel (!%p10_p5) target bundleno = 1 (0x1), region = 84 }

// kernel: forward.30
= control target key start
LH: loop header
LB: loop body
LE: loop exit
PB: predicated region body
PF: predicated region fallthrough
CT: control target
= control target key end

     0   :  { %s934_s12 = smov 0   ;;  %s1053_s0 = inlined_call_operand.vmem [shape: bf16[2,144,9], index: 0, kind: input, shape index: {}]   ;;  %s1054_s1 = inlined_call_operand.vmem [shape: bf16[3,16,48], index: 1, kind: input, shape index: {}]   ;;  %s1055_s2 = inlined_call_operand.vmem [shape: f32[16,1], index: 2, kind: input, shape index: {}]   ;;  %s1056_s3 = inlined_call_operand.vmem [shape: bf16[2,48,3], index: 3, kind: output, shape index: {}]  }
   0x1 LB: > { %s741_s13 = sadd.s32 4294967295, %s903_s12   ;;  %p745_p0 = scmp.ge.s32.totalorder %s903_s12, 1  ;;  %s903_s12 = sphi %s934_s12, %s13_s12  }
   0x2   : > { %p137_p1 = scmp.lt.s32.totalorder %s903_s12, 3 }
   0x4   : > { %p138_p2 = pnand %p745_p0, %p137_p1 }
   0x5   : > { %p161_p3 = scmp.lt.s32.totalorder (!%p138_p2), %s741_s13, 1  ;;  %s988_s26 = smov (!%p138_p2), 0  }
   0x6   : > { %141 = sbr.rel (%p138_p2) target bundleno = 571 (0x23b), region = 32 }
   0xb   : > { %v172_v0 = vld [vmem:[%s1055_s2] sm:$0xff]  ;;  %v184_v1 = vlaneseq  ;;  %v909_v2 = vmov 0   ;;  %s1058_s13 = smov (!%p161_p3, %s741_s13), 1  ;;  %v173_v5 = vld [vmem:[%s1055_s2 + $0x8] sm:$0xff]  ;;  %v910_v10 = vmov 0.0  }
   0xc   : > { %886 = vset.pattern.permute.xlu0 %v909_v2  ;;  %s863_s18 = smul.u32 72, %s1058_s13 }
   0xd   : > { %176 = vperm.xlu0 %886, %v172_v0   ;;  %v945_v3 = vshrl.u32 %v184_v1, 7  ;;  %v188_v4 = vand.u32 127, %v184_v1  ;;  %s864_s19 = smul.u32 24, %s1058_s13 }
   0xe   : > { %s956_s22 = scalar_lea.vmem %s1053_s0, %s863_s18 }
   0xf   : > { %v186_v6 = vadd.s32 8, %v945_v3  ;;  %v951_v7 = vmul.u32 3, %v188_v4  ;;  %s970_s25 = scalar_lea.vmem %s1056_s3, %s864_s19 }
  0x11   : > { %181 = vperm.xlu0 %886, %v173_v5   ;;  %vm190_vm0 = vcmp.eq.s32.totalorder %v945_v3, %v951_v7  ;;  %vm191_vm1 = vcmp.eq.s32.totalorder %v186_v6, %v951_v7  ;;  %v962_v8 = vadd.s32 1, %v951_v7  ;;  %v965_v9 = vadd.s32 2, %v951_v7 }
  0x12   : > { %v972_v11 = vsel %vm191_vm1, 1.0, %v910_v10 }
  0x13   : > { %vm197_vm2 = vcmp.eq.s32.totalorder %v945_v3, %v962_v8  ;;  %vm198_vm3 = vcmp.eq.s32.totalorder %v186_v6, %v962_v8  ;;  %vm204_vm4 = vcmp.eq.s32.totalorder %v945_v3, %v965_v9  ;;  %vm205_vm5 = vcmp.eq.s32.totalorder %v186_v6, %v965_v9 }
  0x14   : > { %v980_v12 = vsel %vm198_vm3, 1.0, %v910_v10  ;;  %v982_v13 = vsel %vm205_vm5, 1.0, %v910_v10 }
  0x88   : > { %v984_v14 = vpop.permute.xlu0 %176 }
  0x8c   : > { %v986_v15 = vpop.permute.xlu0 %181 }
  0x8d LB: >> { %v911_v16 = vmov 0.0   ;;  %s216_s27 = smul.u32 48, %s907_s26  ;;  %vm912_vm6 = vmmov 0   ;;  %v890_v20 = vld [vmem:[%s1054_s1] sm:$0xff]   ;;  %v891_v21 = vld [vmem:[%s1054_s1 + $0x8] sm:$0xff]   ;;  %vm252_vm7 = vcmask 392192   ;;  %s907_s26 = sphi %s988_s26, %s215_s26  }
  0x8e   : >> { %812 = vmatprep.subr.bf16.mxu0 %v911_v16  ;;  %822 = vmatprep.subr.bf16.mxu1 %v911_v16  ;;  %v892_v22 = vld [vmem:[%s1054_s1 + $0x10] sm:$0xff]   ;;  %vm356_vm8 = vcmask 1040384   ;;  %v913_v23 = vmov 1.0   ;;  %vm349_vm9 = vcmask 72704   ;;  %s780_s10 = sshll.u32 %s907_s26, 4  ;;  %vm674_vm10 = vcmask 19456  }
  0x8f   : >> { %818 = vmatprep.mubr.msk.bf16.mxu0 %vm912_vm6, %v911_v16  ;;  %828 = vmatprep.mubr.msk.bf16.mxu1 %vm912_vm6, %v911_v16  ;;  %s217_s28 = sshra.s32 %s216_s27, 3  ;;  %s670_s11 = sshra.s32 %s780_s10, 3 }
  0x90   : >> { %s754_s29 = sshll.u32 %s217_s28, 2  ;;  %s783_s13 = sshll.u32 %s670_s11, 2 }
  0x91   : >> { %s220_s30 = scalar_lea.vmem %s956_s22, %s754_s29  ;;  %s673_s14 = scalar_lea.vmem %s970_s25, %s783_s13 }
  0x92   : >> { %v887_v17 = vld [vmem:[%s220_s30 + $0x10] sm:$0xff]   ;;  %v888_v18 = vld [vmem:[%s220_s30 + $0x8] sm:$0xff]   ;;  %v889_v19 = vld [vmem:[%s220_s30] sm:$0xff]   ;;  %s215_s26 = sadd.s32 1, %s907_s26  }
  0x93   : >> { %813 = vmatpush3.bf16.msra.mxu0 %v887_v17  ;;  %823 = vmatpush3.bf16.msra.mxu1 %v887_v17  ;;  %p212_p4 = scmp.ge.s32.totalorder %s215_s26, 3  }
  0x94   : >> { %814 = vmatprep.subr.bf16.mxu0 %v911_v16  ;;  %824 = vmatprep.subr.bf16.mxu1 %v911_v16 }
  0x97   : >> { %815 = vmatpush3.bf16.msra.mxu0 %v888_v18  ;;  %825 = vmatpush3.bf16.msra.mxu1 %v888_v18 }
  0x98   : >> { %816 = vmatprep.subr.bf16.mxu0 %v911_v16  ;;  %826 = vmatprep.subr.bf16.mxu1 %v911_v16 }
  0x9b   : >> { %817 = vmatpush3.bf16.msra.mxu0 %v889_v19  ;;  %827 = vmatpush3.bf16.msra.mxu1 %v889_v19 }
  0x9c   : >> { %846 = vmatprep.subr.bf16.mxu0 %v911_v16  ;;  %832 = vmatprep.subr.msk.mxu1 %vm356_vm8, %v980_v12 }
  0x9e   : >> { %819 = vmatmul.mubr.msk.bf16.vlgmr.msra.gmra.mxu0 %vm252_vm7, %v890_v20  ;;  %829 = vmatmul.mubr.msk.bf16.vlgmr.msra.gmra.mxu1 %vm252_vm7, %v891_v21 }
  0x9f   : >> { %847 = vmatpush3.bf16.msra.mxu0 %v887_v17  ;;  %852 = vmatprep.mubr.msk.bf16.mxu0 %vm912_vm6, %v911_v16 }
  0xa0   : >> { %848 = vmatprep.subr.bf16.mxu0 %v911_v16  ;;  %833 = vmatpush3.msk.msra.mxu1 %vm356_vm8, %v980_v12 }
  0xa1   : >> { %834 = vmatprep.subr.msk.mxu1 %vm197_vm2, %v913_v23 }
  0xa2   : >> { %835 = vmatpush3.msk.msra.mxu1 %vm197_vm2, %v913_v23 }
  0xa3   : >> { %849 = vmatpush3.bf16.msra.mxu0 %v888_v18  ;;  %839 = vmatprep.subr.msk.mxu1 %vm356_vm8, %v972_v11 }
  0xa4   : >> { %850 = vmatprep.subr.bf16.mxu0 %v911_v16 }
  0xa7   : >> { %851 = vmatpush3.bf16.msra.mxu0 %v889_v19 }
  0xaa   : >> { %853 = vmatmul.mubr.msk.bf16.vlgmr.msra.gmra.mxu0 %vm252_vm7, %v892_v22 }
 0x15e   : >> { %v290_v24 = vpop.f32.mrf.mxu0  ;;  %v342_v25 = vpop.f32.mrf.mxu1 }
 0x15f   : >> { %836 = vmatprep.mubr.msk.f32.mxu1 %vm349_vm9, %v342_v25 }
 0x160   : >> { %v820_v26 = vpop.f32.mrf.mxu0  ;;  %v830_v27 = vpop.f32.mrf.mxu1 }
 0x162   : >> { %v293_v28 = vpop.f32.mrf.mxu0  ;;  %v345_v29 = vpop.f32.mrf.mxu1 }
 0x163   : >> { %837 = vmatmul.mubr.msk.f32.vlgmr.msra.gmra.mxu1 %vm349_vm9, %v345_v29 }
 0x164   : >> { %v821_v30 = vpop.f32.mrf.mxu0  ;;  %v831_v31 = vpop.f32.mrf.mxu1  ;;  %840 = vmatpush3.msk.msra.mxu1 %vm356_vm8, %v972_v11  ;;  %843 = vmatprep.mubr.msk.f32.mxu1 %vm349_vm9, %v290_v24 }
 0x165   : >> { %841 = vmatprep.subr.msk.mxu1 %vm190_vm0, %v913_v23 }
 0x166   : >> { %842 = vmatpush3.msk.msra.mxu1 %vm190_vm0, %v913_v23 }
 0x167   : >> { %844 = vmatmul.mubr.msk.f32.vlgmr.msra.gmra.mxu1 %vm349_vm9, %v293_v28  ;;  %856 = vmatprep.subr.msk.mxu1 %vm356_vm8, %v982_v13 }
 0x168   : >> { %857 = vmatpush3.msk.msra.mxu1 %vm356_vm8, %v982_v13 }
 0x169   : >> { %858 = vmatprep.subr.msk.mxu1 %vm204_vm4, %v913_v23 }
 0x16a   : >> { %v564_v32 = vpop.f32.mrf.mxu0  ;;  %859 = vmatpush3.msk.msra.mxu1 %vm204_vm4, %v913_v23 }
 0x16b   : >> { %860 = vmatprep.mubr.msk.f32.mxu1 %vm349_vm9, %v564_v32 }
 0x16c   : >> { %v854_v33 = vpop.f32.mrf.mxu0 }
 0x16e   : >> { %v567_v34 = vpop.f32.mrf.mxu0 }
 0x16f   : >> { %861 = vmatmul.mubr.msk.f32.vlgmr.msra.gmra.mxu1 %vm349_vm9, %v567_v34 }
 0x170   : >> { %v855_v35 = vpop.f32.mrf.mxu0 }
 0x223   : >> { %v838_v36 = vpop.f32.mrf.mxu1 }
 0x225   : >> { %v426_v37 = vpop.f32.mrf.mxu1 }
 0x227   : >> { %v845_v38 = vpop.f32.mrf.mxu1 }
 0x228   : >> { %v516_v40 = vadd.f32 %v845_v38, %v838_v36 }
 0x229   : >> { %v510_v39 = vpop.f32.mrf.mxu1 }
 0x22a   : >> { %v511_v42 = vadd.f32 %v510_v39, %v426_v37 }
 0x22f   : >> { %v862_v41 = vpop.f32.mrf.mxu1 }
 0x230   : >> { %v656_v43 = vadd.f32 %v862_v41, %v516_v40 }
 0x231   : >> { %v646_v44 = vpop.f32.mrf.mxu1 }
 0x232   : >> { %v658_v45 = vadd.f32 %v656_v43, %v986_v15  ;;  %v655_v46 = vadd.f32 %v646_v44, %v511_v42 }
 0x234   : >> { %v660_v47 = vmax.f32 %v658_v45, 0.0  ;;  %v657_v48 = vadd.f32 %v655_v46, %v984_v14 }
 0x236   : >> { %v787_v49 = vpack.c.bf16 %v660_v47, %v660_v47  ;;  %v659_v50 = vmax.f32 %v657_v48, 0.0  ;;  %214 = sbr.rel (!%p212_p4) target bundleno = 141 (0x8d), region = 73 }
 0x238   : >> { %676 = vst.msk [vmem:[%s673_s14 + $0x4] sm:$0xf] %vm674_vm10, %v787_v49  ;;  %v786_v51 = vpack.c.bf16 %v659_v50, %v659_v50 }
 0x23a   : >> { %675 = vst.msk [vmem:[%s673_s14] sm:$0xf] %vm674_vm10, %v786_v51 }
 0x23b PF: > { %s13_s12 = sadd.s32 1, %s903_s12  }
 0x23c   : > { %p10_p5 = scmp.ge.s32.totalorder %s13_s12, 4  }
 0x23e   :  { %12 = sbr.rel (!%p10_p5) target bundleno = 1 (0x1), region = 84 }

// kernel: forward.31
= control target key start
LH: loop header
LB: loop body
LE: loop exit
PB: predicated region body
PF: predicated region fallthrough
CT: control target
= control target key end

     0   :  { %v182_v1 = vmov 0.0   ;;  %vm51_vm0 = vcmask 130048   ;;  %s270_s0 = inlined_call_operand.vmem [shape: f32[2,144], index: 0, kind: input, shape index: {}]   ;;  %s271_s1 = inlined_call_operand.vmem [shape: f32[144,3], index: 1, kind: input, shape index: {}]   ;;  %s272_s2 = inlined_call_operand.vmem [shape: f32[1,3], index: 2, kind: input, shape index: {}]   ;;  %s273_s3 = inlined_call_operand.hbm [shape: f32[2,3], index: 3, kind: output, shape index: {}]  }
   0x1   :  { %v31_v0 = vld [vmem:[%s271_s1 + $0x78] sm:$0xff]  ;;  %54 = vmatprep.subr.mxu0 %v182_v1  ;;  %v30_v2 = vld [vmem:[%s271_s1 + $0x70] sm:$0xff]  ;;  %v29_v3 = vld [vmem:[%s271_s1 + $0x68] sm:$0xff] }
   0x2   :  { %55 = vmatpush1.msra.mxu0 %v31_v0  ;;  %v28_v4 = vld [vmem:[%s271_s1 + $0x60] sm:$0xff]  ;;  %v27_v6 = vld [vmem:[%s271_s1 + $0x58] sm:$0xff] }
   0x3   :  { %56 = vmatprep.subr.mxu0 %v182_v1  ;;  %v152_v5 = vld.sshfl [vmem:[%s270_s0] sm:$0x33 pattern:$0x76325410] }
   0x4   :  { %57 = vmatpush1.msra.mxu0 %v30_v2  ;;  %v49_v7 = vcombine.high %v152_v5, %v152_v5 }
   0x5   :  { %58 = vmatprep.subr.mxu0 %v182_v1 }
   0x6   :  { %59 = vmatpush1.msra.mxu0 %v29_v3 }
   0x7   :  { %60 = vmatprep.subr.mxu0 %v182_v1 }
   0x8   :  { %8 = vsyncpa [#allocation3], 0  ;;  %61 = vmatpush1.msra.mxu0 %v28_v4  ;;  %v26_v8 = vld [vmem:[%s271_s1 + $0x50] sm:$0xff]  ;;  %153 = vmatprep.mubr.msk.f32.mxu0 %vm51_vm0, %v49_v7  ;;  %v25_v9 = vld [vmem:[%s271_s1 + $0x48] sm:$0xff]  ;;  %vm124_vm1 = vcmask 17408  }
   0x9   :  { %62 = vmatprep.subr.mxu0 %v182_v1  ;;  %v24_v10 = vld [vmem:[%s271_s1 + $0x40] sm:$0xff]  ;;  %v23_v11 = vld [vmem:[%s271_s1 + $0x38] sm:$0xff]  ;;  %v22_v12 = vld [vmem:[%s271_s1 + $0x30] sm:$0xff] }
   0xa   :  { %63 = vmatpush1.msra.mxu0 %v27_v6  ;;  %v21_v13 = vld [vmem:[%s271_s1 + $0x28] sm:$0xff]  ;;  %v20_v14 = vld [vmem:[%s271_s1 + $0x20] sm:$0xff]  ;;  %v19_v15 = vld [vmem:[%s271_s1 + $0x18] sm:$0xff] }
   0xb   :  { %64 = vmatprep.subr.mxu0 %v182_v1  ;;  %v18_v16 = vld [vmem:[%s271_s1 + $0x10] sm:$0xff]  ;;  %v17_v17 = vld [vmem:[%s271_s1 + $0x8] sm:$0xff]  ;;  %v16_v18 = vld [vmem:[%s271_s1] sm:$0xff] }
   0xc   :  { %65 = vmatpush1.msra.mxu0 %v26_v8  ;;  %v33_v19 = vld [vmem:[%s271_s1 + $0x88] sm:$0xff]  ;;  %v32_v20 = vld [vmem:[%s271_s1 + $0x80] sm:$0xff]  ;;  %s183_s1 = smov [#allocation2]  }
   0xd   :  { %66 = vmatprep.subr.mxu0 %v182_v1  ;;  %v151_v21 = vld [vmem:[%s272_s2] ss:$0 sm:$0xff]  ;;  %s143_s24 = sshll.u32 %s183_s1, 4  ;;  %s144_s24 = int_to_ptr.vmem [resolvable:$true] %s143_s24 }
   0xe   :  { %67 = vmatpush1.msra.mxu0 %v25_v9  ;;  %s160_s2 = scalar_lea.vmem %s144_s24, 32  ;;  %p165_p1 = scmp.lt.s32.totalorder %s144_s24, %s144_s24 }
   0xf   :  { %68 = vmatprep.subr.mxu0 %v182_v1  ;;  %p161_p0 = scmp.ne.s32.totalorder %s144_s24, %s160_s2  ;;  %p166_p2 = scmp.lt.s32.totalorder %s160_s2, %s160_s2 }
  0x10   :  { %69 = vmatpush1.msra.mxu0 %v24_v10 }
  0x11   :  { %70 = vmatprep.subr.mxu0 %v182_v1  ;;  %p167_p3 = por %p166_p2, %p165_p1 }
  0x12   :  { %71 = vmatpush1.msra.mxu0 %v23_v11 }
  0x13   :  { %72 = vmatprep.subr.mxu0 %v182_v1  ;;  %p168_p4 = pnand %p167_p3, %p161_p0 }
  0x14   :  { %73 = vmatpush1.msra.mxu0 %v22_v12 }
  0x15   :  { %74 = vmatprep.subr.mxu0 %v182_v1 }
  0x16   :  { %75 = vmatpush1.msra.mxu0 %v21_v13 }
  0x17   :  { %76 = vmatprep.subr.mxu0 %v182_v1 }
  0x18   :  { %77 = vmatpush1.msra.mxu0 %v20_v14 }
  0x19   :  { %78 = vmatprep.subr.mxu0 %v182_v1 }
  0x1a   :  { %79 = vmatpush1.msra.mxu0 %v19_v15 }
  0x1b   :  { %80 = vmatprep.subr.mxu0 %v182_v1 }
  0x1c   :  { %81 = vmatpush1.msra.mxu0 %v18_v16 }
  0x1d   :  { %82 = vmatprep.subr.mxu0 %v182_v1 }
  0x1e   :  { %83 = vmatpush1.msra.mxu0 %v17_v17 }
  0x1f   :  { %84 = vmatprep.subr.mxu0 %v182_v1 }
  0x20   :  { %85 = vmatpush1.msra.mxu0 %v16_v18 }
  0x21   :  { %114 = vmatprep.subr.mxu0 %v182_v1 }
  0x22   :  { %115 = vmatpush2.msra.mxu0 %v33_v19 }
  0x23   :  { %116 = vmatprep.subr.mxu0 %v182_v1 }
  0x24   :  { %117 = vmatpush2.msra.mxu0 %v32_v20 }
  0x25   :  { %119 = vmatmul.mubr.f32.vlgmr.msra.gmra.mxu0 %v152_v5 }
  0xe5   :  { %v120_v22 = vpop.f32.mrf.mxu0 }
  0xe6   :  { %v121_v23 = vadd.f32 %v151_v21, %v120_v22 }
  0xe7   :  { %v122_v24 = vpop.f32.mrf.mxu0 }
  0xe8   :  { %v125_v25 = vsel %vm124_vm1, %v121_v23, -inf }
  0xe9   :  { %126 = vmax.xlane.f32.xlu0 %v125_v25 }
 0x172   :  { %v127_v26 = vpop.xlane.xlu0 %126 }
 0x173   :  { %v128_v27 = vsub.f32 %v121_v23, %v127_v26 }
 0x175   :  { %v129_v28 = vmul.f32 1.442695, %v128_v27 }
 0x177   :  { %156 = vpow2.f32 %v129_v28 }
 0x184   :  { %v157_v29 = vpop.eup %156 }
 0x185   :  { %v131_v30 = vsel %vm124_vm1, %v157_v29, 0.0 }
 0x186   :  { %132 = vadd.xlane.f32.xlu0 %v131_v30 }
 0x20f   :  { %v133_v31 = vpop.xlane.xlu0 %132 }
 0x210   :  { %158 = vrcp.f32 %v133_v31 }
 0x21d   :  { %v159_v32 = vpop.eup %158 }
 0x21e   :  { %v135_v33 = vmul.f32 %v159_v32, %v157_v29 }
 0x220   :  { %136 = vst.msk [vmem:[#allocation2] sm:$0x3] %vm124_vm1, %v135_v33 }
 0x221   :  { %171 = shalt.err (!%p168_p4)
}
 0x222   :  { %146 = dma.vmem_to_hbm [thread:$0]  %s144_s24, 32, %s273_s3, [#allocation3]  }
 0x223   :  { %180 = dma.done.wait [#allocation3], 32  }
 0x224   :  { %181 = vsyncadd [#allocation3], 4294967264 }
 0x225   :  { %150 = vsyncpa [#allocation3], 1 }

</bundles_post_ra>
